<compile_context>
chip_gen: v6e
topology: v6e:2x2x1
jax: 0.10.0
libtpu: 0.0.40
codegen_flags: <defaults>
</compile_context>

<pallas_src>
import math
import functools

import numpy as np
import jax
import jax.numpy as jnp
from jax import lax
from jax.experimental import pallas as pl
from jax.experimental.pallas import tpu as pltpu

EMBED_DIM = 64          # module uses 512; scaled down, still divisible by num_heads=8
NUM_HEADS = 8
FF_DIM = 4 * EMBED_DIM
TEXT_HIDDEN = 32        # stand-in for cliptext hidden size
VISION_HIDDEN = 48      # stand-in for clipvision hidden size
VOCAB = 100
PATCH = 8
LN_EPS = 1e-5
WEIGHT = 0.1            # loss mixing weight from the reference module
NEG_INF = -1e30


# ---------------------------- in-kernel helpers ----------------------------

def _layernorm(z, gamma, beta):
    """LayerNorm over the last (lane) axis, f32 math, rsqrt on the EUP."""
    mu = jnp.mean(z, axis=-1, keepdims=True)
    c = z - mu
    var = jnp.mean(c * c, axis=-1, keepdims=True)
    return c * lax.rsqrt(var + LN_EPS) * gamma + beta


def _attention_core(q_in, k_in, v_in, neg_mask,
                    wq, bq, wk, bk, wv, bv, wo, bo, *, num_heads):
    """SAM-style Attention with batches flattened into rows.

    wq/wk/wv are (D_out, D_in) (pre-transposed; softmax scale pre-folded into
    wq/bq by the wrapper) so the projections come out as (D, M): every head is
    a contiguous block of 8 sublanes -> per-head slices are whole vregs, the
    head outputs are re-assembled with a (cheap) major-axis concat, and the
    output projection is a single matmul.  `neg_mask` is a (Mq, Mk)
    block-diagonal additive mask (0 / -1e30) that keeps attention within each
    (query item, key item) pair.  All matmuls are f32 with f32 accumulation.
    """
    mq, d = q_in.shape
    hd = d // num_heads

    def proj_t(x, w, b):                                   # -> (D, M) f32
        return lax.dot_general(w, x, (((1,), (1,)), ((), ())),
                               preferred_element_type=jnp.float32) + b

    qt = proj_t(q_in, wq, bq)                              # (D, Mq)
    kt = proj_t(k_in, wk, bk)                              # (D, Mk)
    vt = proj_t(v_in, wv, bv)                              # (D, Mk)

    head_outs = []
    for h in range(num_heads):                             # static loop, hd=8
        sl = slice(h * hd, (h + 1) * hd)
        qh = qt[sl, :]                                     # (hd, Mq)
        kh = kt[sl, :]                                     # (hd, Mk)
        vh = vt[sl, :]                                     # (hd, Mk)
        s = lax.dot_general(qh, kh, (((0,), (0,)), ((), ())),
                            preferred_element_type=jnp.float32) + neg_mask
        m = jnp.max(s, axis=-1, keepdims=True)
        e = jnp.exp(s - m)
        p = e * pl.reciprocal(jnp.sum(e, axis=-1, keepdims=True), approx=True)
        head_outs.append(
            lax.dot_general(vh, p, (((1,), (1,)), ((), ())),
                            preferred_element_type=jnp.float32))   # (hd, Mq)
    ot = jnp.concatenate(head_outs, axis=0)                # (D, Mq) - sublane concat
    return lax.dot_general(ot, wo, (((0,), (0,)), ((), ())),
                           preferred_element_type=jnp.float32) + bo  # (Mq, D)


# ---------------------------- Pallas kernels ----------------------------

def _self_branch_kernel(x_ref, pe_ref, mask_ref, wm_ref,
                        wq_ref, bq_ref, wk_ref, bk_ref, wv_ref, bv_ref,
                        wo_ref, bo_ref, g_ref, b_ref, o_ref, *, num_heads):
    """mlp projection -> self attention -> residual + LayerNorm (one branch)."""
    hs = jnp.dot(x_ref[...], wm_ref[...],
                 preferred_element_type=jnp.float32)        # (M, D)
    qk_in = hs + pe_ref[...]
    attn = _attention_core(qk_in, qk_in, hs, mask_ref[...],
                           wq_ref[...], bq_ref[...], wk_ref[...], bk_ref[...],
                           wv_ref[...], bv_ref[...], wo_ref[...], bo_ref[...],
                           num_heads=num_heads)
    o_ref[...] = _layernorm(hs + attn, g_ref[...], b_ref[...])


def _cross_branch_kernel(xq_ref, qpe_ref, xkv_ref, kpe_ref, mask_ref,
                         wq_ref, bq_ref, wk_ref, bk_ref, wv_ref, bv_ref,
                         wo_ref, bo_ref, ga_ref, ba_ref,
                         w1_ref, b1_ref, w2_ref, b2_ref, gf_ref, bf_ref,
                         o_ref, *, num_heads):
    """cross attention -> LN -> FFN(ReLU) -> residual LN (one modality side)."""
    xq = xq_ref[...]
    xkv = xkv_ref[...]
    attn = _attention_core(xq + qpe_ref[...], xkv + kpe_ref[...], xkv, mask_ref[...],
                           wq_ref[...], bq_ref[...], wk_ref[...], bk_ref[...],
                           wv_ref[...], bv_ref[...], wo_ref[...], bo_ref[...],
                           num_heads=num_heads)
    h = _layernorm(xq + attn, ga_ref[...], ba_ref[...])
    ff = jnp.dot(h, w1_ref[...],
                 preferred_element_type=jnp.float32) + b1_ref[...]
    ff = jnp.maximum(ff, 0.0)
    ff = jnp.dot(ff, w2_ref[...],
                 preferred_element_type=jnp.float32) + b2_ref[...]
    o_ref[...] = _layernorm(ff + h, gf_ref[...], bf_ref[...])


# ---------------------------- wrappers ----------------------------

def _zero_map(i, *, n):
    return (0,) * n


def _call_full(kernel, out_shape, args):
    """Single-block pallas_call: whole (tiny) problem resident in VMEM."""
    return pl.pallas_call(
        kernel,
        out_shape=jax.ShapeDtypeStruct(out_shape, jnp.float32),
        grid=(1,),
        in_specs=[pl.BlockSpec(a.shape, functools.partial(_zero_map, n=a.ndim))
                  for a in args],
        out_specs=pl.BlockSpec(out_shape, functools.partial(_zero_map, n=len(out_shape))),
        compiler_params=pltpu.CompilerParams(dimension_semantics=("arbitrary",)),
    )(*args)
    # TODO(synk): at real model size (D=512, S=197) add an M-tiled "parallel"
    # grid axis, switch activations/weights to bf16 MXU operands, and raise
    # vmem_limit_bytes so v7x's second TensorCore is used.


def _batch_mask(bq, nq, bk, nk):
    """Block-diagonal additive mask: query of item i only sees keys of item i."""
    rb = np.repeat(np.arange(bq), nq)
    cb = np.repeat(np.arange(bk), nk)
    return jnp.asarray(np.where(rb[:, None] == cb[None, :], 0.0, NEG_INF),
                       dtype=jnp.float32)


def _attn_kernel_params(p):
    """Kernel-ready attention params: transposed f32 weights, scale folded in q."""
    d = p['wq'].shape[0]
    scale = 1.0 / math.sqrt(d // NUM_HEADS)
    f32 = jnp.float32
    return (
        (p['wq'] * scale).T.astype(f32), (p['bq'] * scale).reshape(d, 1).astype(f32),
        p['wk'].T.astype(f32), p['bk'].reshape(d, 1).astype(f32),
        p['wv'].T.astype(f32), p['bv'].reshape(d, 1).astype(f32),
        p['wo'].astype(f32), p['bo'].reshape(1, d).astype(f32),
    )


def self_branch(x_hid, pe, w_mlp, attn_p, ln):
    """Fused: mlp(x) -> self_attn(mlp+pe, mlp+pe, mlp) -> LN(mlp + attn)."""
    B, N, Hin = x_hid.shape
    D = w_mlp.shape[1]
    M = B * N
    gamma, beta = ln
    args = (x_hid.reshape(M, Hin).astype(jnp.float32),
            pe.reshape(M, D).astype(jnp.float32),
            _batch_mask(B, N, B, N),
            w_mlp.astype(jnp.float32),
            *_attn_kernel_params(attn_p),
            gamma.reshape(1, D).astype(jnp.float32),
            beta.reshape(1, D).astype(jnp.float32))
    kern = functools.partial(_self_branch_kernel, num_heads=NUM_HEADS)
    return _call_full(kern, (M, D), args).reshape(B, N, D)


def cross_branch(xq, qpe, xkv, kpe, attn_p, ln_attn, ffn_p, ln_ffn):
    """Fused: cross_attn -> LN -> FFN -> LN for one modality side."""
    Bq, Nq, D = xq.shape
    Bk, Nk, _ = xkv.shape
    Mq, Mk = Bq * Nq, Bk * Nk
    H = ffn_p['w1'].shape[1]
    ga, ba = ln_attn
    gf, bfb = ln_ffn
    args = (xq.reshape(Mq, D).astype(jnp.float32),
            qpe.reshape(Mq, D).astype(jnp.float32),
            xkv.reshape(Mk, D).astype(jnp.float32),
            kpe.reshape(Mk, D).astype(jnp.float32),
            _batch_mask(Bq, Nq, Bk, Nk),
            *_attn_kernel_params(attn_p),
            ga.reshape(1, D).astype(jnp.float32), ba.reshape(1, D).astype(jnp.float32),
            ffn_p['w1'].astype(jnp.float32), ffn_p['b1'].reshape(1, H).astype(jnp.float32),
            ffn_p['w2'].astype(jnp.float32), ffn_p['b2'].reshape(1, D).astype(jnp.float32),
            gf.reshape(1, D).astype(jnp.float32), bfb.reshape(1, D).astype(jnp.float32))
    kern = functools.partial(_cross_branch_kernel, num_heads=NUM_HEADS)
    return _call_full(kern, (Mq, D), args).reshape(Bq, Nq, D)


# ---------------------------- parameters ----------------------------

def init_params(key):
    keys = iter(jax.random.split(key, 64))

    def dense(in_dim, out_dim, bias=True, std=0.02):
        w = jax.random.normal(next(keys), (in_dim, out_dim), jnp.float32) * std
        b = jnp.zeros((out_dim,), jnp.float32) if bias else None
        return w, b

    def attn_params():
        p = {}
        for name in ('q', 'k', 'v', 'o'):
            w, b = dense(EMBED_DIM, EMBED_DIM)
            p['w' + name] = w
            p['b' + name] = b
        return p

    params = {}
    params['mlp_vision'], _ = dense(VISION_HIDDEN, EMBED_DIM, bias=False)
    params['mlp_text'], _ = dense(TEXT_HIDDEN, EMBED_DIM, bias=False)
    params['self_attn_vision'] = attn_params()
    params['self_attn_text'] = attn_params()
    params['cross_attn_vision'] = attn_params()
    params['cross_attn_text'] = attn_params()
    params['image_pos_emb'] = jax.random.normal(next(keys), (197, EMBED_DIM), jnp.float32) * 0.02
    params['text_pos_emb'] = jax.random.normal(next(keys), (77, EMBED_DIM), jnp.float32) * 0.02
    for i in range(1, 7):
        params[f'norm{i}'] = (jnp.ones((EMBED_DIM,), jnp.float32),
                              jnp.zeros((EMBED_DIM,), jnp.float32))
    for ffname in ('feed_forward1', 'feed_forward2'):
        w1, b1 = dense(EMBED_DIM, FF_DIM)
        w2, b2 = dense(FF_DIM, EMBED_DIM)
        params[ffname] = {'w1': w1, 'b1': b1, 'w2': w2, 'b2': b2}
    params['itm_head'] = dense(EMBED_DIM, 2)
    params['logit_scale'] = jnp.asarray(np.log(1.0 / 0.07), jnp.float32)
    # synthetic backbone substitutes
    params['text_token_emb'] = jax.random.normal(next(keys), (VOCAB, TEXT_HIDDEN), jnp.float32) * 0.02
    params['patch_proj'] = jax.random.normal(next(keys), (3 * PATCH * PATCH, VISION_HIDDEN),
                                             jnp.float32) * 0.02
    params['cls_token'] = jax.random.normal(next(keys), (VISION_HIDDEN,), jnp.float32) * 0.02
    return params


# ---------------------------- forward ----------------------------

def cross_entropy(logits, labels):
    logp = jax.nn.log_softmax(logits, axis=-1)
    return -jnp.mean(logp[jnp.arange(logits.shape[0]), labels])


def forward(params, input_ids, pixel_values, attention_mask):
    del attention_mask  # only consumed by the (substituted) text backbone in the reference
    B, T = input_ids.shape
    D = EMBED_DIM

    # TODO(synk): HF CLIPText/VisionModelWithProjection backbones replaced by
    # deterministic synthetic encoders (token-embedding lookup / patch projection).
    text_last = params['text_token_emb'][input_ids]                    # (B, T, TEXT_HIDDEN)
    C, Himg, Wimg = pixel_values.shape[1:]
    gh, gw = Himg // PATCH, Wimg // PATCH
    patches = pixel_values.reshape(B, C, gh, PATCH, gw, PATCH)
    patches = patches.transpose(0, 2, 4, 1, 3, 5).reshape(B, gh * gw, C * PATCH * PATCH)
    patch_tok = jnp.einsum('bnp,pv->bnv', patches, params['patch_proj'])
    cls = jnp.broadcast_to(params['cls_token'], (B, 1, VISION_HIDDEN))
    vision_last = jnp.concatenate([cls, patch_tok], axis=1)            # (B, S, VISION_HIDDEN)
    S = vision_last.shape[1]

    image_pe = jnp.broadcast_to(params['image_pos_emb'][:S][None], (B, S, D))
    text_pe = jnp.broadcast_to(params['text_pos_emb'][:T][None], (B, T, D))

    # ---- fused unimodal branches (one pallas_call each) ----
    uvo = self_branch(vision_last, image_pe, params['mlp_vision'],
                      params['self_attn_vision'], params['norm1'])     # (B, S, D)
    uto = self_branch(text_last, text_pe, params['mlp_text'],
                      params['self_attn_text'], params['norm2'])       # (B, T, D)

    # ---- CLIP loss (world_size == 1 path); (B,B) matmuls stay in XLA ----
    uni_vision_embeds = uvo[:, 0, :]
    eos_idx = jnp.argmax(input_ids.astype(jnp.int32), axis=-1)
    uni_text_embeds = uto[jnp.arange(B), eos_idx]
    logit_scale = jnp.exp(params['logit_scale'])
    logits_per_image = logit_scale * (uni_vision_embeds @ uni_text_embeds.T)
    logits_per_text = logit_scale * (uni_text_embeds @ uni_vision_embeds.T)
    labels = jnp.arange(B)
    cliploss = (cross_entropy(logits_per_image, labels) +
                cross_entropy(logits_per_text, labels)) / 2.0

    # ---- hard-negative mining (plain XLA: topk / gathers / concats) ----
    _, idx_text = jax.lax.top_k(logits_per_image, 2)
    _, idx_image = jax.lax.top_k(logits_per_text, 2)
    neg_t = idx_text[:, 1]
    neg_i = idx_image[:, 1]
    text_neg = uto[neg_t]
    image_neg = uvo[neg_i]
    text_pe_neg = text_pe[neg_t]
    image_pe_neg = image_pe[neg_i]
    uvo_all = jnp.concatenate([uvo, uvo, image_neg], axis=0)           # (3B, S, D)
    uto_all = jnp.concatenate([uto, text_neg, uto], axis=0)            # (3B, T, D)
    image_pe_all = jnp.concatenate([image_pe, image_pe, image_pe_neg], axis=0)
    text_pe_all = jnp.concatenate([text_pe, text_pe_neg, text_pe], axis=0)
    input_ids_all = jnp.concatenate([input_ids, input_ids[neg_t], input_ids[neg_i]], axis=0)

    # ---- fused cross attention + LN + FFN + LN (one pallas_call per side) ----
    img_cross = cross_branch(uvo_all, image_pe_all, uto_all, text_pe_all,
                             params['cross_attn_vision'], params['norm3'],
                             params['feed_forward1'], params['norm5'])  # (3B, S, D)
    txt_cross = cross_branch(uto_all, text_pe_all, uvo_all, image_pe_all,
                             params['cross_attn_text'], params['norm4'],
                             params['feed_forward2'], params['norm6'])  # (3B, T, D)

    # ---- ITM head + losses (tiny (3B,2) matmul stays in XLA) ----
    image_embeds = img_cross[:, 0, :]
    eos_all = jnp.argmax(input_ids_all.astype(jnp.int32), axis=-1)
    text_embeds = txt_cross[jnp.arange(3 * B), eos_all]
    image_embeds = image_embeds / jnp.linalg.norm(image_embeds, axis=-1, keepdims=True)
    text_embeds = text_embeds / jnp.linalg.norm(text_embeds, axis=-1, keepdims=True)
    vl_embeds = image_embeds * text_embeds
    wi, bi = params['itm_head']
    vl_output = vl_embeds @ wi + bi                                     # (3B, 2)
    itm_labels = jnp.concatenate([jnp.ones((B,), jnp.int32),
                                  jnp.zeros((2 * B,), jnp.int32)], axis=0)
    loss_itm = cross_entropy(vl_output, itm_labels)

    loss = WEIGHT * cliploss + (1.0 - WEIGHT) * loss_itm
    return {'loss': loss,
            'text_embeds': text_embeds[:B],
            'image_embeds': image_embeds[:B],
            'cliploss': cliploss,
            'itmloss': loss_itm}


# ---------------------------- main ----------------------------

if __name__ == "__main__":
    key = jax.random.PRNGKey(0)
    kp, ki, kpix = jax.random.split(key, 3)
    params = init_params(kp)

    B, T = 2, 8
    input_ids = jax.random.randint(ki, (B, T - 1), 1, 50)
    eos_col = jnp.full((B, 1), VOCAB - 1, dtype=input_ids.dtype)       # unique max = EOS
    input_ids = jnp.concatenate([input_ids, eos_col], axis=1).astype(jnp.int32)
    pixel_values = jax.random.normal(kpix, (B, 3, 16, 16), jnp.float32)  # NCHW like PyTorch
    attention_mask = jnp.ones((B, T), jnp.int32)

    out = jax.jit(forward)(params, input_ids, pixel_values, attention_mask)
    out = jax.tree_util.tree_map(jax.block_until_ready, out)
    assert out['text_embeds'].shape == (B, EMBED_DIM)
    assert out['image_embeds'].shape == (B, EMBED_DIM)
    assert jnp.isfinite(out['loss'])
    print("KERNEL_OK")
</pallas_src>

<mosaic_0001>
module attributes {stable_mosaic.version = 11 : i64} {
  func.func @_self_branch_kernel(%arg0: i32, %arg1: memref<10x48xf32, #tpu.memory_space<vmem>>, %arg2: memref<10x64xf32, #tpu.memory_space<vmem>>, %arg3: memref<10x10xf32, #tpu.memory_space<vmem>>, %arg4: memref<48x64xf32, #tpu.memory_space<vmem>>, %arg5: memref<64x64xf32, #tpu.memory_space<vmem>>, %arg6: memref<64x1xf32, #tpu.memory_space<vmem>>, %arg7: memref<64x64xf32, #tpu.memory_space<vmem>>, %arg8: memref<64x1xf32, #tpu.memory_space<vmem>>, %arg9: memref<64x64xf32, #tpu.memory_space<vmem>>, %arg10: memref<64x1xf32, #tpu.memory_space<vmem>>, %arg11: memref<64x64xf32, #tpu.memory_space<vmem>>, %arg12: memref<1x64xf32, #tpu.memory_space<vmem>>, %arg13: memref<1x64xf32, #tpu.memory_space<vmem>>, %arg14: memref<1x64xf32, #tpu.memory_space<vmem>>, %arg15: memref<10x64xf32, #tpu.memory_space<vmem>>) attributes {dimension_semantics = [#tpu.dimension_semantics<arbitrary>], iteration_bounds = array<i64: 1>, scalar_prefetch = 0 : i64, scratch_operands = 0 : i64, tpu.core_type = #tpu.core_type<tc>, window_params = [{pipeline_mode = #tpu.pipeline_mode<synchronous>, transform_indices = @transform_0, window_bounds = array<i64: 10, 48>}, {pipeline_mode = #tpu.pipeline_mode<synchronous>, transform_indices = @transform_1, window_bounds = array<i64: 10, 64>}, {pipeline_mode = #tpu.pipeline_mode<synchronous>, transform_indices = @transform_2, window_bounds = array<i64: 10, 10>}, {pipeline_mode = #tpu.pipeline_mode<synchronous>, transform_indices = @transform_3, window_bounds = array<i64: 48, 64>}, {pipeline_mode = #tpu.pipeline_mode<synchronous>, transform_indices = @transform_4, window_bounds = array<i64: 64, 64>}, {pipeline_mode = #tpu.pipeline_mode<synchronous>, transform_indices = @transform_5, window_bounds = array<i64: 64, 1>}, {pipeline_mode = #tpu.pipeline_mode<synchronous>, transform_indices = @transform_6, window_bounds = array<i64: 64, 64>}, {pipeline_mode = #tpu.pipeline_mode<synchronous>, transform_indices = @transform_7, window_bounds = array<i64: 64, 1>}, {pipeline_mode = #tpu.pipeline_mode<synchronous>, transform_indices = @transform_8, window_bounds = array<i64: 64, 64>}, {pipeline_mode = #tpu.pipeline_mode<synchronous>, transform_indices = @transform_9, window_bounds = array<i64: 64, 1>}, {pipeline_mode = #tpu.pipeline_mode<synchronous>, transform_indices = @transform_10, window_bounds = array<i64: 64, 64>}, {pipeline_mode = #tpu.pipeline_mode<synchronous>, transform_indices = @transform_11, window_bounds = array<i64: 1, 64>}, {pipeline_mode = #tpu.pipeline_mode<synchronous>, transform_indices = @transform_12, window_bounds = array<i64: 1, 64>}, {pipeline_mode = #tpu.pipeline_mode<synchronous>, transform_indices = @transform_13, window_bounds = array<i64: 1, 64>}, {pipeline_mode = #tpu.pipeline_mode<synchronous>, transform_indices = @transform_14, window_bounds = array<i64: 10, 64>}]} {
    %c0 = arith.constant 0 : index
    %c0_0 = arith.constant 0 : index
    %0 = vector.load %arg1[%c0, %c0_0] : memref<10x48xf32, #tpu.memory_space<vmem>>, vector<10x48xf32>
    %c0_1 = arith.constant 0 : index
    %c0_2 = arith.constant 0 : index
    %1 = vector.load %arg4[%c0_1, %c0_2] : memref<48x64xf32, #tpu.memory_space<vmem>>, vector<48x64xf32>
    %cst = arith.constant dense<0.000000e+00> : vector<10x64xf32>
    %2 = tpu.matmul %0, %1, %cst {dimension_numbers = #tpu.dot_dimension_numbers<[1], [0], [0], [1], [0, 0, 1, 1], [], []>} : vector<10x48xf32>, vector<48x64xf32>, vector<10x64xf32> -> vector<10x64xf32>
    %c0_3 = arith.constant 0 : index
    %c0_4 = arith.constant 0 : index
    %3 = vector.load %arg2[%c0_3, %c0_4] : memref<10x64xf32, #tpu.memory_space<vmem>>, vector<10x64xf32>
    %4 = arith.addf %2, %3 : vector<10x64xf32>
    %c0_5 = arith.constant 0 : index
    %c0_6 = arith.constant 0 : index
    %5 = vector.load %arg3[%c0_5, %c0_6] : memref<10x10xf32, #tpu.memory_space<vmem>>, vector<10x10xf32>
    %c0_7 = arith.constant 0 : index
    %c0_8 = arith.constant 0 : index
    %6 = vector.load %arg5[%c0_7, %c0_8] : memref<64x64xf32, #tpu.memory_space<vmem>>, vector<64x64xf32>
    %c0_9 = arith.constant 0 : index
    %c0_10 = arith.constant 0 : index
    %7 = vector.load %arg6[%c0_9, %c0_10] : memref<64x1xf32, #tpu.memory_space<vmem>>, vector<64x1xf32>
    %c0_11 = arith.constant 0 : index
    %c0_12 = arith.constant 0 : index
    %8 = vector.load %arg7[%c0_11, %c0_12] : memref<64x64xf32, #tpu.memory_space<vmem>>, vector<64x64xf32>
    %c0_13 = arith.constant 0 : index
    %c0_14 = arith.constant 0 : index
    %9 = vector.load %arg8[%c0_13, %c0_14] : memref<64x1xf32, #tpu.memory_space<vmem>>, vector<64x1xf32>
    %c0_15 = arith.constant 0 : index
    %c0_16 = arith.constant 0 : index
    %10 = vector.load %arg9[%c0_15, %c0_16] : memref<64x64xf32, #tpu.memory_space<vmem>>, vector<64x64xf32>
    %c0_17 = arith.constant 0 : index
    %c0_18 = arith.constant 0 : index
    %11 = vector.load %arg10[%c0_17, %c0_18] : memref<64x1xf32, #tpu.memory_space<vmem>>, vector<64x1xf32>
    %c0_19 = arith.constant 0 : index
    %c0_20 = arith.constant 0 : index
    %12 = vector.load %arg11[%c0_19, %c0_20] : memref<64x64xf32, #tpu.memory_space<vmem>>, vector<64x64xf32>
    %c0_21 = arith.constant 0 : index
    %c0_22 = arith.constant 0 : index
    %13 = vector.load %arg12[%c0_21, %c0_22] : memref<1x64xf32, #tpu.memory_space<vmem>>, vector<1x64xf32>
    %cst_23 = arith.constant dense<0.000000e+00> : vector<64x10xf32>
    %14 = tpu.matmul %6, %4, %cst_23 {dimension_numbers = #tpu.dot_dimension_numbers<[1], [1], [0], [0], [0, 0, 1, 0], [], []>} : vector<64x64xf32>, vector<10x64xf32>, vector<64x10xf32> -> vector<64x10xf32>
    %15 = vector.broadcast %7 : vector<64x1xf32> to vector<64x10xf32>
    %16 = arith.addf %14, %15 : vector<64x10xf32>
    %cst_24 = arith.constant dense<0.000000e+00> : vector<64x10xf32>
    %17 = tpu.matmul %8, %4, %cst_24 {dimension_numbers = #tpu.dot_dimension_numbers<[1], [1], [0], [0], [0, 0, 1, 0], [], []>} : vector<64x64xf32>, vector<10x64xf32>, vector<64x10xf32> -> vector<64x10xf32>
    %18 = vector.broadcast %9 : vector<64x1xf32> to vector<64x10xf32>
    %19 = arith.addf %17, %18 : vector<64x10xf32>
    %cst_25 = arith.constant dense<0.000000e+00> : vector<64x10xf32>
    %20 = tpu.matmul %10, %2, %cst_25 {dimension_numbers = #tpu.dot_dimension_numbers<[1], [1], [0], [0], [0, 0, 1, 0], [], []>} : vector<64x64xf32>, vector<10x64xf32>, vector<64x10xf32> -> vector<64x10xf32>
    %21 = vector.broadcast %11 : vector<64x1xf32> to vector<64x10xf32>
    %22 = arith.addf %20, %21 : vector<64x10xf32>
    %23 = vector.extract_strided_slice %16 {offsets = [0, 0], sizes = [8, 10], strides = [1, 1]} : vector<64x10xf32> to vector<8x10xf32>
    %24 = vector.extract_strided_slice %19 {offsets = [0, 0], sizes = [8, 10], strides = [1, 1]} : vector<64x10xf32> to vector<8x10xf32>
    %25 = vector.extract_strided_slice %22 {offsets = [0, 0], sizes = [8, 10], strides = [1, 1]} : vector<64x10xf32> to vector<8x10xf32>
    %cst_26 = arith.constant dense<0.000000e+00> : vector<10x10xf32>
    %26 = tpu.matmul %23, %24, %cst_26 {dimension_numbers = #tpu.dot_dimension_numbers<[0], [0], [1], [1], [0, 1, 1, 1], [], []>} : vector<8x10xf32>, vector<8x10xf32>, vector<10x10xf32> -> vector<10x10xf32>
    %27 = arith.addf %26, %5 : vector<10x10xf32>
    %cst_27 = arith.constant dense<0xFF800000> : vector<10xf32>
    %28 = vector.multi_reduction <maximumf>, %27, %cst_27 [1] : vector<10x10xf32> to vector<10xf32>
    %29 = vector.shape_cast %28 : vector<10xf32> to vector<10x1xf32>
    %30 = vector.broadcast %29 : vector<10x1xf32> to vector<10x10xf32>
    %31 = arith.subf %27, %30 : vector<10x10xf32>
    %32 = math.exp %31 : vector<10x10xf32>
    %cst_28 = arith.constant dense<0.000000e+00> : vector<10xf32>
    %33 = vector.multi_reduction <add>, %32, %cst_28 [1] : vector<10x10xf32> to vector<10xf32>
    %34 = vector.shape_cast %33 : vector<10xf32> to vector<10x1xf32>
    %35 = tpu.reciprocal %34 {approx = true} : vector<10x1xf32> -> vector<10x1xf32>
    %36 = vector.broadcast %35 : vector<10x1xf32> to vector<10x10xf32>
    %37 = arith.mulf %32, %36 : vector<10x10xf32>
    %cst_29 = arith.constant dense<0.000000e+00> : vector<8x10xf32>
    %38 = tpu.matmul %25, %37, %cst_29 {dimension_numbers = #tpu.dot_dimension_numbers<[1], [1], [0], [0], [0, 0, 1, 0], [], []>} : vector<8x10xf32>, vector<10x10xf32>, vector<8x10xf32> -> vector<8x10xf32>
    %39 = vector.extract_strided_slice %16 {offsets = [8, 0], sizes = [8, 10], strides = [1, 1]} : vector<64x10xf32> to vector<8x10xf32>
    %40 = vector.extract_strided_slice %19 {offsets = [8, 0], sizes = [8, 10], strides = [1, 1]} : vector<64x10xf32> to vector<8x10xf32>
    %41 = vector.extract_strided_slice %22 {offsets = [8, 0], sizes = [8, 10], strides = [1, 1]} : vector<64x10xf32> to vector<8x10xf32>
    %cst_30 = arith.constant dense<0.000000e+00> : vector<10x10xf32>
    %42 = tpu.matmul %39, %40, %cst_30 {dimension_numbers = #tpu.dot_dimension_numbers<[0], [0], [1], [1], [0, 1, 1, 1], [], []>} : vector<8x10xf32>, vector<8x10xf32>, vector<10x10xf32> -> vector<10x10xf32>
    %43 = arith.addf %42, %5 : vector<10x10xf32>
    %cst_31 = arith.constant dense<0xFF800000> : vector<10xf32>
    %44 = vector.multi_reduction <maximumf>, %43, %cst_31 [1] : vector<10x10xf32> to vector<10xf32>
    %45 = vector.shape_cast %44 : vector<10xf32> to vector<10x1xf32>
    %46 = vector.broadcast %45 : vector<10x1xf32> to vector<10x10xf32>
    %47 = arith.subf %43, %46 : vector<10x10xf32>
    %48 = math.exp %47 : vector<10x10xf32>
    %cst_32 = arith.constant dense<0.000000e+00> : vector<10xf32>
    %49 = vector.multi_reduction <add>, %48, %cst_32 [1] : vector<10x10xf32> to vector<10xf32>
    %50 = vector.shape_cast %49 : vector<10xf32> to vector<10x1xf32>
    %51 = tpu.reciprocal %50 {approx = true} : vector<10x1xf32> -> vector<10x1xf32>
    %52 = vector.broadcast %51 : vector<10x1xf32> to vector<10x10xf32>
    %53 = arith.mulf %48, %52 : vector<10x10xf32>
    %cst_33 = arith.constant dense<0.000000e+00> : vector<8x10xf32>
    %54 = tpu.matmul %41, %53, %cst_33 {dimension_numbers = #tpu.dot_dimension_numbers<[1], [1], [0], [0], [0, 0, 1, 0], [], []>} : vector<8x10xf32>, vector<10x10xf32>, vector<8x10xf32> -> vector<8x10xf32>
    %55 = vector.extract_strided_slice %16 {offsets = [16, 0], sizes = [8, 10], strides = [1, 1]} : vector<64x10xf32> to vector<8x10xf32>
    %56 = vector.extract_strided_slice %19 {offsets = [16, 0], sizes = [8, 10], strides = [1, 1]} : vector<64x10xf32> to vector<8x10xf32>
    %57 = vector.extract_strided_slice %22 {offsets = [16, 0], sizes = [8, 10], strides = [1, 1]} : vector<64x10xf32> to vector<8x10xf32>
    %cst_34 = arith.constant dense<0.000000e+00> : vector<10x10xf32>
    %58 = tpu.matmul %55, %56, %cst_34 {dimension_numbers = #tpu.dot_dimension_numbers<[0], [0], [1], [1], [0, 1, 1, 1], [], []>} : vector<8x10xf32>, vector<8x10xf32>, vector<10x10xf32> -> vector<10x10xf32>
    %59 = arith.addf %58, %5 : vector<10x10xf32>
    %cst_35 = arith.constant dense<0xFF800000> : vector<10xf32>
    %60 = vector.multi_reduction <maximumf>, %59, %cst_35 [1] : vector<10x10xf32> to vector<10xf32>
    %61 = vector.shape_cast %60 : vector<10xf32> to vector<10x1xf32>
    %62 = vector.broadcast %61 : vector<10x1xf32> to vector<10x10xf32>
    %63 = arith.subf %59, %62 : vector<10x10xf32>
    %64 = math.exp %63 : vector<10x10xf32>
    %cst_36 = arith.constant dense<0.000000e+00> : vector<10xf32>
    %65 = vector.multi_reduction <add>, %64, %cst_36 [1] : vector<10x10xf32> to vector<10xf32>
    %66 = vector.shape_cast %65 : vector<10xf32> to vector<10x1xf32>
    %67 = tpu.reciprocal %66 {approx = true} : vector<10x1xf32> -> vector<10x1xf32>
    %68 = vector.broadcast %67 : vector<10x1xf32> to vector<10x10xf32>
    %69 = arith.mulf %64, %68 : vector<10x10xf32>
    %cst_37 = arith.constant dense<0.000000e+00> : vector<8x10xf32>
    %70 = tpu.matmul %57, %69, %cst_37 {dimension_numbers = #tpu.dot_dimension_numbers<[1], [1], [0], [0], [0, 0, 1, 0], [], []>} : vector<8x10xf32>, vector<10x10xf32>, vector<8x10xf32> -> vector<8x10xf32>
    %71 = vector.extract_strided_slice %16 {offsets = [24, 0], sizes = [8, 10], strides = [1, 1]} : vector<64x10xf32> to vector<8x10xf32>
    %72 = vector.extract_strided_slice %19 {offsets = [24, 0], sizes = [8, 10], strides = [1, 1]} : vector<64x10xf32> to vector<8x10xf32>
    %73 = vector.extract_strided_slice %22 {offsets = [24, 0], sizes = [8, 10], strides = [1, 1]} : vector<64x10xf32> to vector<8x10xf32>
    %cst_38 = arith.constant dense<0.000000e+00> : vector<10x10xf32>
    %74 = tpu.matmul %71, %72, %cst_38 {dimension_numbers = #tpu.dot_dimension_numbers<[0], [0], [1], [1], [0, 1, 1, 1], [], []>} : vector<8x10xf32>, vector<8x10xf32>, vector<10x10xf32> -> vector<10x10xf32>
    %75 = arith.addf %74, %5 : vector<10x10xf32>
    %cst_39 = arith.constant dense<0xFF800000> : vector<10xf32>
    %76 = vector.multi_reduction <maximumf>, %75, %cst_39 [1] : vector<10x10xf32> to vector<10xf32>
    %77 = vector.shape_cast %76 : vector<10xf32> to vector<10x1xf32>
    %78 = vector.broadcast %77 : vector<10x1xf32> to vector<10x10xf32>
    %79 = arith.subf %75, %78 : vector<10x10xf32>
    %80 = math.exp %79 : vector<10x10xf32>
    %cst_40 = arith.constant dense<0.000000e+00> : vector<10xf32>
    %81 = vector.multi_reduction <add>, %80, %cst_40 [1] : vector<10x10xf32> to vector<10xf32>
    %82 = vector.shape_cast %81 : vector<10xf32> to vector<10x1xf32>
    %83 = tpu.reciprocal %82 {approx = true} : vector<10x1xf32> -> vector<10x1xf32>
    %84 = vector.broadcast %83 : vector<10x1xf32> to vector<10x10xf32>
    %85 = arith.mulf %80, %84 : vector<10x10xf32>
    %cst_41 = arith.constant dense<0.000000e+00> : vector<8x10xf32>
    %86 = tpu.matmul %73, %85, %cst_41 {dimension_numbers = #tpu.dot_dimension_numbers<[1], [1], [0], [0], [0, 0, 1, 0], [], []>} : vector<8x10xf32>, vector<10x10xf32>, vector<8x10xf32> -> vector<8x10xf32>
    %87 = vector.extract_strided_slice %16 {offsets = [32, 0], sizes = [8, 10], strides = [1, 1]} : vector<64x10xf32> to vector<8x10xf32>
    %88 = vector.extract_strided_slice %19 {offsets = [32, 0], sizes = [8, 10], strides = [1, 1]} : vector<64x10xf32> to vector<8x10xf32>
    %89 = vector.extract_strided_slice %22 {offsets = [32, 0], sizes = [8, 10], strides = [1, 1]} : vector<64x10xf32> to vector<8x10xf32>
    %cst_42 = arith.constant dense<0.000000e+00> : vector<10x10xf32>
    %90 = tpu.matmul %87, %88, %cst_42 {dimension_numbers = #tpu.dot_dimension_numbers<[0], [0], [1], [1], [0, 1, 1, 1], [], []>} : vector<8x10xf32>, vector<8x10xf32>, vector<10x10xf32> -> vector<10x10xf32>
    %91 = arith.addf %90, %5 : vector<10x10xf32>
    %cst_43 = arith.constant dense<0xFF800000> : vector<10xf32>
    %92 = vector.multi_reduction <maximumf>, %91, %cst_43 [1] : vector<10x10xf32> to vector<10xf32>
    %93 = vector.shape_cast %92 : vector<10xf32> to vector<10x1xf32>
    %94 = vector.broadcast %93 : vector<10x1xf32> to vector<10x10xf32>
    %95 = arith.subf %91, %94 : vector<10x10xf32>
    %96 = math.exp %95 : vector<10x10xf32>
    %cst_44 = arith.constant dense<0.000000e+00> : vector<10xf32>
    %97 = vector.multi_reduction <add>, %96, %cst_44 [1] : vector<10x10xf32> to vector<10xf32>
    %98 = vector.shape_cast %97 : vector<10xf32> to vector<10x1xf32>
    %99 = tpu.reciprocal %98 {approx = true} : vector<10x1xf32> -> vector<10x1xf32>
    %100 = vector.broadcast %99 : vector<10x1xf32> to vector<10x10xf32>
    %101 = arith.mulf %96, %100 : vector<10x10xf32>
    %cst_45 = arith.constant dense<0.000000e+00> : vector<8x10xf32>
    %102 = tpu.matmul %89, %101, %cst_45 {dimension_numbers = #tpu.dot_dimension_numbers<[1], [1], [0], [0], [0, 0, 1, 0], [], []>} : vector<8x10xf32>, vector<10x10xf32>, vector<8x10xf32> -> vector<8x10xf32>
    %103 = vector.extract_strided_slice %16 {offsets = [40, 0], sizes = [8, 10], strides = [1, 1]} : vector<64x10xf32> to vector<8x10xf32>
    %104 = vector.extract_strided_slice %19 {offsets = [40, 0], sizes = [8, 10], strides = [1, 1]} : vector<64x10xf32> to vector<8x10xf32>
    %105 = vector.extract_strided_slice %22 {offsets = [40, 0], sizes = [8, 10], strides = [1, 1]} : vector<64x10xf32> to vector<8x10xf32>
    %cst_46 = arith.constant dense<0.000000e+00> : vector<10x10xf32>
    %106 = tpu.matmul %103, %104, %cst_46 {dimension_numbers = #tpu.dot_dimension_numbers<[0], [0], [1], [1], [0, 1, 1, 1], [], []>} : vector<8x10xf32>, vector<8x10xf32>, vector<10x10xf32> -> vector<10x10xf32>
    %107 = arith.addf %106, %5 : vector<10x10xf32>
    %cst_47 = arith.constant dense<0xFF800000> : vector<10xf32>
    %108 = vector.multi_reduction <maximumf>, %107, %cst_47 [1] : vector<10x10xf32> to vector<10xf32>
    %109 = vector.shape_cast %108 : vector<10xf32> to vector<10x1xf32>
    %110 = vector.broadcast %109 : vector<10x1xf32> to vector<10x10xf32>
    %111 = arith.subf %107, %110 : vector<10x10xf32>
    %112 = math.exp %111 : vector<10x10xf32>
    %cst_48 = arith.constant dense<0.000000e+00> : vector<10xf32>
    %113 = vector.multi_reduction <add>, %112, %cst_48 [1] : vector<10x10xf32> to vector<10xf32>
    %114 = vector.shape_cast %113 : vector<10xf32> to vector<10x1xf32>
    %115 = tpu.reciprocal %114 {approx = true} : vector<10x1xf32> -> vector<10x1xf32>
    %116 = vector.broadcast %115 : vector<10x1xf32> to vector<10x10xf32>
    %117 = arith.mulf %112, %116 : vector<10x10xf32>
    %cst_49 = arith.constant dense<0.000000e+00> : vector<8x10xf32>
    %118 = tpu.matmul %105, %117, %cst_49 {dimension_numbers = #tpu.dot_dimension_numbers<[1], [1], [0], [0], [0, 0, 1, 0], [], []>} : vector<8x10xf32>, vector<10x10xf32>, vector<8x10xf32> -> vector<8x10xf32>
    %119 = vector.extract_strided_slice %16 {offsets = [48, 0], sizes = [8, 10], strides = [1, 1]} : vector<64x10xf32> to vector<8x10xf32>
    %120 = vector.extract_strided_slice %19 {offsets = [48, 0], sizes = [8, 10], strides = [1, 1]} : vector<64x10xf32> to vector<8x10xf32>
    %121 = vector.extract_strided_slice %22 {offsets = [48, 0], sizes = [8, 10], strides = [1, 1]} : vector<64x10xf32> to vector<8x10xf32>
    %cst_50 = arith.constant dense<0.000000e+00> : vector<10x10xf32>
    %122 = tpu.matmul %119, %120, %cst_50 {dimension_numbers = #tpu.dot_dimension_numbers<[0], [0], [1], [1], [0, 1, 1, 1], [], []>} : vector<8x10xf32>, vector<8x10xf32>, vector<10x10xf32> -> vector<10x10xf32>
    %123 = arith.addf %122, %5 : vector<10x10xf32>
    %cst_51 = arith.constant dense<0xFF800000> : vector<10xf32>
    %124 = vector.multi_reduction <maximumf>, %123, %cst_51 [1] : vector<10x10xf32> to vector<10xf32>
    %125 = vector.shape_cast %124 : vector<10xf32> to vector<10x1xf32>
    %126 = vector.broadcast %125 : vector<10x1xf32> to vector<10x10xf32>
    %127 = arith.subf %123, %126 : vector<10x10xf32>
    %128 = math.exp %127 : vector<10x10xf32>
    %cst_52 = arith.constant dense<0.000000e+00> : vector<10xf32>
    %129 = vector.multi_reduction <add>, %128, %cst_52 [1] : vector<10x10xf32> to vector<10xf32>
    %130 = vector.shape_cast %129 : vector<10xf32> to vector<10x1xf32>
    %131 = tpu.reciprocal %130 {approx = true} : vector<10x1xf32> -> vector<10x1xf32>
    %132 = vector.broadcast %131 : vector<10x1xf32> to vector<10x10xf32>
    %133 = arith.mulf %128, %132 : vector<10x10xf32>
    %cst_53 = arith.constant dense<0.000000e+00> : vector<8x10xf32>
    %134 = tpu.matmul %121, %133, %cst_53 {dimension_numbers = #tpu.dot_dimension_numbers<[1], [1], [0], [0], [0, 0, 1, 0], [], []>} : vector<8x10xf32>, vector<10x10xf32>, vector<8x10xf32> -> vector<8x10xf32>
    %135 = vector.extract_strided_slice %16 {offsets = [56, 0], sizes = [8, 10], strides = [1, 1]} : vector<64x10xf32> to vector<8x10xf32>
    %136 = vector.extract_strided_slice %19 {offsets = [56, 0], sizes = [8, 10], strides = [1, 1]} : vector<64x10xf32> to vector<8x10xf32>
    %137 = vector.extract_strided_slice %22 {offsets = [56, 0], sizes = [8, 10], strides = [1, 1]} : vector<64x10xf32> to vector<8x10xf32>
    %cst_54 = arith.constant dense<0.000000e+00> : vector<10x10xf32>
    %138 = tpu.matmul %135, %136, %cst_54 {dimension_numbers = #tpu.dot_dimension_numbers<[0], [0], [1], [1], [0, 1, 1, 1], [], []>} : vector<8x10xf32>, vector<8x10xf32>, vector<10x10xf32> -> vector<10x10xf32>
    %139 = arith.addf %138, %5 : vector<10x10xf32>
    %cst_55 = arith.constant dense<0xFF800000> : vector<10xf32>
    %140 = vector.multi_reduction <maximumf>, %139, %cst_55 [1] : vector<10x10xf32> to vector<10xf32>
    %141 = vector.shape_cast %140 : vector<10xf32> to vector<10x1xf32>
    %142 = vector.broadcast %141 : vector<10x1xf32> to vector<10x10xf32>
    %143 = arith.subf %139, %142 : vector<10x10xf32>
    %144 = math.exp %143 : vector<10x10xf32>
    %cst_56 = arith.constant dense<0.000000e+00> : vector<10xf32>
    %145 = vector.multi_reduction <add>, %144, %cst_56 [1] : vector<10x10xf32> to vector<10xf32>
    %146 = vector.shape_cast %145 : vector<10xf32> to vector<10x1xf32>
    %147 = tpu.reciprocal %146 {approx = true} : vector<10x1xf32> -> vector<10x1xf32>
    %148 = vector.broadcast %147 : vector<10x1xf32> to vector<10x10xf32>
    %149 = arith.mulf %144, %148 : vector<10x10xf32>
    %cst_57 = arith.constant dense<0.000000e+00> : vector<8x10xf32>
    %150 = tpu.matmul %137, %149, %cst_57 {dimension_numbers = #tpu.dot_dimension_numbers<[1], [1], [0], [0], [0, 0, 1, 0], [], []>} : vector<8x10xf32>, vector<10x10xf32>, vector<8x10xf32> -> vector<8x10xf32>
    %151 = tpu.concatenate %38, %54, %70, %86, %102, %118, %134, %150 in 0 : vector<8x10xf32>, vector<8x10xf32>, vector<8x10xf32>, vector<8x10xf32>, vector<8x10xf32>, vector<8x10xf32>, vector<8x10xf32>, vector<8x10xf32> -> vector<64x10xf32>
    %cst_58 = arith.constant dense<0.000000e+00> : vector<10x64xf32>
    %152 = tpu.matmul %151, %12, %cst_58 {dimension_numbers = #tpu.dot_dimension_numbers<[0], [0], [1], [1], [0, 1, 1, 1], [], []>} : vector<64x10xf32>, vector<64x64xf32>, vector<10x64xf32> -> vector<10x64xf32>
    %153 = vector.broadcast %13 : vector<1x64xf32> to vector<10x64xf32>
    %154 = arith.addf %152, %153 : vector<10x64xf32>
    %155 = arith.addf %2, %154 : vector<10x64xf32>
    %c0_59 = arith.constant 0 : index
    %c0_60 = arith.constant 0 : index
    %156 = vector.load %arg13[%c0_59, %c0_60] : memref<1x64xf32, #tpu.memory_space<vmem>>, vector<1x64xf32>
    %c0_61 = arith.constant 0 : index
    %c0_62 = arith.constant 0 : index
    %157 = vector.load %arg14[%c0_61, %c0_62] : memref<1x64xf32, #tpu.memory_space<vmem>>, vector<1x64xf32>
    %cst_63 = arith.constant dense<0.000000e+00> : vector<10xf32>
    %158 = vector.multi_reduction <add>, %155, %cst_63 [1] : vector<10x64xf32> to vector<10xf32>
    %159 = vector.shape_cast %158 : vector<10xf32> to vector<10x1xf32>
    %cst_64 = arith.constant 6.400000e+01 : f32
    %160 = vector.broadcast %cst_64 : f32 to vector<10x1xf32>
    %161 = arith.divf %159, %160 : vector<10x1xf32>
    %162 = vector.broadcast %161 : vector<10x1xf32> to vector<10x64xf32>
    %163 = arith.subf %155, %162 : vector<10x64xf32>
    %164 = arith.mulf %163, %163 : vector<10x64xf32>
    %cst_65 = arith.constant dense<0.000000e+00> : vector<10xf32>
    %165 = vector.multi_reduction <add>, %164, %cst_65 [1] : vector<10x64xf32> to vector<10xf32>
    %166 = vector.shape_cast %165 : vector<10xf32> to vector<10x1xf32>
    %cst_66 = arith.constant 6.400000e+01 : f32
    %167 = vector.broadcast %cst_66 : f32 to vector<10x1xf32>
    %168 = arith.divf %166, %167 : vector<10x1xf32>
    %cst_67 = arith.constant 9.99999974E-6 : f32
    %169 = vector.broadcast %cst_67 : f32 to vector<10x1xf32>
    %170 = arith.addf %168, %169 : vector<10x1xf32>
    %171 = math.rsqrt %170 : vector<10x1xf32>
    %172 = vector.broadcast %171 : vector<10x1xf32> to vector<10x64xf32>
    %173 = arith.mulf %163, %172 : vector<10x64xf32>
    %174 = vector.broadcast %156 : vector<1x64xf32> to vector<10x64xf32>
    %175 = arith.mulf %173, %174 : vector<10x64xf32>
    %176 = vector.broadcast %157 : vector<1x64xf32> to vector<10x64xf32>
    %177 = arith.addf %175, %176 : vector<10x64xf32>
    %c0_68 = arith.constant 0 : index
    %c0_69 = arith.constant 0 : index
    %178 = vector.load %arg15[%c0_68, %c0_69] : memref<10x64xf32, #tpu.memory_space<vmem>>, vector<10x64xf32>
    tpu.vector_store %arg15[%c0_68, %c0_69], %177 {strides = array<i32>} : memref<10x64xf32, #tpu.memory_space<vmem>>, vector<10x64xf32>,
    return
  }
  func.func @transform_0(%arg0: i32) -> (i32, i32) {
    %c0_i32 = arith.constant 0 : i32
    %c0_i32_0 = arith.constant 0 : i32
    %c0_i32_1 = arith.constant 0 : i32
    return %c0_i32, %c0_i32_0 : i32, i32
  }
  func.func @transform_1(%arg0: i32) -> (i32, i32) {
    %c0_i32 = arith.constant 0 : i32
    %c0_i32_0 = arith.constant 0 : i32
    %c0_i32_1 = arith.constant 0 : i32
    return %c0_i32, %c0_i32_0 : i32, i32
  }
  func.func @transform_2(%arg0: i32) -> (i32, i32) {
    %c0_i32 = arith.constant 0 : i32
    %c0_i32_0 = arith.constant 0 : i32
    %c0_i32_1 = arith.constant 0 : i32
    return %c0_i32, %c0_i32_0 : i32, i32
  }
  func.func @transform_3(%arg0: i32) -> (i32, i32) {
    %c0_i32 = arith.constant 0 : i32
    %c0_i32_0 = arith.constant 0 : i32
    %c0_i32_1 = arith.constant 0 : i32
    return %c0_i32, %c0_i32_0 : i32, i32
  }
  func.func @transform_4(%arg0: i32) -> (i32, i32) {
    %c0_i32 = arith.constant 0 : i32
    %c0_i32_0 = arith.constant 0 : i32
    %c0_i32_1 = arith.constant 0 : i32
    return %c0_i32, %c0_i32_0 : i32, i32
  }
  func.func @transform_5(%arg0: i32) -> (i32, i32) {
    %c0_i32 = arith.constant 0 : i32
    %c0_i32_0 = arith.constant 0 : i32
    %c0_i32_1 = arith.constant 0 : i32
    return %c0_i32, %c0_i32_0 : i32, i32
  }
  func.func @transform_6(%arg0: i32) -> (i32, i32) {
    %c0_i32 = arith.constant 0 : i32
    %c0_i32_0 = arith.constant 0 : i32
    %c0_i32_1 = arith.constant 0 : i32
    return %c0_i32, %c0_i32_0 : i32, i32
  }
  func.func @transform_7(%arg0: i32) -> (i32, i32) {
    %c0_i32 = arith.constant 0 : i32
    %c0_i32_0 = arith.constant 0 : i32
    %c0_i32_1 = arith.constant 0 : i32
    return %c0_i32, %c0_i32_0 : i32, i32
  }
  func.func @transform_8(%arg0: i32) -> (i32, i32) {
    %c0_i32 = arith.constant 0 : i32
    %c0_i32_0 = arith.constant 0 : i32
    %c0_i32_1 = arith.constant 0 : i32
    return %c0_i32, %c0_i32_0 : i32, i32
  }
  func.func @transform_9(%arg0: i32) -> (i32, i32) {
    %c0_i32 = arith.constant 0 : i32
    %c0_i32_0 = arith.constant 0 : i32
    %c0_i32_1 = arith.constant 0 : i32
    return %c0_i32, %c0_i32_0 : i32, i32
  }
  func.func @transform_10(%arg0: i32) -> (i32, i32) {
    %c0_i32 = arith.constant 0 : i32
    %c0_i32_0 = arith.constant 0 : i32
    %c0_i32_1 = arith.constant 0 : i32
    return %c0_i32, %c0_i32_0 : i32, i32
  }
  func.func @transform_11(%arg0: i32) -> (i32, i32) {
    %c0_i32 = arith.constant 0 : i32
    %c0_i32_0 = arith.constant 0 : i32
    %c0_i32_1 = arith.constant 0 : i32
    return %c0_i32, %c0_i32_0 : i32, i32
  }
  func.func @transform_12(%arg0: i32) -> (i32, i32) {
    %c0_i32 = arith.constant 0 : i32
    %c0_i32_0 = arith.constant 0 : i32
    %c0_i32_1 = arith.constant 0 : i32
    return %c0_i32, %c0_i32_0 : i32, i32
  }
  func.func @transform_13(%arg0: i32) -> (i32, i32) {
    %c0_i32 = arith.constant 0 : i32
    %c0_i32_0 = arith.constant 0 : i32
    %c0_i32_1 = arith.constant 0 : i32
    return %c0_i32, %c0_i32_0 : i32, i32
  }
  func.func @transform_14(%arg0: i32) -> (i32, i32) {
    %c0_i32 = arith.constant 0 : i32
    %c0_i32_0 = arith.constant 0 : i32
    %c0_i32_1 = arith.constant 0 : i32
    return %c0_i32, %c0_i32_0 : i32, i32
  }
}

module attributes {stable_mosaic.version = 11 : i64} {
  func.func @_self_branch_kernel(%arg0: i32, %arg1: memref<16x32xf32, #tpu.memory_space<vmem>>, %arg2: memref<16x64xf32, #tpu.memory_space<vmem>>, %arg3: memref<16x16xf32, #tpu.memory_space<vmem>>, %arg4: memref<32x64xf32, #tpu.memory_space<vmem>>, %arg5: memref<64x64xf32, #tpu.memory_space<vmem>>, %arg6: memref<64x1xf32, #tpu.memory_space<vmem>>, %arg7: memref<64x64xf32, #tpu.memory_space<vmem>>, %arg8: memref<64x1xf32, #tpu.memory_space<vmem>>, %arg9: memref<64x64xf32, #tpu.memory_space<vmem>>, %arg10: memref<64x1xf32, #tpu.memory_space<vmem>>, %arg11: memref<64x64xf32, #tpu.memory_space<vmem>>, %arg12: memref<1x64xf32, #tpu.memory_space<vmem>>, %arg13: memref<1x64xf32, #tpu.memory_space<vmem>>, %arg14: memref<1x64xf32, #tpu.memory_space<vmem>>, %arg15: memref<16x64xf32, #tpu.memory_space<vmem>>) attributes {dimension_semantics = [#tpu.dimension_semantics<arbitrary>], iteration_bounds = array<i64: 1>, scalar_prefetch = 0 : i64, scratch_operands = 0 : i64, tpu.core_type = #tpu.core_type<tc>, window_params = [{pipeline_mode = #tpu.pipeline_mode<synchronous>, transform_indices = @transform_0, window_bounds = array<i64: 16, 32>}, {pipeline_mode = #tpu.pipeline_mode<synchronous>, transform_indices = @transform_1, window_bounds = array<i64: 16, 64>}, {pipeline_mode = #tpu.pipeline_mode<synchronous>, transform_indices = @transform_2, window_bounds = array<i64: 16, 16>}, {pipeline_mode = #tpu.pipeline_mode<synchronous>, transform_indices = @transform_3, window_bounds = array<i64: 32, 64>}, {pipeline_mode = #tpu.pipeline_mode<synchronous>, transform_indices = @transform_4, window_bounds = array<i64: 64, 64>}, {pipeline_mode = #tpu.pipeline_mode<synchronous>, transform_indices = @transform_5, window_bounds = array<i64: 64, 1>}, {pipeline_mode = #tpu.pipeline_mode<synchronous>, transform_indices = @transform_6, window_bounds = array<i64: 64, 64>}, {pipeline_mode = #tpu.pipeline_mode<synchronous>, transform_indices = @transform_7, window_bounds = array<i64: 64, 1>}, {pipeline_mode = #tpu.pipeline_mode<synchronous>, transform_indices = @transform_8, window_bounds = array<i64: 64, 64>}, {pipeline_mode = #tpu.pipeline_mode<synchronous>, transform_indices = @transform_9, window_bounds = array<i64: 64, 1>}, {pipeline_mode = #tpu.pipeline_mode<synchronous>, transform_indices = @transform_10, window_bounds = array<i64: 64, 64>}, {pipeline_mode = #tpu.pipeline_mode<synchronous>, transform_indices = @transform_11, window_bounds = array<i64: 1, 64>}, {pipeline_mode = #tpu.pipeline_mode<synchronous>, transform_indices = @transform_12, window_bounds = array<i64: 1, 64>}, {pipeline_mode = #tpu.pipeline_mode<synchronous>, transform_indices = @transform_13, window_bounds = array<i64: 1, 64>}, {pipeline_mode = #tpu.pipeline_mode<synchronous>, transform_indices = @transform_14, window_bounds = array<i64: 16, 64>}]} {
    %c0 = arith.constant 0 : index
    %c0_0 = arith.constant 0 : index
    %0 = vector.load %arg1[%c0, %c0_0] : memref<16x32xf32, #tpu.memory_space<vmem>>, vector<16x32xf32>
    %c0_1 = arith.constant 0 : index
    %c0_2 = arith.constant 0 : index
    %1 = vector.load %arg4[%c0_1, %c0_2] : memref<32x64xf32, #tpu.memory_space<vmem>>, vector<32x64xf32>
    %cst = arith.constant dense<0.000000e+00> : vector<16x64xf32>
    %2 = tpu.matmul %0, %1, %cst {dimension_numbers = #tpu.dot_dimension_numbers<[1], [0], [0], [1], [0, 0, 1, 1], [], []>} : vector<16x32xf32>, vector<32x64xf32>, vector<16x64xf32> -> vector<16x64xf32>
    %c0_3 = arith.constant 0 : index
    %c0_4 = arith.constant 0 : index
    %3 = vector.load %arg2[%c0_3, %c0_4] : memref<16x64xf32, #tpu.memory_space<vmem>>, vector<16x64xf32>
    %4 = arith.addf %2, %3 : vector<16x64xf32>
    %c0_5 = arith.constant 0 : index
    %c0_6 = arith.constant 0 : index
    %5 = vector.load %arg3[%c0_5, %c0_6] : memref<16x16xf32, #tpu.memory_space<vmem>>, vector<16x16xf32>
    %c0_7 = arith.constant 0 : index
    %c0_8 = arith.constant 0 : index
    %6 = vector.load %arg5[%c0_7, %c0_8] : memref<64x64xf32, #tpu.memory_space<vmem>>, vector<64x64xf32>
    %c0_9 = arith.constant 0 : index
    %c0_10 = arith.constant 0 : index
    %7 = vector.load %arg6[%c0_9, %c0_10] : memref<64x1xf32, #tpu.memory_space<vmem>>, vector<64x1xf32>
    %c0_11 = arith.constant 0 : index
    %c0_12 = arith.constant 0 : index
    %8 = vector.load %arg7[%c0_11, %c0_12] : memref<64x64xf32, #tpu.memory_space<vmem>>, vector<64x64xf32>
    %c0_13 = arith.constant 0 : index
    %c0_14 = arith.constant 0 : index
    %9 = vector.load %arg8[%c0_13, %c0_14] : memref<64x1xf32, #tpu.memory_space<vmem>>, vector<64x1xf32>
    %c0_15 = arith.constant 0 : index
    %c0_16 = arith.constant 0 : index
    %10 = vector.load %arg9[%c0_15, %c0_16] : memref<64x64xf32, #tpu.memory_space<vmem>>, vector<64x64xf32>
    %c0_17 = arith.constant 0 : index
    %c0_18 = arith.constant 0 : index
    %11 = vector.load %arg10[%c0_17, %c0_18] : memref<64x1xf32, #tpu.memory_space<vmem>>, vector<64x1xf32>
    %c0_19 = arith.constant 0 : index
    %c0_20 = arith.constant 0 : index
    %12 = vector.load %arg11[%c0_19, %c0_20] : memref<64x64xf32, #tpu.memory_space<vmem>>, vector<64x64xf32>
    %c0_21 = arith.constant 0 : index
    %c0_22 = arith.constant 0 : index
    %13 = vector.load %arg12[%c0_21, %c0_22] : memref<1x64xf32, #tpu.memory_space<vmem>>, vector<1x64xf32>
    %cst_23 = arith.constant dense<0.000000e+00> : vector<64x16xf32>
    %14 = tpu.matmul %6, %4, %cst_23 {dimension_numbers = #tpu.dot_dimension_numbers<[1], [1], [0], [0], [0, 0, 1, 0], [], []>} : vector<64x64xf32>, vector<16x64xf32>, vector<64x16xf32> -> vector<64x16xf32>
    %15 = vector.broadcast %7 : vector<64x1xf32> to vector<64x16xf32>
    %16 = arith.addf %14, %15 : vector<64x16xf32>
    %cst_24 = arith.constant dense<0.000000e+00> : vector<64x16xf32>
    %17 = tpu.matmul %8, %4, %cst_24 {dimension_numbers = #tpu.dot_dimension_numbers<[1], [1], [0], [0], [0, 0, 1, 0], [], []>} : vector<64x64xf32>, vector<16x64xf32>, vector<64x16xf32> -> vector<64x16xf32>
    %18 = vector.broadcast %9 : vector<64x1xf32> to vector<64x16xf32>
    %19 = arith.addf %17, %18 : vector<64x16xf32>
    %cst_25 = arith.constant dense<0.000000e+00> : vector<64x16xf32>
    %20 = tpu.matmul %10, %2, %cst_25 {dimension_numbers = #tpu.dot_dimension_numbers<[1], [1], [0], [0], [0, 0, 1, 0], [], []>} : vector<64x64xf32>, vector<16x64xf32>, vector<64x16xf32> -> vector<64x16xf32>
    %21 = vector.broadcast %11 : vector<64x1xf32> to vector<64x16xf32>
    %22 = arith.addf %20, %21 : vector<64x16xf32>
    %23 = vector.extract_strided_slice %16 {offsets = [0, 0], sizes = [8, 16], strides = [1, 1]} : vector<64x16xf32> to vector<8x16xf32>
    %24 = vector.extract_strided_slice %19 {offsets = [0, 0], sizes = [8, 16], strides = [1, 1]} : vector<64x16xf32> to vector<8x16xf32>
    %25 = vector.extract_strided_slice %22 {offsets = [0, 0], sizes = [8, 16], strides = [1, 1]} : vector<64x16xf32> to vector<8x16xf32>
    %cst_26 = arith.constant dense<0.000000e+00> : vector<16x16xf32>
    %26 = tpu.matmul %23, %24, %cst_26 {dimension_numbers = #tpu.dot_dimension_numbers<[0], [0], [1], [1], [0, 1, 1, 1], [], []>} : vector<8x16xf32>, vector<8x16xf32>, vector<16x16xf32> -> vector<16x16xf32>
    %27 = arith.addf %26, %5 : vector<16x16xf32>
    %cst_27 = arith.constant dense<0xFF800000> : vector<16xf32>
    %28 = vector.multi_reduction <maximumf>, %27, %cst_27 [1] : vector<16x16xf32> to vector<16xf32>
    %29 = vector.shape_cast %28 : vector<16xf32> to vector<16x1xf32>
    %30 = vector.broadcast %29 : vector<16x1xf32> to vector<16x16xf32>
    %31 = arith.subf %27, %30 : vector<16x16xf32>
    %32 = math.exp %31 : vector<16x16xf32>
    %cst_28 = arith.constant dense<0.000000e+00> : vector<16xf32>
    %33 = vector.multi_reduction <add>, %32, %cst_28 [1] : vector<16x16xf32> to vector<16xf32>
    %34 = vector.shape_cast %33 : vector<16xf32> to vector<16x1xf32>
    %35 = tpu.reciprocal %34 {approx = true} : vector<16x1xf32> -> vector<16x1xf32>
    %36 = vector.broadcast %35 : vector<16x1xf32> to vector<16x16xf32>
    %37 = arith.mulf %32, %36 : vector<16x16xf32>
    %cst_29 = arith.constant dense<0.000000e+00> : vector<8x16xf32>
    %38 = tpu.matmul %25, %37, %cst_29 {dimension_numbers = #tpu.dot_dimension_numbers<[1], [1], [0], [0], [0, 0, 1, 0], [], []>} : vector<8x16xf32>, vector<16x16xf32>, vector<8x16xf32> -> vector<8x16xf32>
    %39 = vector.extract_strided_slice %16 {offsets = [8, 0], sizes = [8, 16], strides = [1, 1]} : vector<64x16xf32> to vector<8x16xf32>
    %40 = vector.extract_strided_slice %19 {offsets = [8, 0], sizes = [8, 16], strides = [1, 1]} : vector<64x16xf32> to vector<8x16xf32>
    %41 = vector.extract_strided_slice %22 {offsets = [8, 0], sizes = [8, 16], strides = [1, 1]} : vector<64x16xf32> to vector<8x16xf32>
    %cst_30 = arith.constant dense<0.000000e+00> : vector<16x16xf32>
    %42 = tpu.matmul %39, %40, %cst_30 {dimension_numbers = #tpu.dot_dimension_numbers<[0], [0], [1], [1], [0, 1, 1, 1], [], []>} : vector<8x16xf32>, vector<8x16xf32>, vector<16x16xf32> -> vector<16x16xf32>
    %43 = arith.addf %42, %5 : vector<16x16xf32>
    %cst_31 = arith.constant dense<0xFF800000> : vector<16xf32>
    %44 = vector.multi_reduction <maximumf>, %43, %cst_31 [1] : vector<16x16xf32> to vector<16xf32>
    %45 = vector.shape_cast %44 : vector<16xf32> to vector<16x1xf32>
    %46 = vector.broadcast %45 : vector<16x1xf32> to vector<16x16xf32>
    %47 = arith.subf %43, %46 : vector<16x16xf32>
    %48 = math.exp %47 : vector<16x16xf32>
    %cst_32 = arith.constant dense<0.000000e+00> : vector<16xf32>
    %49 = vector.multi_reduction <add>, %48, %cst_32 [1] : vector<16x16xf32> to vector<16xf32>
    %50 = vector.shape_cast %49 : vector<16xf32> to vector<16x1xf32>
    %51 = tpu.reciprocal %50 {approx = true} : vector<16x1xf32> -> vector<16x1xf32>
    %52 = vector.broadcast %51 : vector<16x1xf32> to vector<16x16xf32>
    %53 = arith.mulf %48, %52 : vector<16x16xf32>
    %cst_33 = arith.constant dense<0.000000e+00> : vector<8x16xf32>
    %54 = tpu.matmul %41, %53, %cst_33 {dimension_numbers = #tpu.dot_dimension_numbers<[1], [1], [0], [0], [0, 0, 1, 0], [], []>} : vector<8x16xf32>, vector<16x16xf32>, vector<8x16xf32> -> vector<8x16xf32>
    %55 = vector.extract_strided_slice %16 {offsets = [16, 0], sizes = [8, 16], strides = [1, 1]} : vector<64x16xf32> to vector<8x16xf32>
    %56 = vector.extract_strided_slice %19 {offsets = [16, 0], sizes = [8, 16], strides = [1, 1]} : vector<64x16xf32> to vector<8x16xf32>
    %57 = vector.extract_strided_slice %22 {offsets = [16, 0], sizes = [8, 16], strides = [1, 1]} : vector<64x16xf32> to vector<8x16xf32>
    %cst_34 = arith.constant dense<0.000000e+00> : vector<16x16xf32>
    %58 = tpu.matmul %55, %56, %cst_34 {dimension_numbers = #tpu.dot_dimension_numbers<[0], [0], [1], [1], [0, 1, 1, 1], [], []>} : vector<8x16xf32>, vector<8x16xf32>, vector<16x16xf32> -> vector<16x16xf32>
    %59 = arith.addf %58, %5 : vector<16x16xf32>
    %cst_35 = arith.constant dense<0xFF800000> : vector<16xf32>
    %60 = vector.multi_reduction <maximumf>, %59, %cst_35 [1] : vector<16x16xf32> to vector<16xf32>
    %61 = vector.shape_cast %60 : vector<16xf32> to vector<16x1xf32>
    %62 = vector.broadcast %61 : vector<16x1xf32> to vector<16x16xf32>
    %63 = arith.subf %59, %62 : vector<16x16xf32>
    %64 = math.exp %63 : vector<16x16xf32>
    %cst_36 = arith.constant dense<0.000000e+00> : vector<16xf32>
    %65 = vector.multi_reduction <add>, %64, %cst_36 [1] : vector<16x16xf32> to vector<16xf32>
    %66 = vector.shape_cast %65 : vector<16xf32> to vector<16x1xf32>
    %67 = tpu.reciprocal %66 {approx = true} : vector<16x1xf32> -> vector<16x1xf32>
    %68 = vector.broadcast %67 : vector<16x1xf32> to vector<16x16xf32>
    %69 = arith.mulf %64, %68 : vector<16x16xf32>
    %cst_37 = arith.constant dense<0.000000e+00> : vector<8x16xf32>
    %70 = tpu.matmul %57, %69, %cst_37 {dimension_numbers = #tpu.dot_dimension_numbers<[1], [1], [0], [0], [0, 0, 1, 0], [], []>} : vector<8x16xf32>, vector<16x16xf32>, vector<8x16xf32> -> vector<8x16xf32>
    %71 = vector.extract_strided_slice %16 {offsets = [24, 0], sizes = [8, 16], strides = [1, 1]} : vector<64x16xf32> to vector<8x16xf32>
    %72 = vector.extract_strided_slice %19 {offsets = [24, 0], sizes = [8, 16], strides = [1, 1]} : vector<64x16xf32> to vector<8x16xf32>
    %73 = vector.extract_strided_slice %22 {offsets = [24, 0], sizes = [8, 16], strides = [1, 1]} : vector<64x16xf32> to vector<8x16xf32>
    %cst_38 = arith.constant dense<0.000000e+00> : vector<16x16xf32>
    %74 = tpu.matmul %71, %72, %cst_38 {dimension_numbers = #tpu.dot_dimension_numbers<[0], [0], [1], [1], [0, 1, 1, 1], [], []>} : vector<8x16xf32>, vector<8x16xf32>, vector<16x16xf32> -> vector<16x16xf32>
    %75 = arith.addf %74, %5 : vector<16x16xf32>
    %cst_39 = arith.constant dense<0xFF800000> : vector<16xf32>
    %76 = vector.multi_reduction <maximumf>, %75, %cst_39 [1] : vector<16x16xf32> to vector<16xf32>
    %77 = vector.shape_cast %76 : vector<16xf32> to vector<16x1xf32>
    %78 = vector.broadcast %77 : vector<16x1xf32> to vector<16x16xf32>
    %79 = arith.subf %75, %78 : vector<16x16xf32>
    %80 = math.exp %79 : vector<16x16xf32>
    %cst_40 = arith.constant dense<0.000000e+00> : vector<16xf32>
    %81 = vector.multi_reduction <add>, %80, %cst_40 [1] : vector<16x16xf32> to vector<16xf32>
    %82 = vector.shape_cast %81 : vector<16xf32> to vector<16x1xf32>
    %83 = tpu.reciprocal %82 {approx = true} : vector<16x1xf32> -> vector<16x1xf32>
    %84 = vector.broadcast %83 : vector<16x1xf32> to vector<16x16xf32>
    %85 = arith.mulf %80, %84 : vector<16x16xf32>
    %cst_41 = arith.constant dense<0.000000e+00> : vector<8x16xf32>
    %86 = tpu.matmul %73, %85, %cst_41 {dimension_numbers = #tpu.dot_dimension_numbers<[1], [1], [0], [0], [0, 0, 1, 0], [], []>} : vector<8x16xf32>, vector<16x16xf32>, vector<8x16xf32> -> vector<8x16xf32>
    %87 = vector.extract_strided_slice %16 {offsets = [32, 0], sizes = [8, 16], strides = [1, 1]} : vector<64x16xf32> to vector<8x16xf32>
    %88 = vector.extract_strided_slice %19 {offsets = [32, 0], sizes = [8, 16], strides = [1, 1]} : vector<64x16xf32> to vector<8x16xf32>
    %89 = vector.extract_strided_slice %22 {offsets = [32, 0], sizes = [8, 16], strides = [1, 1]} : vector<64x16xf32> to vector<8x16xf32>
    %cst_42 = arith.constant dense<0.000000e+00> : vector<16x16xf32>
    %90 = tpu.matmul %87, %88, %cst_42 {dimension_numbers = #tpu.dot_dimension_numbers<[0], [0], [1], [1], [0, 1, 1, 1], [], []>} : vector<8x16xf32>, vector<8x16xf32>, vector<16x16xf32> -> vector<16x16xf32>
    %91 = arith.addf %90, %5 : vector<16x16xf32>
    %cst_43 = arith.constant dense<0xFF800000> : vector<16xf32>
    %92 = vector.multi_reduction <maximumf>, %91, %cst_43 [1] : vector<16x16xf32> to vector<16xf32>
    %93 = vector.shape_cast %92 : vector<16xf32> to vector<16x1xf32>
    %94 = vector.broadcast %93 : vector<16x1xf32> to vector<16x16xf32>
    %95 = arith.subf %91, %94 : vector<16x16xf32>
    %96 = math.exp %95 : vector<16x16xf32>
    %cst_44 = arith.constant dense<0.000000e+00> : vector<16xf32>
    %97 = vector.multi_reduction <add>, %96, %cst_44 [1] : vector<16x16xf32> to vector<16xf32>
    %98 = vector.shape_cast %97 : vector<16xf32> to vector<16x1xf32>
    %99 = tpu.reciprocal %98 {approx = true} : vector<16x1xf32> -> vector<16x1xf32>
    %100 = vector.broadcast %99 : vector<16x1xf32> to vector<16x16xf32>
    %101 = arith.mulf %96, %100 : vector<16x16xf32>
    %cst_45 = arith.constant dense<0.000000e+00> : vector<8x16xf32>
    %102 = tpu.matmul %89, %101, %cst_45 {dimension_numbers = #tpu.dot_dimension_numbers<[1], [1], [0], [0], [0, 0, 1, 0], [], []>} : vector<8x16xf32>, vector<16x16xf32>, vector<8x16xf32> -> vector<8x16xf32>
    %103 = vector.extract_strided_slice %16 {offsets = [40, 0], sizes = [8, 16], strides = [1, 1]} : vector<64x16xf32> to vector<8x16xf32>
    %104 = vector.extract_strided_slice %19 {offsets = [40, 0], sizes = [8, 16], strides = [1, 1]} : vector<64x16xf32> to vector<8x16xf32>
    %105 = vector.extract_strided_slice %22 {offsets = [40, 0], sizes = [8, 16], strides = [1, 1]} : vector<64x16xf32> to vector<8x16xf32>
    %cst_46 = arith.constant dense<0.000000e+00> : vector<16x16xf32>
    %106 = tpu.matmul %103, %104, %cst_46 {dimension_numbers = #tpu.dot_dimension_numbers<[0], [0], [1], [1], [0, 1, 1, 1], [], []>} : vector<8x16xf32>, vector<8x16xf32>, vector<16x16xf32> -> vector<16x16xf32>
    %107 = arith.addf %106, %5 : vector<16x16xf32>
    %cst_47 = arith.constant dense<0xFF800000> : vector<16xf32>
    %108 = vector.multi_reduction <maximumf>, %107, %cst_47 [1] : vector<16x16xf32> to vector<16xf32>
    %109 = vector.shape_cast %108 : vector<16xf32> to vector<16x1xf32>
    %110 = vector.broadcast %109 : vector<16x1xf32> to vector<16x16xf32>
    %111 = arith.subf %107, %110 : vector<16x16xf32>
    %112 = math.exp %111 : vector<16x16xf32>
    %cst_48 = arith.constant dense<0.000000e+00> : vector<16xf32>
    %113 = vector.multi_reduction <add>, %112, %cst_48 [1] : vector<16x16xf32> to vector<16xf32>
    %114 = vector.shape_cast %113 : vector<16xf32> to vector<16x1xf32>
    %115 = tpu.reciprocal %114 {approx = true} : vector<16x1xf32> -> vector<16x1xf32>
    %116 = vector.broadcast %115 : vector<16x1xf32> to vector<16x16xf32>
    %117 = arith.mulf %112, %116 : vector<16x16xf32>
    %cst_49 = arith.constant dense<0.000000e+00> : vector<8x16xf32>
    %118 = tpu.matmul %105, %117, %cst_49 {dimension_numbers = #tpu.dot_dimension_numbers<[1], [1], [0], [0], [0, 0, 1, 0], [], []>} : vector<8x16xf32>, vector<16x16xf32>, vector<8x16xf32> -> vector<8x16xf32>
    %119 = vector.extract_strided_slice %16 {offsets = [48, 0], sizes = [8, 16], strides = [1, 1]} : vector<64x16xf32> to vector<8x16xf32>
    %120 = vector.extract_strided_slice %19 {offsets = [48, 0], sizes = [8, 16], strides = [1, 1]} : vector<64x16xf32> to vector<8x16xf32>
    %121 = vector.extract_strided_slice %22 {offsets = [48, 0], sizes = [8, 16], strides = [1, 1]} : vector<64x16xf32> to vector<8x16xf32>
    %cst_50 = arith.constant dense<0.000000e+00> : vector<16x16xf32>
    %122 = tpu.matmul %119, %120, %cst_50 {dimension_numbers = #tpu.dot_dimension_numbers<[0], [0], [1], [1], [0, 1, 1, 1], [], []>} : vector<8x16xf32>, vector<8x16xf32>, vector<16x16xf32> -> vector<16x16xf32>
    %123 = arith.addf %122, %5 : vector<16x16xf32>
    %cst_51 = arith.constant dense<0xFF800000> : vector<16xf32>
    %124 = vector.multi_reduction <maximumf>, %123, %cst_51 [1] : vector<16x16xf32> to vector<16xf32>
    %125 = vector.shape_cast %124 : vector<16xf32> to vector<16x1xf32>
    %126 = vector.broadcast %125 : vector<16x1xf32> to vector<16x16xf32>
    %127 = arith.subf %123, %126 : vector<16x16xf32>
    %128 = math.exp %127 : vector<16x16xf32>
    %cst_52 = arith.constant dense<0.000000e+00> : vector<16xf32>
    %129 = vector.multi_reduction <add>, %128, %cst_52 [1] : vector<16x16xf32> to vector<16xf32>
    %130 = vector.shape_cast %129 : vector<16xf32> to vector<16x1xf32>
    %131 = tpu.reciprocal %130 {approx = true} : vector<16x1xf32> -> vector<16x1xf32>
    %132 = vector.broadcast %131 : vector<16x1xf32> to vector<16x16xf32>
    %133 = arith.mulf %128, %132 : vector<16x16xf32>
    %cst_53 = arith.constant dense<0.000000e+00> : vector<8x16xf32>
    %134 = tpu.matmul %121, %133, %cst_53 {dimension_numbers = #tpu.dot_dimension_numbers<[1], [1], [0], [0], [0, 0, 1, 0], [], []>} : vector<8x16xf32>, vector<16x16xf32>, vector<8x16xf32> -> vector<8x16xf32>
    %135 = vector.extract_strided_slice %16 {offsets = [56, 0], sizes = [8, 16], strides = [1, 1]} : vector<64x16xf32> to vector<8x16xf32>
    %136 = vector.extract_strided_slice %19 {offsets = [56, 0], sizes = [8, 16], strides = [1, 1]} : vector<64x16xf32> to vector<8x16xf32>
    %137 = vector.extract_strided_slice %22 {offsets = [56, 0], sizes = [8, 16], strides = [1, 1]} : vector<64x16xf32> to vector<8x16xf32>
    %cst_54 = arith.constant dense<0.000000e+00> : vector<16x16xf32>
    %138 = tpu.matmul %135, %136, %cst_54 {dimension_numbers = #tpu.dot_dimension_numbers<[0], [0], [1], [1], [0, 1, 1, 1], [], []>} : vector<8x16xf32>, vector<8x16xf32>, vector<16x16xf32> -> vector<16x16xf32>
    %139 = arith.addf %138, %5 : vector<16x16xf32>
    %cst_55 = arith.constant dense<0xFF800000> : vector<16xf32>
    %140 = vector.multi_reduction <maximumf>, %139, %cst_55 [1] : vector<16x16xf32> to vector<16xf32>
    %141 = vector.shape_cast %140 : vector<16xf32> to vector<16x1xf32>
    %142 = vector.broadcast %141 : vector<16x1xf32> to vector<16x16xf32>
    %143 = arith.subf %139, %142 : vector<16x16xf32>
    %144 = math.exp %143 : vector<16x16xf32>
    %cst_56 = arith.constant dense<0.000000e+00> : vector<16xf32>
    %145 = vector.multi_reduction <add>, %144, %cst_56 [1] : vector<16x16xf32> to vector<16xf32>
    %146 = vector.shape_cast %145 : vector<16xf32> to vector<16x1xf32>
    %147 = tpu.reciprocal %146 {approx = true} : vector<16x1xf32> -> vector<16x1xf32>
    %148 = vector.broadcast %147 : vector<16x1xf32> to vector<16x16xf32>
    %149 = arith.mulf %144, %148 : vector<16x16xf32>
    %cst_57 = arith.constant dense<0.000000e+00> : vector<8x16xf32>
    %150 = tpu.matmul %137, %149, %cst_57 {dimension_numbers = #tpu.dot_dimension_numbers<[1], [1], [0], [0], [0, 0, 1, 0], [], []>} : vector<8x16xf32>, vector<16x16xf32>, vector<8x16xf32> -> vector<8x16xf32>
    %151 = tpu.concatenate %38, %54, %70, %86, %102, %118, %134, %150 in 0 : vector<8x16xf32>, vector<8x16xf32>, vector<8x16xf32>, vector<8x16xf32>, vector<8x16xf32>, vector<8x16xf32>, vector<8x16xf32>, vector<8x16xf32> -> vector<64x16xf32>
    %cst_58 = arith.constant dense<0.000000e+00> : vector<16x64xf32>
    %152 = tpu.matmul %151, %12, %cst_58 {dimension_numbers = #tpu.dot_dimension_numbers<[0], [0], [1], [1], [0, 1, 1, 1], [], []>} : vector<64x16xf32>, vector<64x64xf32>, vector<16x64xf32> -> vector<16x64xf32>
    %153 = vector.broadcast %13 : vector<1x64xf32> to vector<16x64xf32>
    %154 = arith.addf %152, %153 : vector<16x64xf32>
    %155 = arith.addf %2, %154 : vector<16x64xf32>
    %c0_59 = arith.constant 0 : index
    %c0_60 = arith.constant 0 : index
    %156 = vector.load %arg13[%c0_59, %c0_60] : memref<1x64xf32, #tpu.memory_space<vmem>>, vector<1x64xf32>
    %c0_61 = arith.constant 0 : index
    %c0_62 = arith.constant 0 : index
    %157 = vector.load %arg14[%c0_61, %c0_62] : memref<1x64xf32, #tpu.memory_space<vmem>>, vector<1x64xf32>
    %cst_63 = arith.constant dense<0.000000e+00> : vector<16xf32>
    %158 = vector.multi_reduction <add>, %155, %cst_63 [1] : vector<16x64xf32> to vector<16xf32>
    %159 = vector.shape_cast %158 : vector<16xf32> to vector<16x1xf32>
    %cst_64 = arith.constant 6.400000e+01 : f32
    %160 = vector.broadcast %cst_64 : f32 to vector<16x1xf32>
    %161 = arith.divf %159, %160 : vector<16x1xf32>
    %162 = vector.broadcast %161 : vector<16x1xf32> to vector<16x64xf32>
    %163 = arith.subf %155, %162 : vector<16x64xf32>
    %164 = arith.mulf %163, %163 : vector<16x64xf32>
    %cst_65 = arith.constant dense<0.000000e+00> : vector<16xf32>
    %165 = vector.multi_reduction <add>, %164, %cst_65 [1] : vector<16x64xf32> to vector<16xf32>
    %166 = vector.shape_cast %165 : vector<16xf32> to vector<16x1xf32>
    %cst_66 = arith.constant 6.400000e+01 : f32
    %167 = vector.broadcast %cst_66 : f32 to vector<16x1xf32>
    %168 = arith.divf %166, %167 : vector<16x1xf32>
    %cst_67 = arith.constant 9.99999974E-6 : f32
    %169 = vector.broadcast %cst_67 : f32 to vector<16x1xf32>
    %170 = arith.addf %168, %169 : vector<16x1xf32>
    %171 = math.rsqrt %170 : vector<16x1xf32>
    %172 = vector.broadcast %171 : vector<16x1xf32> to vector<16x64xf32>
    %173 = arith.mulf %163, %172 : vector<16x64xf32>
    %174 = vector.broadcast %156 : vector<1x64xf32> to vector<16x64xf32>
    %175 = arith.mulf %173, %174 : vector<16x64xf32>
    %176 = vector.broadcast %157 : vector<1x64xf32> to vector<16x64xf32>
    %177 = arith.addf %175, %176 : vector<16x64xf32>
    %c0_68 = arith.constant 0 : index
    %c0_69 = arith.constant 0 : index
    %178 = vector.load %arg15[%c0_68, %c0_69] : memref<16x64xf32, #tpu.memory_space<vmem>>, vector<16x64xf32>
    tpu.vector_store %arg15[%c0_68, %c0_69], %177 {strides = array<i32>} : memref<16x64xf32, #tpu.memory_space<vmem>>, vector<16x64xf32>,
    return
  }
  func.func @transform_0(%arg0: i32) -> (i32, i32) {
    %c0_i32 = arith.constant 0 : i32
    %c0_i32_0 = arith.constant 0 : i32
    %c0_i32_1 = arith.constant 0 : i32
    return %c0_i32, %c0_i32_0 : i32, i32
  }
  func.func @transform_1(%arg0: i32) -> (i32, i32) {
    %c0_i32 = arith.constant 0 : i32
    %c0_i32_0 = arith.constant 0 : i32
    %c0_i32_1 = arith.constant 0 : i32
    return %c0_i32, %c0_i32_0 : i32, i32
  }
  func.func @transform_2(%arg0: i32) -> (i32, i32) {
    %c0_i32 = arith.constant 0 : i32
    %c0_i32_0 = arith.constant 0 : i32
    %c0_i32_1 = arith.constant 0 : i32
    return %c0_i32, %c0_i32_0 : i32, i32
  }
  func.func @transform_3(%arg0: i32) -> (i32, i32) {
    %c0_i32 = arith.constant 0 : i32
    %c0_i32_0 = arith.constant 0 : i32
    %c0_i32_1 = arith.constant 0 : i32
    return %c0_i32, %c0_i32_0 : i32, i32
  }
  func.func @transform_4(%arg0: i32) -> (i32, i32) {
    %c0_i32 = arith.constant 0 : i32
    %c0_i32_0 = arith.constant 0 : i32
    %c0_i32_1 = arith.constant 0 : i32
    return %c0_i32, %c0_i32_0 : i32, i32
  }
  func.func @transform_5(%arg0: i32) -> (i32, i32) {
    %c0_i32 = arith.constant 0 : i32
    %c0_i32_0 = arith.constant 0 : i32
    %c0_i32_1 = arith.constant 0 : i32
    return %c0_i32, %c0_i32_0 : i32, i32
  }
  func.func @transform_6(%arg0: i32) -> (i32, i32) {
    %c0_i32 = arith.constant 0 : i32
    %c0_i32_0 = arith.constant 0 : i32
    %c0_i32_1 = arith.constant 0 : i32
    return %c0_i32, %c0_i32_0 : i32, i32
  }
  func.func @transform_7(%arg0: i32) -> (i32, i32) {
    %c0_i32 = arith.constant 0 : i32
    %c0_i32_0 = arith.constant 0 : i32
    %c0_i32_1 = arith.constant 0 : i32
    return %c0_i32, %c0_i32_0 : i32, i32
  }
  func.func @transform_8(%arg0: i32) -> (i32, i32) {
    %c0_i32 = arith.constant 0 : i32
    %c0_i32_0 = arith.constant 0 : i32
    %c0_i32_1 = arith.constant 0 : i32
    return %c0_i32, %c0_i32_0 : i32, i32
  }
  func.func @transform_9(%arg0: i32) -> (i32, i32) {
    %c0_i32 = arith.constant 0 : i32
    %c0_i32_0 = arith.constant 0 : i32
    %c0_i32_1 = arith.constant 0 : i32
    return %c0_i32, %c0_i32_0 : i32, i32
  }
  func.func @transform_10(%arg0: i32) -> (i32, i32) {
    %c0_i32 = arith.constant 0 : i32
    %c0_i32_0 = arith.constant 0 : i32
    %c0_i32_1 = arith.constant 0 : i32
    return %c0_i32, %c0_i32_0 : i32, i32
  }
  func.func @transform_11(%arg0: i32) -> (i32, i32) {
    %c0_i32 = arith.constant 0 : i32
    %c0_i32_0 = arith.constant 0 : i32
    %c0_i32_1 = arith.constant 0 : i32
    return %c0_i32, %c0_i32_0 : i32, i32
  }
  func.func @transform_12(%arg0: i32) -> (i32, i32) {
    %c0_i32 = arith.constant 0 : i32
    %c0_i32_0 = arith.constant 0 : i32
    %c0_i32_1 = arith.constant 0 : i32
    return %c0_i32, %c0_i32_0 : i32, i32
  }
  func.func @transform_13(%arg0: i32) -> (i32, i32) {
    %c0_i32 = arith.constant 0 : i32
    %c0_i32_0 = arith.constant 0 : i32
    %c0_i32_1 = arith.constant 0 : i32
    return %c0_i32, %c0_i32_0 : i32, i32
  }
  func.func @transform_14(%arg0: i32) -> (i32, i32) {
    %c0_i32 = arith.constant 0 : i32
    %c0_i32_0 = arith.constant 0 : i32
    %c0_i32_1 = arith.constant 0 : i32
    return %c0_i32, %c0_i32_0 : i32, i32
  }
}

module attributes {stable_mosaic.version = 11 : i64} {
  func.func @_cross_branch_kernel(%arg0: i32, %arg1: memref<48x64xf32, #tpu.memory_space<vmem>>, %arg2: memref<48x64xf32, #tpu.memory_space<vmem>>, %arg3: memref<30x64xf32, #tpu.memory_space<vmem>>, %arg4: memref<30x64xf32, #tpu.memory_space<vmem>>, %arg5: memref<48x30xf32, #tpu.memory_space<vmem>>, %arg6: memref<64x64xf32, #tpu.memory_space<vmem>>, %arg7: memref<64x1xf32, #tpu.memory_space<vmem>>, %arg8: memref<64x64xf32, #tpu.memory_space<vmem>>, %arg9: memref<64x1xf32, #tpu.memory_space<vmem>>, %arg10: memref<64x64xf32, #tpu.memory_space<vmem>>, %arg11: memref<64x1xf32, #tpu.memory_space<vmem>>, %arg12: memref<64x64xf32, #tpu.memory_space<vmem>>, %arg13: memref<1x64xf32, #tpu.memory_space<vmem>>, %arg14: memref<1x64xf32, #tpu.memory_space<vmem>>, %arg15: memref<1x64xf32, #tpu.memory_space<vmem>>, %arg16: memref<64x256xf32, #tpu.memory_space<vmem>>, %arg17: memref<1x256xf32, #tpu.memory_space<vmem>>, %arg18: memref<256x64xf32, #tpu.memory_space<vmem>>, %arg19: memref<1x64xf32, #tpu.memory_space<vmem>>, %arg20: memref<1x64xf32, #tpu.memory_space<vmem>>, %arg21: memref<1x64xf32, #tpu.memory_space<vmem>>, %arg22: memref<48x64xf32, #tpu.memory_space<vmem>>) attributes {dimension_semantics = [#tpu.dimension_semantics<arbitrary>], iteration_bounds = array<i64: 1>, scalar_prefetch = 0 : i64, scratch_operands = 0 : i64, tpu.core_type = #tpu.core_type<tc>, window_params = [{pipeline_mode = #tpu.pipeline_mode<synchronous>, transform_indices = @transform_0, window_bounds = array<i64: 48, 64>}, {pipeline_mode = #tpu.pipeline_mode<synchronous>, transform_indices = @transform_1, window_bounds = array<i64: 48, 64>}, {pipeline_mode = #tpu.pipeline_mode<synchronous>, transform_indices = @transform_2, window_bounds = array<i64: 30, 64>}, {pipeline_mode = #tpu.pipeline_mode<synchronous>, transform_indices = @transform_3, window_bounds = array<i64: 30, 64>}, {pipeline_mode = #tpu.pipeline_mode<synchronous>, transform_indices = @transform_4, window_bounds = array<i64: 48, 30>}, {pipeline_mode = #tpu.pipeline_mode<synchronous>, transform_indices = @transform_5, window_bounds = array<i64: 64, 64>}, {pipeline_mode = #tpu.pipeline_mode<synchronous>, transform_indices = @transform_6, window_bounds = array<i64: 64, 1>}, {pipeline_mode = #tpu.pipeline_mode<synchronous>, transform_indices = @transform_7, window_bounds = array<i64: 64, 64>}, {pipeline_mode = #tpu.pipeline_mode<synchronous>, transform_indices = @transform_8, window_bounds = array<i64: 64, 1>}, {pipeline_mode = #tpu.pipeline_mode<synchronous>, transform_indices = @transform_9, window_bounds = array<i64: 64, 64>}, {pipeline_mode = #tpu.pipeline_mode<synchronous>, transform_indices = @transform_10, window_bounds = array<i64: 64, 1>}, {pipeline_mode = #tpu.pipeline_mode<synchronous>, transform_indices = @transform_11, window_bounds = array<i64: 64, 64>}, {pipeline_mode = #tpu.pipeline_mode<synchronous>, transform_indices = @transform_12, window_bounds = array<i64: 1, 64>}, {pipeline_mode = #tpu.pipeline_mode<synchronous>, transform_indices = @transform_13, window_bounds = array<i64: 1, 64>}, {pipeline_mode = #tpu.pipeline_mode<synchronous>, transform_indices = @transform_14, window_bounds = array<i64: 1, 64>}, {pipeline_mode = #tpu.pipeline_mode<synchronous>, transform_indices = @transform_15, window_bounds = array<i64: 64, 256>}, {pipeline_mode = #tpu.pipeline_mode<synchronous>, transform_indices = @transform_16, window_bounds = array<i64: 1, 256>}, {pipeline_mode = #tpu.pipeline_mode<synchronous>, transform_indices = @transform_17, window_bounds = array<i64: 256, 64>}, {pipeline_mode = #tpu.pipeline_mode<synchronous>, transform_indices = @transform_18, window_bounds = array<i64: 1, 64>}, {pipeline_mode = #tpu.pipeline_mode<synchronous>, transform_indices = @transform_19, window_bounds = array<i64: 1, 64>}, {pipeline_mode = #tpu.pipeline_mode<synchronous>, transform_indices = @transform_20, window_bounds = array<i64: 1, 64>}, {pipeline_mode = #tpu.pipeline_mode<synchronous>, transform_indices = @transform_21, window_bounds = array<i64: 48, 64>}]} {
    %c0 = arith.constant 0 : index
    %c0_0 = arith.constant 0 : index
    %0 = vector.load %arg1[%c0, %c0_0] : memref<48x64xf32, #tpu.memory_space<vmem>>, vector<48x64xf32>
    %c0_1 = arith.constant 0 : index
    %c0_2 = arith.constant 0 : index
    %1 = vector.load %arg3[%c0_1, %c0_2] : memref<30x64xf32, #tpu.memory_space<vmem>>, vector<30x64xf32>
    %c0_3 = arith.constant 0 : index
    %c0_4 = arith.constant 0 : index
    %2 = vector.load %arg2[%c0_3, %c0_4] : memref<48x64xf32, #tpu.memory_space<vmem>>, vector<48x64xf32>
    %3 = arith.addf %0, %2 : vector<48x64xf32>
    %c0_5 = arith.constant 0 : index
    %c0_6 = arith.constant 0 : index
    %4 = vector.load %arg4[%c0_5, %c0_6] : memref<30x64xf32, #tpu.memory_space<vmem>>, vector<30x64xf32>
    %5 = arith.addf %1, %4 : vector<30x64xf32>
    %c0_7 = arith.constant 0 : index
    %c0_8 = arith.constant 0 : index
    %6 = vector.load %arg5[%c0_7, %c0_8] : memref<48x30xf32, #tpu.memory_space<vmem>>, vector<48x30xf32>
    %c0_9 = arith.constant 0 : index
    %c0_10 = arith.constant 0 : index
    %7 = vector.load %arg6[%c0_9, %c0_10] : memref<64x64xf32, #tpu.memory_space<vmem>>, vector<64x64xf32>
    %c0_11 = arith.constant 0 : index
    %c0_12 = arith.constant 0 : index
    %8 = vector.load %arg7[%c0_11, %c0_12] : memref<64x1xf32, #tpu.memory_space<vmem>>, vector<64x1xf32>
    %c0_13 = arith.constant 0 : index
    %c0_14 = arith.constant 0 : index
    %9 = vector.load %arg8[%c0_13, %c0_14] : memref<64x64xf32, #tpu.memory_space<vmem>>, vector<64x64xf32>
    %c0_15 = arith.constant 0 : index
    %c0_16 = arith.constant 0 : index
    %10 = vector.load %arg9[%c0_15, %c0_16] : memref<64x1xf32, #tpu.memory_space<vmem>>, vector<64x1xf32>
    %c0_17 = arith.constant 0 : index
    %c0_18 = arith.constant 0 : index
    %11 = vector.load %arg10[%c0_17, %c0_18] : memref<64x64xf32, #tpu.memory_space<vmem>>, vector<64x64xf32>
    %c0_19 = arith.constant 0 : index
    %c0_20 = arith.constant 0 : index
    %12 = vector.load %arg11[%c0_19, %c0_20] : memref<64x1xf32, #tpu.memory_space<vmem>>, vector<64x1xf32>
    %c0_21 = arith.constant 0 : index
    %c0_22 = arith.constant 0 : index
    %13 = vector.load %arg12[%c0_21, %c0_22] : memref<64x64xf32, #tpu.memory_space<vmem>>, vector<64x64xf32>
    %c0_23 = arith.constant 0 : index
    %c0_24 = arith.constant 0 : index
    %14 = vector.load %arg13[%c0_23, %c0_24] : memref<1x64xf32, #tpu.memory_space<vmem>>, vector<1x64xf32>
    %cst = arith.constant dense<0.000000e+00> : vector<64x48xf32>
    %15 = tpu.matmul %7, %3, %cst {dimension_numbers = #tpu.dot_dimension_numbers<[1], [1], [0], [0], [0, 0, 1, 0], [], []>} : vector<64x64xf32>, vector<48x64xf32>, vector<64x48xf32> -> vector<64x48xf32>
    %16 = vector.broadcast %8 : vector<64x1xf32> to vector<64x48xf32>
    %17 = arith.addf %15, %16 : vector<64x48xf32>
    %cst_25 = arith.constant dense<0.000000e+00> : vector<64x30xf32>
    %18 = tpu.matmul %9, %5, %cst_25 {dimension_numbers = #tpu.dot_dimension_numbers<[1], [1], [0], [0], [0, 0, 1, 0], [], []>} : vector<64x64xf32>, vector<30x64xf32>, vector<64x30xf32> -> vector<64x30xf32>
    %19 = vector.broadcast %10 : vector<64x1xf32> to vector<64x30xf32>
    %20 = arith.addf %18, %19 : vector<64x30xf32>
    %cst_26 = arith.constant dense<0.000000e+00> : vector<64x30xf32>
    %21 = tpu.matmul %11, %1, %cst_26 {dimension_numbers = #tpu.dot_dimension_numbers<[1], [1], [0], [0], [0, 0, 1, 0], [], []>} : vector<64x64xf32>, vector<30x64xf32>, vector<64x30xf32> -> vector<64x30xf32>
    %22 = vector.broadcast %12 : vector<64x1xf32> to vector<64x30xf32>
    %23 = arith.addf %21, %22 : vector<64x30xf32>
    %24 = vector.extract_strided_slice %17 {offsets = [0, 0], sizes = [8, 48], strides = [1, 1]} : vector<64x48xf32> to vector<8x48xf32>
    %25 = vector.extract_strided_slice %20 {offsets = [0, 0], sizes = [8, 30], strides = [1, 1]} : vector<64x30xf32> to vector<8x30xf32>
    %26 = vector.extract_strided_slice %23 {offsets = [0, 0], sizes = [8, 30], strides = [1, 1]} : vector<64x30xf32> to vector<8x30xf32>
    %cst_27 = arith.constant dense<0.000000e+00> : vector<48x30xf32>
    %27 = tpu.matmul %24, %25, %cst_27 {dimension_numbers = #tpu.dot_dimension_numbers<[0], [0], [1], [1], [0, 1, 1, 1], [], []>} : vector<8x48xf32>, vector<8x30xf32>, vector<48x30xf32> -> vector<48x30xf32>
    %28 = arith.addf %27, %6 : vector<48x30xf32>
    %cst_28 = arith.constant dense<0xFF800000> : vector<48xf32>
    %29 = vector.multi_reduction <maximumf>, %28, %cst_28 [1] : vector<48x30xf32> to vector<48xf32>
    %30 = vector.shape_cast %29 : vector<48xf32> to vector<48x1xf32>
    %31 = vector.broadcast %30 : vector<48x1xf32> to vector<48x30xf32>
    %32 = arith.subf %28, %31 : vector<48x30xf32>
    %33 = math.exp %32 : vector<48x30xf32>
    %cst_29 = arith.constant dense<0.000000e+00> : vector<48xf32>
    %34 = vector.multi_reduction <add>, %33, %cst_29 [1] : vector<48x30xf32> to vector<48xf32>
    %35 = vector.shape_cast %34 : vector<48xf32> to vector<48x1xf32>
    %36 = tpu.reciprocal %35 {approx = true} : vector<48x1xf32> -> vector<48x1xf32>
    %37 = vector.broadcast %36 : vector<48x1xf32> to vector<48x30xf32>
    %38 = arith.mulf %33, %37 : vector<48x30xf32>
    %cst_30 = arith.constant dense<0.000000e+00> : vector<8x48xf32>
    %39 = tpu.matmul %26, %38, %cst_30 {dimension_numbers = #tpu.dot_dimension_numbers<[1], [1], [0], [0], [0, 0, 1, 0], [], []>} : vector<8x30xf32>, vector<48x30xf32>, vector<8x48xf32> -> vector<8x48xf32>
    %40 = vector.extract_strided_slice %17 {offsets = [8, 0], sizes = [8, 48], strides = [1, 1]} : vector<64x48xf32> to vector<8x48xf32>
    %41 = vector.extract_strided_slice %20 {offsets = [8, 0], sizes = [8, 30], strides = [1, 1]} : vector<64x30xf32> to vector<8x30xf32>
    %42 = vector.extract_strided_slice %23 {offsets = [8, 0], sizes = [8, 30], strides = [1, 1]} : vector<64x30xf32> to vector<8x30xf32>
    %cst_31 = arith.constant dense<0.000000e+00> : vector<48x30xf32>
    %43 = tpu.matmul %40, %41, %cst_31 {dimension_numbers = #tpu.dot_dimension_numbers<[0], [0], [1], [1], [0, 1, 1, 1], [], []>} : vector<8x48xf32>, vector<8x30xf32>, vector<48x30xf32> -> vector<48x30xf32>
    %44 = arith.addf %43, %6 : vector<48x30xf32>
    %cst_32 = arith.constant dense<0xFF800000> : vector<48xf32>
    %45 = vector.multi_reduction <maximumf>, %44, %cst_32 [1] : vector<48x30xf32> to vector<48xf32>
    %46 = vector.shape_cast %45 : vector<48xf32> to vector<48x1xf32>
    %47 = vector.broadcast %46 : vector<48x1xf32> to vector<48x30xf32>
    %48 = arith.subf %44, %47 : vector<48x30xf32>
    %49 = math.exp %48 : vector<48x30xf32>
    %cst_33 = arith.constant dense<0.000000e+00> : vector<48xf32>
    %50 = vector.multi_reduction <add>, %49, %cst_33 [1] : vector<48x30xf32> to vector<48xf32>
    %51 = vector.shape_cast %50 : vector<48xf32> to vector<48x1xf32>
    %52 = tpu.reciprocal %51 {approx = true} : vector<48x1xf32> -> vector<48x1xf32>
    %53 = vector.broadcast %52 : vector<48x1xf32> to vector<48x30xf32>
    %54 = arith.mulf %49, %53 : vector<48x30xf32>
    %cst_34 = arith.constant dense<0.000000e+00> : vector<8x48xf32>
    %55 = tpu.matmul %42, %54, %cst_34 {dimension_numbers = #tpu.dot_dimension_numbers<[1], [1], [0], [0], [0, 0, 1, 0], [], []>} : vector<8x30xf32>, vector<48x30xf32>, vector<8x48xf32> -> vector<8x48xf32>
    %56 = vector.extract_strided_slice %17 {offsets = [16, 0], sizes = [8, 48], strides = [1, 1]} : vector<64x48xf32> to vector<8x48xf32>
    %57 = vector.extract_strided_slice %20 {offsets = [16, 0], sizes = [8, 30], strides = [1, 1]} : vector<64x30xf32> to vector<8x30xf32>
    %58 = vector.extract_strided_slice %23 {offsets = [16, 0], sizes = [8, 30], strides = [1, 1]} : vector<64x30xf32> to vector<8x30xf32>
    %cst_35 = arith.constant dense<0.000000e+00> : vector<48x30xf32>
    %59 = tpu.matmul %56, %57, %cst_35 {dimension_numbers = #tpu.dot_dimension_numbers<[0], [0], [1], [1], [0, 1, 1, 1], [], []>} : vector<8x48xf32>, vector<8x30xf32>, vector<48x30xf32> -> vector<48x30xf32>
    %60 = arith.addf %59, %6 : vector<48x30xf32>
    %cst_36 = arith.constant dense<0xFF800000> : vector<48xf32>
    %61 = vector.multi_reduction <maximumf>, %60, %cst_36 [1] : vector<48x30xf32> to vector<48xf32>
    %62 = vector.shape_cast %61 : vector<48xf32> to vector<48x1xf32>
    %63 = vector.broadcast %62 : vector<48x1xf32> to vector<48x30xf32>
    %64 = arith.subf %60, %63 : vector<48x30xf32>
    %65 = math.exp %64 : vector<48x30xf32>
    %cst_37 = arith.constant dense<0.000000e+00> : vector<48xf32>
    %66 = vector.multi_reduction <add>, %65, %cst_37 [1] : vector<48x30xf32> to vector<48xf32>
    %67 = vector.shape_cast %66 : vector<48xf32> to vector<48x1xf32>
    %68 = tpu.reciprocal %67 {approx = true} : vector<48x1xf32> -> vector<48x1xf32>
    %69 = vector.broadcast %68 : vector<48x1xf32> to vector<48x30xf32>
    %70 = arith.mulf %65, %69 : vector<48x30xf32>
    %cst_38 = arith.constant dense<0.000000e+00> : vector<8x48xf32>
    %71 = tpu.matmul %58, %70, %cst_38 {dimension_numbers = #tpu.dot_dimension_numbers<[1], [1], [0], [0], [0, 0, 1, 0], [], []>} : vector<8x30xf32>, vector<48x30xf32>, vector<8x48xf32> -> vector<8x48xf32>
    %72 = vector.extract_strided_slice %17 {offsets = [24, 0], sizes = [8, 48], strides = [1, 1]} : vector<64x48xf32> to vector<8x48xf32>
    %73 = vector.extract_strided_slice %20 {offsets = [24, 0], sizes = [8, 30], strides = [1, 1]} : vector<64x30xf32> to vector<8x30xf32>
    %74 = vector.extract_strided_slice %23 {offsets = [24, 0], sizes = [8, 30], strides = [1, 1]} : vector<64x30xf32> to vector<8x30xf32>
    %cst_39 = arith.constant dense<0.000000e+00> : vector<48x30xf32>
    %75 = tpu.matmul %72, %73, %cst_39 {dimension_numbers = #tpu.dot_dimension_numbers<[0], [0], [1], [1], [0, 1, 1, 1], [], []>} : vector<8x48xf32>, vector<8x30xf32>, vector<48x30xf32> -> vector<48x30xf32>
    %76 = arith.addf %75, %6 : vector<48x30xf32>
    %cst_40 = arith.constant dense<0xFF800000> : vector<48xf32>
    %77 = vector.multi_reduction <maximumf>, %76, %cst_40 [1] : vector<48x30xf32> to vector<48xf32>
    %78 = vector.shape_cast %77 : vector<48xf32> to vector<48x1xf32>
    %79 = vector.broadcast %78 : vector<48x1xf32> to vector<48x30xf32>
    %80 = arith.subf %76, %79 : vector<48x30xf32>
    %81 = math.exp %80 : vector<48x30xf32>
    %cst_41 = arith.constant dense<0.000000e+00> : vector<48xf32>
    %82 = vector.multi_reduction <add>, %81, %cst_41 [1] : vector<48x30xf32> to vector<48xf32>
    %83 = vector.shape_cast %82 : vector<48xf32> to vector<48x1xf32>
    %84 = tpu.reciprocal %83 {approx = true} : vector<48x1xf32> -> vector<48x1xf32>
    %85 = vector.broadcast %84 : vector<48x1xf32> to vector<48x30xf32>
    %86 = arith.mulf %81, %85 : vector<48x30xf32>
    %cst_42 = arith.constant dense<0.000000e+00> : vector<8x48xf32>
    %87 = tpu.matmul %74, %86, %cst_42 {dimension_numbers = #tpu.dot_dimension_numbers<[1], [1], [0], [0], [0, 0, 1, 0], [], []>} : vector<8x30xf32>, vector<48x30xf32>, vector<8x48xf32> -> vector<8x48xf32>
    %88 = vector.extract_strided_slice %17 {offsets = [32, 0], sizes = [8, 48], strides = [1, 1]} : vector<64x48xf32> to vector<8x48xf32>
    %89 = vector.extract_strided_slice %20 {offsets = [32, 0], sizes = [8, 30], strides = [1, 1]} : vector<64x30xf32> to vector<8x30xf32>
    %90 = vector.extract_strided_slice %23 {offsets = [32, 0], sizes = [8, 30], strides = [1, 1]} : vector<64x30xf32> to vector<8x30xf32>
    %cst_43 = arith.constant dense<0.000000e+00> : vector<48x30xf32>
    %91 = tpu.matmul %88, %89, %cst_43 {dimension_numbers = #tpu.dot_dimension_numbers<[0], [0], [1], [1], [0, 1, 1, 1], [], []>} : vector<8x48xf32>, vector<8x30xf32>, vector<48x30xf32> -> vector<48x30xf32>
    %92 = arith.addf %91, %6 : vector<48x30xf32>
    %cst_44 = arith.constant dense<0xFF800000> : vector<48xf32>
    %93 = vector.multi_reduction <maximumf>, %92, %cst_44 [1] : vector<48x30xf32> to vector<48xf32>
    %94 = vector.shape_cast %93 : vector<48xf32> to vector<48x1xf32>
    %95 = vector.broadcast %94 : vector<48x1xf32> to vector<48x30xf32>
    %96 = arith.subf %92, %95 : vector<48x30xf32>
    %97 = math.exp %96 : vector<48x30xf32>
    %cst_45 = arith.constant dense<0.000000e+00> : vector<48xf32>
    %98 = vector.multi_reduction <add>, %97, %cst_45 [1] : vector<48x30xf32> to vector<48xf32>
    %99 = vector.shape_cast %98 : vector<48xf32> to vector<48x1xf32>
    %100 = tpu.reciprocal %99 {approx = true} : vector<48x1xf32> -> vector<48x1xf32>
    %101 = vector.broadcast %100 : vector<48x1xf32> to vector<48x30xf32>
    %102 = arith.mulf %97, %101 : vector<48x30xf32>
    %cst_46 = arith.constant dense<0.000000e+00> : vector<8x48xf32>
    %103 = tpu.matmul %90, %102, %cst_46 {dimension_numbers = #tpu.dot_dimension_numbers<[1], [1], [0], [0], [0, 0, 1, 0], [], []>} : vector<8x30xf32>, vector<48x30xf32>, vector<8x48xf32> -> vector<8x48xf32>
    %104 = vector.extract_strided_slice %17 {offsets = [40, 0], sizes = [8, 48], strides = [1, 1]} : vector<64x48xf32> to vector<8x48xf32>
    %105 = vector.extract_strided_slice %20 {offsets = [40, 0], sizes = [8, 30], strides = [1, 1]} : vector<64x30xf32> to vector<8x30xf32>
    %106 = vector.extract_strided_slice %23 {offsets = [40, 0], sizes = [8, 30], strides = [1, 1]} : vector<64x30xf32> to vector<8x30xf32>
    %cst_47 = arith.constant dense<0.000000e+00> : vector<48x30xf32>
    %107 = tpu.matmul %104, %105, %cst_47 {dimension_numbers = #tpu.dot_dimension_numbers<[0], [0], [1], [1], [0, 1, 1, 1], [], []>} : vector<8x48xf32>, vector<8x30xf32>, vector<48x30xf32> -> vector<48x30xf32>
    %108 = arith.addf %107, %6 : vector<48x30xf32>
    %cst_48 = arith.constant dense<0xFF800000> : vector<48xf32>
    %109 = vector.multi_reduction <maximumf>, %108, %cst_48 [1] : vector<48x30xf32> to vector<48xf32>
    %110 = vector.shape_cast %109 : vector<48xf32> to vector<48x1xf32>
    %111 = vector.broadcast %110 : vector<48x1xf32> to vector<48x30xf32>
    %112 = arith.subf %108, %111 : vector<48x30xf32>
    %113 = math.exp %112 : vector<48x30xf32>
    %cst_49 = arith.constant dense<0.000000e+00> : vector<48xf32>
    %114 = vector.multi_reduction <add>, %113, %cst_49 [1] : vector<48x30xf32> to vector<48xf32>
    %115 = vector.shape_cast %114 : vector<48xf32> to vector<48x1xf32>
    %116 = tpu.reciprocal %115 {approx = true} : vector<48x1xf32> -> vector<48x1xf32>
    %117 = vector.broadcast %116 : vector<48x1xf32> to vector<48x30xf32>
    %118 = arith.mulf %113, %117 : vector<48x30xf32>
    %cst_50 = arith.constant dense<0.000000e+00> : vector<8x48xf32>
    %119 = tpu.matmul %106, %118, %cst_50 {dimension_numbers = #tpu.dot_dimension_numbers<[1], [1], [0], [0], [0, 0, 1, 0], [], []>} : vector<8x30xf32>, vector<48x30xf32>, vector<8x48xf32> -> vector<8x48xf32>
    %120 = vector.extract_strided_slice %17 {offsets = [48, 0], sizes = [8, 48], strides = [1, 1]} : vector<64x48xf32> to vector<8x48xf32>
    %121 = vector.extract_strided_slice %20 {offsets = [48, 0], sizes = [8, 30], strides = [1, 1]} : vector<64x30xf32> to vector<8x30xf32>
    %122 = vector.extract_strided_slice %23 {offsets = [48, 0], sizes = [8, 30], strides = [1, 1]} : vector<64x30xf32> to vector<8x30xf32>
    %cst_51 = arith.constant dense<0.000000e+00> : vector<48x30xf32>
    %123 = tpu.matmul %120, %121, %cst_51 {dimension_numbers = #tpu.dot_dimension_numbers<[0], [0], [1], [1], [0, 1, 1, 1], [], []>} : vector<8x48xf32>, vector<8x30xf32>, vector<48x30xf32> -> vector<48x30xf32>
    %124 = arith.addf %123, %6 : vector<48x30xf32>
    %cst_52 = arith.constant dense<0xFF800000> : vector<48xf32>
    %125 = vector.multi_reduction <maximumf>, %124, %cst_52 [1] : vector<48x30xf32> to vector<48xf32>
    %126 = vector.shape_cast %125 : vector<48xf32> to vector<48x1xf32>
    %127 = vector.broadcast %126 : vector<48x1xf32> to vector<48x30xf32>
    %128 = arith.subf %124, %127 : vector<48x30xf32>
    %129 = math.exp %128 : vector<48x30xf32>
    %cst_53 = arith.constant dense<0.000000e+00> : vector<48xf32>
    %130 = vector.multi_reduction <add>, %129, %cst_53 [1] : vector<48x30xf32> to vector<48xf32>
    %131 = vector.shape_cast %130 : vector<48xf32> to vector<48x1xf32>
    %132 = tpu.reciprocal %131 {approx = true} : vector<48x1xf32> -> vector<48x1xf32>
    %133 = vector.broadcast %132 : vector<48x1xf32> to vector<48x30xf32>
    %134 = arith.mulf %129, %133 : vector<48x30xf32>
    %cst_54 = arith.constant dense<0.000000e+00> : vector<8x48xf32>
    %135 = tpu.matmul %122, %134, %cst_54 {dimension_numbers = #tpu.dot_dimension_numbers<[1], [1], [0], [0], [0, 0, 1, 0], [], []>} : vector<8x30xf32>, vector<48x30xf32>, vector<8x48xf32> -> vector<8x48xf32>
    %136 = vector.extract_strided_slice %17 {offsets = [56, 0], sizes = [8, 48], strides = [1, 1]} : vector<64x48xf32> to vector<8x48xf32>
    %137 = vector.extract_strided_slice %20 {offsets = [56, 0], sizes = [8, 30], strides = [1, 1]} : vector<64x30xf32> to vector<8x30xf32>
    %138 = vector.extract_strided_slice %23 {offsets = [56, 0], sizes = [8, 30], strides = [1, 1]} : vector<64x30xf32> to vector<8x30xf32>
    %cst_55 = arith.constant dense<0.000000e+00> : vector<48x30xf32>
    %139 = tpu.matmul %136, %137, %cst_55 {dimension_numbers = #tpu.dot_dimension_numbers<[0], [0], [1], [1], [0, 1, 1, 1], [], []>} : vector<8x48xf32>, vector<8x30xf32>, vector<48x30xf32> -> vector<48x30xf32>
    %140 = arith.addf %139, %6 : vector<48x30xf32>
    %cst_56 = arith.constant dense<0xFF800000> : vector<48xf32>
    %141 = vector.multi_reduction <maximumf>, %140, %cst_56 [1] : vector<48x30xf32> to vector<48xf32>
    %142 = vector.shape_cast %141 : vector<48xf32> to vector<48x1xf32>
    %143 = vector.broadcast %142 : vector<48x1xf32> to vector<48x30xf32>
    %144 = arith.subf %140, %143 : vector<48x30xf32>
    %145 = math.exp %144 : vector<48x30xf32>
    %cst_57 = arith.constant dense<0.000000e+00> : vector<48xf32>
    %146 = vector.multi_reduction <add>, %145, %cst_57 [1] : vector<48x30xf32> to vector<48xf32>
    %147 = vector.shape_cast %146 : vector<48xf32> to vector<48x1xf32>
    %148 = tpu.reciprocal %147 {approx = true} : vector<48x1xf32> -> vector<48x1xf32>
    %149 = vector.broadcast %148 : vector<48x1xf32> to vector<48x30xf32>
    %150 = arith.mulf %145, %149 : vector<48x30xf32>
    %cst_58 = arith.constant dense<0.000000e+00> : vector<8x48xf32>
    %151 = tpu.matmul %138, %150, %cst_58 {dimension_numbers = #tpu.dot_dimension_numbers<[1], [1], [0], [0], [0, 0, 1, 0], [], []>} : vector<8x30xf32>, vector<48x30xf32>, vector<8x48xf32> -> vector<8x48xf32>
    %152 = tpu.concatenate %39, %55, %71, %87, %103, %119, %135, %151 in 0 : vector<8x48xf32>, vector<8x48xf32>, vector<8x48xf32>, vector<8x48xf32>, vector<8x48xf32>, vector<8x48xf32>, vector<8x48xf32>, vector<8x48xf32> -> vector<64x48xf32>
    %cst_59 = arith.constant dense<0.000000e+00> : vector<48x64xf32>
    %153 = tpu.matmul %152, %13, %cst_59 {dimension_numbers = #tpu.dot_dimension_numbers<[0], [0], [1], [1], [0, 1, 1, 1], [], []>} : vector<64x48xf32>, vector<64x64xf32>, vector<48x64xf32> -> vector<48x64xf32>
    %154 = vector.broadcast %14 : vector<1x64xf32> to vector<48x64xf32>
    %155 = arith.addf %153, %154 : vector<48x64xf32>
    %156 = arith.addf %0, %155 : vector<48x64xf32>
    %c0_60 = arith.constant 0 : index
    %c0_61 = arith.constant 0 : index
    %157 = vector.load %arg14[%c0_60, %c0_61] : memref<1x64xf32, #tpu.memory_space<vmem>>, vector<1x64xf32>
    %c0_62 = arith.constant 0 : index
    %c0_63 = arith.constant 0 : index
    %158 = vector.load %arg15[%c0_62, %c0_63] : memref<1x64xf32, #tpu.memory_space<vmem>>, vector<1x64xf32>
    %cst_64 = arith.constant dense<0.000000e+00> : vector<48xf32>
    %159 = vector.multi_reduction <add>, %156, %cst_64 [1] : vector<48x64xf32> to vector<48xf32>
    %160 = vector.shape_cast %159 : vector<48xf32> to vector<48x1xf32>
    %cst_65 = arith.constant 6.400000e+01 : f32
    %161 = vector.broadcast %cst_65 : f32 to vector<48x1xf32>
    %162 = arith.divf %160, %161 : vector<48x1xf32>
    %163 = vector.broadcast %162 : vector<48x1xf32> to vector<48x64xf32>
    %164 = arith.subf %156, %163 : vector<48x64xf32>
    %165 = arith.mulf %164, %164 : vector<48x64xf32>
    %cst_66 = arith.constant dense<0.000000e+00> : vector<48xf32>
    %166 = vector.multi_reduction <add>, %165, %cst_66 [1] : vector<48x64xf32> to vector<48xf32>
    %167 = vector.shape_cast %166 : vector<48xf32> to vector<48x1xf32>
    %cst_67 = arith.constant 6.400000e+01 : f32
    %168 = vector.broadcast %cst_67 : f32 to vector<48x1xf32>
    %169 = arith.divf %167, %168 : vector<48x1xf32>
    %cst_68 = arith.constant 9.99999974E-6 : f32
    %170 = vector.broadcast %cst_68 : f32 to vector<48x1xf32>
    %171 = arith.addf %169, %170 : vector<48x1xf32>
    %172 = math.rsqrt %171 : vector<48x1xf32>
    %173 = vector.broadcast %172 : vector<48x1xf32> to vector<48x64xf32>
    %174 = arith.mulf %164, %173 : vector<48x64xf32>
    %175 = vector.broadcast %157 : vector<1x64xf32> to vector<48x64xf32>
    %176 = arith.mulf %174, %175 : vector<48x64xf32>
    %177 = vector.broadcast %158 : vector<1x64xf32> to vector<48x64xf32>
    %178 = arith.addf %176, %177 : vector<48x64xf32>
    %c0_69 = arith.constant 0 : index
    %c0_70 = arith.constant 0 : index
    %179 = vector.load %arg16[%c0_69, %c0_70] : memref<64x256xf32, #tpu.memory_space<vmem>>, vector<64x256xf32>
    %cst_71 = arith.constant dense<0.000000e+00> : vector<48x256xf32>
    %180 = tpu.matmul %178, %179, %cst_71 {dimension_numbers = #tpu.dot_dimension_numbers<[1], [0], [0], [1], [0, 0, 1, 1], [], []>} : vector<48x64xf32>, vector<64x256xf32>, vector<48x256xf32> -> vector<48x256xf32>
    %c0_72 = arith.constant 0 : index
    %c0_73 = arith.constant 0 : index
    %181 = vector.load %arg17[%c0_72, %c0_73] : memref<1x256xf32, #tpu.memory_space<vmem>>, vector<1x256xf32>
    %182 = vector.broadcast %181 : vector<1x256xf32> to vector<48x256xf32>
    %183 = arith.addf %180, %182 : vector<48x256xf32>
    %cst_74 = arith.constant 0.000000e+00 : f32
    %184 = vector.broadcast %cst_74 : f32 to vector<48x256xf32>
    %185 = arith.maximumf %183, %184 : vector<48x256xf32>
    %c0_75 = arith.constant 0 : index
    %c0_76 = arith.constant 0 : index
    %186 = vector.load %arg18[%c0_75, %c0_76] : memref<256x64xf32, #tpu.memory_space<vmem>>, vector<256x64xf32>
    %cst_77 = arith.constant dense<0.000000e+00> : vector<48x64xf32>
    %187 = tpu.matmul %185, %186, %cst_77 {dimension_numbers = #tpu.dot_dimension_numbers<[1], [0], [0], [1], [0, 0, 1, 1], [], []>} : vector<48x256xf32>, vector<256x64xf32>, vector<48x64xf32> -> vector<48x64xf32>
    %c0_78 = arith.constant 0 : index
    %c0_79 = arith.constant 0 : index
    %188 = vector.load %arg19[%c0_78, %c0_79] : memref<1x64xf32, #tpu.memory_space<vmem>>, vector<1x64xf32>
    %189 = vector.broadcast %188 : vector<1x64xf32> to vector<48x64xf32>
    %190 = arith.addf %187, %189 : vector<48x64xf32>
    %191 = arith.addf %190, %178 : vector<48x64xf32>
    %c0_80 = arith.constant 0 : index
    %c0_81 = arith.constant 0 : index
    %192 = vector.load %arg20[%c0_80, %c0_81] : memref<1x64xf32, #tpu.memory_space<vmem>>, vector<1x64xf32>
    %c0_82 = arith.constant 0 : index
    %c0_83 = arith.constant 0 : index
    %193 = vector.load %arg21[%c0_82, %c0_83] : memref<1x64xf32, #tpu.memory_space<vmem>>, vector<1x64xf32>
    %cst_84 = arith.constant dense<0.000000e+00> : vector<48xf32>
    %194 = vector.multi_reduction <add>, %191, %cst_84 [1] : vector<48x64xf32> to vector<48xf32>
    %195 = vector.shape_cast %194 : vector<48xf32> to vector<48x1xf32>
    %cst_85 = arith.constant 6.400000e+01 : f32
    %196 = vector.broadcast %cst_85 : f32 to vector<48x1xf32>
    %197 = arith.divf %195, %196 : vector<48x1xf32>
    %198 = vector.broadcast %197 : vector<48x1xf32> to vector<48x64xf32>
    %199 = arith.subf %191, %198 : vector<48x64xf32>
    %200 = arith.mulf %199, %199 : vector<48x64xf32>
    %cst_86 = arith.constant dense<0.000000e+00> : vector<48xf32>
    %201 = vector.multi_reduction <add>, %200, %cst_86 [1] : vector<48x64xf32> to vector<48xf32>
    %202 = vector.shape_cast %201 : vector<48xf32> to vector<48x1xf32>
    %cst_87 = arith.constant 6.400000e+01 : f32
    %203 = vector.broadcast %cst_87 : f32 to vector<48x1xf32>
    %204 = arith.divf %202, %203 : vector<48x1xf32>
    %cst_88 = arith.constant 9.99999974E-6 : f32
    %205 = vector.broadcast %cst_88 : f32 to vector<48x1xf32>
    %206 = arith.addf %204, %205 : vector<48x1xf32>
    %207 = math.rsqrt %206 : vector<48x1xf32>
    %208 = vector.broadcast %207 : vector<48x1xf32> to vector<48x64xf32>
    %209 = arith.mulf %199, %208 : vector<48x64xf32>
    %210 = vector.broadcast %192 : vector<1x64xf32> to vector<48x64xf32>
    %211 = arith.mulf %209, %210 : vector<48x64xf32>
    %212 = vector.broadcast %193 : vector<1x64xf32> to vector<48x64xf32>
    %213 = arith.addf %211, %212 : vector<48x64xf32>
    %c0_89 = arith.constant 0 : index
    %c0_90 = arith.constant 0 : index
    %214 = vector.load %arg22[%c0_89, %c0_90] : memref<48x64xf32, #tpu.memory_space<vmem>>, vector<48x64xf32>
    tpu.vector_store %arg22[%c0_89, %c0_90], %213 {strides = array<i32>} : memref<48x64xf32, #tpu.memory_space<vmem>>, vector<48x64xf32>,
    return
  }
  func.func @transform_0(%arg0: i32) -> (i32, i32) {
    %c0_i32 = arith.constant 0 : i32
    %c0_i32_0 = arith.constant 0 : i32
    %c0_i32_1 = arith.constant 0 : i32
    return %c0_i32, %c0_i32_0 : i32, i32
  }
  func.func @transform_1(%arg0: i32) -> (i32, i32) {
    %c0_i32 = arith.constant 0 : i32
    %c0_i32_0 = arith.constant 0 : i32
    %c0_i32_1 = arith.constant 0 : i32
    return %c0_i32, %c0_i32_0 : i32, i32
  }
  func.func @transform_2(%arg0: i32) -> (i32, i32) {
    %c0_i32 = arith.constant 0 : i32
    %c0_i32_0 = arith.constant 0 : i32
    %c0_i32_1 = arith.constant 0 : i32
    return %c0_i32, %c0_i32_0 : i32, i32
  }
  func.func @transform_3(%arg0: i32) -> (i32, i32) {
    %c0_i32 = arith.constant 0 : i32
    %c0_i32_0 = arith.constant 0 : i32
    %c0_i32_1 = arith.constant 0 : i32
    return %c0_i32, %c0_i32_0 : i32, i32
  }
  func.func @transform_4(%arg0: i32) -> (i32, i32) {
    %c0_i32 = arith.constant 0 : i32
    %c0_i32_0 = arith.constant 0 : i32
    %c0_i32_1 = arith.constant 0 : i32
    return %c0_i32, %c0_i32_0 : i32, i32
  }
  func.func @transform_5(%arg0: i32) -> (i32, i32) {
    %c0_i32 = arith.constant 0 : i32
    %c0_i32_0 = arith.constant 0 : i32
    %c0_i32_1 = arith.constant 0 : i32
    return %c0_i32, %c0_i32_0 : i32, i32
  }
  func.func @transform_6(%arg0: i32) -> (i32, i32) {
    %c0_i32 = arith.constant 0 : i32
    %c0_i32_0 = arith.constant 0 : i32
    %c0_i32_1 = arith.constant 0 : i32
    return %c0_i32, %c0_i32_0 : i32, i32
  }
  func.func @transform_7(%arg0: i32) -> (i32, i32) {
    %c0_i32 = arith.constant 0 : i32
    %c0_i32_0 = arith.constant 0 : i32
    %c0_i32_1 = arith.constant 0 : i32
    return %c0_i32, %c0_i32_0 : i32, i32
  }
  func.func @transform_8(%arg0: i32) -> (i32, i32) {
    %c0_i32 = arith.constant 0 : i32
    %c0_i32_0 = arith.constant 0 : i32
    %c0_i32_1 = arith.constant 0 : i32
    return %c0_i32, %c0_i32_0 : i32, i32
  }
  func.func @transform_9(%arg0: i32) -> (i32, i32) {
    %c0_i32 = arith.constant 0 : i32
    %c0_i32_0 = arith.constant 0 : i32
    %c0_i32_1 = arith.constant 0 : i32
    return %c0_i32, %c0_i32_0 : i32, i32
  }
  func.func @transform_10(%arg0: i32) -> (i32, i32) {
    %c0_i32 = arith.constant 0 : i32
    %c0_i32_0 = arith.constant 0 : i32
    %c0_i32_1 = arith.constant 0 : i32
    return %c0_i32, %c0_i32_0 : i32, i32
  }
  func.func @transform_11(%arg0: i32) -> (i32, i32) {
    %c0_i32 = arith.constant 0 : i32
    %c0_i32_0 = arith.constant 0 : i32
    %c0_i32_1 = arith.constant 0 : i32
    return %c0_i32, %c0_i32_0 : i32, i32
  }
  func.func @transform_12(%arg0: i32) -> (i32, i32) {
    %c0_i32 = arith.constant 0 : i32
    %c0_i32_0 = arith.constant 0 : i32
    %c0_i32_1 = arith.constant 0 : i32
    return %c0_i32, %c0_i32_0 : i32, i32
  }
  func.func @transform_13(%arg0: i32) -> (i32, i32) {
    %c0_i32 = arith.constant 0 : i32
    %c0_i32_0 = arith.constant 0 : i32
    %c0_i32_1 = arith.constant 0 : i32
    return %c0_i32, %c0_i32_0 : i32, i32
  }
  func.func @transform_14(%arg0: i32) -> (i32, i32) {
    %c0_i32 = arith.constant 0 : i32
    %c0_i32_0 = arith.constant 0 : i32
    %c0_i32_1 = arith.constant 0 : i32
    return %c0_i32, %c0_i32_0 : i32, i32
  }
  func.func @transform_15(%arg0: i32) -> (i32, i32) {
    %c0_i32 = arith.constant 0 : i32
    %c0_i32_0 = arith.constant 0 : i32
    %c0_i32_1 = arith.constant 0 : i32
    return %c0_i32, %c0_i32_0 : i32, i32
  }
  func.func @transform_16(%arg0: i32) -> (i32, i32) {
    %c0_i32 = arith.constant 0 : i32
    %c0_i32_0 = arith.constant 0 : i32
    %c0_i32_1 = arith.constant 0 : i32
    return %c0_i32, %c0_i32_0 : i32, i32
  }
  func.func @transform_17(%arg0: i32) -> (i32, i32) {
    %c0_i32 = arith.constant 0 : i32
    %c0_i32_0 = arith.constant 0 : i32
    %c0_i32_1 = arith.constant 0 : i32
    return %c0_i32, %c0_i32_0 : i32, i32
  }
  func.func @transform_18(%arg0: i32) -> (i32, i32) {
    %c0_i32 = arith.constant 0 : i32
    %c0_i32_0 = arith.constant 0 : i32
    %c0_i32_1 = arith.constant 0 : i32
    return %c0_i32, %c0_i32_0 : i32, i32
  }
  func.func @transform_19(%arg0: i32) -> (i32, i32) {
    %c0_i32 = arith.constant 0 : i32
    %c0_i32_0 = arith.constant 0 : i32
    %c0_i32_1 = arith.constant 0 : i32
    return %c0_i32, %c0_i32_0 : i32, i32
  }
  func.func @transform_20(%arg0: i32) -> (i32, i32) {
    %c0_i32 = arith.constant 0 : i32
    %c0_i32_0 = arith.constant 0 : i32
    %c0_i32_1 = arith.constant 0 : i32
    return %c0_i32, %c0_i32_0 : i32, i32
  }
  func.func @transform_21(%arg0: i32) -> (i32, i32) {
    %c0_i32 = arith.constant 0 : i32
    %c0_i32_0 = arith.constant 0 : i32
    %c0_i32_1 = arith.constant 0 : i32
    return %c0_i32, %c0_i32_0 : i32, i32
  }
}

module attributes {stable_mosaic.version = 11 : i64} {
  func.func @_cross_branch_kernel(%arg0: i32, %arg1: memref<30x64xf32, #tpu.memory_space<vmem>>, %arg2: memref<30x64xf32, #tpu.memory_space<vmem>>, %arg3: memref<48x64xf32, #tpu.memory_space<vmem>>, %arg4: memref<48x64xf32, #tpu.memory_space<vmem>>, %arg5: memref<30x48xf32, #tpu.memory_space<vmem>>, %arg6: memref<64x64xf32, #tpu.memory_space<vmem>>, %arg7: memref<64x1xf32, #tpu.memory_space<vmem>>, %arg8: memref<64x64xf32, #tpu.memory_space<vmem>>, %arg9: memref<64x1xf32, #tpu.memory_space<vmem>>, %arg10: memref<64x64xf32, #tpu.memory_space<vmem>>, %arg11: memref<64x1xf32, #tpu.memory_space<vmem>>, %arg12: memref<64x64xf32, #tpu.memory_space<vmem>>, %arg13: memref<1x64xf32, #tpu.memory_space<vmem>>, %arg14: memref<1x64xf32, #tpu.memory_space<vmem>>, %arg15: memref<1x64xf32, #tpu.memory_space<vmem>>, %arg16: memref<64x256xf32, #tpu.memory_space<vmem>>, %arg17: memref<1x256xf32, #tpu.memory_space<vmem>>, %arg18: memref<256x64xf32, #tpu.memory_space<vmem>>, %arg19: memref<1x64xf32, #tpu.memory_space<vmem>>, %arg20: memref<1x64xf32, #tpu.memory_space<vmem>>, %arg21: memref<1x64xf32, #tpu.memory_space<vmem>>, %arg22: memref<30x64xf32, #tpu.memory_space<vmem>>) attributes {dimension_semantics = [#tpu.dimension_semantics<arbitrary>], iteration_bounds = array<i64: 1>, scalar_prefetch = 0 : i64, scratch_operands = 0 : i64, tpu.core_type = #tpu.core_type<tc>, window_params = [{pipeline_mode = #tpu.pipeline_mode<synchronous>, transform_indices = @transform_0, window_bounds = array<i64: 30, 64>}, {pipeline_mode = #tpu.pipeline_mode<synchronous>, transform_indices = @transform_1, window_bounds = array<i64: 30, 64>}, {pipeline_mode = #tpu.pipeline_mode<synchronous>, transform_indices = @transform_2, window_bounds = array<i64: 48, 64>}, {pipeline_mode = #tpu.pipeline_mode<synchronous>, transform_indices = @transform_3, window_bounds = array<i64: 48, 64>}, {pipeline_mode = #tpu.pipeline_mode<synchronous>, transform_indices = @transform_4, window_bounds = array<i64: 30, 48>}, {pipeline_mode = #tpu.pipeline_mode<synchronous>, transform_indices = @transform_5, window_bounds = array<i64: 64, 64>}, {pipeline_mode = #tpu.pipeline_mode<synchronous>, transform_indices = @transform_6, window_bounds = array<i64: 64, 1>}, {pipeline_mode = #tpu.pipeline_mode<synchronous>, transform_indices = @transform_7, window_bounds = array<i64: 64, 64>}, {pipeline_mode = #tpu.pipeline_mode<synchronous>, transform_indices = @transform_8, window_bounds = array<i64: 64, 1>}, {pipeline_mode = #tpu.pipeline_mode<synchronous>, transform_indices = @transform_9, window_bounds = array<i64: 64, 64>}, {pipeline_mode = #tpu.pipeline_mode<synchronous>, transform_indices = @transform_10, window_bounds = array<i64: 64, 1>}, {pipeline_mode = #tpu.pipeline_mode<synchronous>, transform_indices = @transform_11, window_bounds = array<i64: 64, 64>}, {pipeline_mode = #tpu.pipeline_mode<synchronous>, transform_indices = @transform_12, window_bounds = array<i64: 1, 64>}, {pipeline_mode = #tpu.pipeline_mode<synchronous>, transform_indices = @transform_13, window_bounds = array<i64: 1, 64>}, {pipeline_mode = #tpu.pipeline_mode<synchronous>, transform_indices = @transform_14, window_bounds = array<i64: 1, 64>}, {pipeline_mode = #tpu.pipeline_mode<synchronous>, transform_indices = @transform_15, window_bounds = array<i64: 64, 256>}, {pipeline_mode = #tpu.pipeline_mode<synchronous>, transform_indices = @transform_16, window_bounds = array<i64: 1, 256>}, {pipeline_mode = #tpu.pipeline_mode<synchronous>, transform_indices = @transform_17, window_bounds = array<i64: 256, 64>}, {pipeline_mode = #tpu.pipeline_mode<synchronous>, transform_indices = @transform_18, window_bounds = array<i64: 1, 64>}, {pipeline_mode = #tpu.pipeline_mode<synchronous>, transform_indices = @transform_19, window_bounds = array<i64: 1, 64>}, {pipeline_mode = #tpu.pipeline_mode<synchronous>, transform_indices = @transform_20, window_bounds = array<i64: 1, 64>}, {pipeline_mode = #tpu.pipeline_mode<synchronous>, transform_indices = @transform_21, window_bounds = array<i64: 30, 64>}]} {
    %c0 = arith.constant 0 : index
    %c0_0 = arith.constant 0 : index
    %0 = vector.load %arg1[%c0, %c0_0] : memref<30x64xf32, #tpu.memory_space<vmem>>, vector<30x64xf32>
    %c0_1 = arith.constant 0 : index
    %c0_2 = arith.constant 0 : index
    %1 = vector.load %arg3[%c0_1, %c0_2] : memref<48x64xf32, #tpu.memory_space<vmem>>, vector<48x64xf32>
    %c0_3 = arith.constant 0 : index
    %c0_4 = arith.constant 0 : index
    %2 = vector.load %arg2[%c0_3, %c0_4] : memref<30x64xf32, #tpu.memory_space<vmem>>, vector<30x64xf32>
    %3 = arith.addf %0, %2 : vector<30x64xf32>
    %c0_5 = arith.constant 0 : index
    %c0_6 = arith.constant 0 : index
    %4 = vector.load %arg4[%c0_5, %c0_6] : memref<48x64xf32, #tpu.memory_space<vmem>>, vector<48x64xf32>
    %5 = arith.addf %1, %4 : vector<48x64xf32>
    %c0_7 = arith.constant 0 : index
    %c0_8 = arith.constant 0 : index
    %6 = vector.load %arg5[%c0_7, %c0_8] : memref<30x48xf32, #tpu.memory_space<vmem>>, vector<30x48xf32>
    %c0_9 = arith.constant 0 : index
    %c0_10 = arith.constant 0 : index
    %7 = vector.load %arg6[%c0_9, %c0_10] : memref<64x64xf32, #tpu.memory_space<vmem>>, vector<64x64xf32>
    %c0_11 = arith.constant 0 : index
    %c0_12 = arith.constant 0 : index
    %8 = vector.load %arg7[%c0_11, %c0_12] : memref<64x1xf32, #tpu.memory_space<vmem>>, vector<64x1xf32>
    %c0_13 = arith.constant 0 : index
    %c0_14 = arith.constant 0 : index
    %9 = vector.load %arg8[%c0_13, %c0_14] : memref<64x64xf32, #tpu.memory_space<vmem>>, vector<64x64xf32>
    %c0_15 = arith.constant 0 : index
    %c0_16 = arith.constant 0 : index
    %10 = vector.load %arg9[%c0_15, %c0_16] : memref<64x1xf32, #tpu.memory_space<vmem>>, vector<64x1xf32>
    %c0_17 = arith.constant 0 : index
    %c0_18 = arith.constant 0 : index
    %11 = vector.load %arg10[%c0_17, %c0_18] : memref<64x64xf32, #tpu.memory_space<vmem>>, vector<64x64xf32>
    %c0_19 = arith.constant 0 : index
    %c0_20 = arith.constant 0 : index
    %12 = vector.load %arg11[%c0_19, %c0_20] : memref<64x1xf32, #tpu.memory_space<vmem>>, vector<64x1xf32>
    %c0_21 = arith.constant 0 : index
    %c0_22 = arith.constant 0 : index
    %13 = vector.load %arg12[%c0_21, %c0_22] : memref<64x64xf32, #tpu.memory_space<vmem>>, vector<64x64xf32>
    %c0_23 = arith.constant 0 : index
    %c0_24 = arith.constant 0 : index
    %14 = vector.load %arg13[%c0_23, %c0_24] : memref<1x64xf32, #tpu.memory_space<vmem>>, vector<1x64xf32>
    %cst = arith.constant dense<0.000000e+00> : vector<64x30xf32>
    %15 = tpu.matmul %7, %3, %cst {dimension_numbers = #tpu.dot_dimension_numbers<[1], [1], [0], [0], [0, 0, 1, 0], [], []>} : vector<64x64xf32>, vector<30x64xf32>, vector<64x30xf32> -> vector<64x30xf32>
    %16 = vector.broadcast %8 : vector<64x1xf32> to vector<64x30xf32>
    %17 = arith.addf %15, %16 : vector<64x30xf32>
    %cst_25 = arith.constant dense<0.000000e+00> : vector<64x48xf32>
    %18 = tpu.matmul %9, %5, %cst_25 {dimension_numbers = #tpu.dot_dimension_numbers<[1], [1], [0], [0], [0, 0, 1, 0], [], []>} : vector<64x64xf32>, vector<48x64xf32>, vector<64x48xf32> -> vector<64x48xf32>
    %19 = vector.broadcast %10 : vector<64x1xf32> to vector<64x48xf32>
    %20 = arith.addf %18, %19 : vector<64x48xf32>
    %cst_26 = arith.constant dense<0.000000e+00> : vector<64x48xf32>
    %21 = tpu.matmul %11, %1, %cst_26 {dimension_numbers = #tpu.dot_dimension_numbers<[1], [1], [0], [0], [0, 0, 1, 0], [], []>} : vector<64x64xf32>, vector<48x64xf32>, vector<64x48xf32> -> vector<64x48xf32>
    %22 = vector.broadcast %12 : vector<64x1xf32> to vector<64x48xf32>
    %23 = arith.addf %21, %22 : vector<64x48xf32>
    %24 = vector.extract_strided_slice %17 {offsets = [0, 0], sizes = [8, 30], strides = [1, 1]} : vector<64x30xf32> to vector<8x30xf32>
    %25 = vector.extract_strided_slice %20 {offsets = [0, 0], sizes = [8, 48], strides = [1, 1]} : vector<64x48xf32> to vector<8x48xf32>
    %26 = vector.extract_strided_slice %23 {offsets = [0, 0], sizes = [8, 48], strides = [1, 1]} : vector<64x48xf32> to vector<8x48xf32>
    %cst_27 = arith.constant dense<0.000000e+00> : vector<30x48xf32>
    %27 = tpu.matmul %24, %25, %cst_27 {dimension_numbers = #tpu.dot_dimension_numbers<[0], [0], [1], [1], [0, 1, 1, 1], [], []>} : vector<8x30xf32>, vector<8x48xf32>, vector<30x48xf32> -> vector<30x48xf32>
    %28 = arith.addf %27, %6 : vector<30x48xf32>
    %cst_28 = arith.constant dense<0xFF800000> : vector<30xf32>
    %29 = vector.multi_reduction <maximumf>, %28, %cst_28 [1] : vector<30x48xf32> to vector<30xf32>
    %30 = vector.shape_cast %29 : vector<30xf32> to vector<30x1xf32>
    %31 = vector.broadcast %30 : vector<30x1xf32> to vector<30x48xf32>
    %32 = arith.subf %28, %31 : vector<30x48xf32>
    %33 = math.exp %32 : vector<30x48xf32>
    %cst_29 = arith.constant dense<0.000000e+00> : vector<30xf32>
    %34 = vector.multi_reduction <add>, %33, %cst_29 [1] : vector<30x48xf32> to vector<30xf32>
    %35 = vector.shape_cast %34 : vector<30xf32> to vector<30x1xf32>
    %36 = tpu.reciprocal %35 {approx = true} : vector<30x1xf32> -> vector<30x1xf32>
    %37 = vector.broadcast %36 : vector<30x1xf32> to vector<30x48xf32>
    %38 = arith.mulf %33, %37 : vector<30x48xf32>
    %cst_30 = arith.constant dense<0.000000e+00> : vector<8x30xf32>
    %39 = tpu.matmul %26, %38, %cst_30 {dimension_numbers = #tpu.dot_dimension_numbers<[1], [1], [0], [0], [0, 0, 1, 0], [], []>} : vector<8x48xf32>, vector<30x48xf32>, vector<8x30xf32> -> vector<8x30xf32>
    %40 = vector.extract_strided_slice %17 {offsets = [8, 0], sizes = [8, 30], strides = [1, 1]} : vector<64x30xf32> to vector<8x30xf32>
    %41 = vector.extract_strided_slice %20 {offsets = [8, 0], sizes = [8, 48], strides = [1, 1]} : vector<64x48xf32> to vector<8x48xf32>
    %42 = vector.extract_strided_slice %23 {offsets = [8, 0], sizes = [8, 48], strides = [1, 1]} : vector<64x48xf32> to vector<8x48xf32>
    %cst_31 = arith.constant dense<0.000000e+00> : vector<30x48xf32>
    %43 = tpu.matmul %40, %41, %cst_31 {dimension_numbers = #tpu.dot_dimension_numbers<[0], [0], [1], [1], [0, 1, 1, 1], [], []>} : vector<8x30xf32>, vector<8x48xf32>, vector<30x48xf32> -> vector<30x48xf32>
    %44 = arith.addf %43, %6 : vector<30x48xf32>
    %cst_32 = arith.constant dense<0xFF800000> : vector<30xf32>
    %45 = vector.multi_reduction <maximumf>, %44, %cst_32 [1] : vector<30x48xf32> to vector<30xf32>
    %46 = vector.shape_cast %45 : vector<30xf32> to vector<30x1xf32>
    %47 = vector.broadcast %46 : vector<30x1xf32> to vector<30x48xf32>
    %48 = arith.subf %44, %47 : vector<30x48xf32>
    %49 = math.exp %48 : vector<30x48xf32>
    %cst_33 = arith.constant dense<0.000000e+00> : vector<30xf32>
    %50 = vector.multi_reduction <add>, %49, %cst_33 [1] : vector<30x48xf32> to vector<30xf32>
    %51 = vector.shape_cast %50 : vector<30xf32> to vector<30x1xf32>
    %52 = tpu.reciprocal %51 {approx = true} : vector<30x1xf32> -> vector<30x1xf32>
    %53 = vector.broadcast %52 : vector<30x1xf32> to vector<30x48xf32>
    %54 = arith.mulf %49, %53 : vector<30x48xf32>
    %cst_34 = arith.constant dense<0.000000e+00> : vector<8x30xf32>
    %55 = tpu.matmul %42, %54, %cst_34 {dimension_numbers = #tpu.dot_dimension_numbers<[1], [1], [0], [0], [0, 0, 1, 0], [], []>} : vector<8x48xf32>, vector<30x48xf32>, vector<8x30xf32> -> vector<8x30xf32>
    %56 = vector.extract_strided_slice %17 {offsets = [16, 0], sizes = [8, 30], strides = [1, 1]} : vector<64x30xf32> to vector<8x30xf32>
    %57 = vector.extract_strided_slice %20 {offsets = [16, 0], sizes = [8, 48], strides = [1, 1]} : vector<64x48xf32> to vector<8x48xf32>
    %58 = vector.extract_strided_slice %23 {offsets = [16, 0], sizes = [8, 48], strides = [1, 1]} : vector<64x48xf32> to vector<8x48xf32>
    %cst_35 = arith.constant dense<0.000000e+00> : vector<30x48xf32>
    %59 = tpu.matmul %56, %57, %cst_35 {dimension_numbers = #tpu.dot_dimension_numbers<[0], [0], [1], [1], [0, 1, 1, 1], [], []>} : vector<8x30xf32>, vector<8x48xf32>, vector<30x48xf32> -> vector<30x48xf32>
    %60 = arith.addf %59, %6 : vector<30x48xf32>
    %cst_36 = arith.constant dense<0xFF800000> : vector<30xf32>
    %61 = vector.multi_reduction <maximumf>, %60, %cst_36 [1] : vector<30x48xf32> to vector<30xf32>
    %62 = vector.shape_cast %61 : vector<30xf32> to vector<30x1xf32>
    %63 = vector.broadcast %62 : vector<30x1xf32> to vector<30x48xf32>
    %64 = arith.subf %60, %63 : vector<30x48xf32>
    %65 = math.exp %64 : vector<30x48xf32>
    %cst_37 = arith.constant dense<0.000000e+00> : vector<30xf32>
    %66 = vector.multi_reduction <add>, %65, %cst_37 [1] : vector<30x48xf32> to vector<30xf32>
    %67 = vector.shape_cast %66 : vector<30xf32> to vector<30x1xf32>
    %68 = tpu.reciprocal %67 {approx = true} : vector<30x1xf32> -> vector<30x1xf32>
    %69 = vector.broadcast %68 : vector<30x1xf32> to vector<30x48xf32>
    %70 = arith.mulf %65, %69 : vector<30x48xf32>
    %cst_38 = arith.constant dense<0.000000e+00> : vector<8x30xf32>
    %71 = tpu.matmul %58, %70, %cst_38 {dimension_numbers = #tpu.dot_dimension_numbers<[1], [1], [0], [0], [0, 0, 1, 0], [], []>} : vector<8x48xf32>, vector<30x48xf32>, vector<8x30xf32> -> vector<8x30xf32>
    %72 = vector.extract_strided_slice %17 {offsets = [24, 0], sizes = [8, 30], strides = [1, 1]} : vector<64x30xf32> to vector<8x30xf32>
    %73 = vector.extract_strided_slice %20 {offsets = [24, 0], sizes = [8, 48], strides = [1, 1]} : vector<64x48xf32> to vector<8x48xf32>
    %74 = vector.extract_strided_slice %23 {offsets = [24, 0], sizes = [8, 48], strides = [1, 1]} : vector<64x48xf32> to vector<8x48xf32>
    %cst_39 = arith.constant dense<0.000000e+00> : vector<30x48xf32>
    %75 = tpu.matmul %72, %73, %cst_39 {dimension_numbers = #tpu.dot_dimension_numbers<[0], [0], [1], [1], [0, 1, 1, 1], [], []>} : vector<8x30xf32>, vector<8x48xf32>, vector<30x48xf32> -> vector<30x48xf32>
    %76 = arith.addf %75, %6 : vector<30x48xf32>
    %cst_40 = arith.constant dense<0xFF800000> : vector<30xf32>
    %77 = vector.multi_reduction <maximumf>, %76, %cst_40 [1] : vector<30x48xf32> to vector<30xf32>
    %78 = vector.shape_cast %77 : vector<30xf32> to vector<30x1xf32>
    %79 = vector.broadcast %78 : vector<30x1xf32> to vector<30x48xf32>
    %80 = arith.subf %76, %79 : vector<30x48xf32>
    %81 = math.exp %80 : vector<30x48xf32>
    %cst_41 = arith.constant dense<0.000000e+00> : vector<30xf32>
    %82 = vector.multi_reduction <add>, %81, %cst_41 [1] : vector<30x48xf32> to vector<30xf32>
    %83 = vector.shape_cast %82 : vector<30xf32> to vector<30x1xf32>
    %84 = tpu.reciprocal %83 {approx = true} : vector<30x1xf32> -> vector<30x1xf32>
    %85 = vector.broadcast %84 : vector<30x1xf32> to vector<30x48xf32>
    %86 = arith.mulf %81, %85 : vector<30x48xf32>
    %cst_42 = arith.constant dense<0.000000e+00> : vector<8x30xf32>
    %87 = tpu.matmul %74, %86, %cst_42 {dimension_numbers = #tpu.dot_dimension_numbers<[1], [1], [0], [0], [0, 0, 1, 0], [], []>} : vector<8x48xf32>, vector<30x48xf32>, vector<8x30xf32> -> vector<8x30xf32>
    %88 = vector.extract_strided_slice %17 {offsets = [32, 0], sizes = [8, 30], strides = [1, 1]} : vector<64x30xf32> to vector<8x30xf32>
    %89 = vector.extract_strided_slice %20 {offsets = [32, 0], sizes = [8, 48], strides = [1, 1]} : vector<64x48xf32> to vector<8x48xf32>
    %90 = vector.extract_strided_slice %23 {offsets = [32, 0], sizes = [8, 48], strides = [1, 1]} : vector<64x48xf32> to vector<8x48xf32>
    %cst_43 = arith.constant dense<0.000000e+00> : vector<30x48xf32>
    %91 = tpu.matmul %88, %89, %cst_43 {dimension_numbers = #tpu.dot_dimension_numbers<[0], [0], [1], [1], [0, 1, 1, 1], [], []>} : vector<8x30xf32>, vector<8x48xf32>, vector<30x48xf32> -> vector<30x48xf32>
    %92 = arith.addf %91, %6 : vector<30x48xf32>
    %cst_44 = arith.constant dense<0xFF800000> : vector<30xf32>
    %93 = vector.multi_reduction <maximumf>, %92, %cst_44 [1] : vector<30x48xf32> to vector<30xf32>
    %94 = vector.shape_cast %93 : vector<30xf32> to vector<30x1xf32>
    %95 = vector.broadcast %94 : vector<30x1xf32> to vector<30x48xf32>
    %96 = arith.subf %92, %95 : vector<30x48xf32>
    %97 = math.exp %96 : vector<30x48xf32>
    %cst_45 = arith.constant dense<0.000000e+00> : vector<30xf32>
    %98 = vector.multi_reduction <add>, %97, %cst_45 [1] : vector<30x48xf32> to vector<30xf32>
    %99 = vector.shape_cast %98 : vector<30xf32> to vector<30x1xf32>
    %100 = tpu.reciprocal %99 {approx = true} : vector<30x1xf32> -> vector<30x1xf32>
    %101 = vector.broadcast %100 : vector<30x1xf32> to vector<30x48xf32>
    %102 = arith.mulf %97, %101 : vector<30x48xf32>
    %cst_46 = arith.constant dense<0.000000e+00> : vector<8x30xf32>
    %103 = tpu.matmul %90, %102, %cst_46 {dimension_numbers = #tpu.dot_dimension_numbers<[1], [1], [0], [0], [0, 0, 1, 0], [], []>} : vector<8x48xf32>, vector<30x48xf32>, vector<8x30xf32> -> vector<8x30xf32>
    %104 = vector.extract_strided_slice %17 {offsets = [40, 0], sizes = [8, 30], strides = [1, 1]} : vector<64x30xf32> to vector<8x30xf32>
    %105 = vector.extract_strided_slice %20 {offsets = [40, 0], sizes = [8, 48], strides = [1, 1]} : vector<64x48xf32> to vector<8x48xf32>
    %106 = vector.extract_strided_slice %23 {offsets = [40, 0], sizes = [8, 48], strides = [1, 1]} : vector<64x48xf32> to vector<8x48xf32>
    %cst_47 = arith.constant dense<0.000000e+00> : vector<30x48xf32>
    %107 = tpu.matmul %104, %105, %cst_47 {dimension_numbers = #tpu.dot_dimension_numbers<[0], [0], [1], [1], [0, 1, 1, 1], [], []>} : vector<8x30xf32>, vector<8x48xf32>, vector<30x48xf32> -> vector<30x48xf32>
    %108 = arith.addf %107, %6 : vector<30x48xf32>
    %cst_48 = arith.constant dense<0xFF800000> : vector<30xf32>
    %109 = vector.multi_reduction <maximumf>, %108, %cst_48 [1] : vector<30x48xf32> to vector<30xf32>
    %110 = vector.shape_cast %109 : vector<30xf32> to vector<30x1xf32>
    %111 = vector.broadcast %110 : vector<30x1xf32> to vector<30x48xf32>
    %112 = arith.subf %108, %111 : vector<30x48xf32>
    %113 = math.exp %112 : vector<30x48xf32>
    %cst_49 = arith.constant dense<0.000000e+00> : vector<30xf32>
    %114 = vector.multi_reduction <add>, %113, %cst_49 [1] : vector<30x48xf32> to vector<30xf32>
    %115 = vector.shape_cast %114 : vector<30xf32> to vector<30x1xf32>
    %116 = tpu.reciprocal %115 {approx = true} : vector<30x1xf32> -> vector<30x1xf32>
    %117 = vector.broadcast %116 : vector<30x1xf32> to vector<30x48xf32>
    %118 = arith.mulf %113, %117 : vector<30x48xf32>
    %cst_50 = arith.constant dense<0.000000e+00> : vector<8x30xf32>
    %119 = tpu.matmul %106, %118, %cst_50 {dimension_numbers = #tpu.dot_dimension_numbers<[1], [1], [0], [0], [0, 0, 1, 0], [], []>} : vector<8x48xf32>, vector<30x48xf32>, vector<8x30xf32> -> vector<8x30xf32>
    %120 = vector.extract_strided_slice %17 {offsets = [48, 0], sizes = [8, 30], strides = [1, 1]} : vector<64x30xf32> to vector<8x30xf32>
    %121 = vector.extract_strided_slice %20 {offsets = [48, 0], sizes = [8, 48], strides = [1, 1]} : vector<64x48xf32> to vector<8x48xf32>
    %122 = vector.extract_strided_slice %23 {offsets = [48, 0], sizes = [8, 48], strides = [1, 1]} : vector<64x48xf32> to vector<8x48xf32>
    %cst_51 = arith.constant dense<0.000000e+00> : vector<30x48xf32>
    %123 = tpu.matmul %120, %121, %cst_51 {dimension_numbers = #tpu.dot_dimension_numbers<[0], [0], [1], [1], [0, 1, 1, 1], [], []>} : vector<8x30xf32>, vector<8x48xf32>, vector<30x48xf32> -> vector<30x48xf32>
    %124 = arith.addf %123, %6 : vector<30x48xf32>
    %cst_52 = arith.constant dense<0xFF800000> : vector<30xf32>
    %125 = vector.multi_reduction <maximumf>, %124, %cst_52 [1] : vector<30x48xf32> to vector<30xf32>
    %126 = vector.shape_cast %125 : vector<30xf32> to vector<30x1xf32>
    %127 = vector.broadcast %126 : vector<30x1xf32> to vector<30x48xf32>
    %128 = arith.subf %124, %127 : vector<30x48xf32>
    %129 = math.exp %128 : vector<30x48xf32>
    %cst_53 = arith.constant dense<0.000000e+00> : vector<30xf32>
    %130 = vector.multi_reduction <add>, %129, %cst_53 [1] : vector<30x48xf32> to vector<30xf32>
    %131 = vector.shape_cast %130 : vector<30xf32> to vector<30x1xf32>
    %132 = tpu.reciprocal %131 {approx = true} : vector<30x1xf32> -> vector<30x1xf32>
    %133 = vector.broadcast %132 : vector<30x1xf32> to vector<30x48xf32>
    %134 = arith.mulf %129, %133 : vector<30x48xf32>
    %cst_54 = arith.constant dense<0.000000e+00> : vector<8x30xf32>
    %135 = tpu.matmul %122, %134, %cst_54 {dimension_numbers = #tpu.dot_dimension_numbers<[1], [1], [0], [0], [0, 0, 1, 0], [], []>} : vector<8x48xf32>, vector<30x48xf32>, vector<8x30xf32> -> vector<8x30xf32>
    %136 = vector.extract_strided_slice %17 {offsets = [56, 0], sizes = [8, 30], strides = [1, 1]} : vector<64x30xf32> to vector<8x30xf32>
    %137 = vector.extract_strided_slice %20 {offsets = [56, 0], sizes = [8, 48], strides = [1, 1]} : vector<64x48xf32> to vector<8x48xf32>
    %138 = vector.extract_strided_slice %23 {offsets = [56, 0], sizes = [8, 48], strides = [1, 1]} : vector<64x48xf32> to vector<8x48xf32>
    %cst_55 = arith.constant dense<0.000000e+00> : vector<30x48xf32>
    %139 = tpu.matmul %136, %137, %cst_55 {dimension_numbers = #tpu.dot_dimension_numbers<[0], [0], [1], [1], [0, 1, 1, 1], [], []>} : vector<8x30xf32>, vector<8x48xf32>, vector<30x48xf32> -> vector<30x48xf32>
    %140 = arith.addf %139, %6 : vector<30x48xf32>
    %cst_56 = arith.constant dense<0xFF800000> : vector<30xf32>
    %141 = vector.multi_reduction <maximumf>, %140, %cst_56 [1] : vector<30x48xf32> to vector<30xf32>
    %142 = vector.shape_cast %141 : vector<30xf32> to vector<30x1xf32>
    %143 = vector.broadcast %142 : vector<30x1xf32> to vector<30x48xf32>
    %144 = arith.subf %140, %143 : vector<30x48xf32>
    %145 = math.exp %144 : vector<30x48xf32>
    %cst_57 = arith.constant dense<0.000000e+00> : vector<30xf32>
    %146 = vector.multi_reduction <add>, %145, %cst_57 [1] : vector<30x48xf32> to vector<30xf32>
    %147 = vector.shape_cast %146 : vector<30xf32> to vector<30x1xf32>
    %148 = tpu.reciprocal %147 {approx = true} : vector<30x1xf32> -> vector<30x1xf32>
    %149 = vector.broadcast %148 : vector<30x1xf32> to vector<30x48xf32>
    %150 = arith.mulf %145, %149 : vector<30x48xf32>
    %cst_58 = arith.constant dense<0.000000e+00> : vector<8x30xf32>
    %151 = tpu.matmul %138, %150, %cst_58 {dimension_numbers = #tpu.dot_dimension_numbers<[1], [1], [0], [0], [0, 0, 1, 0], [], []>} : vector<8x48xf32>, vector<30x48xf32>, vector<8x30xf32> -> vector<8x30xf32>
    %152 = tpu.concatenate %39, %55, %71, %87, %103, %119, %135, %151 in 0 : vector<8x30xf32>, vector<8x30xf32>, vector<8x30xf32>, vector<8x30xf32>, vector<8x30xf32>, vector<8x30xf32>, vector<8x30xf32>, vector<8x30xf32> -> vector<64x30xf32>
    %cst_59 = arith.constant dense<0.000000e+00> : vector<30x64xf32>
    %153 = tpu.matmul %152, %13, %cst_59 {dimension_numbers = #tpu.dot_dimension_numbers<[0], [0], [1], [1], [0, 1, 1, 1], [], []>} : vector<64x30xf32>, vector<64x64xf32>, vector<30x64xf32> -> vector<30x64xf32>
    %154 = vector.broadcast %14 : vector<1x64xf32> to vector<30x64xf32>
    %155 = arith.addf %153, %154 : vector<30x64xf32>
    %156 = arith.addf %0, %155 : vector<30x64xf32>
    %c0_60 = arith.constant 0 : index
    %c0_61 = arith.constant 0 : index
    %157 = vector.load %arg14[%c0_60, %c0_61] : memref<1x64xf32, #tpu.memory_space<vmem>>, vector<1x64xf32>
    %c0_62 = arith.constant 0 : index
    %c0_63 = arith.constant 0 : index
    %158 = vector.load %arg15[%c0_62, %c0_63] : memref<1x64xf32, #tpu.memory_space<vmem>>, vector<1x64xf32>
    %cst_64 = arith.constant dense<0.000000e+00> : vector<30xf32>
    %159 = vector.multi_reduction <add>, %156, %cst_64 [1] : vector<30x64xf32> to vector<30xf32>
    %160 = vector.shape_cast %159 : vector<30xf32> to vector<30x1xf32>
    %cst_65 = arith.constant 6.400000e+01 : f32
    %161 = vector.broadcast %cst_65 : f32 to vector<30x1xf32>
    %162 = arith.divf %160, %161 : vector<30x1xf32>
    %163 = vector.broadcast %162 : vector<30x1xf32> to vector<30x64xf32>
    %164 = arith.subf %156, %163 : vector<30x64xf32>
    %165 = arith.mulf %164, %164 : vector<30x64xf32>
    %cst_66 = arith.constant dense<0.000000e+00> : vector<30xf32>
    %166 = vector.multi_reduction <add>, %165, %cst_66 [1] : vector<30x64xf32> to vector<30xf32>
    %167 = vector.shape_cast %166 : vector<30xf32> to vector<30x1xf32>
    %cst_67 = arith.constant 6.400000e+01 : f32
    %168 = vector.broadcast %cst_67 : f32 to vector<30x1xf32>
    %169 = arith.divf %167, %168 : vector<30x1xf32>
    %cst_68 = arith.constant 9.99999974E-6 : f32
    %170 = vector.broadcast %cst_68 : f32 to vector<30x1xf32>
    %171 = arith.addf %169, %170 : vector<30x1xf32>
    %172 = math.rsqrt %171 : vector<30x1xf32>
    %173 = vector.broadcast %172 : vector<30x1xf32> to vector<30x64xf32>
    %174 = arith.mulf %164, %173 : vector<30x64xf32>
    %175 = vector.broadcast %157 : vector<1x64xf32> to vector<30x64xf32>
    %176 = arith.mulf %174, %175 : vector<30x64xf32>
    %177 = vector.broadcast %158 : vector<1x64xf32> to vector<30x64xf32>
    %178 = arith.addf %176, %177 : vector<30x64xf32>
    %c0_69 = arith.constant 0 : index
    %c0_70 = arith.constant 0 : index
    %179 = vector.load %arg16[%c0_69, %c0_70] : memref<64x256xf32, #tpu.memory_space<vmem>>, vector<64x256xf32>
    %cst_71 = arith.constant dense<0.000000e+00> : vector<30x256xf32>
    %180 = tpu.matmul %178, %179, %cst_71 {dimension_numbers = #tpu.dot_dimension_numbers<[1], [0], [0], [1], [0, 0, 1, 1], [], []>} : vector<30x64xf32>, vector<64x256xf32>, vector<30x256xf32> -> vector<30x256xf32>
    %c0_72 = arith.constant 0 : index
    %c0_73 = arith.constant 0 : index
    %181 = vector.load %arg17[%c0_72, %c0_73] : memref<1x256xf32, #tpu.memory_space<vmem>>, vector<1x256xf32>
    %182 = vector.broadcast %181 : vector<1x256xf32> to vector<30x256xf32>
    %183 = arith.addf %180, %182 : vector<30x256xf32>
    %cst_74 = arith.constant 0.000000e+00 : f32
    %184 = vector.broadcast %cst_74 : f32 to vector<30x256xf32>
    %185 = arith.maximumf %183, %184 : vector<30x256xf32>
    %c0_75 = arith.constant 0 : index
    %c0_76 = arith.constant 0 : index
    %186 = vector.load %arg18[%c0_75, %c0_76] : memref<256x64xf32, #tpu.memory_space<vmem>>, vector<256x64xf32>
    %cst_77 = arith.constant dense<0.000000e+00> : vector<30x64xf32>
    %187 = tpu.matmul %185, %186, %cst_77 {dimension_numbers = #tpu.dot_dimension_numbers<[1], [0], [0], [1], [0, 0, 1, 1], [], []>} : vector<30x256xf32>, vector<256x64xf32>, vector<30x64xf32> -> vector<30x64xf32>
    %c0_78 = arith.constant 0 : index
    %c0_79 = arith.constant 0 : index
    %188 = vector.load %arg19[%c0_78, %c0_79] : memref<1x64xf32, #tpu.memory_space<vmem>>, vector<1x64xf32>
    %189 = vector.broadcast %188 : vector<1x64xf32> to vector<30x64xf32>
    %190 = arith.addf %187, %189 : vector<30x64xf32>
    %191 = arith.addf %190, %178 : vector<30x64xf32>
    %c0_80 = arith.constant 0 : index
    %c0_81 = arith.constant 0 : index
    %192 = vector.load %arg20[%c0_80, %c0_81] : memref<1x64xf32, #tpu.memory_space<vmem>>, vector<1x64xf32>
    %c0_82 = arith.constant 0 : index
    %c0_83 = arith.constant 0 : index
    %193 = vector.load %arg21[%c0_82, %c0_83] : memref<1x64xf32, #tpu.memory_space<vmem>>, vector<1x64xf32>
    %cst_84 = arith.constant dense<0.000000e+00> : vector<30xf32>
    %194 = vector.multi_reduction <add>, %191, %cst_84 [1] : vector<30x64xf32> to vector<30xf32>
    %195 = vector.shape_cast %194 : vector<30xf32> to vector<30x1xf32>
    %cst_85 = arith.constant 6.400000e+01 : f32
    %196 = vector.broadcast %cst_85 : f32 to vector<30x1xf32>
    %197 = arith.divf %195, %196 : vector<30x1xf32>
    %198 = vector.broadcast %197 : vector<30x1xf32> to vector<30x64xf32>
    %199 = arith.subf %191, %198 : vector<30x64xf32>
    %200 = arith.mulf %199, %199 : vector<30x64xf32>
    %cst_86 = arith.constant dense<0.000000e+00> : vector<30xf32>
    %201 = vector.multi_reduction <add>, %200, %cst_86 [1] : vector<30x64xf32> to vector<30xf32>
    %202 = vector.shape_cast %201 : vector<30xf32> to vector<30x1xf32>
    %cst_87 = arith.constant 6.400000e+01 : f32
    %203 = vector.broadcast %cst_87 : f32 to vector<30x1xf32>
    %204 = arith.divf %202, %203 : vector<30x1xf32>
    %cst_88 = arith.constant 9.99999974E-6 : f32
    %205 = vector.broadcast %cst_88 : f32 to vector<30x1xf32>
    %206 = arith.addf %204, %205 : vector<30x1xf32>
    %207 = math.rsqrt %206 : vector<30x1xf32>
    %208 = vector.broadcast %207 : vector<30x1xf32> to vector<30x64xf32>
    %209 = arith.mulf %199, %208 : vector<30x64xf32>
    %210 = vector.broadcast %192 : vector<1x64xf32> to vector<30x64xf32>
    %211 = arith.mulf %209, %210 : vector<30x64xf32>
    %212 = vector.broadcast %193 : vector<1x64xf32> to vector<30x64xf32>
    %213 = arith.addf %211, %212 : vector<30x64xf32>
    %c0_89 = arith.constant 0 : index
    %c0_90 = arith.constant 0 : index
    %214 = vector.load %arg22[%c0_89, %c0_90] : memref<30x64xf32, #tpu.memory_space<vmem>>, vector<30x64xf32>
    tpu.vector_store %arg22[%c0_89, %c0_90], %213 {strides = array<i32>} : memref<30x64xf32, #tpu.memory_space<vmem>>, vector<30x64xf32>,
    return
  }
  func.func @transform_0(%arg0: i32) -> (i32, i32) {
    %c0_i32 = arith.constant 0 : i32
    %c0_i32_0 = arith.constant 0 : i32
    %c0_i32_1 = arith.constant 0 : i32
    return %c0_i32, %c0_i32_0 : i32, i32
  }
  func.func @transform_1(%arg0: i32) -> (i32, i32) {
    %c0_i32 = arith.constant 0 : i32
    %c0_i32_0 = arith.constant 0 : i32
    %c0_i32_1 = arith.constant 0 : i32
    return %c0_i32, %c0_i32_0 : i32, i32
  }
  func.func @transform_2(%arg0: i32) -> (i32, i32) {
    %c0_i32 = arith.constant 0 : i32
    %c0_i32_0 = arith.constant 0 : i32
    %c0_i32_1 = arith.constant 0 : i32
    return %c0_i32, %c0_i32_0 : i32, i32
  }
  func.func @transform_3(%arg0: i32) -> (i32, i32) {
    %c0_i32 = arith.constant 0 : i32
    %c0_i32_0 = arith.constant 0 : i32
    %c0_i32_1 = arith.constant 0 : i32
    return %c0_i32, %c0_i32_0 : i32, i32
  }
  func.func @transform_4(%arg0: i32) -> (i32, i32) {
    %c0_i32 = arith.constant 0 : i32
    %c0_i32_0 = arith.constant 0 : i32
    %c0_i32_1 = arith.constant 0 : i32
    return %c0_i32, %c0_i32_0 : i32, i32
  }
  func.func @transform_5(%arg0: i32) -> (i32, i32) {
    %c0_i32 = arith.constant 0 : i32
    %c0_i32_0 = arith.constant 0 : i32
    %c0_i32_1 = arith.constant 0 : i32
    return %c0_i32, %c0_i32_0 : i32, i32
  }
  func.func @transform_6(%arg0: i32) -> (i32, i32) {
    %c0_i32 = arith.constant 0 : i32
    %c0_i32_0 = arith.constant 0 : i32
    %c0_i32_1 = arith.constant 0 : i32
    return %c0_i32, %c0_i32_0 : i32, i32
  }
  func.func @transform_7(%arg0: i32) -> (i32, i32) {
    %c0_i32 = arith.constant 0 : i32
    %c0_i32_0 = arith.constant 0 : i32
    %c0_i32_1 = arith.constant 0 : i32
    return %c0_i32, %c0_i32_0 : i32, i32
  }
  func.func @transform_8(%arg0: i32) -> (i32, i32) {
    %c0_i32 = arith.constant 0 : i32
    %c0_i32_0 = arith.constant 0 : i32
    %c0_i32_1 = arith.constant 0 : i32
    return %c0_i32, %c0_i32_0 : i32, i32
  }
  func.func @transform_9(%arg0: i32) -> (i32, i32) {
    %c0_i32 = arith.constant 0 : i32
    %c0_i32_0 = arith.constant 0 : i32
    %c0_i32_1 = arith.constant 0 : i32
    return %c0_i32, %c0_i32_0 : i32, i32
  }
  func.func @transform_10(%arg0: i32) -> (i32, i32) {
    %c0_i32 = arith.constant 0 : i32
    %c0_i32_0 = arith.constant 0 : i32
    %c0_i32_1 = arith.constant 0 : i32
    return %c0_i32, %c0_i32_0 : i32, i32
  }
  func.func @transform_11(%arg0: i32) -> (i32, i32) {
    %c0_i32 = arith.constant 0 : i32
    %c0_i32_0 = arith.constant 0 : i32
    %c0_i32_1 = arith.constant 0 : i32
    return %c0_i32, %c0_i32_0 : i32, i32
  }
  func.func @transform_12(%arg0: i32) -> (i32, i32) {
    %c0_i32 = arith.constant 0 : i32
    %c0_i32_0 = arith.constant 0 : i32
    %c0_i32_1 = arith.constant 0 : i32
    return %c0_i32, %c0_i32_0 : i32, i32
  }
  func.func @transform_13(%arg0: i32) -> (i32, i32) {
    %c0_i32 = arith.constant 0 : i32
    %c0_i32_0 = arith.constant 0 : i32
    %c0_i32_1 = arith.constant 0 : i32
    return %c0_i32, %c0_i32_0 : i32, i32
  }
  func.func @transform_14(%arg0: i32) -> (i32, i32) {
    %c0_i32 = arith.constant 0 : i32
    %c0_i32_0 = arith.constant 0 : i32
    %c0_i32_1 = arith.constant 0 : i32
    return %c0_i32, %c0_i32_0 : i32, i32
  }
  func.func @transform_15(%arg0: i32) -> (i32, i32) {
    %c0_i32 = arith.constant 0 : i32
    %c0_i32_0 = arith.constant 0 : i32
    %c0_i32_1 = arith.constant 0 : i32
    return %c0_i32, %c0_i32_0 : i32, i32
  }
  func.func @transform_16(%arg0: i32) -> (i32, i32) {
    %c0_i32 = arith.constant 0 : i32
    %c0_i32_0 = arith.constant 0 : i32
    %c0_i32_1 = arith.constant 0 : i32
    return %c0_i32, %c0_i32_0 : i32, i32
  }
  func.func @transform_17(%arg0: i32) -> (i32, i32) {
    %c0_i32 = arith.constant 0 : i32
    %c0_i32_0 = arith.constant 0 : i32
    %c0_i32_1 = arith.constant 0 : i32
    return %c0_i32, %c0_i32_0 : i32, i32
  }
  func.func @transform_18(%arg0: i32) -> (i32, i32) {
    %c0_i32 = arith.constant 0 : i32
    %c0_i32_0 = arith.constant 0 : i32
    %c0_i32_1 = arith.constant 0 : i32
    return %c0_i32, %c0_i32_0 : i32, i32
  }
  func.func @transform_19(%arg0: i32) -> (i32, i32) {
    %c0_i32 = arith.constant 0 : i32
    %c0_i32_0 = arith.constant 0 : i32
    %c0_i32_1 = arith.constant 0 : i32
    return %c0_i32, %c0_i32_0 : i32, i32
  }
  func.func @transform_20(%arg0: i32) -> (i32, i32) {
    %c0_i32 = arith.constant 0 : i32
    %c0_i32_0 = arith.constant 0 : i32
    %c0_i32_1 = arith.constant 0 : i32
    return %c0_i32, %c0_i32_0 : i32, i32
  }
  func.func @transform_21(%arg0: i32) -> (i32, i32) {
    %c0_i32 = arith.constant 0 : i32
    %c0_i32_0 = arith.constant 0 : i32
    %c0_i32_1 = arith.constant 0 : i32
    return %c0_i32, %c0_i32_0 : i32, i32
  }
}

</mosaic_0001>

<bundles_post_ra>
// kernel: forward.5
= control target key start
LH: loop header
LB: loop body
LE: loop exit
PB: predicated region body
PF: predicated region fallthrough
CT: control target
= control target key end

     0   :  { %vm53_vm0 = vcmask 261120   ;;  %vm238_vm1 = vcmask 523264   ;;  %v3026_v8 = vmov 0   ;;  %vm750_vm2 = vcmask 64512   ;;  %s3576_s3 = inlined_call_operand.vmem [shape: f32[32,64], index: 3, kind: input, shape index: {}]   ;;  %s3577_s0 = inlined_call_operand.vmem [shape: f32[16,32], index: 0, kind: input, shape index: {}]   ;;  %s3578_s4 = inlined_call_operand.vmem [shape: f32[64,64], index: 4, kind: input, shape index: {}]   ;;  %s3579_s6 = inlined_call_operand.vmem [shape: f32[64,64], index: 6, kind: input, shape index: {}]   ;;  %s3580_s5 = inlined_call_operand.vmem [shape: f32[64,1], index: 5, kind: input, shape index: {}]   ;;  %s3581_s7 = inlined_call_operand.vmem [shape: f32[64,1], index: 7, kind: input, shape index: {}]   ;;  %s3582_s1 = inlined_call_operand.vmem [shape: f32[16,64], index: 1, kind: input, shape index: {}]   ;;  %s3583_s8 = inlined_call_operand.vmem [shape: f32[64,64], index: 8, kind: input, shape index: {}]   ;;  %s3584_s2 = inlined_call_operand.vmem [shape: f32[16,16], index: 2, kind: input, shape index: {}]   ;;  %s3585_s9 = inlined_call_operand.vmem [shape: f32[64,1], index: 9, kind: input, shape index: {}]   ;;  %s3586_s10 = inlined_call_operand.vmem [shape: f32[64,64], index: 10, kind: input, shape index: {}]   ;;  %s3587_s11 = inlined_call_operand.vmem [shape: f32[1,64], index: 11, kind: input, shape index: {}]   ;;  %s3588_s12 = inlined_call_operand.vmem [shape: f32[1,64], index: 12, kind: input, shape index: {}]   ;;  %s3589_s13 = inlined_call_operand.vmem [shape: f32[1,64], index: 13, kind: input, shape index: {}]   ;;  %s3590_s14 = inlined_call_operand.vmem [shape: f32[16,64], index: 14, kind: output, shape index: {}]  }
   0x1   :  { %v52_v0 = vld [vmem:[%s3576_s3 + $0x18] sm:$0xff]  ;;  %v51_v1 = vld [vmem:[%s3576_s3 + $0x10] sm:$0xff]  ;;  %v47_v2 = vld [vmem:[%s3577_s0] sm:$0xff]  ;;  %2956 = vset.pattern.permute.xlu0 %v3026_v8  ;;  %2957 = vset.pattern.permute.xlu1 %v3026_v8  ;;  %vm832_vm3 = vcmask 130048   ;;  %vm3028_vm4 = vmmov 0  }
   0x2   :  { %2775 = vmatprep.subr.mxu0 %v52_v0  ;;  %v50_v3 = vld [vmem:[%s3576_s3 + $0x8] sm:$0xff]  ;;  %2783 = vmatprep.mubr.msk.f32.mxu0 %vm53_vm0, %v47_v2  ;;  %v49_v4 = vld [vmem:[%s3576_s3] sm:$0xff]  ;;  %v143_v21 = vld [vmem:[%s3578_s4 + $0x10] sm:$0xff] }
   0x3   :  { %2776 = vmatpush3.msra.mxu0 %v52_v0  ;;  %v48_v5 = vld [vmem:[%s3577_s0 + $0x8] sm:$0xff]  ;;  %v141_v6 = vld [vmem:[%s3578_s4] sm:$0xff]  ;;  %v159_v22 = vld [vmem:[%s3579_s6 + $0x10] sm:$0xff] }
   0x4   :  { %2777 = vmatprep.subr.mxu0 %v51_v1  ;;  %2790 = vmatprep.mubr.msk.f32.mxu1 %vm238_vm1, %v141_v6  ;;  %v157_v7 = vld [vmem:[%s3579_s6] sm:$0xff]  ;;  %v150_v11 = vld [vmem:[%s3580_s5 + $0x8] sm:$0xff]  ;;  %v144_v23 = vld [vmem:[%s3578_s4 + $0x18] sm:$0xff] }
   0x5   :  { %2778 = vmatpush3.msra.mxu0 %v51_v1  ;;  %v149_v9 = vld [vmem:[%s3580_s5] sm:$0xff]  ;;  %v166_v12 = vld [vmem:[%s3581_s7 + $0x8] sm:$0xff]  ;;  %v160_v24 = vld [vmem:[%s3579_s6 + $0x18] sm:$0xff] }
   0x6   :  { %2779 = vmatprep.subr.mxu0 %v50_v3  ;;  %v165_v10 = vld [vmem:[%s3581_s7] sm:$0xff]  ;;  %200 = vperm.xlu0 %2956, %v149_v9   ;;  %v136_v13 = vld [vmem:[%s3582_s1 + $0x8] sm:$0xff]  ;;  %v147_v29 = vld [vmem:[%s3578_s4 + $0x30] sm:$0xff] }
   0x7   :  { %2780 = vmatpush3.msra.mxu0 %v50_v3  ;;  %376 = vperm.xlu1 %2957, %v165_v10   ;;  %v135_v15 = vld [vmem:[%s3582_s1] sm:$0xff]  ;;  %v142_v19 = vld [vmem:[%s3578_s4 + $0x8] sm:$0xff]  ;;  %v163_v30 = vld [vmem:[%s3579_s6 + $0x30] sm:$0xff] }
   0x8   :  { %2781 = vmatprep.subr.mxu0 %v49_v4  ;;  %v158_v20 = vld [vmem:[%s3579_s6 + $0x8] sm:$0xff]  ;;  %v145_v25 = vld [vmem:[%s3578_s4 + $0x20] sm:$0xff]  ;;  %v148_v31 = vld [vmem:[%s3578_s4 + $0x38] sm:$0xff] }
   0x9   :  { %2782 = vmatpush3.msra.mxu0 %v49_v4  ;;  %v161_v26 = vld [vmem:[%s3579_s6 + $0x20] sm:$0xff]  ;;  %v146_v27 = vld [vmem:[%s3578_s4 + $0x28] sm:$0xff]  ;;  %v164_v32 = vld [vmem:[%s3579_s6 + $0x38] sm:$0xff] }
   0xa   :  { %2784 = vmatmul.mubr.msk.f32.vlgmr.msra.gmra.mxu0 %vm53_vm0, %v48_v5  ;;  %205 = vperm.xlu0 %2956, %v150_v11   ;;  %v162_v28 = vld [vmem:[%s3579_s6 + $0x28] sm:$0xff]  ;;  %v173_v33 = vld [vmem:[%s3583_s8] sm:$0xff]  ;;  %v175_v34 = vld [vmem:[%s3583_s8 + $0x10] sm:$0xff] }
   0xb   :  { %2806 = vmatprep.mubr.msk.f32.mxu0 %vm238_vm1, %v157_v7  ;;  %381 = vperm.xlu1 %2957, %v166_v12   ;;  %v174_v35 = vld [vmem:[%s3583_s8 + $0x8] sm:$0xff]  ;;  %v176_v36 = vld [vmem:[%s3583_s8 + $0x18] sm:$0xff]  ;;  %v177_v37 = vld [vmem:[%s3583_s8 + $0x20] sm:$0xff] }
   0xc   :  { %v178_v38 = vld [vmem:[%s3583_s8 + $0x28] sm:$0xff]  ;;  %v179_v49 = vld [vmem:[%s3583_s8 + $0x30] sm:$0xff]  ;;  %v180_v52 = vld [vmem:[%s3583_s8 + $0x38] sm:$0xff] }
  0x81   :  { %v201_v39 = vpop.permute.xlu0 %200 }
  0x82   :  { %v377_v40 = vpop.permute.xlu1 %376 }
  0x85   :  { %v206_v41 = vpop.permute.xlu0 %205 }
  0x86   :  { %v382_v42 = vpop.permute.xlu1 %381 }
  0xca   :  { %v3147_v14 = vpop.f32.mrf.mxu0 }
  0xcb   :  { %v138_v16 = vadd.f32 %v3147_v14, %v136_v13  ;;  %v3313_v13 = vld [vmem:[%s3584_s2 + $0x8] sm:$0xff] }
  0xcc   :  { %v3153_v17 = vpop.f32.mrf.mxu0 }
  0xcd   :  { %2786 = vmatprep.subr.msk.mxu1 %vm238_vm1, %v138_v16  ;;  %2802 = vmatprep.subr.msk.mxu0 %vm238_vm1, %v138_v16  ;;  %v137_v18 = vadd.f32 %v135_v15, %v3153_v17 }
  0xce   :  { %2787 = vmatpush3.xpose.msk.msra.mxu1 %vm238_vm1, %v138_v16  ;;  %2803 = vmatpush3.xpose.msk.msra.mxu0 %vm238_vm1, %v138_v16  ;;  %v3318_v16 = vld [vmem:[%s3584_s2] sm:$0xff] }
  0xcf   :  { %2788 = vmatprep.subr.msk.mxu1 %vm238_vm1, %v137_v18  ;;  %2804 = vmatprep.subr.msk.mxu0 %vm238_vm1, %v137_v18 }
  0xd2   :  { %2789 = vmatpush3.xpose.msk.msra.mxu1 %vm238_vm1, %v137_v18  ;;  %2805 = vmatpush3.xpose.msk.msra.mxu0 %vm238_vm1, %v137_v18 }
  0xd3   :  { %2818 = vmatprep.subr.msk.mxu0 %vm238_vm1, %v3147_v14  ;;  %2949 = vmatprep.subr.msk.mxu1 %vm238_vm1, %v3147_v14 }
  0xd5   :  { %2791 = vmatmul.mubr.msk.f32.vlgmr.msra.gmra.mxu1 %vm238_vm1, %v142_v19  ;;  %2807 = vmatmul.mubr.msk.f32.vlgmr.msra.gmra.mxu0 %vm238_vm1, %v158_v20 }
  0xd6   :  { %2819 = vmatpush3.xpose.msk.msra.mxu0 %vm238_vm1, %v3147_v14  ;;  %2951 = vmatpush3.xpose.msk.msra.mxu1 %vm238_vm1, %v3147_v14 }
  0xd7   :  { %2820 = vmatprep.subr.msk.mxu0 %vm238_vm1, %v3153_v17  ;;  %2950 = vmatprep.subr.msk.mxu1 %vm238_vm1, %v3153_v17 }
  0xd8   :  { %2793 = vmatprep.mubr.msk.f32.mxu1 %vm238_vm1, %v143_v21  ;;  %2809 = vmatprep.mubr.msk.f32.mxu0 %vm238_vm1, %v159_v22 }
  0xd9   :  { %2794 = vmatmul.mubr.msk.f32.gmra.mxu1 %vm238_vm1, %v144_v23  ;;  %2810 = vmatmul.mubr.msk.f32.gmra.mxu0 %vm238_vm1, %v160_v24 }
  0xda   :  { %2821 = vmatpush3.xpose.msk.msra.mxu0 %vm238_vm1, %v3153_v17  ;;  %2952 = vmatpush3.xpose.msk.msra.mxu1 %vm238_vm1, %v3153_v17 }
  0xdb   :  { %2796 = vmatprep.mubr.msk.f32.mxu1 %vm238_vm1, %v145_v25  ;;  %2812 = vmatprep.mubr.msk.f32.mxu0 %vm238_vm1, %v161_v26 }
  0xdd   :  { %2797 = vmatmul.mubr.msk.f32.gmra.mxu1 %vm238_vm1, %v146_v27  ;;  %2813 = vmatmul.mubr.msk.f32.gmra.mxu0 %vm238_vm1, %v162_v28 }
  0xde   :  { %2799 = vmatprep.mubr.msk.f32.mxu1 %vm238_vm1, %v147_v29  ;;  %2815 = vmatprep.mubr.msk.f32.mxu0 %vm238_vm1, %v163_v30  ;;  %v152_v29 = vld [vmem:[%s3580_s5 + $0x18] sm:$0xff]  ;;  %v167_v30 = vld [vmem:[%s3581_s7 + $0x10] sm:$0xff] }
  0xe1   :  { %2800 = vmatmul.mubr.msk.f32.gmra.mxu1 %vm238_vm1, %v148_v31  ;;  %2816 = vmatmul.mubr.msk.f32.gmra.mxu0 %vm238_vm1, %v164_v32  ;;  %v151_v31 = vld [vmem:[%s3580_s5 + $0x10] sm:$0xff]  ;;  %v181_v32 = vld [vmem:[%s3585_s9] sm:$0xff] }
  0xe2   :  { %2822 = vmatprep.mubr.msk.f32.mxu0 %vm238_vm1, %v173_v33  ;;  %2825 = vmatprep.mubr.msk.f32.mxu1 %vm238_vm1, %v175_v34 }
  0xe5   :  { %2823 = vmatmul.mubr.msk.f32.vlgmr.msra.gmra.mxu0 %vm238_vm1, %v174_v35  ;;  %2826 = vmatmul.mubr.msk.f32.vlgmr.msra.gmra.mxu1 %vm238_vm1, %v176_v36 }
  0xe6   :  { %2828 = vmatprep.mubr.msk.f32.mxu1 %vm238_vm1, %v177_v37 }
  0xe9   :  { %2829 = vmatmul.mubr.msk.f32.gmra.mxu1 %vm238_vm1, %v178_v38 }
  0xea   :  { %2831 = vmatprep.mubr.msk.f32.mxu1 %vm238_vm1, %v179_v49 }
  0xed   :  { %2832 = vmatmul.mubr.msk.f32.gmra.mxu1 %vm238_vm1, %v180_v52 }
 0x195   :  { %v2792_v43 = vpop.f32.mrf.mxu1  ;;  %v2808_v44 = vpop.f32.mrf.mxu0 }
 0x196   :  { %v341_v45 = vadd.f32 %v2792_v43, %v206_v41  ;;  %v510_v46 = vadd.f32 %v2808_v44, %v382_v42 }
 0x197   :  { %v335_v47 = vpop.f32.mrf.mxu1  ;;  %v504_v48 = vpop.f32.mrf.mxu0 }
 0x198   :  { %v336_v50 = vadd.f32 %v335_v47, %v201_v39  ;;  %934 = vxpose.xlu1.b32.start.end [1/1] (short) (narrow) %v341_v45, 16  ;;  %v505_v51 = vadd.f32 %v504_v48, %v377_v40  ;;  %2846 = vmatprep.subr.mxu1 %v510_v46 }
 0x199   :  { %2847 = vmatpush3.msra.mxu1 %v510_v46  ;;  %v3272_v57 = vpop.f32.mrf.mxu1  ;;  %v3282_v62 = vpop.f32.mrf.mxu0 }
 0x19a   :  { %718 = vxpose.xlu0.b32.start.end [1/1] (short) (narrow) %v336_v50, 16  ;;  %2834 = vmatprep.subr.mxu0 %v505_v51 }
 0x19b   :  { %2835 = vmatpush3.msra.mxu0 %v505_v51  ;;  %v3274_v58 = vpop.f32.mrf.mxu1  ;;  %v514_v0 = vpop.f32.mrf.mxu0 }
 0x19d   :  { %v3276_v59 = vpop.f32.mrf.mxu1  ;;  %v3288_v2 = vpop.f32.mrf.mxu0 }
 0x19f   :  { %v3278_v60 = vpop.f32.mrf.mxu1  ;;  %v3292_v4 = vpop.f32.mrf.mxu0 }
 0x1a1   :  { %v3280_v61 = vpop.f32.mrf.mxu1  ;;  %v3296_v6 = vpop.f32.mrf.mxu0 }
 0x1a3   :  { %v3284_v63 = vpop.f32.mrf.mxu1  ;;  %v3300_v8 = vpop.f32.mrf.mxu0 }
 0x1a5   :  { %v3286_v1 = vpop.f32.mrf.mxu1  ;;  %v3304_v10 = vpop.f32.mrf.mxu0 }
 0x1a7   :  { %v3290_v3 = vpop.f32.mrf.mxu1  ;;  %v3308_v12 = vpop.f32.mrf.mxu0 }
 0x1a9   :  { %v3294_v5 = vpop.f32.mrf.mxu1 }
 0x1ab   :  { %v3298_v7 = vpop.f32.mrf.mxu1 }
 0x1ad   :  { %v3302_v9 = vpop.f32.mrf.mxu1 }
 0x1af   :  { %v3306_v11 = vpop.f32.mrf.mxu1 }
 0x214   :  { %v950_v53 = vpop.trf.xlu1 }
 0x215   :  { %2848 = vmatprep.mubr.msk.f32.mxu1 %vm750_vm2, %v950_v53 }
 0x216   :  { %v734_v54 = vpop.trf.xlu0 }
 0x217   :  { %2836 = vmatprep.mubr.msk.f32.mxu0 %vm750_vm2, %v734_v54 }
 0x218   :  { %v951_v55 = vpop.trf.xlu1 }
 0x219   :  { %2849 = vmatmul.mubr.msk.f32.vlgmr.msra.gmra.mxu1 %vm750_vm2, %v951_v55 }
 0x21a   :  { %v735_v56 = vpop.trf.xlu0 }
 0x21b   :  { %2837 = vmatmul.mubr.msk.f32.vlgmr.msra.gmra.mxu0 %vm750_vm2, %v735_v56  ;;  %v182_v56 = vld [vmem:[%s3585_s9 + $0x8] sm:$0xff] }
 0x2d9   :  { %v2850_v18 = vpop.f32.mrf.mxu1 }
 0x2da   :  { %v1044_v20 = vadd.f32 %v2850_v18, %v3313_v13 }
 0x2db   :  { %v2838_v15 = vpop.f32.mrf.mxu0  ;;  %v1038_v24 = vpop.f32.mrf.mxu1 }
 0x2dc   :  { %v829_v19 = vadd.f32 %v2838_v15, %v3313_v13  ;;  %v1050_v26 = vsel %vm832_vm3, %v1044_v20, -inf  ;;  %v1039_v27 = vadd.f32 %v1038_v24, %v3318_v16  ;;  %v168_v15 = vld [vmem:[%s3581_s7 + $0x18] sm:$0xff] }
 0x2dd   :  { %v823_v21 = vpop.f32.mrf.mxu0 }
 0x2de   :  { %v824_v22 = vadd.f32 %v823_v21, %v3318_v16  ;;  %v836_v23 = vsel %vm832_vm3, %v829_v19, -inf  ;;  %v1047_v28 = vsel %vm832_vm3, %v1039_v27, -inf }
 0x2df   :  { %837 = vmax.xlane.f32.xlu0 %v836_v23 }
 0x2e0   :  { %v833_v25 = vsel %vm832_vm3, %v824_v22, -inf }
 0x2e1   :  { %834 = vmax.xlane.f32.xlu1 %v833_v25 }
 0x2e3   :  { %1051 = vmax.xlane.f32.xlu0 %v1050_v26 }
 0x2e7   :  { %1048 = vmax.xlane.f32.xlu0 %v1047_v28 }
 0x2f2   :  { %215 = vperm.xlu1 %2957, %v152_v29  }
 0x2f6   :  { %386 = vperm.xlu1 %2957, %v167_v30  }
 0x2fd   :  { %210 = vperm.xlu0 %2956, %v151_v31  }
 0x301   :  { %545 = vperm.xlu0 %2956, %v181_v32  }
 0x368   :  { %v838_v33 = vpop.xlane.xlu0 %837 }
 0x369   :  { %v840_v34 = vsub.f32 %v829_v19, %v838_v33 }
 0x36a   :  { %v835_v35 = vpop.xlane.xlu1 %834 }
 0x36b   :  { %v843_v36 = vmul.f32 1.442695, %v840_v34  ;;  %v839_v40 = vsub.f32 %v824_v22, %v835_v35 }
 0x36c   :  { %v1052_v37 = vpop.xlane.xlu0 %1051 }
 0x36d   :  { %2958 = vpow2.f32 %v843_v36  ;;  %v1054_v38 = vsub.f32 %v1044_v20, %v1052_v37  ;;  %v841_v45 = vmul.f32 1.442695, %v839_v40 }
 0x36e   :  { %v216_v39 = vpop.permute.xlu1 %215 }
 0x36f   :  { %v1057_v41 = vmul.f32 1.442695, %v1054_v38  ;;  %v351_v20 = vadd.f32 %v3272_v57, %v216_v39 }
 0x370   :  { %v1049_v42 = vpop.xlane.xlu0 %1048 }
 0x371   :  { %2960 = vpow2.f32 %v1057_v41  ;;  %v1053_v43 = vsub.f32 %v1039_v27, %v1049_v42 }
 0x372   :  { %v387_v44 = vpop.permute.xlu1 %386 }
 0x373   :  { %v1055_v46 = vmul.f32 1.442695, %v1053_v43  ;;  %v515_v47 = vadd.f32 %v514_v0, %v387_v44  ;;  %v3027_v0 = vmov 0.0  }
 0x374   :  { %2839 = vmatprep.subr.mxu0 %v3027_v0  ;;  %2843 = vmatprep.mubr.msk.f32.mxu0 %vm3028_vm4, %v3027_v0 }
 0x375   :  { %2962 = vpow2.f32 %v1055_v46  ;;  %2858 = vmatprep.subr.mxu1 %v515_v47 }
 0x376   :  { %2859 = vmatpush3.msra.mxu1 %v515_v47  ;;  %2964 = vpow2.f32 %v841_v45 }
 0x377   :  { %2863 = vmatprep.subr.mxu1 %v3027_v0 }
 0x378   :  { %v211_v18 = vpop.permute.xlu0 %210 }
 0x379   :  { %v346_v19 = vadd.f32 %v3274_v58, %v211_v18 }
 0x37a   :  { %v2959_v48 = vpop.eup %2958 }
 0x37b   :  { %v848_v49 = vsel %vm832_vm3, %v2959_v48, 0.0 }
 0x37c   :  { %849 = vadd.xlane.f32.xlu1 %v848_v49  ;;  %v546_v22 = vpop.permute.xlu0 %545 }
 0x37d   :  { %v680_v57 = vadd.f32 %v3308_v12, %v546_v22 }
 0x37e   :  { %v2961_v50 = vpop.eup %2960 }
 0x37f   :  { %v1062_v51 = vsel %vm832_vm3, %v2961_v50, 0.0 }
 0x380   :  { %1063 = vadd.xlane.f32.xlu0 %v1062_v51 }
 0x382   :  { %v2963_v52 = vpop.eup %2962 }
 0x383   :  { %v1059_v53 = vsel %vm832_vm3, %v2963_v52, 0.0  ;;  %v2965_v54 = vpop.eup %2964 }
 0x384   :  { %1060 = vadd.xlane.f32.xlu1 %v1059_v53  ;;  %v845_v55 = vsel %vm832_vm3, %v2965_v54, 0.0 }
 0x388   :  { %846 = vadd.xlane.f32.xlu1 %v845_v55  ;;  %v154_v55 = vld [vmem:[%s3580_s5 + $0x28] sm:$0xff] }
 0x396   :  { %550 = vperm.xlu0 %2956, %v182_v56  }
 0x399   :  { %391 = vperm.xlu1 %2957, %v168_v15  }
 0x3b4   :  { %1148 = vxpose.xlu0.b32.start.end [1/1] (short) (narrow) %v346_v19, 16 }
 0x3c2   :  { %1362 = vxpose.xlu1.b32.start.end [1/1] (short) (narrow) %v351_v20, 16 }
 0x405   :  { %v850_v21 = vpop.xlane.xlu1 %849 }
 0x406   :  { %2966 = vrcp.f32 %v850_v21 }
 0x409   :  { %v1064_v24 = vpop.xlane.xlu0 %1063 }
 0x40d   :  { %v1061_v23 = vpop.xlane.xlu1 %1060 }
 0x411   :  { %v847_v25 = vpop.xlane.xlu1 %846  ;;  %v551_v33 = vpop.permute.xlu0 %550 }
 0x412   :  { %2968 = vrcp.f32 %v847_v25  ;;  %v685_v12 = vadd.f32 %v3304_v10, %v551_v33 }
 0x413   :  { %v2967_v26 = vpop.eup %2966  ;;  %2970 = vrcp.f32 %v1064_v24 }
 0x414   :  { %v854_v27 = vmul.f32 %v2967_v26, %v2959_v48  ;;  %2972 = vrcp.f32 %v1061_v23 }
 0x415   :  { %v392_v32 = vpop.permute.xlu1 %391 }
 0x416   :  { %2840 = vmatpush3.xpose.msk.msra.mxu0 %vm832_vm3, %v854_v27  ;;  %v520_v35 = vadd.f32 %v3282_v62, %v392_v32 }
 0x417   :  { %2841 = vmatprep.subr.mxu0 %v3027_v0 }
 0x41f   :  { %v2969_v58 = vpop.eup %2968 }
 0x420   :  { %v853_v28 = vmul.f32 %v2969_v58, %v2965_v54  ;;  %v2971_v29 = vpop.eup %2970  ;;  %v153_v54 = vld [vmem:[%s3580_s5 + $0x20] sm:$0xff] }
 0x421   :  { %v1068_v30 = vmul.f32 %v2971_v29, %v2961_v50  ;;  %v2973_v31 = vpop.eup %2972 }
 0x422   :  { %2842 = vmatpush3.xpose.msk.msra.mxu0 %vm832_vm3, %v853_v28  ;;  %v1067_v34 = vmul.f32 %v2973_v31, %v2963_v52 }
 0x423   :  { %2851 = vmatprep.subr.mxu0 %v3027_v0 }
 0x425   :  { %2844 = vmatmul.mubr.msk.f32.vlgmr.msra.gmra.mxu0 %vm832_vm3, %v680_v57 }
 0x426   :  { %2852 = vmatpush3.xpose.msk.msra.mxu0 %vm832_vm3, %v1068_v30  ;;  %2855 = vmatprep.mubr.msk.f32.mxu0 %vm3028_vm4, %v3027_v0 }
 0x427   :  { %2853 = vmatprep.subr.mxu0 %v3027_v0 }
 0x42a   :  { %2854 = vmatpush3.xpose.msk.msra.mxu0 %vm832_vm3, %v1067_v34  ;;  %v183_v34 = vld [vmem:[%s3585_s9 + $0x10] sm:$0xff] }
 0x42b   :  { %2870 = vmatprep.subr.mxu0 %v520_v35 }
 0x42d   :  { %2856 = vmatmul.mubr.msk.f32.vlgmr.msra.gmra.mxu0 %vm832_vm3, %v685_v12  ;;  %v170_v12 = vld [vmem:[%s3581_s7 + $0x28] sm:$0xff] }
 0x42e   :  { %2871 = vmatpush3.msra.mxu0 %v520_v35  ;;  %v184_v35 = vld [vmem:[%s3585_s9 + $0x18] sm:$0xff] }
 0x42f   :  { %2875 = vmatprep.subr.mxu0 %v3027_v0 }
 0x430   :  { %v1164_v36 = vpop.trf.xlu0 }
 0x431   :  { %2860 = vmatprep.mubr.msk.f32.mxu1 %vm750_vm2, %v1164_v36  ;;  %v169_v36 = vld [vmem:[%s3581_s7 + $0x20] sm:$0xff] }
 0x434   :  { %v1165_v37 = vpop.trf.xlu0 }
 0x435   :  { %2861 = vmatmul.mubr.msk.f32.vlgmr.msra.gmra.mxu1 %vm750_vm2, %v1165_v37 }
 0x436   :  { %2867 = vmatprep.mubr.msk.f32.mxu1 %vm3028_vm4, %v3027_v0 }
 0x43e   :  { %v1378_v62 = vpop.trf.xlu1 }
 0x43f   :  { %2872 = vmatprep.mubr.msk.f32.mxu0 %vm750_vm2, %v1378_v62 }
 0x442   :  { %v1379_v38 = vpop.trf.xlu1 }
 0x443   :  { %2873 = vmatmul.mubr.msk.f32.vlgmr.msra.gmra.mxu0 %vm750_vm2, %v1379_v38 }
 0x444   :  { %2879 = vmatprep.mubr.msk.f32.mxu0 %vm3028_vm4, %v3027_v0 }
 0x4e5   :  { %v3379_v10 = vpop.f32.mrf.mxu0 }
 0x4e7   :  { %v2845_v39 = vpop.f32.mrf.mxu0 }
 0x4ed   :  { %v3381_v40 = vpop.f32.mrf.mxu0 }
 0x4ef   :  { %v2857_v41 = vpop.f32.mrf.mxu0 }
 0x4f5   :  { %v2862_v42 = vpop.f32.mrf.mxu1 }
 0x4f6   :  { %v1258_v43 = vadd.f32 %v2862_v42, %v3313_v13 }
 0x4f7   :  { %v1252_v44 = vpop.f32.mrf.mxu1 }
 0x4f8   :  { %v1264_v45 = vsel %vm832_vm3, %v1258_v43, -inf  ;;  %v1253_v46 = vadd.f32 %v1252_v44, %v3318_v16 }
 0x4f9   :  { %1265 = vmax.xlane.f32.xlu0 %v1264_v45 }
 0x4fa   :  { %v1261_v47 = vsel %vm832_vm3, %v1253_v46, -inf }
 0x4fd   :  { %1262 = vmax.xlane.f32.xlu0 %v1261_v47 }
 0x503   :  { %v2874_v48 = vpop.f32.mrf.mxu0 }
 0x504   :  { %v1472_v49 = vadd.f32 %v2874_v48, %v3313_v13 }
 0x505   :  { %v1466_v50 = vpop.f32.mrf.mxu0 }
 0x506   :  { %v1467_v51 = vadd.f32 %v1466_v50, %v3318_v16  ;;  %v1478_v52 = vsel %vm832_vm3, %v1472_v49, -inf }
 0x507   :  { %1479 = vmax.xlane.f32.xlu1 %v1478_v52 }
 0x508   :  { %v1475_v53 = vsel %vm832_vm3, %v1467_v51, -inf }
 0x509   :  { %1476 = vmax.xlane.f32.xlu0 %v1475_v53 }
 0x518   :  { %220 = vperm.xlu1 %2957, %v153_v54  }
 0x51f   :  { %225 = vperm.xlu0 %2956, %v154_v55  }
 0x582   :  { %v1266_v56 = vpop.xlane.xlu0 %1265 }
 0x583   :  { %v1268_v15 = vsub.f32 %v1258_v43, %v1266_v56 }
 0x585   :  { %v1271_v18 = vmul.f32 1.442695, %v1268_v15 }
 0x586   :  { %v1263_v19 = vpop.xlane.xlu0 %1262 }
 0x587   :  { %2974 = vpow2.f32 %v1271_v18  ;;  %v1267_v20 = vsub.f32 %v1253_v46, %v1263_v19 }
 0x589   :  { %v1269_v21 = vmul.f32 1.442695, %v1267_v20 }
 0x58b   :  { %2976 = vpow2.f32 %v1269_v21 }
 0x590   :  { %v1480_v22 = vpop.xlane.xlu1 %1479 }
 0x591   :  { %v1482_v23 = vsub.f32 %v1472_v49, %v1480_v22 }
 0x592   :  { %v1477_v24 = vpop.xlane.xlu0 %1476 }
 0x593   :  { %v1485_v25 = vmul.f32 1.442695, %v1482_v23  ;;  %v1481_v26 = vsub.f32 %v1467_v51, %v1477_v24 }
 0x594   :  { %v2975_v27 = vpop.eup %2974  ;;  %v221_v37 = vpop.permute.xlu1 %220 }
 0x595   :  { %2978 = vpow2.f32 %v1485_v25  ;;  %v1483_v58 = vmul.f32 1.442695, %v1481_v26  ;;  %v1276_v28 = vsel %vm832_vm3, %v2975_v27, 0.0  ;;  %v356_v38 = vadd.f32 %v3278_v60, %v221_v37 }
 0x596   :  { %1277 = vadd.xlane.f32.xlu1 %v1276_v28 }
 0x597   :  { %2980 = vpow2.f32 %v1483_v58 }
 0x598   :  { %v2977_v29 = vpop.eup %2976 }
 0x599   :  { %v1273_v57 = vsel %vm832_vm3, %v2977_v29, 0.0 }
 0x59a   :  { %1274 = vadd.xlane.f32.xlu1 %v1273_v57  ;;  %v226_v62 = vpop.permute.xlu0 %225 }
 0x59b   :  { %v361_v39 = vadd.f32 %v3276_v59, %v226_v62 }
 0x5a2   :  { %v2979_v30 = vpop.eup %2978 }
 0x5a3   :  { %v1490_v31 = vsel %vm832_vm3, %v2979_v30, 0.0 }
 0x5a4   :  { %v2981_v32 = vpop.eup %2980  ;;  %1491 = vadd.xlane.f32.xlu0 %v1490_v31 }
 0x5a5   :  { %v1487_v33 = vsel %vm832_vm3, %v2981_v32, 0.0 }
 0x5a8   :  { %1488 = vadd.xlane.f32.xlu0 %v1487_v33  ;;  %v155_v33 = vld [vmem:[%s3580_s5 + $0x30] sm:$0xff] }
 0x5ab   :  { %555 = vperm.xlu1 %2957, %v183_v34   ;;  %v156_v34 = vld [vmem:[%s3580_s5 + $0x38] sm:$0xff] }
 0x5af   :  { %560 = vperm.xlu1 %2957, %v184_v35  }
 0x5b3   :  { %401 = vperm.xlu1 %2957, %v170_v12  }
 0x5be   :  { %396 = vperm.xlu0 %2956, %v169_v36  }
 0x5dc   :  { %1576 = vxpose.xlu0.b32.start.end [1/1] (short) (narrow) %v356_v38, 16  ;;  %1790 = vxpose.xlu1.b32.start.end [1/1] (short) (narrow) %v361_v39, 16 }
 0x61f   :  { %v1278_v41 = vpop.xlane.xlu1 %1277 }
 0x620   :  { %2982 = vrcp.f32 %v1278_v41 }
 0x623   :  { %v1275_v42 = vpop.xlane.xlu1 %1274 }
 0x624   :  { %2984 = vrcp.f32 %v1275_v42 }
 0x627   :  { %v556_v48 = vpop.permute.xlu1 %555 }
 0x628   :  { %v690_v59 = vadd.f32 %v3290_v3, %v556_v48 }
 0x62b   :  { %v561_v49 = vpop.permute.xlu1 %560 }
 0x62c   :  { %v695_v15 = vadd.f32 %v3286_v1, %v561_v49 }
 0x62d   :  { %v2983_v43 = vpop.eup %2982  ;;  %v1492_v44 = vpop.xlane.xlu0 %1491 }
 0x62e   :  { %2986 = vrcp.f32 %v1492_v44  ;;  %v1282_v45 = vmul.f32 %v2983_v43, %v2975_v27 }
 0x62f   :  { %v402_v54 = vpop.permute.xlu1 %401 }
 0x630   :  { %2864 = vmatpush3.xpose.msk.msra.mxu1 %vm832_vm3, %v1282_v45  ;;  %v530_v3 = vadd.f32 %v3288_v2, %v402_v54  ;;  %v172_v54 = vld [vmem:[%s3581_s7 + $0x38] sm:$0xff] }
 0x631   :  { %v2985_v46 = vpop.eup %2984  ;;  %v1489_v47 = vpop.xlane.xlu0 %1488  ;;  %2865 = vmatprep.subr.mxu1 %v3027_v0 }
 0x632   :  { %2988 = vrcp.f32 %v1489_v47  ;;  %v1281_v60 = vmul.f32 %v2985_v46, %v2977_v29 }
 0x634   :  { %2866 = vmatpush3.xpose.msk.msra.mxu1 %vm832_vm3, %v1281_v60 }
 0x637   :  { %2868 = vmatmul.mubr.msk.f32.vlgmr.msra.gmra.mxu1 %vm832_vm3, %v690_v59 }
 0x639   :  { %v397_v50 = vpop.permute.xlu0 %396 }
 0x63a   :  { %v525_v51 = vadd.f32 %v3292_v4, %v397_v50 }
 0x63b   :  { %v2987_v52 = vpop.eup %2986 }
 0x63c   :  { %2882 = vmatprep.subr.mxu1 %v525_v51  ;;  %v1496_v53 = vmul.f32 %v2987_v52, %v2979_v30  ;;  %v185_v52 = vld [vmem:[%s3585_s9 + $0x20] sm:$0xff] }
 0x63d   :  { %2883 = vmatpush3.msra.mxu1 %v525_v51 }
 0x63e   :  { %2876 = vmatpush3.xpose.msk.msra.mxu0 %vm832_vm3, %v1496_v53  ;;  %2887 = vmatprep.subr.mxu1 %v3027_v0  ;;  %v186_v53 = vld [vmem:[%s3585_s9 + $0x28] sm:$0xff] }
 0x63f   :  { %v2989_v55 = vpop.eup %2988  ;;  %2877 = vmatprep.subr.mxu0 %v3027_v0 }
 0x640   :  { %v1495_v56 = vmul.f32 %v2989_v55, %v2981_v32  ;;  %v171_v55 = vld [vmem:[%s3581_s7 + $0x30] sm:$0xff] }
 0x642   :  { %2878 = vmatpush3.xpose.msk.msra.mxu0 %vm832_vm3, %v1495_v56 }
 0x643   :  { %2894 = vmatprep.subr.mxu0 %v530_v3 }
 0x645   :  { %2880 = vmatmul.mubr.msk.f32.vlgmr.msra.gmra.mxu0 %vm832_vm3, %v695_v15 }
 0x646   :  { %2895 = vmatpush3.msra.mxu0 %v530_v3 }
 0x647   :  { %2899 = vmatprep.subr.mxu0 %v3027_v0 }
 0x658   :  { %v1806_v4 = vpop.trf.xlu1  ;;  %v1592_v18 = vpop.trf.xlu0 }
 0x659   :  { %2884 = vmatprep.mubr.msk.f32.mxu1 %vm750_vm2, %v1592_v18  ;;  %2896 = vmatprep.mubr.msk.f32.mxu0 %vm750_vm2, %v1806_v4 }
 0x65c   :  { %v1807_v19 = vpop.trf.xlu1  ;;  %v1593_v20 = vpop.trf.xlu0 }
 0x65d   :  { %2885 = vmatmul.mubr.msk.f32.vlgmr.msra.gmra.mxu1 %vm750_vm2, %v1593_v20  ;;  %2897 = vmatmul.mubr.msk.f32.vlgmr.msra.gmra.mxu0 %vm750_vm2, %v1807_v19 }
 0x65e   :  { %2891 = vmatprep.mubr.msk.f32.mxu1 %vm3028_vm4, %v3027_v0  ;;  %2903 = vmatprep.mubr.msk.f32.mxu0 %vm3028_vm4, %v3027_v0 }
 0x6f7   :  { %v3437_v1 = vpop.f32.mrf.mxu1 }
 0x6f9   :  { %v2869_v2 = vpop.f32.mrf.mxu1 }
 0x705   :  { %v3439_v21 = vpop.f32.mrf.mxu0 }
 0x707   :  { %v2881_v22 = vpop.f32.mrf.mxu0 }
 0x71d   :  { %v2886_v23 = vpop.f32.mrf.mxu1  ;;  %v2898_v24 = vpop.f32.mrf.mxu0 }
 0x71e   :  { %v1686_v25 = vadd.f32 %v2886_v23, %v3313_v13  ;;  %v1900_v26 = vadd.f32 %v2898_v24, %v3313_v13 }
 0x71f   :  { %v1680_v27 = vpop.f32.mrf.mxu1  ;;  %v1894_v58 = vpop.f32.mrf.mxu0 }
 0x720   :  { %v1681_v28 = vadd.f32 %v1680_v27, %v3318_v16  ;;  %v1906_v29 = vsel %vm832_vm3, %v1900_v26, -inf  ;;  %v1692_v57 = vsel %vm832_vm3, %v1686_v25, -inf  ;;  %v1895_v30 = vadd.f32 %v1894_v58, %v3318_v16 }
 0x721   :  { %1907 = vmax.xlane.f32.xlu1 %v1906_v29  ;;  %1693 = vmax.xlane.f32.xlu0 %v1692_v57 }
 0x722   :  { %v1689_v31 = vsel %vm832_vm3, %v1681_v28, -inf  ;;  %v1903_v32 = vsel %vm832_vm3, %v1895_v30, -inf }
 0x725   :  { %1690 = vmax.xlane.f32.xlu0 %v1689_v31 }
 0x729   :  { %1904 = vmax.xlane.f32.xlu0 %v1903_v32 }
 0x732   :  { %230 = vperm.xlu1 %2957, %v155_v33  }
 0x73f   :  { %235 = vperm.xlu0 %2956, %v156_v34  }
 0x7aa   :  { %v1908_v35 = vpop.xlane.xlu1 %1907  ;;  %v1694_v12 = vpop.xlane.xlu0 %1693 }
 0x7ab   :  { %v1910_v36 = vsub.f32 %v1900_v26, %v1908_v35  ;;  %v1696_v37 = vsub.f32 %v1686_v25, %v1694_v12 }
 0x7ad   :  { %v1913_v62 = vmul.f32 1.442695, %v1910_v36  ;;  %v1699_v38 = vmul.f32 1.442695, %v1696_v37 }
 0x7ae   :  { %v1691_v39 = vpop.xlane.xlu0 %1690  ;;  %v231_v56 = vpop.permute.xlu1 %230 }
 0x7af   :  { %2990 = vpow2.f32 %v1913_v62  ;;  %v1695_v41 = vsub.f32 %v1681_v28, %v1691_v39  ;;  %v366_v3 = vadd.f32 %v3284_v63, %v231_v56 }
 0x7b0   :  { %2992 = vpow2.f32 %v1699_v38 }
 0x7b1   :  { %v1697_v42 = vmul.f32 1.442695, %v1695_v41 }
 0x7b2   :  { %v1905_v43 = vpop.xlane.xlu0 %1904 }
 0x7b3   :  { %2994 = vpow2.f32 %v1697_v42  ;;  %v1909_v44 = vsub.f32 %v1895_v30, %v1905_v43 }
 0x7b5   :  { %v1911_v45 = vmul.f32 1.442695, %v1909_v44 }
 0x7b7   :  { %2996 = vpow2.f32 %v1911_v45 }
 0x7ba   :  { %v236_v15 = vpop.permute.xlu0 %235 }
 0x7bb   :  { %v371_v4 = vadd.f32 %v3280_v61, %v236_v15 }
 0x7bc   :  { %v2991_v46 = vpop.eup %2990 }
 0x7bd   :  { %v2993_v47 = vpop.eup %2992  ;;  %v1918_v48 = vsel %vm832_vm3, %v2991_v46, 0.0 }
 0x7be   :  { %v1704_v60 = vsel %vm832_vm3, %v2993_v47, 0.0  ;;  %1919 = vadd.xlane.f32.xlu0 %v1918_v48 }
 0x7bf   :  { %1705 = vadd.xlane.f32.xlu1 %v1704_v60 }
 0x7c0   :  { %v2995_v59 = vpop.eup %2994 }
 0x7c1   :  { %v1701_v49 = vsel %vm832_vm3, %v2995_v59, 0.0 }
 0x7c3   :  { %1702 = vadd.xlane.f32.xlu1 %v1701_v49 }
 0x7c4   :  { %v2997_v50 = vpop.eup %2996 }
 0x7c5   :  { %v1915_v51 = vsel %vm832_vm3, %v2997_v50, 0.0 }
 0x7c6   :  { %1916 = vadd.xlane.f32.xlu0 %v1915_v51 }
 0x7d4   :  { %565 = vperm.xlu1 %2957, %v185_v52  }
 0x7d8   :  { %570 = vperm.xlu1 %2957, %v186_v53  }
 0x7dc   :  { %411 = vperm.xlu1 %2957, %v172_v54   ;;  %406 = vperm.xlu0 %2956, %v171_v55  }
 0x7fa   :  { %2004 = vxpose.xlu0.b32.start.end [1/1] (short) (narrow) %v366_v3, 16 }
 0x805   :  { %2218 = vxpose.xlu1.b32.start.end [1/1] (short) (narrow) %v371_v4, 16 }
 0x847   :  { %v1920_v18 = vpop.xlane.xlu0 %1919 }
 0x848   :  { %v1706_v19 = vpop.xlane.xlu1 %1705  ;;  %2998 = vrcp.f32 %v1920_v18 }
 0x849   :  { %3000 = vrcp.f32 %v1706_v19 }
 0x84c   :  { %v1703_v20 = vpop.xlane.xlu1 %1702 }
 0x84d   :  { %3002 = vrcp.f32 %v1703_v20 }
 0x84f   :  { %v1917_v2 = vpop.xlane.xlu0 %1916 }
 0x850   :  { %v566_v22 = vpop.permute.xlu1 %565  ;;  %3004 = vrcp.f32 %v1917_v2 }
 0x851   :  { %v700_v30 = vadd.f32 %v3298_v7, %v566_v22 }
 0x854   :  { %v571_v25 = vpop.permute.xlu1 %570 }
 0x855   :  { %v2999_v23 = vpop.eup %2998  ;;  %v705_v33 = vadd.f32 %v3294_v5, %v571_v25 }
 0x856   :  { %v3001_v24 = vpop.eup %3000  ;;  %v1924_v26 = vmul.f32 %v2999_v23, %v2991_v46  ;;  %v187_v23 = vld [vmem:[%s3585_s9 + $0x30] sm:$0xff] }
 0x857   :  { %v1710_v27 = vmul.f32 %v3001_v24, %v2993_v47  ;;  %v407_v63 = vpop.permute.xlu0 %406  ;;  %v188_v24 = vld [vmem:[%s3585_s9 + $0x38] sm:$0xff] }
 0x858   :  { %2900 = vmatpush3.xpose.msk.msra.mxu0 %vm832_vm3, %v1924_v26  ;;  %v412_v28 = vpop.permute.xlu1 %411  ;;  %v535_v29 = vadd.f32 %v3300_v8, %v407_v63 }
 0x859   :  { %2888 = vmatpush3.xpose.msk.msra.mxu1 %vm832_vm3, %v1710_v27  ;;  %2901 = vmatprep.subr.mxu0 %v3027_v0  ;;  %v540_v32 = vadd.f32 %v3296_v6, %v412_v28 }
 0x85a   :  { %v3003_v61 = vpop.eup %3002  ;;  %2889 = vmatprep.subr.mxu1 %v3027_v0 }
 0x85b   :  { %v1709_v58 = vmul.f32 %v3003_v61, %v2995_v59 }
 0x85d   :  { %v3005_v57 = vpop.eup %3004  ;;  %2890 = vmatpush3.xpose.msk.msra.mxu1 %vm832_vm3, %v1709_v58 }
 0x85e   :  { %2906 = vmatprep.subr.mxu1 %v535_v29  ;;  %v1923_v31 = vmul.f32 %v3005_v57, %v2997_v50 }
 0x860   :  { %2892 = vmatmul.mubr.msk.f32.vlgmr.msra.gmra.mxu1 %vm832_vm3, %v700_v30  ;;  %2902 = vmatpush3.xpose.msk.msra.mxu0 %vm832_vm3, %v1923_v31 }
 0x861   :  { %2907 = vmatpush3.msra.mxu1 %v535_v29  ;;  %2918 = vmatprep.subr.mxu0 %v540_v32 }
 0x862   :  { %2911 = vmatprep.subr.mxu1 %v3027_v0 }
 0x863   :  { %2904 = vmatmul.mubr.msk.f32.vlgmr.msra.gmra.mxu0 %vm832_vm3, %v705_v33  ;;  %v195_v33 = vld [vmem:[%s3586_s10 + $0x30] sm:$0xff] }
 0x864   :  { %2919 = vmatpush3.msra.mxu0 %v540_v32 }
 0x865   :  { %2923 = vmatprep.subr.mxu0 %v3027_v0 }
 0x876   :  { %v2020_v7 = vpop.trf.xlu0 }
 0x877   :  { %2908 = vmatprep.mubr.msk.f32.mxu1 %vm750_vm2, %v2020_v7  ;;  %v192_v7 = vld [vmem:[%s3586_s10 + $0x18] sm:$0xff] }
 0x87a   :  { %v2021_v8 = vpop.trf.xlu0 }
 0x87b   :  { %2909 = vmatmul.mubr.msk.f32.vlgmr.msra.gmra.mxu1 %vm750_vm2, %v2021_v8  ;;  %v191_v8 = vld [vmem:[%s3586_s10 + $0x10] sm:$0xff] }
 0x87c   :  { %2915 = vmatprep.mubr.msk.f32.mxu1 %vm3028_vm4, %v3027_v0 }
 0x881   :  { %v2234_v6 = vpop.trf.xlu1 }
 0x882   :  { %2920 = vmatprep.mubr.msk.f32.mxu0 %vm750_vm2, %v2234_v6  ;;  %v190_v6 = vld [vmem:[%s3586_s10 + $0x8] sm:$0xff] }
 0x885   :  { %v2235_v5 = vpop.trf.xlu1 }
 0x886   :  { %2921 = vmatmul.mubr.msk.f32.vlgmr.msra.gmra.mxu0 %vm750_vm2, %v2235_v5  ;;  %v189_v5 = vld [vmem:[%s3586_s10] sm:$0xff] }
 0x887   :  { %2927 = vmatprep.mubr.msk.f32.mxu0 %vm3028_vm4, %v3027_v0 }
 0x920   :  { %v1786_v34 = vpop.f32.mrf.mxu1 }
 0x922   :  { %v2893_v35 = vpop.f32.mrf.mxu1 }
 0x923   :  { %v2000_v12 = vpop.f32.mrf.mxu0 }
 0x925   :  { %v2905_v36 = vpop.f32.mrf.mxu0 }
 0x93b   :  { %v2910_v37 = vpop.f32.mrf.mxu1 }
 0x93c   :  { %v2114_v62 = vadd.f32 %v2910_v37, %v3313_v13 }
 0x93d   :  { %v2108_v38 = vpop.f32.mrf.mxu1 }
 0x93e   :  { %v2120_v39 = vsel %vm832_vm3, %v2114_v62, -inf  ;;  %v2109_v41 = vadd.f32 %v2108_v38, %v3318_v16 }
 0x93f   :  { %2121 = vmax.xlane.f32.xlu0 %v2120_v39  ;;  %v2676_v39 = vld [vmem:[%s3587_s11] ss:$0 sm:$0xff] }
 0x940   :  { %v2117_v42 = vsel %vm832_vm3, %v2109_v41, -inf }
 0x943   :  { %2118 = vmax.xlane.f32.xlu0 %v2117_v42 }
 0x946   :  { %v2922_v43 = vpop.f32.mrf.mxu0 }
 0x947   :  { %v2328_v44 = vadd.f32 %v2922_v43, %v3313_v13 }
 0x948   :  { %v2322_v45 = vpop.f32.mrf.mxu0 }
 0x949   :  { %v2323_v46 = vadd.f32 %v2322_v45, %v3318_v16  ;;  %v2334_v47 = vsel %vm832_vm3, %v2328_v44, -inf }
 0x94a   :  { %2335 = vmax.xlane.f32.xlu1 %v2334_v47 }
 0x94b   :  { %v2331_v48 = vsel %vm832_vm3, %v2323_v46, -inf }
 0x94c   :  { %2332 = vmax.xlane.f32.xlu0 %v2331_v48 }
 0x9c8   :  { %v2122_v60 = vpop.xlane.xlu0 %2121 }
 0x9c9   :  { %v2124_v59 = vsub.f32 %v2114_v62, %v2122_v60 }
 0x9cb   :  { %v2127_v49 = vmul.f32 1.442695, %v2124_v59 }
 0x9cc   :  { %v2119_v50 = vpop.xlane.xlu0 %2118 }
 0x9cd   :  { %3006 = vpow2.f32 %v2127_v49  ;;  %v2123_v51 = vsub.f32 %v2109_v41, %v2119_v50 }
 0x9cf   :  { %v2125_v52 = vmul.f32 1.442695, %v2123_v51 }
 0x9d1   :  { %3008 = vpow2.f32 %v2125_v52 }
 0x9d3   :  { %v2336_v53 = vpop.xlane.xlu1 %2335 }
 0x9d4   :  { %v2338_v54 = vsub.f32 %v2328_v44, %v2336_v53 }
 0x9d5   :  { %v2333_v13 = vpop.xlane.xlu0 %2332 }
 0x9d6   :  { %v2341_v55 = vmul.f32 1.442695, %v2338_v54  ;;  %v2337_v56 = vsub.f32 %v2323_v46, %v2333_v13 }
 0x9d8   :  { %3010 = vpow2.f32 %v2341_v55  ;;  %v2339_v16 = vmul.f32 1.442695, %v2337_v56 }
 0x9da   :  { %v3007_v3 = vpop.eup %3006  ;;  %3012 = vpow2.f32 %v2339_v16 }
 0x9db   :  { %v2132_v15 = vsel %vm832_vm3, %v3007_v3, 0.0 }
 0x9dc   :  { %2133 = vadd.xlane.f32.xlu1 %v2132_v15 }
 0x9de   :  { %v3009_v4 = vpop.eup %3008 }
 0x9df   :  { %v2129_v18 = vsel %vm832_vm3, %v3009_v4, 0.0 }
 0x9e0   :  { %2130 = vadd.xlane.f32.xlu1 %v2129_v18 }
 0x9e5   :  { %v3011_v19 = vpop.eup %3010 }
 0x9e6   :  { %v2346_v20 = vsel %vm832_vm3, %v3011_v19, 0.0 }
 0x9e7   :  { %v3013_v2 = vpop.eup %3012  ;;  %2347 = vadd.xlane.f32.xlu0 %v2346_v20 }
 0x9e8   :  { %v2343_v22 = vsel %vm832_vm3, %v3013_v2, 0.0 }
 0x9eb   :  { %2344 = vadd.xlane.f32.xlu0 %v2343_v22 }
 0x9f1   :  { %575 = vperm.xlu1 %2957, %v187_v23  }
 0xa01   :  { %580 = vperm.xlu0 %2956, %v188_v24  }
 0xa1a   :  { %2438 = vxpose.xlu1.b32.start [1/8] (short) (narrow) %v3379_v10, 16 }
 0xa1e   :  { %2439 = vxpose.xlu1.b32.cont [2/8] (short) (narrow) %v3381_v40, 16 }
 0xa22   :  { %2440 = vxpose.xlu1.b32.cont [3/8] (short) (narrow) %v3437_v1, 16 }
 0xa26   :  { %2441 = vxpose.xlu1.b32.cont [4/8] (short) (narrow) %v3439_v21, 16 }
 0xa2a   :  { %2442 = vxpose.xlu1.b32.cont [5/8] (short) (narrow) %v1786_v34, 16 }
 0xa2e   :  { %2443 = vxpose.xlu1.b32.cont [6/8] (short) (narrow) %v2000_v12, 16 }
 0xa65   :  { %v2134_v25 = vpop.xlane.xlu1 %2133 }
 0xa66   :  { %3014 = vrcp.f32 %v2134_v25 }
 0xa69   :  { %v2131_v26 = vpop.xlane.xlu1 %2130 }
 0xa6a   :  { %3016 = vrcp.f32 %v2131_v26 }
 0xa6d   :  { %v576_v40 = vpop.permute.xlu1 %575 }
 0xa6e   :  { %v710_v21 = vadd.f32 %v3306_v11, %v576_v40  ;;  %v196_v11 = vld [vmem:[%s3586_s10 + $0x38] sm:$0xff] }
 0xa70   :  { %v2348_v27 = vpop.xlane.xlu0 %2347 }
 0xa71   :  { %3018 = vrcp.f32 %v2348_v27 }
 0xa73   :  { %v3015_v63 = vpop.eup %3014 }
 0xa74   :  { %v2345_v61 = vpop.xlane.xlu0 %2344  ;;  %v2138_v58 = vmul.f32 %v3015_v63, %v3007_v3 }
 0xa75   :  { %3020 = vrcp.f32 %v2345_v61 }
 0xa76   :  { %2912 = vmatpush3.xpose.msk.msra.mxu1 %vm832_vm3, %v2138_v58 }
 0xa77   :  { %v3017_v10 = vpop.eup %3016  ;;  %2913 = vmatprep.subr.mxu1 %v3027_v0 }
 0xa78   :  { %v2137_v1 = vmul.f32 %v3017_v10, %v3009_v4  ;;  %v2679_v4 = vld [vmem:[%s3588_s12] ss:$0 sm:$0xff] }
 0xa7a   :  { %2914 = vmatpush3.xpose.msk.msra.mxu1 %vm832_vm3, %v2137_v1 }
 0xa7b   :  { %2930 = vmatprep.subr.mxu1 %v196_v11 }
 0xa7c   :  { %v581_v30 = vpop.permute.xlu0 %580 }
 0xa7d   :  { %2916 = vmatmul.mubr.msk.f32.vlgmr.msra.gmra.mxu1 %vm832_vm3, %v710_v21  ;;  %v715_v32 = vadd.f32 %v3302_v9, %v581_v30  ;;  %v193_v9 = vld [vmem:[%s3586_s10 + $0x20] sm:$0xff] }
 0xa7e   :  { %v3019_v28 = vpop.eup %3018  ;;  %2931 = vmatpush3.msra.mxu1 %v196_v11 }
 0xa7f   :  { %v2352_v29 = vmul.f32 %v3019_v28, %v3011_v19  ;;  %2932 = vmatprep.subr.mxu1 %v195_v33  ;;  %v2680_v19 = vld [vmem:[%s3589_s13] ss:$0 sm:$0xff] }
 0xa80   :  { %2933 = vmatpush3.msra.mxu1 %v195_v33 }
 0xa81   :  { %2924 = vmatpush3.xpose.msk.msra.mxu0 %vm832_vm3, %v2352_v29 }
 0xa82   :  { %v3021_v57 = vpop.eup %3020  ;;  %2925 = vmatprep.subr.mxu0 %v3027_v0  ;;  %v194_v0 = vld [vmem:[%s3586_s10 + $0x28] sm:$0xff] }
 0xa83   :  { %v2351_v31 = vmul.f32 %v3021_v57, %v3013_v2  ;;  %2934 = vmatprep.subr.mxu1 %v194_v0 }
 0xa84   :  { %2935 = vmatpush3.msra.mxu1 %v194_v0 }
 0xa85   :  { %2926 = vmatpush3.xpose.msk.msra.mxu0 %vm832_vm3, %v2351_v31  ;;  %2936 = vmatprep.subr.mxu1 %v193_v9 }
 0xa86   :  { %2937 = vmatpush3.msra.mxu1 %v193_v9 }
 0xa87   :  { %2938 = vmatprep.subr.mxu1 %v192_v7 }
 0xa88   :  { %2928 = vmatmul.mubr.msk.f32.vlgmr.msra.gmra.mxu0 %vm832_vm3, %v715_v32  ;;  %2939 = vmatpush3.msra.mxu1 %v192_v7 }
 0xa89   :  { %2940 = vmatprep.subr.mxu1 %v191_v8 }
 0xa8a   :  { %2941 = vmatpush3.msra.mxu1 %v191_v8 }
 0xa8b   :  { %2942 = vmatprep.subr.mxu1 %v190_v6 }
 0xa8c   :  { %2943 = vmatpush3.msra.mxu1 %v190_v6 }
 0xa8d   :  { %2944 = vmatprep.subr.mxu1 %v189_v5 }
 0xa8e   :  { %2945 = vmatpush3.msra.mxu1 %v189_v5 }
 0xb3d   :  { %v2214_v34 = vpop.f32.mrf.mxu1 }
 0xb3e   :  { %2444 = vxpose.xlu1.b32.cont [7/8] (short) (narrow) %v2214_v34, 16 }
 0xb3f   :  { %v2917_v35 = vpop.f32.mrf.mxu1 }
 0xb48   :  { %v2428_v12 = vpop.f32.mrf.mxu0 }
 0xb49   :  { %2445 = vxpose.xlu1.b32.end [8/8] (short) (narrow) %v2428_v12, 16 }
 0xb4a   :  { %v2929_v36 = vpop.f32.mrf.mxu0 }
 0xba9   :  { %v2454_v37 = vpop.trf.xlu1 }
 0xbaa   :  { %2946 = vmatprep.mubr.msk.f32.mxu1 %vm238_vm1, %v2454_v37 }
 0xbad   :  { %v2455_v62 = vpop.trf.xlu1 }
 0xbae   :  { %2947 = vmatmul.mubr.msk.f32.vlgmr.msra.gmra.mxu1 %vm238_vm1, %v2455_v62 }
 0xc6e   :  { %v2948_v38 = vpop.f32.mrf.mxu1 }
 0xc6f   :  { %v2548_v42 = vadd.f32 %v2948_v38, %v2676_v39 }
 0xc70   :  { %v2542_v41 = vpop.f32.mrf.mxu1 }
 0xc71   :  { %v2543_v43 = vadd.f32 %v2676_v39, %v2542_v41  ;;  %v2552_v46 = vadd.f32 %v3147_v14, %v2548_v42 }
 0xc73   :  { %v2551_v44 = vadd.f32 %v2543_v43, %v3153_v17  ;;  %v2558_v47 = vsel %vm238_vm1, %v2552_v46, 0.0 }
 0xc75   :  { %v2555_v45 = vsel %vm238_vm1, %v2551_v44, 0.0 }
 0xc76   :  { %2556 = vadd.xlane.f32.xlu0 %v2555_v45 }
 0xc7a   :  { %2559 = vadd.xlane.f32.xlu0 %v2558_v47 }
 0xcff   :  { %v2557_v48 = vpop.xlane.xlu0 %2556 }
 0xd00   :  { %v2562_v60 = vmul.f32 0.015625, %v2557_v48 }
 0xd02   :  { %v2564_v59 = vsub.f32 %v2551_v44, %v2562_v60 }
 0xd03   :  { %v2560_v49 = vpop.xlane.xlu0 %2559 }
 0xd04   :  { %v2563_v50 = vmul.f32 0.015625, %v2560_v49  ;;  %v2566_v51 = vmul.f32 %v2564_v59, %v2564_v59 }
 0xd06   :  { %v2565_v52 = vsub.f32 %v2552_v46, %v2563_v50  ;;  %v2568_v53 = vsel %vm238_vm1, %v2566_v51, 0.0 }
 0xd07   :  { %2569 = vadd.xlane.f32.xlu0 %v2568_v53 }
 0xd08   :  { %v2567_v54 = vmul.f32 %v2565_v52, %v2565_v52 }
 0xd0a   :  { %v2571_v17 = vsel %vm238_vm1, %v2567_v54, 0.0 }
 0xd0b   :  { %2572 = vadd.xlane.f32.xlu0 %v2571_v17 }
 0xd90   :  { %v2570_v13 = vpop.xlane.xlu0 %2569 }
 0xd91   :  { %v2574_v14 = vmul.f32 0.015625, %v2570_v13 }
 0xd93   :  { %v2576_v55 = vadd.f32 1e-05, %v2574_v14 }
 0xd94   :  { %v2573_v56 = vpop.xlane.xlu0 %2572 }
 0xd95   :  { %3022 = vrsqrt.f32 %v2576_v55  ;;  %v2575_v16 = vmul.f32 0.015625, %v2573_v56 }
 0xd97   :  { %v2577_v3 = vadd.f32 1e-05, %v2575_v16 }
 0xd99   :  { %3024 = vrsqrt.f32 %v2577_v3 }
 0xda2   :  { %v3023_v15 = vpop.eup %3022 }
 0xda3   :  { %v2580_v18 = vmul.f32 %v3023_v15, %v2564_v59 }
 0xda5   :  { %v2588_v20 = vmul.f32 %v2679_v4, %v2580_v18 }
 0xda6   :  { %v3025_v2 = vpop.eup %3024 }
 0xda7   :  { %v2596_v22 = vadd.f32 %v2680_v19, %v2588_v20  ;;  %v2581_v23 = vmul.f32 %v3025_v2, %v2565_v52 }
 0xda9   :  { %2598 = vst.msk [vmem:[%s3590_s14] sm:$0xff] %vm238_vm1, %v2596_v22  ;;  %v2589_v24 = vmul.f32 %v2679_v4, %v2581_v23 }
 0xdab   :  { %v2597_v25 = vadd.f32 %v2680_v19, %v2589_v24 }
 0xdad   :  { %2599 = vst.msk [vmem:[%s3590_s14 + $0x8] sm:$0xff] %vm238_vm1, %v2597_v25 }

// kernel: forward.4
= control target key start
LH: loop header
LB: loop body
LE: loop exit
PB: predicated region body
PF: predicated region fallthrough
CT: control target
= control target key end

     0   :  { %vm55_vm0 = vcmask 392192   ;;  %vm240_vm1 = vcmask 523264   ;;  %v3036_v10 = vmov 0   ;;  %vm752_vm2 = vcmask 64512   ;;  %s3605_s3 = inlined_call_operand.vmem [shape: f32[48,64], index: 3, kind: input, shape index: {}]   ;;  %s3606_s0 = inlined_call_operand.vmem [shape: f32[10,48], index: 0, kind: input, shape index: {}]   ;;  %s3607_s4 = inlined_call_operand.vmem [shape: f32[64,64], index: 4, kind: input, shape index: {}]   ;;  %s3608_s6 = inlined_call_operand.vmem [shape: f32[64,64], index: 6, kind: input, shape index: {}]   ;;  %s3609_s5 = inlined_call_operand.vmem [shape: f32[64,1], index: 5, kind: input, shape index: {}]   ;;  %s3610_s7 = inlined_call_operand.vmem [shape: f32[64,1], index: 7, kind: input, shape index: {}]   ;;  %s3611_s1 = inlined_call_operand.vmem [shape: f32[10,64], index: 1, kind: input, shape index: {}]   ;;  %s3612_s8 = inlined_call_operand.vmem [shape: f32[64,64], index: 8, kind: input, shape index: {}]   ;;  %s3613_s2 = inlined_call_operand.vmem [shape: f32[10,10], index: 2, kind: input, shape index: {}]   ;;  %s3614_s9 = inlined_call_operand.vmem [shape: f32[64,1], index: 9, kind: input, shape index: {}]   ;;  %s3615_s10 = inlined_call_operand.vmem [shape: f32[64,64], index: 10, kind: input, shape index: {}]   ;;  %s3616_s11 = inlined_call_operand.vmem [shape: f32[1,64], index: 11, kind: input, shape index: {}]   ;;  %s3617_s12 = inlined_call_operand.vmem [shape: f32[1,64], index: 12, kind: input, shape index: {}]   ;;  %s3618_s13 = inlined_call_operand.vmem [shape: f32[1,64], index: 13, kind: input, shape index: {}]   ;;  %s3619_s14 = inlined_call_operand.vmem [shape: f32[10,64], index: 14, kind: output, shape index: {}]  }
   0x1   :  { %v54_v0 = vld [vmem:[%s3605_s3 + $0x28] sm:$0xff]  ;;  %v53_v1 = vld [vmem:[%s3605_s3 + $0x20] sm:$0xff]  ;;  %v52_v2 = vld [vmem:[%s3605_s3 + $0x18] sm:$0xff]  ;;  %2966 = vset.pattern.permute.xlu0 %v3036_v10  ;;  %2967 = vset.pattern.permute.xlu1 %v3036_v10  ;;  %vm838_vm3 = vcmask 74752   ;;  %vm834_vm4 = vcmask 80896   ;;  %vm3038_vm5 = vmmov 0  }
   0x2   :  { %2781 = vmatprep.subr.mxu0 %v54_v0  ;;  %v47_v3 = vld [vmem:[%s3606_s0] sm:$0xff]  ;;  %v51_v4 = vld [vmem:[%s3605_s3 + $0x10] sm:$0xff]  ;;  %v50_v5 = vld [vmem:[%s3605_s3 + $0x8] sm:$0xff]  ;;  %vm2561_vm6 = vcmask 517120  }
   0x3   :  { %2782 = vmatpush3.msra.mxu0 %v54_v0  ;;  %2793 = vmatprep.mubr.msk.f32.mxu0 %vm55_vm0, %v47_v3  ;;  %v49_v6 = vld [vmem:[%s3605_s3] sm:$0xff]  ;;  %v48_v7 = vld [vmem:[%s3606_s0 + $0x8] sm:$0x3]  ;;  %v161_v23 = vld [vmem:[%s3608_s6 + $0x10] sm:$0xff] }
   0x4   :  { %2783 = vmatprep.subr.mxu0 %v53_v1  ;;  %v143_v8 = vld [vmem:[%s3607_s4] sm:$0xff]  ;;  %v152_v13 = vld [vmem:[%s3609_s5 + $0x8] sm:$0xff]  ;;  %v162_v24 = vld [vmem:[%s3608_s6 + $0x18] sm:$0xff] }
   0x5   :  { %2784 = vmatpush3.msra.mxu0 %v53_v1  ;;  %2800 = vmatprep.mubr.msk.f32.mxu1 %vm240_vm1, %v143_v8  ;;  %v159_v9 = vld [vmem:[%s3608_s6] sm:$0xff]  ;;  %v168_v14 = vld [vmem:[%s3610_s7 + $0x8] sm:$0xff]  ;;  %v165_v27 = vld [vmem:[%s3608_s6 + $0x30] sm:$0xff] }
   0x6   :  { %2785 = vmatprep.subr.mxu0 %v52_v2  ;;  %v151_v11 = vld [vmem:[%s3609_s5] sm:$0xff]  ;;  %v138_v15 = vld [vmem:[%s3611_s1 + $0x8] sm:$0x3]  ;;  %v166_v28 = vld [vmem:[%s3608_s6 + $0x38] sm:$0xff] }
   0x7   :  { %2786 = vmatpush3.msra.mxu0 %v52_v2  ;;  %v167_v12 = vld [vmem:[%s3610_s7] sm:$0xff]  ;;  %202 = vperm.xlu0 %2966, %v151_v11   ;;  %v144_v21 = vld [vmem:[%s3607_s4 + $0x8] sm:$0xff]  ;;  %v145_v43 = vld [vmem:[%s3607_s4 + $0x10] sm:$0xff] }
   0x8   :  { %2787 = vmatprep.subr.mxu0 %v51_v4  ;;  %378 = vperm.xlu1 %2967, %v167_v12   ;;  %v137_v17 = vld [vmem:[%s3611_s1] sm:$0xff]  ;;  %v160_v22 = vld [vmem:[%s3608_s6 + $0x8] sm:$0xff]  ;;  %v146_v44 = vld [vmem:[%s3607_s4 + $0x18] sm:$0xff] }
   0x9   :  { %2788 = vmatpush3.msra.mxu0 %v51_v4  ;;  %v163_v25 = vld [vmem:[%s3608_s6 + $0x20] sm:$0xff]  ;;  %v164_v26 = vld [vmem:[%s3608_s6 + $0x28] sm:$0xff] }
   0xa   :  { %2789 = vmatprep.subr.mxu0 %v50_v5  ;;  %v175_v29 = vld [vmem:[%s3612_s8] sm:$0xff]  ;;  %v176_v30 = vld [vmem:[%s3612_s8 + $0x8] sm:$0xff] }
   0xb   :  { %2790 = vmatpush3.msra.mxu0 %v50_v5  ;;  %207 = vperm.xlu0 %2966, %v152_v13   ;;  %v3267_v57 = vld [vmem:[%s3613_s2 + $0x8] sm:$0x3]  ;;  %v3272_v59 = vld [vmem:[%s3613_s2] sm:$0xff] }
   0xc   :  { %2791 = vmatprep.subr.mxu0 %v49_v6  ;;  %383 = vperm.xlu1 %2967, %v168_v14   ;;  %v183_v8 = vld [vmem:[%s3614_s9] sm:$0xff] }
   0xd   :  { %2792 = vmatpush3.msra.mxu0 %v49_v6 }
   0xe   :  { %2794 = vmatmul.mubr.msk.f32.vlgmr.msra.gmra.mxu0 %vm55_vm0, %v48_v7  ;;  %v153_v7 = vld [vmem:[%s3609_s5 + $0x10] sm:$0xff] }
   0xf   :  { %2816 = vmatprep.mubr.msk.f32.mxu0 %vm240_vm1, %v159_v9  ;;  %v154_v9 = vld [vmem:[%s3609_s5 + $0x18] sm:$0xff] }
  0x82   :  { %v203_v31 = vpop.permute.xlu0 %202 }
  0x83   :  { %v379_v32 = vpop.permute.xlu1 %378 }
  0x86   :  { %v208_v33 = vpop.permute.xlu0 %207 }
  0x87   :  { %v384_v34 = vpop.permute.xlu1 %383 }
  0xce   :  { %v3163_v16 = vpop.f32.mrf.mxu0 }
  0xcf   :  { %v140_v18 = vadd.f32 %v3163_v16, %v138_v15 }
  0xd0   :  { %v3169_v19 = vpop.f32.mrf.mxu0 }
  0xd1   :  { %2796 = vmatprep.subr.msk.mxu1 %vm240_vm1, %v140_v18  ;;  %2812 = vmatprep.subr.msk.mxu0 %vm240_vm1, %v140_v18  ;;  %v139_v20 = vadd.f32 %v137_v17, %v3169_v19 }
  0xd2   :  { %2797 = vmatpush3.xpose.msk.msra.mxu1 %vm240_vm1, %v140_v18  ;;  %2813 = vmatpush3.xpose.msk.msra.mxu0 %vm240_vm1, %v140_v18 }
  0xd3   :  { %2798 = vmatprep.subr.msk.mxu1 %vm240_vm1, %v139_v20  ;;  %2814 = vmatprep.subr.msk.mxu0 %vm240_vm1, %v139_v20 }
  0xd6   :  { %2799 = vmatpush3.xpose.msk.msra.mxu1 %vm240_vm1, %v139_v20  ;;  %2815 = vmatpush3.xpose.msk.msra.mxu0 %vm240_vm1, %v139_v20 }
  0xd7   :  { %2828 = vmatprep.subr.msk.mxu0 %vm240_vm1, %v3163_v16  ;;  %2959 = vmatprep.subr.msk.mxu1 %vm240_vm1, %v3163_v16 }
  0xd9   :  { %2801 = vmatmul.mubr.msk.f32.vlgmr.msra.gmra.mxu1 %vm240_vm1, %v144_v21  ;;  %2817 = vmatmul.mubr.msk.f32.vlgmr.msra.gmra.mxu0 %vm240_vm1, %v160_v22 }
  0xda   :  { %2829 = vmatpush3.xpose.msk.msra.mxu0 %vm240_vm1, %v3163_v16  ;;  %2961 = vmatpush3.xpose.msk.msra.mxu1 %vm240_vm1, %v3163_v16 }
  0xdb   :  { %2830 = vmatprep.subr.msk.mxu0 %vm240_vm1, %v3169_v19  ;;  %2960 = vmatprep.subr.msk.mxu1 %vm240_vm1, %v3169_v19 }
  0xdc   :  { %2819 = vmatprep.mubr.msk.f32.mxu0 %vm240_vm1, %v161_v23  ;;  %2803 = vmatprep.mubr.msk.f32.mxu1 %vm240_vm1, %v145_v43  ;;  %v181_v43 = vld [vmem:[%s3612_s8 + $0x30] sm:$0xff] }
  0xdd   :  { %2820 = vmatmul.mubr.msk.f32.gmra.mxu0 %vm240_vm1, %v162_v24  ;;  %2804 = vmatmul.mubr.msk.f32.gmra.mxu1 %vm240_vm1, %v146_v44  ;;  %v182_v44 = vld [vmem:[%s3612_s8 + $0x38] sm:$0xff] }
  0xde   :  { %2831 = vmatpush3.xpose.msk.msra.mxu0 %vm240_vm1, %v3169_v19  ;;  %2962 = vmatpush3.xpose.msk.msra.mxu1 %vm240_vm1, %v3169_v19 }
  0xdf   :  { %2822 = vmatprep.mubr.msk.f32.mxu0 %vm240_vm1, %v163_v25 }
  0xe1   :  { %2823 = vmatmul.mubr.msk.f32.gmra.mxu0 %vm240_vm1, %v164_v26 }
  0xe2   :  { %2825 = vmatprep.mubr.msk.f32.mxu0 %vm240_vm1, %v165_v27 }
  0xe5   :  { %2826 = vmatmul.mubr.msk.f32.gmra.mxu0 %vm240_vm1, %v166_v28 }
  0xe6   :  { %2832 = vmatprep.mubr.msk.f32.mxu0 %vm240_vm1, %v175_v29 }
  0xe9   :  { %2833 = vmatmul.mubr.msk.f32.vlgmr.msra.gmra.mxu0 %vm240_vm1, %v176_v30 }
 0x199   :  { %v2802_v35 = vpop.f32.mrf.mxu1  ;;  %v2818_v36 = vpop.f32.mrf.mxu0 }
 0x19a   :  { %v343_v37 = vadd.f32 %v2802_v35, %v208_v33  ;;  %v512_v42 = vadd.f32 %v2818_v36, %v384_v34  ;;  %v148_v33 = vld [vmem:[%s3607_s4 + $0x28] sm:$0xff]  ;;  %v149_v34 = vld [vmem:[%s3607_s4 + $0x30] sm:$0xff]  ;;  %v150_v35 = vld [vmem:[%s3607_s4 + $0x38] sm:$0xff] }
 0x19b   :  { %v337_v38 = vpop.f32.mrf.mxu1  ;;  %v506_v39 = vpop.f32.mrf.mxu0  ;;  %v184_v36 = vld [vmem:[%s3614_s9 + $0x8] sm:$0xff] }
 0x19c   :  { %v338_v40 = vadd.f32 %v337_v38, %v203_v31  ;;  %937 = vxpose.xlu1.b32.start.end [1/1] (short) (narrow) %v343_v37, 16  ;;  %v507_v41 = vadd.f32 %v506_v39, %v379_v32  ;;  %v147_v32 = vld [vmem:[%s3607_s4 + $0x20] sm:$0xff]  ;;  %v177_v37 = vld [vmem:[%s3612_s8 + $0x10] sm:$0xff]  ;;  %v178_v38 = vld [vmem:[%s3612_s8 + $0x18] sm:$0xff] }
 0x19d   :  { %v3248_v49 = vpop.f32.mrf.mxu0  ;;  %2806 = vmatprep.mubr.msk.f32.mxu1 %vm240_vm1, %v147_v32  ;;  %v170_v39 = vld [vmem:[%s3610_s7 + $0x18] sm:$0xff] }
 0x19e   :  { %720 = vxpose.xlu0.b32.start.end [1/1] (short) (narrow) %v338_v40, 16  ;;  %2844 = vmatprep.subr.mxu0 %v507_v41  ;;  %v179_v40 = vld [vmem:[%s3612_s8 + $0x20] sm:$0xff] }
 0x19f   :  { %2845 = vmatpush3.msra.mxu0 %v507_v41  ;;  %v3250_v50 = vpop.f32.mrf.mxu0  ;;  %2807 = vmatmul.mubr.msk.f32.gmra.mxu1 %vm240_vm1, %v148_v33  ;;  %v180_v41 = vld [vmem:[%s3612_s8 + $0x28] sm:$0xff] }
 0x1a0   :  { %2856 = vmatprep.subr.mxu0 %v512_v42  ;;  %2809 = vmatprep.mubr.msk.f32.mxu1 %vm240_vm1, %v149_v34 }
 0x1a1   :  { %v3252_v51 = vpop.f32.mrf.mxu0 }
 0x1a3   :  { %v3254_v52 = vpop.f32.mrf.mxu0  ;;  %2810 = vmatmul.mubr.msk.f32.gmra.mxu1 %vm240_vm1, %v150_v35 }
 0x1a4   :  { %2835 = vmatprep.mubr.msk.f32.mxu1 %vm240_vm1, %v177_v37 }
 0x1a5   :  { %v3256_v53 = vpop.f32.mrf.mxu0 }
 0x1a7   :  { %v3258_v54 = vpop.f32.mrf.mxu0  ;;  %2836 = vmatmul.mubr.msk.f32.vlgmr.msra.gmra.mxu1 %vm240_vm1, %v178_v38 }
 0x1a8   :  { %2838 = vmatprep.mubr.msk.f32.mxu1 %vm240_vm1, %v179_v40 }
 0x1a9   :  { %v3260_v55 = vpop.f32.mrf.mxu0 }
 0x1ab   :  { %v3262_v56 = vpop.f32.mrf.mxu0  ;;  %2839 = vmatmul.mubr.msk.f32.gmra.mxu1 %vm240_vm1, %v180_v41 }
 0x1ac   :  { %2841 = vmatprep.mubr.msk.f32.mxu1 %vm240_vm1, %v181_v43 }
 0x1af   :  { %2842 = vmatmul.mubr.msk.f32.gmra.mxu1 %vm240_vm1, %v182_v44 }
 0x218   :  { %v953_v46 = vpop.trf.xlu1 }
 0x21a   :  { %v736_v45 = vpop.trf.xlu0 }
 0x21b   :  { %2846 = vmatprep.mubr.msk.f32.mxu0 %vm752_vm2, %v736_v45  ;;  %v169_v45 = vld [vmem:[%s3610_s7 + $0x10] sm:$0xff] }
 0x21c   :  { %v954_v48 = vpop.trf.xlu1 }
 0x21e   :  { %v737_v47 = vpop.trf.xlu0 }
 0x21f   :  { %2847 = vmatmul.mubr.msk.f32.vlgmr.msra.gmra.mxu0 %vm752_vm2, %v737_v47 }
 0x220   :  { %2857 = vmatpush3.msra.mxu0 %v512_v42  ;;  %2858 = vmatprep.mubr.msk.f32.mxu0 %vm752_vm2, %v953_v46  ;;  %v3037_v42 = vmov 0.0   ;;  %v2805_v46 = vpop.f32.mrf.mxu1 }
 0x221   :  { %2849 = vmatprep.subr.mxu1 %v3037_v42  ;;  %2861 = vmatprep.subr.mxu0 %v3037_v42 }
 0x222   :  { %2853 = vmatprep.mubr.msk.f32.mxu1 %vm3038_vm5, %v3037_v42  ;;  %v347_v47 = vpop.f32.mrf.mxu1 }
 0x223   :  { %2859 = vmatmul.mubr.msk.f32.vlgmr.msra.gmra.mxu0 %vm752_vm2, %v954_v48 }
 0x224   :  { %2865 = vmatprep.mubr.msk.f32.mxu0 %vm3038_vm5, %v3037_v42 }
 0x2df   :  { %v2848_v58 = vpop.f32.mrf.mxu0 }
 0x2e0   :  { %v831_v60 = vadd.f32 %v2848_v58, %v3267_v57 }
 0x2e1   :  { %v825_v61 = vpop.f32.mrf.mxu0 }
 0x2e2   :  { %v826_v62 = vadd.f32 %v825_v61, %v3272_v59  ;;  %v839_v63 = vsel %vm838_vm3, %v831_v60, -inf }
 0x2e3   :  { %840 = vmax.xlane.f32.xlu0 %v839_v63  ;;  %v2860_v0 = vpop.f32.mrf.mxu0 }
 0x2e4   :  { %v1047_v1 = vadd.f32 %v2860_v0, %v3267_v57  ;;  %v835_v5 = vsel %vm834_vm4, %v826_v62, -inf }
 0x2e5   :  { %v1041_v2 = vpop.f32.mrf.mxu0 }
 0x2e6   :  { %v1042_v3 = vadd.f32 %v1041_v2, %v3272_v59  ;;  %v1053_v4 = vsel %vm838_vm3, %v1047_v1, -inf }
 0x2e7   :  { %1054 = vmax.xlane.f32.xlu1 %v1053_v4  ;;  %836 = vmax.xlane.f32.xlu0 %v835_v5 }
 0x2e8   :  { %v1050_v6 = vsel %vm834_vm4, %v1042_v3, -inf }
 0x2eb   :  { %1051 = vmax.xlane.f32.xlu0 %v1050_v6 }
 0x2f8   :  { %212 = vperm.xlu1 %2967, %v153_v7  }
 0x2fc   :  { %547 = vperm.xlu1 %2967, %v183_v8  }
 0x301   :  { %217 = vperm.xlu0 %2966, %v154_v9  }
 0x36c   :  { %v841_v10 = vpop.xlane.xlu0 %840 }
 0x36d   :  { %v843_v11 = vsub.f32 %v831_v60, %v841_v10 }
 0x36f   :  { %v846_v12 = vmul.f32 1.442695, %v843_v11 }
 0x370   :  { %v1055_v13 = vpop.xlane.xlu1 %1054  ;;  %v837_v14 = vpop.xlane.xlu0 %836 }
 0x371   :  { %2968 = vpow2.f32 %v846_v12  ;;  %v1057_v15 = vsub.f32 %v1047_v1, %v1055_v13  ;;  %v842_v17 = vsub.f32 %v826_v62, %v837_v14 }
 0x373   :  { %v1060_v18 = vmul.f32 1.442695, %v1057_v15  ;;  %v844_v20 = vmul.f32 1.442695, %v842_v17 }
 0x374   :  { %v1052_v21 = vpop.xlane.xlu0 %1051  ;;  %v213_v48 = vpop.permute.xlu1 %212 }
 0x375   :  { %2970 = vpow2.f32 %v1060_v18  ;;  %v1056_v22 = vsub.f32 %v1042_v3, %v1052_v21  ;;  %v348_v58 = vadd.f32 %v347_v47, %v213_v48  ;;  %v155_v47 = vld [vmem:[%s3609_s5 + $0x20] sm:$0xff]  ;;  %v185_v48 = vld [vmem:[%s3614_s9 + $0x10] sm:$0xff] }
 0x376   :  { %2972 = vpow2.f32 %v844_v20  ;;  %v3388_v20 = vpop.f32.mrf.mxu1 }
 0x377   :  { %v1058_v23 = vmul.f32 1.442695, %v1056_v22 }
 0x378   :  { %v548_v62 = vpop.permute.xlu1 %547  ;;  %v3390_v21 = vpop.f32.mrf.mxu1 }
 0x379   :  { %2974 = vpow2.f32 %v1058_v23  ;;  %v682_v14 = vadd.f32 %v3262_v56, %v548_v62 }
 0x37a   :  { %v3392_v22 = vpop.f32.mrf.mxu1 }
 0x37c   :  { %v218_v60 = vpop.permute.xlu0 %217  ;;  %v3394_v23 = vpop.f32.mrf.mxu1 }
 0x37d   :  { %v353_v61 = vadd.f32 %v2805_v46, %v218_v60 }
 0x37e   :  { %v3291_v24 = vpop.eup %2968 }
 0x37f   :  { %v851_v25 = vsel %vm838_vm3, %v3291_v24, 0.0 }
 0x380   :  { %852 = vadd.xlane.f32.xlu1 %v851_v25 }
 0x382   :  { %v3295_v26 = vpop.eup %2970 }
 0x383   :  { %v3297_v27 = vpop.eup %2972  ;;  %v1065_v28 = vsel %vm838_vm3, %v3295_v26, 0.0 }
 0x384   :  { %1066 = vadd.xlane.f32.xlu0 %v1065_v28  ;;  %v848_v29 = vsel %vm834_vm4, %v3297_v27, 0.0 }
 0x385   :  { %849 = vadd.xlane.f32.xlu1 %v848_v29 }
 0x386   :  { %v3303_v30 = vpop.eup %2974 }
 0x387   :  { %v1062_v31 = vsel %vm834_vm4, %v3303_v30, 0.0 }
 0x388   :  { %1063 = vadd.xlane.f32.xlu0 %v1062_v31 }
 0x396   :  { %552 = vperm.xlu1 %2967, %v184_v36  }
 0x39a   :  { %393 = vperm.xlu1 %2967, %v170_v39  }
 0x39e   :  { %388 = vperm.xlu0 %2966, %v169_v45  }
 0x3bc   :  { %1151 = vxpose.xlu0.b32.start.end [1/1] (short) (narrow) %v348_v58, 16  ;;  %v156_v58 = vld [vmem:[%s3609_s5 + $0x28] sm:$0xff] }
 0x3c3   :  { %1365 = vxpose.xlu1.b32.start.end [1/1] (short) (narrow) %v353_v61, 16 }
 0x409   :  { %v853_v63 = vpop.xlane.xlu1 %852 }
 0x40a   :  { %2976 = vrcp.f32 %v853_v63 }
 0x40d   :  { %v1067_v0 = vpop.xlane.xlu0 %1066 }
 0x40e   :  { %v850_v1 = vpop.xlane.xlu1 %849  ;;  %2978 = vrcp.f32 %v1067_v0 }
 0x40f   :  { %2980 = vrcp.f32 %v850_v1 }
 0x411   :  { %v1064_v2 = vpop.xlane.xlu0 %1063 }
 0x412   :  { %2982 = vrcp.f32 %v1064_v2  ;;  %v553_v4 = vpop.permute.xlu1 %552 }
 0x416   :  { %v394_v11 = vpop.permute.xlu1 %393 }
 0x417   :  { %v2977_v3 = vpop.eup %2976  ;;  %v522_v17 = vadd.f32 %v3248_v49, %v394_v11 }
 0x418   :  { %v857_v5 = vmul.f32 %v2977_v3, %v3291_v24  ;;  %v3396_v24 = vpop.f32.mrf.mxu1 }
 0x419   :  { %v389_v7 = vpop.permute.xlu0 %388 }
 0x41a   :  { %2850 = vmatpush3.xpose.msk.msra.mxu1 %vm834_vm4, %v857_v5  ;;  %v517_v12 = vadd.f32 %v3250_v50, %v389_v7  ;;  %v687_v50 = vadd.f32 %v3260_v55, %v553_v4  ;;  %v3398_v25 = vpop.f32.mrf.mxu1 }
 0x41b   :  { %v2979_v6 = vpop.eup %2978  ;;  %2851 = vmatprep.subr.mxu1 %v3037_v42 }
 0x41c   :  { %v2981_v8 = vpop.eup %2980  ;;  %v1071_v9 = vmul.f32 %v2979_v6, %v3295_v26  ;;  %v3400_v26 = vpop.f32.mrf.mxu1 }
 0x41d   :  { %v856_v10 = vmul.f32 %v2981_v8, %v3297_v27 }
 0x41e   :  { %2862 = vmatpush3.xpose.msk.msra.mxu0 %vm834_vm4, %v1071_v9  ;;  %v3402_v27 = vpop.f32.mrf.mxu1 }
 0x41f   :  { %v2983_v13 = vpop.eup %2982  ;;  %2852 = vmatpush3.xpose.msk.msra.mxu1 %vm834_vm4, %v856_v10  ;;  %2863 = vmatprep.subr.mxu0 %v3037_v42 }
 0x420   :  { %2868 = vmatprep.subr.mxu1 %v517_v12  ;;  %v1070_v15 = vmul.f32 %v2983_v13, %v3303_v30  ;;  %v3404_v28 = vpop.f32.mrf.mxu1 }
 0x422   :  { %2854 = vmatmul.mubr.msk.f32.vlgmr.msra.gmra.mxu1 %vm834_vm4, %v682_v14  ;;  %2864 = vmatpush3.xpose.msk.msra.mxu0 %vm834_vm4, %v1070_v15  ;;  %v3406_v29 = vpop.f32.mrf.mxu1 }
 0x423   :  { %2869 = vmatpush3.msra.mxu1 %v517_v12  ;;  %2880 = vmatprep.subr.mxu0 %v522_v17 }
 0x424   :  { %2873 = vmatprep.subr.mxu1 %v3037_v42 }
 0x425   :  { %2866 = vmatmul.mubr.msk.f32.vlgmr.msra.gmra.mxu0 %vm834_vm4, %v687_v50  ;;  %v172_v50 = vld [vmem:[%s3610_s7 + $0x28] sm:$0xff] }
 0x426   :  { %2881 = vmatpush3.msra.mxu0 %v522_v17  ;;  %v186_v17 = vld [vmem:[%s3614_s9 + $0x18] sm:$0xff] }
 0x427   :  { %2885 = vmatprep.subr.mxu0 %v3037_v42 }
 0x438   :  { %v1167_v56 = vpop.trf.xlu0 }
 0x439   :  { %2870 = vmatprep.mubr.msk.f32.mxu1 %vm752_vm2, %v1167_v56  ;;  %v171_v56 = vld [vmem:[%s3610_s7 + $0x20] sm:$0xff] }
 0x43c   :  { %v1168_v18 = vpop.trf.xlu0 }
 0x43d   :  { %2871 = vmatmul.mubr.msk.f32.vlgmr.msra.gmra.mxu1 %vm752_vm2, %v1168_v18 }
 0x43e   :  { %2877 = vmatprep.mubr.msk.f32.mxu1 %vm3038_vm5, %v3037_v42 }
 0x43f   :  { %v1381_v49 = vpop.trf.xlu1 }
 0x440   :  { %2882 = vmatprep.mubr.msk.f32.mxu0 %vm752_vm2, %v1381_v49 }
 0x443   :  { %v1382_v55 = vpop.trf.xlu1 }
 0x444   :  { %2883 = vmatmul.mubr.msk.f32.vlgmr.msra.gmra.mxu0 %vm752_vm2, %v1382_v55 }
 0x445   :  { %2889 = vmatprep.mubr.msk.f32.mxu0 %vm3038_vm5, %v3037_v42 }
 0x4e2   :  { %v3408_v30 = vpop.f32.mrf.mxu1 }
 0x4e4   :  { %v2855_v31 = vpop.f32.mrf.mxu1 }
 0x4e5   :  { %v3410_v32 = vpop.f32.mrf.mxu0 }
 0x4e7   :  { %v2867_v33 = vpop.f32.mrf.mxu0 }
 0x4fd   :  { %v2872_v34 = vpop.f32.mrf.mxu1 }
 0x4fe   :  { %v1261_v35 = vadd.f32 %v2872_v34, %v3267_v57 }
 0x4ff   :  { %v1255_v36 = vpop.f32.mrf.mxu1 }
 0x500   :  { %v1256_v37 = vadd.f32 %v1255_v36, %v3272_v59  ;;  %v1267_v38 = vsel %vm838_vm3, %v1261_v35, -inf }
 0x501   :  { %1268 = vmax.xlane.f32.xlu0 %v1267_v38 }
 0x502   :  { %v1264_v40 = vsel %vm834_vm4, %v1256_v37, -inf }
 0x504   :  { %v2884_v39 = vpop.f32.mrf.mxu0 }
 0x505   :  { %v1475_v41 = vadd.f32 %v2884_v39, %v3267_v57  ;;  %1265 = vmax.xlane.f32.xlu0 %v1264_v40 }
 0x506   :  { %v1469_v43 = vpop.f32.mrf.mxu0 }
 0x507   :  { %v1470_v44 = vadd.f32 %v1469_v43, %v3272_v59  ;;  %v1481_v45 = vsel %vm838_vm3, %v1475_v41, -inf }
 0x508   :  { %1482 = vmax.xlane.f32.xlu1 %v1481_v45 }
 0x509   :  { %v1478_v46 = vsel %vm834_vm4, %v1470_v44, -inf }
 0x50a   :  { %1479 = vmax.xlane.f32.xlu0 %v1478_v46 }
 0x519   :  { %222 = vperm.xlu1 %2967, %v155_v47  }
 0x51d   :  { %557 = vperm.xlu1 %2967, %v185_v48  }
 0x520   :  { %227 = vperm.xlu0 %2966, %v156_v58  }
 0x58a   :  { %v1269_v60 = vpop.xlane.xlu0 %1268 }
 0x58b   :  { %v1271_v61 = vsub.f32 %v1261_v35, %v1269_v60 }
 0x58d   :  { %v1274_v62 = vmul.f32 1.442695, %v1271_v61 }
 0x58e   :  { %v1266_v63 = vpop.xlane.xlu0 %1265 }
 0x58f   :  { %2984 = vpow2.f32 %v1274_v62  ;;  %v1270_v0 = vsub.f32 %v1256_v37, %v1266_v63 }
 0x591   :  { %v1272_v1 = vmul.f32 1.442695, %v1270_v0  ;;  %v1483_v2 = vpop.xlane.xlu1 %1482 }
 0x592   :  { %v1485_v3 = vsub.f32 %v1475_v41, %v1483_v2 }
 0x593   :  { %2986 = vpow2.f32 %v1272_v1  ;;  %v1480_v4 = vpop.xlane.xlu0 %1479 }
 0x594   :  { %v1488_v5 = vmul.f32 1.442695, %v1485_v3  ;;  %v1484_v6 = vsub.f32 %v1470_v44, %v1480_v4 }
 0x595   :  { %v223_v18 = vpop.permute.xlu1 %222 }
 0x596   :  { %2988 = vpow2.f32 %v1488_v5  ;;  %v1486_v7 = vmul.f32 1.442695, %v1484_v6  ;;  %v358_v49 = vadd.f32 %v3390_v21, %v223_v18 }
 0x598   :  { %2990 = vpow2.f32 %v1486_v7 }
 0x599   :  { %v558_v33 = vpop.permute.xlu1 %557 }
 0x59a   :  { %v692_v45 = vadd.f32 %v3398_v25, %v558_v33 }
 0x59b   :  { %v228_v55 = vpop.permute.xlu0 %227 }
 0x59c   :  { %v2985_v8 = vpop.eup %2984  ;;  %v363_v31 = vadd.f32 %v3388_v20, %v228_v55 }
 0x59d   :  { %v1279_v9 = vsel %vm838_vm3, %v2985_v8, 0.0 }
 0x59e   :  { %1280 = vadd.xlane.f32.xlu1 %v1279_v9 }
 0x5a0   :  { %v2987_v10 = vpop.eup %2986 }
 0x5a1   :  { %v1276_v11 = vsel %vm834_vm4, %v2987_v10, 0.0 }
 0x5a2   :  { %1277 = vadd.xlane.f32.xlu1 %v1276_v11 }
 0x5a3   :  { %v2989_v12 = vpop.eup %2988 }
 0x5a4   :  { %v1493_v13 = vsel %vm838_vm3, %v2989_v12, 0.0 }
 0x5a5   :  { %v2991_v14 = vpop.eup %2990  ;;  %1494 = vadd.xlane.f32.xlu0 %v1493_v13 }
 0x5a6   :  { %v1490_v15 = vsel %vm834_vm4, %v2991_v14, 0.0 }
 0x5a9   :  { %1491 = vadd.xlane.f32.xlu0 %v1490_v15  ;;  %v187_v15 = vld [vmem:[%s3614_s9 + $0x20] sm:$0xff] }
 0x5b3   :  { %562 = vperm.xlu1 %2967, %v186_v17   ;;  %v158_v17 = vld [vmem:[%s3609_s5 + $0x38] sm:$0xff] }
 0x5b7   :  { %403 = vperm.xlu1 %2967, %v172_v50  }
 0x5bf   :  { %398 = vperm.xlu0 %2966, %v171_v56  }
 0x5dd   :  { %1579 = vxpose.xlu0.b32.start.end [1/1] (short) (narrow) %v358_v49, 16 }
 0x5e0   :  { %1793 = vxpose.xlu1.b32.start.end [1/1] (short) (narrow) %v363_v31, 16 }
 0x627   :  { %v1281_v34 = vpop.xlane.xlu1 %1280 }
 0x628   :  { %2992 = vrcp.f32 %v1281_v34 }
 0x62b   :  { %v1278_v35 = vpop.xlane.xlu1 %1277 }
 0x62c   :  { %2994 = vrcp.f32 %v1278_v35 }
 0x62e   :  { %v1495_v36 = vpop.xlane.xlu0 %1494 }
 0x62f   :  { %2996 = vrcp.f32 %v1495_v36  ;;  %v563_v21 = vpop.permute.xlu1 %562 }
 0x630   :  { %v697_v25 = vadd.f32 %v3396_v24, %v563_v21 }
 0x632   :  { %v1492_v37 = vpop.xlane.xlu0 %1491 }
 0x633   :  { %2998 = vrcp.f32 %v1492_v37  ;;  %v404_v47 = vpop.permute.xlu1 %403 }
 0x635   :  { %v2993_v38 = vpop.eup %2992 }
 0x636   :  { %v1285_v39 = vmul.f32 %v2993_v38, %v2985_v8 }
 0x638   :  { %2874 = vmatpush3.xpose.msk.msra.mxu1 %vm834_vm4, %v1285_v39 }
 0x639   :  { %v2995_v40 = vpop.eup %2994  ;;  %2875 = vmatprep.subr.mxu1 %v3037_v42 }
 0x63a   :  { %v399_v41 = vpop.permute.xlu0 %398  ;;  %v1284_v20 = vmul.f32 %v2995_v40, %v2987_v10 }
 0x63b   :  { %v527_v43 = vadd.f32 %v3254_v52, %v399_v41  ;;  %v532_v52 = vadd.f32 %v3252_v51, %v404_v47  ;;  %v174_v47 = vld [vmem:[%s3610_s7 + $0x38] sm:$0xff] }
 0x63c   :  { %v2997_v44 = vpop.eup %2996  ;;  %2876 = vmatpush3.xpose.msk.msra.mxu1 %vm834_vm4, %v1284_v20 }
 0x63d   :  { %2892 = vmatprep.subr.mxu1 %v527_v43  ;;  %v1499_v46 = vmul.f32 %v2997_v44, %v2989_v12 }
 0x63f   :  { %2886 = vmatpush3.xpose.msk.msra.mxu0 %vm834_vm4, %v1499_v46  ;;  %2878 = vmatmul.mubr.msk.f32.vlgmr.msra.gmra.mxu1 %vm834_vm4, %v692_v45  ;;  %v188_v46 = vld [vmem:[%s3614_s9 + $0x28] sm:$0xff] }
 0x640   :  { %v2999_v48 = vpop.eup %2998  ;;  %2893 = vmatpush3.msra.mxu1 %v527_v43  ;;  %2887 = vmatprep.subr.mxu0 %v3037_v42 }
 0x641   :  { %v1498_v58 = vmul.f32 %v2999_v48, %v2991_v14  ;;  %2897 = vmatprep.subr.mxu1 %v3037_v42  ;;  %v157_v14 = vld [vmem:[%s3609_s5 + $0x30] sm:$0xff] }
 0x642   :  { %v173_v48 = vld [vmem:[%s3610_s7 + $0x30] sm:$0xff] }
 0x643   :  { %2888 = vmatpush3.xpose.msk.msra.mxu0 %vm834_vm4, %v1498_v58 }
 0x644   :  { %2904 = vmatprep.subr.mxu0 %v532_v52 }
 0x646   :  { %2890 = vmatmul.mubr.msk.f32.vlgmr.msra.gmra.mxu0 %vm834_vm4, %v697_v25 }
 0x647   :  { %2905 = vmatpush3.msra.mxu0 %v532_v52 }
 0x648   :  { %2909 = vmatprep.subr.mxu0 %v3037_v42 }
 0x659   :  { %v1595_v60 = vpop.trf.xlu0 }
 0x65a   :  { %2894 = vmatprep.mubr.msk.f32.mxu1 %vm752_vm2, %v1595_v60 }
 0x65c   :  { %v1809_v61 = vpop.trf.xlu1 }
 0x65d   :  { %v1596_v62 = vpop.trf.xlu0  ;;  %2906 = vmatprep.mubr.msk.f32.mxu0 %vm752_vm2, %v1809_v61 }
 0x65e   :  { %2895 = vmatmul.mubr.msk.f32.vlgmr.msra.gmra.mxu1 %vm752_vm2, %v1596_v62 }
 0x65f   :  { %2901 = vmatprep.mubr.msk.f32.mxu1 %vm3038_vm5, %v3037_v42 }
 0x660   :  { %v1810_v51 = vpop.trf.xlu1 }
 0x661   :  { %2907 = vmatmul.mubr.msk.f32.vlgmr.msra.gmra.mxu0 %vm752_vm2, %v1810_v51 }
 0x662   :  { %2913 = vmatprep.mubr.msk.f32.mxu0 %vm3038_vm5, %v3037_v42 }
 0x6ff   :  { %v3466_v24 = vpop.f32.mrf.mxu1 }
 0x701   :  { %v2879_v63 = vpop.f32.mrf.mxu1 }
 0x706   :  { %v3468_v0 = vpop.f32.mrf.mxu0 }
 0x708   :  { %v2891_v1 = vpop.f32.mrf.mxu0 }
 0x71e   :  { %v2896_v2 = vpop.f32.mrf.mxu1 }
 0x71f   :  { %v1689_v3 = vadd.f32 %v2896_v2, %v3267_v57 }
 0x720   :  { %v1683_v4 = vpop.f32.mrf.mxu1 }
 0x721   :  { %v1684_v5 = vadd.f32 %v1683_v4, %v3272_v59  ;;  %v2908_v6 = vpop.f32.mrf.mxu0  ;;  %v1695_v7 = vsel %vm838_vm3, %v1689_v3, -inf }
 0x722   :  { %v1903_v8 = vadd.f32 %v2908_v6, %v3267_v57  ;;  %1696 = vmax.xlane.f32.xlu0 %v1695_v7 }
 0x723   :  { %v1897_v9 = vpop.f32.mrf.mxu0  ;;  %v1692_v12 = vsel %vm834_vm4, %v1684_v5, -inf }
 0x724   :  { %v1909_v10 = vsel %vm838_vm3, %v1903_v8, -inf  ;;  %v1898_v11 = vadd.f32 %v1897_v9, %v3272_v59 }
 0x725   :  { %1910 = vmax.xlane.f32.xlu1 %v1909_v10 }
 0x726   :  { %1693 = vmax.xlane.f32.xlu0 %v1692_v12  ;;  %v1906_v13 = vsel %vm834_vm4, %v1898_v11, -inf }
 0x72a   :  { %1907 = vmax.xlane.f32.xlu0 %v1906_v13 }
 0x736   :  { %232 = vperm.xlu1 %2967, %v157_v14  }
 0x73a   :  { %567 = vperm.xlu1 %2967, %v187_v15  }
 0x740   :  { %237 = vperm.xlu0 %2966, %v158_v17  }
 0x7ab   :  { %v1697_v50 = vpop.xlane.xlu0 %1696 }
 0x7ac   :  { %v1699_v56 = vsub.f32 %v1689_v3, %v1697_v50 }
 0x7ae   :  { %v1702_v18 = vmul.f32 1.442695, %v1699_v56  ;;  %v1911_v49 = vpop.xlane.xlu1 %1910 }
 0x7af   :  { %v1913_v55 = vsub.f32 %v1903_v8, %v1911_v49  ;;  %v1694_v31 = vpop.xlane.xlu0 %1693 }
 0x7b0   :  { %3000 = vpow2.f32 %v1702_v18  ;;  %v1698_v33 = vsub.f32 %v1684_v5, %v1694_v31 }
 0x7b1   :  { %v1916_v34 = vmul.f32 1.442695, %v1913_v55 }
 0x7b2   :  { %v1700_v35 = vmul.f32 1.442695, %v1698_v33  ;;  %v233_v58 = vpop.permute.xlu1 %232 }
 0x7b3   :  { %3002 = vpow2.f32 %v1916_v34  ;;  %v1908_v36 = vpop.xlane.xlu0 %1907  ;;  %v368_v52 = vadd.f32 %v3394_v23, %v233_v58 }
 0x7b4   :  { %3004 = vpow2.f32 %v1700_v35  ;;  %v1912_v37 = vsub.f32 %v1898_v11, %v1908_v36 }
 0x7b6   :  { %v1914_v38 = vmul.f32 1.442695, %v1912_v37  ;;  %v568_v61 = vpop.permute.xlu1 %567 }
 0x7b7   :  { %v702_v11 = vadd.f32 %v3402_v27, %v568_v61 }
 0x7b8   :  { %3006 = vpow2.f32 %v1914_v38 }
 0x7bb   :  { %v238_v25 = vpop.permute.xlu0 %237 }
 0x7bc   :  { %v373_v60 = vadd.f32 %v3392_v22, %v238_v25 }
 0x7bd   :  { %v3001_v39 = vpop.eup %3000 }
 0x7be   :  { %v1707_v40 = vsel %vm838_vm3, %v3001_v39, 0.0 }
 0x7bf   :  { %1708 = vadd.xlane.f32.xlu1 %v1707_v40 }
 0x7c0   :  { %v3003_v21 = vpop.eup %3002 }
 0x7c1   :  { %v3005_v41 = vpop.eup %3004  ;;  %v1921_v20 = vsel %vm838_vm3, %v3003_v21, 0.0 }
 0x7c2   :  { %1922 = vadd.xlane.f32.xlu0 %v1921_v20  ;;  %v1704_v43 = vsel %vm834_vm4, %v3005_v41, 0.0 }
 0x7c3   :  { %1705 = vadd.xlane.f32.xlu1 %v1704_v43 }
 0x7c5   :  { %v3007_v44 = vpop.eup %3006 }
 0x7c6   :  { %v1918_v45 = vsel %vm834_vm4, %v3007_v44, 0.0 }
 0x7c7   :  { %1919 = vadd.xlane.f32.xlu0 %v1918_v45 }
 0x7d4   :  { %572 = vperm.xlu1 %2967, %v188_v46  }
 0x7d8   :  { %413 = vperm.xlu1 %2967, %v174_v47  }
 0x7dd   :  { %408 = vperm.xlu0 %2966, %v173_v48  }
 0x7fb   :  { %2007 = vxpose.xlu0.b32.start.end [1/1] (short) (narrow) %v368_v52, 16 }
 0x801   :  { %2221 = vxpose.xlu1.b32.start.end [1/1] (short) (narrow) %v373_v60, 16 }
 0x848   :  { %v1709_v62 = vpop.xlane.xlu1 %1708 }
 0x849   :  { %3008 = vrcp.f32 %v1709_v62 }
 0x84b   :  { %v1923_v51 = vpop.xlane.xlu0 %1922 }
 0x84c   :  { %v1706_v63 = vpop.xlane.xlu1 %1705  ;;  %3010 = vrcp.f32 %v1923_v51 }
 0x84d   :  { %3012 = vrcp.f32 %v1706_v63 }
 0x850   :  { %v1920_v1 = vpop.xlane.xlu0 %1919  ;;  %v573_v3 = vpop.permute.xlu1 %572 }
 0x851   :  { %3014 = vrcp.f32 %v1920_v1 }
 0x854   :  { %v414_v9 = vpop.permute.xlu1 %413 }
 0x855   :  { %v542_v13 = vadd.f32 %v3256_v53, %v414_v9 }
 0x856   :  { %v3009_v2 = vpop.eup %3008 }
 0x857   :  { %v1713_v4 = vmul.f32 %v3009_v2, %v3001_v39  ;;  %v189_v2 = vld [vmem:[%s3614_s9 + $0x30] sm:$0xff] }
 0x858   :  { %v409_v6 = vpop.permute.xlu0 %408 }
 0x859   :  { %v3011_v5 = vpop.eup %3010  ;;  %2898 = vmatpush3.xpose.msk.msra.mxu1 %vm834_vm4, %v1713_v4  ;;  %v537_v8 = vadd.f32 %v3258_v54, %v409_v6  ;;  %v707_v54 = vadd.f32 %v3400_v26, %v573_v3  ;;  %v190_v3 = vld [vmem:[%s3614_s9 + $0x38] sm:$0xff] }
 0x85a   :  { %v3013_v23 = vpop.eup %3012  ;;  %2899 = vmatprep.subr.mxu1 %v3037_v42  ;;  %v1927_v22 = vmul.f32 %v3011_v5, %v3003_v21 }
 0x85b   :  { %v1712_v7 = vmul.f32 %v3013_v23, %v3005_v41 }
 0x85c   :  { %2910 = vmatpush3.xpose.msk.msra.mxu0 %vm834_vm4, %v1927_v22 }
 0x85d   :  { %2900 = vmatpush3.xpose.msk.msra.mxu1 %vm834_vm4, %v1712_v7  ;;  %2911 = vmatprep.subr.mxu0 %v3037_v42 }
 0x85e   :  { %v3015_v10 = vpop.eup %3014  ;;  %2916 = vmatprep.subr.mxu1 %v537_v8 }
 0x85f   :  { %v1926_v12 = vmul.f32 %v3015_v10, %v3007_v44 }
 0x860   :  { %2902 = vmatmul.mubr.msk.f32.vlgmr.msra.gmra.mxu1 %vm834_vm4, %v702_v11 }
 0x861   :  { %2912 = vmatpush3.xpose.msk.msra.mxu0 %vm834_vm4, %v1926_v12  ;;  %2917 = vmatpush3.msra.mxu1 %v537_v8 }
 0x862   :  { %2928 = vmatprep.subr.mxu0 %v542_v13  ;;  %2921 = vmatprep.subr.mxu1 %v3037_v42 }
 0x864   :  { %2914 = vmatmul.mubr.msk.f32.vlgmr.msra.gmra.mxu0 %vm834_vm4, %v707_v54  ;;  %v198_v54 = vld [vmem:[%s3615_s10 + $0x38] sm:$0xff] }
 0x865   :  { %2929 = vmatpush3.msra.mxu0 %v542_v13 }
 0x866   :  { %2933 = vmatprep.subr.mxu0 %v3037_v42 }
 0x877   :  { %v2023_v27 = vpop.trf.xlu0 }
 0x878   :  { %2918 = vmatprep.mubr.msk.f32.mxu1 %vm752_vm2, %v2023_v27  ;;  %v194_v27 = vld [vmem:[%s3615_s10 + $0x18] sm:$0xff] }
 0x87b   :  { %v2024_v14 = vpop.trf.xlu0 }
 0x87c   :  { %2919 = vmatmul.mubr.msk.f32.vlgmr.msra.gmra.mxu1 %vm752_vm2, %v2024_v14  ;;  %v193_v14 = vld [vmem:[%s3615_s10 + $0x10] sm:$0xff] }
 0x87d   :  { %v2237_v53 = vpop.trf.xlu1  ;;  %2925 = vmatprep.mubr.msk.f32.mxu1 %vm3038_vm5, %v3037_v42 }
 0x87e   :  { %2930 = vmatprep.mubr.msk.f32.mxu0 %vm752_vm2, %v2237_v53  ;;  %v192_v53 = vld [vmem:[%s3615_s10 + $0x8] sm:$0xff] }
 0x881   :  { %v2238_v26 = vpop.trf.xlu1 }
 0x882   :  { %2931 = vmatmul.mubr.msk.f32.vlgmr.msra.gmra.mxu0 %vm752_vm2, %v2238_v26  ;;  %v191_v26 = vld [vmem:[%s3615_s10] sm:$0xff] }
 0x883   :  { %2937 = vmatprep.mubr.msk.f32.mxu0 %vm3038_vm5, %v3037_v42 }
 0x920   :  { %v1789_v15 = vpop.f32.mrf.mxu1 }
 0x922   :  { %v2903_v17 = vpop.f32.mrf.mxu1 }
 0x924   :  { %v2003_v50 = vpop.f32.mrf.mxu0 }
 0x926   :  { %v2915_v56 = vpop.f32.mrf.mxu0 }
 0x93c   :  { %v2920_v18 = vpop.f32.mrf.mxu1 }
 0x93d   :  { %v2117_v49 = vadd.f32 %v2920_v18, %v3267_v57 }
 0x93e   :  { %v2111_v55 = vpop.f32.mrf.mxu1 }
 0x93f   :  { %v2112_v31 = vadd.f32 %v2111_v55, %v3272_v59  ;;  %v2123_v33 = vsel %vm838_vm3, %v2117_v49, -inf }
 0x940   :  { %2124 = vmax.xlane.f32.xlu0 %v2123_v33 }
 0x941   :  { %v2120_v36 = vsel %vm834_vm4, %v2112_v31, -inf }
 0x942   :  { %v2932_v34 = vpop.f32.mrf.mxu0 }
 0x943   :  { %v2331_v35 = vadd.f32 %v2932_v34, %v3267_v57 }
 0x944   :  { %v2325_v37 = vpop.f32.mrf.mxu0  ;;  %2121 = vmax.xlane.f32.xlu0 %v2120_v36 }
 0x945   :  { %v2326_v38 = vadd.f32 %v2325_v37, %v3272_v59  ;;  %v2337_v39 = vsel %vm838_vm3, %v2331_v35, -inf }
 0x946   :  { %2338 = vmax.xlane.f32.xlu1 %v2337_v39 }
 0x947   :  { %v2334_v40 = vsel %vm834_vm4, %v2326_v38, -inf }
 0x948   :  { %2335 = vmax.xlane.f32.xlu0 %v2334_v40 }
 0x9c9   :  { %v2125_v21 = vpop.xlane.xlu0 %2124 }
 0x9ca   :  { %v2127_v41 = vsub.f32 %v2117_v49, %v2125_v21 }
 0x9cc   :  { %v2130_v20 = vmul.f32 1.442695, %v2127_v41 }
 0x9cd   :  { %v2122_v43 = vpop.xlane.xlu0 %2121 }
 0x9ce   :  { %3016 = vpow2.f32 %v2130_v20  ;;  %v2126_v44 = vsub.f32 %v2112_v31, %v2122_v43  ;;  %v2680_v31 = vld [vmem:[%s3616_s11] ss:$0 sm:$0xff] }
 0x9cf   :  { %v2339_v45 = vpop.xlane.xlu1 %2338 }
 0x9d0   :  { %v2128_v57 = vmul.f32 1.442695, %v2126_v44  ;;  %v2341_v46 = vsub.f32 %v2331_v35, %v2339_v45 }
 0x9d1   :  { %v2336_v47 = vpop.xlane.xlu0 %2335 }
 0x9d2   :  { %3018 = vpow2.f32 %v2128_v57  ;;  %v2344_v48 = vmul.f32 1.442695, %v2341_v46  ;;  %v2340_v58 = vsub.f32 %v2326_v38, %v2336_v47 }
 0x9d4   :  { %3020 = vpow2.f32 %v2344_v48  ;;  %v2342_v59 = vmul.f32 1.442695, %v2340_v58 }
 0x9d6   :  { %3022 = vpow2.f32 %v2342_v59 }
 0x9db   :  { %v3017_v52 = vpop.eup %3016 }
 0x9dc   :  { %v2135_v25 = vsel %vm838_vm3, %v3017_v52, 0.0 }
 0x9dd   :  { %2136 = vadd.xlane.f32.xlu1 %v2135_v25 }
 0x9df   :  { %v3019_v60 = vpop.eup %3018 }
 0x9e0   :  { %v2132_v61 = vsel %vm834_vm4, %v3019_v60, 0.0 }
 0x9e1   :  { %v3021_v62 = vpop.eup %3020  ;;  %2133 = vadd.xlane.f32.xlu1 %v2132_v61 }
 0x9e2   :  { %v2349_v51 = vsel %vm838_vm3, %v3021_v62, 0.0 }
 0x9e3   :  { %v3023_v63 = vpop.eup %3022  ;;  %2350 = vadd.xlane.f32.xlu0 %v2349_v51 }
 0x9e4   :  { %v2346_v1 = vsel %vm834_vm4, %v3023_v63, 0.0 }
 0x9e7   :  { %2347 = vadd.xlane.f32.xlu0 %v2346_v1 }
 0x9f2   :  { %577 = vperm.xlu1 %2967, %v189_v2  }
 0x9fd   :  { %582 = vperm.xlu0 %2966, %v190_v3  }
 0xa1b   :  { %2441 = vxpose.xlu1.b32.start [1/8] (short) (narrow) %v3408_v30, 16 }
 0xa1f   :  { %2442 = vxpose.xlu1.b32.cont [2/8] (short) (narrow) %v3410_v32, 16 }
 0xa23   :  { %2443 = vxpose.xlu1.b32.cont [3/8] (short) (narrow) %v3466_v24, 16 }
 0xa27   :  { %2444 = vxpose.xlu1.b32.cont [4/8] (short) (narrow) %v3468_v0, 16 }
 0xa2b   :  { %2445 = vxpose.xlu1.b32.cont [5/8] (short) (narrow) %v1789_v15, 16 }
 0xa2f   :  { %2446 = vxpose.xlu1.b32.cont [6/8] (short) (narrow) %v2003_v50, 16 }
 0xa66   :  { %v2137_v4 = vpop.xlane.xlu1 %2136 }
 0xa67   :  { %3024 = vrcp.f32 %v2137_v4 }
 0xa6a   :  { %v2134_v5 = vpop.xlane.xlu1 %2133 }
 0xa6b   :  { %3026 = vrcp.f32 %v2134_v5 }
 0xa6c   :  { %v2351_v6 = vpop.xlane.xlu0 %2350 }
 0xa6d   :  { %3028 = vrcp.f32 %v2351_v6 }
 0xa6e   :  { %v578_v32 = vpop.permute.xlu1 %577 }
 0xa6f   :  { %v712_v9 = vadd.f32 %v3406_v29, %v578_v32  ;;  %v197_v29 = vld [vmem:[%s3615_s10 + $0x30] sm:$0xff] }
 0xa70   :  { %v2348_v23 = vpop.xlane.xlu0 %2347 }
 0xa71   :  { %3030 = vrcp.f32 %v2348_v23 }
 0xa74   :  { %v3025_v22 = vpop.eup %3024 }
 0xa75   :  { %v2141_v7 = vmul.f32 %v3025_v22, %v3017_v52 }
 0xa77   :  { %2922 = vmatpush3.xpose.msk.msra.mxu1 %vm834_vm4, %v2141_v7 }
 0xa78   :  { %v3027_v30 = vpop.eup %3026  ;;  %2923 = vmatprep.subr.mxu1 %v3037_v42  ;;  %v583_v11 = vpop.permute.xlu0 %582 }
 0xa79   :  { %v2140_v24 = vmul.f32 %v3027_v30, %v3019_v60  ;;  %v717_v13 = vadd.f32 %v3404_v28, %v583_v11  ;;  %v195_v28 = vld [vmem:[%s3615_s10 + $0x20] sm:$0xff] }
 0xa7a   :  { %v3029_v0 = vpop.eup %3028  ;;  %v2683_v60 = vld [vmem:[%s3617_s12] ss:$0 sm:$0xff] }
 0xa7b   :  { %2924 = vmatpush3.xpose.msk.msra.mxu1 %vm834_vm4, %v2140_v24  ;;  %v2355_v8 = vmul.f32 %v3029_v0, %v3021_v62  ;;  %v2684_v62 = vld [vmem:[%s3618_s13] ss:$0 sm:$0xff] }
 0xa7c   :  { %2940 = vmatprep.subr.mxu1 %v198_v54 }
 0xa7d   :  { %2934 = vmatpush3.xpose.msk.msra.mxu0 %vm834_vm4, %v2355_v8 }
 0xa7e   :  { %v3031_v10 = vpop.eup %3030  ;;  %2926 = vmatmul.mubr.msk.f32.vlgmr.msra.gmra.mxu1 %vm834_vm4, %v712_v9  ;;  %2935 = vmatprep.subr.mxu0 %v3037_v42  ;;  %v196_v42 = vld [vmem:[%s3615_s10 + $0x28] sm:$0xff] }
 0xa7f   :  { %v2354_v12 = vmul.f32 %v3031_v10, %v3023_v63  ;;  %2941 = vmatpush3.msra.mxu1 %v198_v54 }
 0xa80   :  { %2942 = vmatprep.subr.mxu1 %v197_v29 }
 0xa81   :  { %2936 = vmatpush3.xpose.msk.msra.mxu0 %vm834_vm4, %v2354_v12  ;;  %2943 = vmatpush3.msra.mxu1 %v197_v29 }
 0xa82   :  { %2944 = vmatprep.subr.mxu1 %v196_v42 }
 0xa83   :  { %2945 = vmatpush3.msra.mxu1 %v196_v42 }
 0xa84   :  { %2938 = vmatmul.mubr.msk.f32.vlgmr.msra.gmra.mxu0 %vm834_vm4, %v717_v13  ;;  %2946 = vmatprep.subr.mxu1 %v195_v28 }
 0xa85   :  { %2947 = vmatpush3.msra.mxu1 %v195_v28 }
 0xa86   :  { %2948 = vmatprep.subr.mxu1 %v194_v27 }
 0xa87   :  { %2949 = vmatpush3.msra.mxu1 %v194_v27 }
 0xa88   :  { %2950 = vmatprep.subr.mxu1 %v193_v14 }
 0xa89   :  { %2951 = vmatpush3.msra.mxu1 %v193_v14 }
 0xa8a   :  { %2952 = vmatprep.subr.mxu1 %v192_v53 }
 0xa8b   :  { %2953 = vmatpush3.msra.mxu1 %v192_v53 }
 0xa8c   :  { %2954 = vmatprep.subr.mxu1 %v191_v26 }
 0xa8d   :  { %2955 = vmatpush3.msra.mxu1 %v191_v26 }
 0xb3e   :  { %v2217_v15 = vpop.f32.mrf.mxu1 }
 0xb3f   :  { %2447 = vxpose.xlu1.b32.cont [7/8] (short) (narrow) %v2217_v15, 16 }
 0xb40   :  { %v2927_v17 = vpop.f32.mrf.mxu1 }
 0xb44   :  { %v2431_v50 = vpop.f32.mrf.mxu0 }
 0xb45   :  { %2448 = vxpose.xlu1.b32.end [8/8] (short) (narrow) %v2431_v50, 16 }
 0xb46   :  { %v2939_v56 = vpop.f32.mrf.mxu0 }
 0xba5   :  { %v2457_v18 = vpop.trf.xlu1 }
 0xba6   :  { %2956 = vmatprep.mubr.msk.f32.mxu1 %vm240_vm1, %v2457_v18 }
 0xba9   :  { %v2458_v49 = vpop.trf.xlu1 }
 0xbaa   :  { %2957 = vmatmul.mubr.msk.f32.vlgmr.msra.gmra.mxu1 %vm240_vm1, %v2458_v49 }
 0xc6a   :  { %v2958_v55 = vpop.f32.mrf.mxu1 }
 0xc6b   :  { %v2551_v34 = vadd.f32 %v2958_v55, %v2680_v31 }
 0xc6c   :  { %v2545_v33 = vpop.f32.mrf.mxu1 }
 0xc6d   :  { %v2546_v35 = vadd.f32 %v2680_v31, %v2545_v33  ;;  %v2555_v38 = vadd.f32 %v3163_v16, %v2551_v34 }
 0xc6f   :  { %v2554_v36 = vadd.f32 %v2546_v35, %v3169_v19  ;;  %v2562_v39 = vsel %vm2561_vm6, %v2555_v38, 0.0 }
 0xc71   :  { %v2558_v37 = vsel %vm240_vm1, %v2554_v36, 0.0 }
 0xc72   :  { %2559 = vadd.xlane.f32.xlu0 %v2558_v37 }
 0xc76   :  { %2563 = vadd.xlane.f32.xlu0 %v2562_v39 }
 0xcfb   :  { %v2560_v40 = vpop.xlane.xlu0 %2559 }
 0xcfc   :  { %v2566_v21 = vmul.f32 0.015625, %v2560_v40 }
 0xcfe   :  { %v2568_v41 = vsub.f32 %v2554_v36, %v2566_v21 }
 0xcff   :  { %v2564_v20 = vpop.xlane.xlu0 %2563 }
 0xd00   :  { %v2567_v43 = vmul.f32 0.015625, %v2564_v20  ;;  %v2570_v44 = vmul.f32 %v2568_v41, %v2568_v41 }
 0xd02   :  { %v2569_v45 = vsub.f32 %v2555_v38, %v2567_v43  ;;  %v2572_v57 = vsel %vm240_vm1, %v2570_v44, 0.0 }
 0xd03   :  { %2573 = vadd.xlane.f32.xlu0 %v2572_v57 }
 0xd04   :  { %v2571_v19 = vmul.f32 %v2569_v45, %v2569_v45 }
 0xd06   :  { %v2575_v46 = vsel %vm2561_vm6, %v2571_v19, 0.0 }
 0xd07   :  { %2576 = vadd.xlane.f32.xlu0 %v2575_v46 }
 0xd8c   :  { %v2574_v16 = vpop.xlane.xlu0 %2573 }
 0xd8d   :  { %v2578_v47 = vmul.f32 0.015625, %v2574_v16 }
 0xd8f   :  { %v2580_v48 = vadd.f32 1e-05, %v2578_v47 }
 0xd90   :  { %v2577_v58 = vpop.xlane.xlu0 %2576 }
 0xd91   :  { %3032 = vrsqrt.f32 %v2580_v48  ;;  %v2579_v59 = vmul.f32 0.015625, %v2577_v58 }
 0xd93   :  { %v2581_v52 = vadd.f32 1e-05, %v2579_v59 }
 0xd95   :  { %3034 = vrsqrt.f32 %v2581_v52 }
 0xd9e   :  { %v3033_v25 = vpop.eup %3032 }
 0xd9f   :  { %v2584_v61 = vmul.f32 %v3033_v25, %v2568_v41 }
 0xda1   :  { %v2592_v51 = vmul.f32 %v2683_v60, %v2584_v61 }
 0xda2   :  { %v3035_v63 = vpop.eup %3034 }
 0xda3   :  { %v2600_v1 = vadd.f32 %v2684_v62, %v2592_v51  ;;  %v2585_v2 = vmul.f32 %v3035_v63, %v2569_v45 }
 0xda5   :  { %2602 = vst.msk [vmem:[%s3619_s14] sm:$0xff] %vm240_vm1, %v2600_v1  ;;  %v2593_v3 = vmul.f32 %v2683_v60, %v2585_v2 }
 0xda7   :  { %v2601_v4 = vadd.f32 %v2684_v62, %v2593_v3 }
 0xda9   :  { %2603 = vst.msk [vmem:[%s3619_s14 + $0x8] sm:$0x3] %vm2561_vm6, %v2601_v4 }

// kernel: forward.6
= control target key start
LH: loop header
LB: loop body
LE: loop exit
PB: predicated region body
PF: predicated region fallthrough
CT: control target
= control target key end

     0   :  { %vm199_vm0 = vcmask 523264   ;;  %v4045_v3 = vmov 0   ;;  %vm747_vm1 = vcmask 64512   ;;  %vm855_vm2 = vcmask 390144   ;;  %s5078_s0 = inlined_call_operand.vmem [shape: f32[30,64], index: 0, kind: input, shape index: {}]   ;;  %s5079_s1 = inlined_call_operand.vmem [shape: f32[30,64], index: 1, kind: input, shape index: {}]   ;;  %s5080_s5 = inlined_call_operand.vmem [shape: f32[64,64], index: 5, kind: input, shape index: {}]   ;;  %s5081_s2 = inlined_call_operand.vmem [shape: f32[48,64], index: 2, kind: input, shape index: {}]   ;;  %s5082_s3 = inlined_call_operand.vmem [shape: f32[48,64], index: 3, kind: input, shape index: {}]   ;;  %s5083_s6 = inlined_call_operand.vmem [shape: f32[64,1], index: 6, kind: input, shape index: {}]   ;;  %s5084_s8 = inlined_call_operand.vmem [shape: f32[64,1], index: 8, kind: input, shape index: {}]   ;;  %s5085_s7 = inlined_call_operand.vmem [shape: f32[64,64], index: 7, kind: input, shape index: {}]   ;;  %s5086_s9 = inlined_call_operand.vmem [shape: f32[64,64], index: 9, kind: input, shape index: {}]   ;;  %s5087_s4 = inlined_call_operand.vmem [shape: f32[30,48], index: 4, kind: input, shape index: {}]   ;;  %s5088_s10 = inlined_call_operand.vmem [shape: f32[64,1], index: 10, kind: input, shape index: {}]   ;;  %s5089_s11 = inlined_call_operand.vmem [shape: f32[64,64], index: 11, kind: input, shape index: {}]   ;;  %s5090_s12 = inlined_call_operand.vmem [shape: f32[1,64], index: 12, kind: input, shape index: {}]   ;;  %s5091_s15 = inlined_call_operand.vmem [shape: f32[64,256], index: 15, kind: input, shape index: {}]   ;;  %s5092_s17 = inlined_call_operand.vmem [shape: f32[256,64], index: 17, kind: input, shape index: {}]   ;;  %s5093_s13 = inlined_call_operand.vmem [shape: f32[1,64], index: 13, kind: input, shape index: {}]   ;;  %s5094_s14 = inlined_call_operand.vmem [shape: f32[1,64], index: 14, kind: input, shape index: {}]   ;;  %s5095_s16 = inlined_call_operand.vmem [shape: f32[1,256], index: 16, kind: input, shape index: {}]   ;;  %s5096_s18 = inlined_call_operand.vmem [shape: f32[1,64], index: 18, kind: input, shape index: {}]   ;;  %s5097_s19 = inlined_call_operand.vmem [shape: f32[1,64], index: 19, kind: input, shape index: {}]   ;;  %s5098_s20 = inlined_call_operand.vmem [shape: f32[1,64], index: 20, kind: input, shape index: {}]   ;;  %s5099_s21 = inlined_call_operand.vmem [shape: f32[30,64], index: 21, kind: output, shape index: {}]  }
   0x1   :  { %5106 = sst [smem:[#allocation2_spill]] %s5078_s0  ;;  %3891 = vset.pattern.permute.xlu0 %v4045_v3  ;;  %v126_v19 = vld [vmem:[%s5084_s8] sm:$0xff]  ;;  %v119_v42 = vld [vmem:[%s5085_s7 + $0x8] sm:$0xff]  ;;  %v120_v43 = vld [vmem:[%s5085_s7 + $0x10] sm:$0xff]  ;;  %vm845_vm3 = vcmask 392192   ;;  %vm4047_vm4 = vmmov 0  }
   0x2   :  { %5107 = sst [smem:[#allocation3_spill]] %s5079_s1  ;;  %v118_v39 = vld [vmem:[%s5085_s7] sm:$0xff]  ;;  %v121_v44 = vld [vmem:[%s5085_s7 + $0x18] sm:$0xff]  ;;  %v123_v46 = vld [vmem:[%s5085_s7 + $0x28] sm:$0xff]  ;;  %vm2932_vm5 = vcmask 521216  }
   0x3   :  { %5108 = sst [smem:[#allocation4_spill]] %s5080_s5  ;;  %v122_v45 = vld [vmem:[%s5085_s7 + $0x20] sm:$0xff]  ;;  %v124_v47 = vld [vmem:[%s5085_s7 + $0x30] sm:$0xff]  ;;  %v125_v48 = vld [vmem:[%s5085_s7 + $0x38] sm:$0xff] }
   0x4   :  { %5109 = sst [smem:[#allocation5_spill]] %s5081_s2 }
   0x5   :  { %5110 = sst [smem:[#allocation6_spill]] %s5082_s3 }
   0x6   :  { %5111 = sst [smem:[#allocation7_spill]] %s5083_s6 }
   0x7   :  { %5112 = sst [smem:[#allocation8_spill]] %s5094_s14 }
   0x8   :  { %s5113_s26 = sld [smem:[#allocation2_spill]] }
   0x9   :  { %s5114_s14 = sld [smem:[#allocation3_spill]] }
   0xa   :  { %s5115_s5 = sld [smem:[#allocation4_spill]] }
   0xb   :  { %s5116_s2 = sld [smem:[#allocation5_spill]] }
   0xc   :  { %s5117_s25 = sld [smem:[#allocation6_spill]] }
   0xe   :  { %v71_v0 = vld [vmem:[%s5113_s26 + $0x18] sm:$0x3f]  ;;  %v70_v2 = vld [vmem:[%s5113_s26 + $0x10] sm:$0xff]  ;;  %v69_v7 = vld [vmem:[%s5113_s26 + $0x8] sm:$0xff] }
   0xf   :  { %v81_v1 = vld [vmem:[%s5114_s14 + $0x18] sm:$0x3f]  ;;  %v80_v5 = vld [vmem:[%s5114_s14 + $0x10] sm:$0xff]  ;;  %v79_v8 = vld [vmem:[%s5114_s14 + $0x8] sm:$0xff] }
  0x10   :  { %v85_v4 = vadd.f32 %v81_v1, %v71_v0  ;;  %v84_v6 = vadd.f32 %v80_v5, %v70_v2  ;;  %v102_v9 = vld [vmem:[%s5115_s5] sm:$0xff]  ;;  %v83_v11 = vadd.f32 %v79_v8, %v69_v7  ;;  %v103_v23 = vld [vmem:[%s5115_s5 + $0x8] sm:$0xff]  ;;  %v104_v25 = vld [vmem:[%s5115_s5 + $0x10] sm:$0xff] }
  0x11   :  { %3654 = vmatprep.mubr.msk.f32.mxu1 %vm199_vm0, %v102_v9  ;;  %v77_v10 = vld [vmem:[%s5116_s2 + $0x28] sm:$0xff]  ;;  %v76_v12 = vld [vmem:[%s5116_s2 + $0x20] sm:$0xff]  ;;  %v75_v16 = vld [vmem:[%s5116_s2 + $0x18] sm:$0xff] }
  0x12   :  { %3646 = vmatprep.subr.msk.mxu1 %vm199_vm0, %v85_v4  ;;  %3690 = vmatprep.subr.msk.mxu0 %vm199_vm0, %v77_v10  ;;  %v68_v13 = vld [vmem:[%s5113_s26] sm:$0xff]  ;;  %v91_v17 = vld [vmem:[%s5117_s25 + $0x28] sm:$0xff]  ;;  %v74_v21 = vld [vmem:[%s5116_s2 + $0x10] sm:$0xff] }
  0x13   :  { %3647 = vmatpush3.xpose.msk.msra.mxu1 %vm199_vm0, %v85_v4  ;;  %3691 = vmatpush3.xpose.msk.msra.mxu0 %vm199_vm0, %v77_v10  ;;  %v78_v14 = vld [vmem:[%s5114_s14] sm:$0xff]  ;;  %s5118_s14 = sld [smem:[#allocation7_spill]]  ;;  %v97_v20 = vadd.f32 %v91_v17, %v77_v10  ;;  %v73_v26 = vld [vmem:[%s5116_s2 + $0x8] sm:$0xff]  ;;  %v89_v27 = vld [vmem:[%s5117_s25 + $0x18] sm:$0xff] }
  0x14   :  { %3648 = vmatprep.subr.msk.mxu1 %vm199_vm0, %v84_v6  ;;  %3692 = vmatprep.subr.msk.mxu0 %vm199_vm0, %v76_v12  ;;  %v82_v15 = vadd.f32 %v78_v14, %v68_v13  ;;  %v90_v22 = vld [vmem:[%s5117_s25 + $0x20] sm:$0xff]  ;;  %v105_v28 = vld [vmem:[%s5115_s5 + $0x18] sm:$0xff]  ;;  %v95_v29 = vadd.f32 %v89_v27, %v75_v16  ;;  %v88_v32 = vld [vmem:[%s5117_s25 + $0x10] sm:$0xff] }
  0x15   :  { %v96_v24 = vadd.f32 %v90_v22, %v76_v12  ;;  %v106_v30 = vld [vmem:[%s5115_s5 + $0x20] sm:$0xff]  ;;  %v107_v33 = vld [vmem:[%s5115_s5 + $0x28] sm:$0xff]  ;;  %v94_v34 = vadd.f32 %v88_v32, %v74_v21  ;;  %v108_v35 = vld [vmem:[%s5115_s5 + $0x30] sm:$0xff] }
  0x16   :  { %v72_v31 = vld [vmem:[%s5116_s2] sm:$0xff]  ;;  %v87_v36 = vld [vmem:[%s5117_s25 + $0x8] sm:$0xff]  ;;  %v109_v37 = vld [vmem:[%s5115_s5 + $0x38] sm:$0xff] }
  0x17   :  { %3649 = vmatpush3.xpose.msk.msra.mxu1 %vm199_vm0, %v84_v6  ;;  %3693 = vmatpush3.xpose.msk.msra.mxu0 %vm199_vm0, %v76_v12  ;;  %v93_v38 = vadd.f32 %v87_v36, %v73_v26  ;;  %v86_v40 = vld [vmem:[%s5117_s25] sm:$0xff]  ;;  %v4365_v13 = vld [vmem:[%s5087_s4 + $0x18] sm:$0x3f]  ;;  %v4376_v17 = vld [vmem:[%s5087_s4 + $0x8] sm:$0xff] }
  0x18   :  { %3650 = vmatprep.subr.msk.mxu1 %vm199_vm0, %v83_v11  ;;  %3694 = vmatprep.subr.msk.mxu0 %vm199_vm0, %v75_v16  ;;  %v92_v41 = vadd.f32 %v86_v40, %v72_v31  ;;  %v134_v4 = vld [vmem:[%s5086_s9] sm:$0xff] }
  0x19   :  { %v110_v18 = vld [vmem:[%s5118_s14] sm:$0xff]  ;;  %3702 = vmatprep.mubr.msk.f32.mxu0 %vm199_vm0, %v134_v4 }
  0x1a   :  { %161 = vperm.xlu0 %3891, %v110_v18  }
  0x1b   :  { %3651 = vmatpush3.xpose.msk.msra.mxu1 %vm199_vm0, %v83_v11  ;;  %3695 = vmatpush3.xpose.msk.msra.mxu0 %vm199_vm0, %v75_v16 }
  0x1c   :  { %3652 = vmatprep.subr.msk.mxu1 %vm199_vm0, %v82_v15  ;;  %3696 = vmatprep.subr.msk.mxu0 %vm199_vm0, %v74_v21 }
  0x1e   :  { %343 = vperm.xlu0 %3891, %v126_v19  }
  0x1f   :  { %3653 = vmatpush3.xpose.msk.msra.mxu1 %vm199_vm0, %v82_v15  ;;  %3697 = vmatpush3.xpose.msk.msra.mxu0 %vm199_vm0, %v74_v21  ;;  %v4370_v15 = vld [vmem:[%s5087_s4 + $0x10] sm:$0xff] }
  0x20   :  { %3666 = vmatprep.subr.msk.mxu1 %vm199_vm0, %v97_v20  ;;  %3698 = vmatprep.subr.msk.mxu0 %vm199_vm0, %v73_v26 }
  0x22   :  { %3655 = vmatmul.mubr.msk.f32.vlgmr.msra.gmra.mxu1 %vm199_vm0, %v103_v23  ;;  %v4385_v23 = vld [vmem:[%s5087_s4] sm:$0xff] }
  0x23   :  { %3667 = vmatpush3.xpose.msk.msra.mxu1 %vm199_vm0, %v97_v20  ;;  %3657 = vmatprep.mubr.msk.f32.mxu1 %vm199_vm0, %v104_v25 }
  0x24   :  { %3668 = vmatprep.subr.msk.mxu1 %vm199_vm0, %v96_v24  ;;  %3699 = vmatpush3.xpose.msk.msra.mxu0 %vm199_vm0, %v73_v26 }
  0x25   :  { %3700 = vmatprep.subr.msk.mxu0 %vm199_vm0, %v72_v31 }
  0x26   :  { %3658 = vmatmul.mubr.msk.f32.gmra.mxu1 %vm199_vm0, %v105_v28 }
  0x27   :  { %3669 = vmatpush3.xpose.msk.msra.mxu1 %vm199_vm0, %v96_v24  ;;  %3660 = vmatprep.mubr.msk.f32.mxu1 %vm199_vm0, %v106_v30 }
  0x28   :  { %3670 = vmatprep.subr.msk.mxu1 %vm199_vm0, %v95_v29  ;;  %3701 = vmatpush3.xpose.msk.msra.mxu0 %vm199_vm0, %v72_v31 }
  0x2a   :  { %3661 = vmatmul.mubr.msk.f32.gmra.mxu1 %vm199_vm0, %v107_v33 }
  0x2b   :  { %3671 = vmatpush3.xpose.msk.msra.mxu1 %vm199_vm0, %v95_v29  ;;  %3663 = vmatprep.mubr.msk.f32.mxu1 %vm199_vm0, %v108_v35 }
  0x2c   :  { %3672 = vmatprep.subr.msk.mxu1 %vm199_vm0, %v94_v34 }
  0x2e   :  { %3664 = vmatmul.mubr.msk.f32.gmra.mxu1 %vm199_vm0, %v109_v37 }
  0x2f   :  { %3673 = vmatpush3.xpose.msk.msra.mxu1 %vm199_vm0, %v94_v34  ;;  %3678 = vmatprep.mubr.msk.f32.mxu1 %vm199_vm0, %v118_v39 }
  0x30   :  { %3674 = vmatprep.subr.msk.mxu1 %vm199_vm0, %v93_v38 }
  0x33   :  { %3675 = vmatpush3.xpose.msk.msra.mxu1 %vm199_vm0, %v93_v38 }
  0x34   :  { %3676 = vmatprep.subr.msk.mxu1 %vm199_vm0, %v92_v41 }
  0x37   :  { %3677 = vmatpush3.xpose.msk.msra.mxu1 %vm199_vm0, %v92_v41 }
  0x3a   :  { %3679 = vmatmul.mubr.msk.f32.vlgmr.msra.gmra.mxu1 %vm199_vm0, %v119_v42 }
  0x3b   :  { %3681 = vmatprep.mubr.msk.f32.mxu1 %vm199_vm0, %v120_v43 }
  0x3e   :  { %3682 = vmatmul.mubr.msk.f32.gmra.mxu1 %vm199_vm0, %v121_v44 }
  0x3f   :  { %3684 = vmatprep.mubr.msk.f32.mxu1 %vm199_vm0, %v122_v45 }
  0x42   :  { %3685 = vmatmul.mubr.msk.f32.gmra.mxu1 %vm199_vm0, %v123_v46 }
  0x43   :  { %3687 = vmatprep.mubr.msk.f32.mxu1 %vm199_vm0, %v124_v47  ;;  %v112_v47 = vld [vmem:[%s5118_s14 + $0x10] sm:$0xff] }
  0x46   :  { %3688 = vmatmul.mubr.msk.f32.gmra.mxu1 %vm199_vm0, %v125_v48  ;;  %v142_v48 = vld [vmem:[%s5088_s10] sm:$0xff] }
  0x95   :  { %v162_v50 = vpop.permute.xlu0 %161 }
  0x99   :  { %v344_v60 = vpop.permute.xlu0 %343 }
  0xe2   :  { %v4321_v49 = vpop.f32.mrf.mxu1 }
  0xe4   :  { %v302_v51 = vpop.f32.mrf.mxu1 }
  0xe5   :  { %v303_v52 = vadd.f32 %v302_v51, %v162_v50  ;;  %v4046_v50 = vmov 0.0   ;;  %v136_v51 = vld [vmem:[%s5086_s9 + $0x10] sm:$0xff] }
  0xe6   :  { %v4323_v53 = vpop.f32.mrf.mxu1  ;;  %3722 = vmatprep.subr.mxu0 %v4046_v50 }
  0xe7   :  { %715 = vxpose.xlu1.b32.start.end [1/1] (short) (narrow) %v303_v52, 32  ;;  %v128_v52 = vld [vmem:[%s5084_s8 + $0x10] sm:$0xff] }
  0xe8   :  { %v4325_v54 = vpop.f32.mrf.mxu1 }
  0xea   :  { %v4327_v55 = vpop.f32.mrf.mxu1 }
  0xec   :  { %v4329_v56 = vpop.f32.mrf.mxu1 }
  0xee   :  { %v4331_v57 = vpop.f32.mrf.mxu1 }
  0xf0   :  { %v4333_v58 = vpop.f32.mrf.mxu1 }
  0xfa   :  { %v4335_v59 = vpop.f32.mrf.mxu1 }
  0xfc   :  { %v489_v61 = vpop.f32.mrf.mxu1 }
  0xfd   :  { %v490_v62 = vadd.f32 %v489_v61, %v344_v60  ;;  %v137_v60 = vld [vmem:[%s5086_s9 + $0x18] sm:$0xff]  ;;  %v138_v61 = vld [vmem:[%s5086_s9 + $0x20] sm:$0xff] }
  0xfe   :  { %v4350_v5 = vpop.f32.mrf.mxu1 }
  0xff   :  { %3714 = vmatprep.subr.mxu1 %v490_v62 }
 0x100   :  { %3715 = vmatpush3.msra.mxu1 %v490_v62  ;;  %v4352_v6 = vpop.f32.mrf.mxu1  ;;  %v139_v62 = vld [vmem:[%s5086_s9 + $0x28] sm:$0xff] }
 0x102   :  { %v4354_v7 = vpop.f32.mrf.mxu1 }
 0x104   :  { %v4356_v8 = vpop.f32.mrf.mxu1 }
 0x105   :  { %3892 = vset.pattern.permute.xlu1 %v4045_v3  ;;  %v135_v3 = vld [vmem:[%s5086_s9 + $0x8] sm:$0xff] }
 0x106   :  { %3703 = vmatmul.mubr.msk.f32.vlgmr.msra.gmra.mxu0 %vm199_vm0, %v135_v3  ;;  %v4358_v9 = vpop.f32.mrf.mxu1 }
 0x107   :  { %3705 = vmatprep.mubr.msk.f32.mxu0 %vm199_vm0, %v136_v51 }
 0x108   :  { %v4360_v10 = vpop.f32.mrf.mxu1 }
 0x10a   :  { %3706 = vmatmul.mubr.msk.f32.gmra.mxu0 %vm199_vm0, %v137_v60 }
 0x10b   :  { %3708 = vmatprep.mubr.msk.f32.mxu0 %vm199_vm0, %v138_v61 }
 0x10e   :  { %3709 = vmatmul.mubr.msk.f32.gmra.mxu0 %vm199_vm0, %v139_v62 }
 0x163   :  { %v731_v63 = vpop.trf.xlu1 }
 0x164   :  { %3716 = vmatprep.mubr.msk.f32.mxu1 %vm747_vm1, %v731_v63  ;;  %v140_v63 = vld [vmem:[%s5086_s9 + $0x30] sm:$0xff] }
 0x165   :  { %3711 = vmatprep.mubr.msk.f32.mxu0 %vm199_vm0, %v140_v63  ;;  %v114_v63 = vld [vmem:[%s5118_s14 + $0x20] sm:$0xff] }
 0x167   :  { %v732_v0 = vpop.trf.xlu1 }
 0x168   :  { %3717 = vmatmul.mubr.msk.f32.vlgmr.msra.gmra.mxu1 %vm747_vm1, %v732_v0  ;;  %v141_v0 = vld [vmem:[%s5086_s9 + $0x38] sm:$0xff] }
 0x169   :  { %3712 = vmatmul.mubr.msk.f32.gmra.mxu0 %vm199_vm0, %v141_v0  ;;  %v127_v0 = vld [vmem:[%s5084_s8 + $0x8] sm:$0xff] }
 0x16a   :  { %3730 = vmatprep.mubr.msk.f32.mxu0 %vm4047_vm4, %v4046_v50 }
 0x16b   :  { %v733_v1 = vpop.trf.xlu1 }
 0x16c   :  { %3719 = vmatprep.mubr.msk.f32.mxu1 %vm747_vm1, %v733_v1 }
 0x16f   :  { %v734_v2 = vpop.trf.xlu1 }
 0x170   :  { %3720 = vmatmul.mubr.msk.f32.gmra.mxu1 %vm747_vm1, %v734_v2 }
 0x228   :  { %v3718_v11 = vpop.f32.mrf.mxu1 }
 0x229   :  { %v832_v21 = vadd.f32 %v3718_v11, %v4376_v17 }
 0x22a   :  { %v826_v12 = vpop.f32.mrf.mxu1 }
 0x22b   :  { %v827_v24 = vadd.f32 %v826_v12, %v4385_v23  ;;  %v849_v25 = vsel %vm845_vm3, %v832_v21, -inf }
 0x22d   :  { %v846_v26 = vsel %vm845_vm3, %v827_v24, -inf }
 0x230   :  { %v3721_v14 = vpop.f32.mrf.mxu1 }
 0x231   :  { %v842_v16 = vadd.f32 %v3721_v14, %v4365_v13 }
 0x232   :  { %v836_v18 = vpop.f32.mrf.mxu1 }
 0x233   :  { %v837_v19 = vadd.f32 %v836_v18, %v4370_v15  ;;  %v856_v20 = vsel %vm855_vm2, %v842_v16, -inf }
 0x234   :  { %857 = vmax.xlane.f32.xlu1 %v856_v20 }
 0x235   :  { %v852_v22 = vsel %vm845_vm3, %v837_v19, -inf }
 0x236   :  { %853 = vmax.xlane.f32.xlu0 %v852_v22 }
 0x23a   :  { %850 = vmax.xlane.f32.xlu0 %v849_v25 }
 0x23e   :  { %847 = vmax.xlane.f32.xlu0 %v846_v26 }
 0x2bd   :  { %v858_v27 = vpop.xlane.xlu1 %857 }
 0x2be   :  { %v862_v28 = vsub.f32 %v842_v16, %v858_v27 }
 0x2bf   :  { %v854_v29 = vpop.xlane.xlu0 %853 }
 0x2c0   :  { %v869_v30 = vmul.f32 1.442695, %v862_v28  ;;  %v861_v31 = vsub.f32 %v837_v19, %v854_v29 }
 0x2c2   :  { %3893 = vpow2.f32 %v869_v30  ;;  %v867_v32 = vmul.f32 1.442695, %v861_v31  ;;  %v111_v30 = vld [vmem:[%s5118_s14 + $0x8] sm:$0xff] }
 0x2c3   :  { %v851_v33 = vpop.xlane.xlu0 %850 }
 0x2c4   :  { %3895 = vpow2.f32 %v867_v32  ;;  %v860_v34 = vsub.f32 %v832_v21, %v851_v33  ;;  %v4433_v21 = vpop.f32.mrf.mxu0 }
 0x2c6   :  { %v865_v35 = vmul.f32 1.442695, %v860_v34  ;;  %v676_v25 = vpop.f32.mrf.mxu0 }
 0x2c7   :  { %v848_v36 = vpop.xlane.xlu0 %847 }
 0x2c8   :  { %3897 = vpow2.f32 %v865_v35  ;;  %v859_v37 = vsub.f32 %v827_v24, %v848_v36  ;;  %v4452_v34 = vpop.f32.mrf.mxu0 }
 0x2ca   :  { %v863_v38 = vmul.f32 1.442695, %v859_v37  ;;  %v4454_v35 = vpop.f32.mrf.mxu0 }
 0x2cc   :  { %3899 = vpow2.f32 %v863_v38  ;;  %v4456_v36 = vpop.f32.mrf.mxu0 }
 0x2ce   :  { %v4458_v37 = vpop.f32.mrf.mxu0 }
 0x2cf   :  { %v3894_v39 = vpop.eup %3893 }
 0x2d0   :  { %v880_v40 = vsel %vm855_vm2, %v3894_v39, 0.0  ;;  %v4460_v38 = vpop.f32.mrf.mxu0 }
 0x2d1   :  { %v3896_v41 = vpop.eup %3895  ;;  %881 = vadd.xlane.f32.xlu0 %v880_v40 }
 0x2d2   :  { %v877_v42 = vsel %vm845_vm3, %v3896_v41, 0.0 }
 0x2d5   :  { %v3898_v43 = vpop.eup %3897  ;;  %878 = vadd.xlane.f32.xlu0 %v877_v42 }
 0x2d6   :  { %v874_v44 = vsel %vm845_vm3, %v3898_v43, 0.0 }
 0x2d7   :  { %875 = vadd.xlane.f32.xlu1 %v874_v44 }
 0x2d9   :  { %v3900_v45 = vpop.eup %3899 }
 0x2da   :  { %v871_v46 = vsel %vm845_vm3, %v3900_v45, 0.0 }
 0x2db   :  { %872 = vadd.xlane.f32.xlu1 %v871_v46 }
 0x2eb   :  { %171 = vperm.xlu0 %3891, %v112_v47  }
 0x2ec   :  { %530 = vperm.xlu1 %3892, %v142_v48  }
 0x2ef   :  { %353 = vperm.xlu0 %3891, %v128_v52  }
 0x35a   :  { %v882_v1 = vpop.xlane.xlu0 %881 }
 0x35b   :  { %3901 = vrcp.f32 %v882_v1 }
 0x35e   :  { %v879_v2 = vpop.xlane.xlu0 %878 }
 0x35f   :  { %3903 = vrcp.f32 %v879_v2 }
 0x360   :  { %v876_v4 = vpop.xlane.xlu1 %875 }
 0x361   :  { %3905 = vrcp.f32 %v876_v4 }
 0x364   :  { %v873_v3 = vpop.xlane.xlu1 %872 }
 0x365   :  { %3907 = vrcp.f32 %v873_v3 }
 0x366   :  { %v172_v11 = vpop.permute.xlu0 %171 }
 0x367   :  { %v313_v12 = vadd.f32 %v4325_v54, %v172_v11 }
 0x368   :  { %v3902_v14 = vpop.eup %3901  ;;  %v531_v26 = vpop.permute.xlu1 %530 }
 0x369   :  { %1234 = vxpose.xlu1.b32.start.end [1/1] (short) (narrow) %v313_v12, 32  ;;  %v890_v16 = vmul.f32 %v3902_v14, %v3894_v39  ;;  %v677_v29 = vadd.f32 %v676_v25, %v531_v26  ;;  %v4462_v39 = vpop.f32.mrf.mxu0 }
 0x36a   :  { %v354_v54 = vpop.permute.xlu0 %353 }
 0x36b   :  { %3723 = vmatpush3.xpose.msk.msra.mxu0 %vm845_vm3, %v890_v16  ;;  %v500_v28 = vadd.f32 %v4352_v6, %v354_v54 }
 0x36c   :  { %v3904_v18 = vpop.eup %3903  ;;  %3724 = vmatprep.subr.mxu0 %v4046_v50 }
 0x36d   :  { %v889_v19 = vmul.f32 %v3904_v18, %v3896_v41 }
 0x36e   :  { %v3906_v20 = vpop.eup %3905 }
 0x36f   :  { %3725 = vmatpush3.xpose.msk.msra.mxu0 %vm845_vm3, %v889_v19  ;;  %v888_v22 = vmul.f32 %v3906_v20, %v3898_v43 }
 0x370   :  { %3726 = vmatprep.subr.mxu0 %v4046_v50 }
 0x372   :  { %v3908_v24 = vpop.eup %3907 }
 0x373   :  { %3727 = vmatpush3.xpose.msk.msra.mxu0 %vm845_vm3, %v888_v22  ;;  %v887_v27 = vmul.f32 %v3908_v24, %v3900_v45 }
 0x374   :  { %3728 = vmatprep.subr.mxu0 %v4046_v50 }
 0x377   :  { %3729 = vmatpush3.xpose.msk.msra.mxu0 %vm845_vm3, %v887_v27 }
 0x378   :  { %3752 = vmatprep.subr.mxu0 %v500_v28 }
 0x37a   :  { %3731 = vmatmul.mubr.msk.f32.vlgmr.msra.gmra.mxu0 %vm845_vm3, %v677_v29 }
 0x37b   :  { %3753 = vmatpush3.msra.mxu0 %v500_v28 }
 0x37c   :  { %3760 = vmatprep.subr.mxu0 %v4046_v50 }
 0x393   :  { %166 = vperm.xlu1 %3892, %v111_v30  }
 0x3e5   :  { %v1250_v31 = vpop.trf.xlu1 }
 0x3e6   :  { %3754 = vmatprep.mubr.msk.f32.mxu0 %vm747_vm1, %v1250_v31 }
 0x3e9   :  { %v1251_v32 = vpop.trf.xlu1 }
 0x3ea   :  { %3755 = vmatmul.mubr.msk.f32.vlgmr.msra.gmra.mxu0 %vm747_vm1, %v1251_v32 }
 0x3ed   :  { %v1252_v6 = vpop.trf.xlu1 }
 0x3ee   :  { %3757 = vmatprep.mubr.msk.f32.mxu0 %vm747_vm1, %v1252_v6 }
 0x3f1   :  { %v1253_v33 = vpop.trf.xlu1 }
 0x3f2   :  { %3758 = vmatmul.mubr.msk.f32.gmra.mxu0 %vm747_vm1, %v1253_v33  ;;  %v130_v33 = vld [vmem:[%s5084_s8 + $0x20] sm:$0xff] }
 0x3f3   :  { %3768 = vmatprep.mubr.msk.f32.mxu0 %vm4047_vm4, %v4046_v50 }
 0x43a   :  { %v4464_v40 = vpop.f32.mrf.mxu0 }
 0x43c   :  { %v3732_v41 = vpop.f32.mrf.mxu0 }
 0x43d   :  { %v167_v41 = vpop.permute.xlu1 %166 }
 0x4aa   :  { %v3756_v42 = vpop.f32.mrf.mxu0 }
 0x4ab   :  { %v1350_v51 = vadd.f32 %v3756_v42, %v4376_v17  ;;  %v308_v42 = vadd.f32 %v4321_v49, %v167_v41 }
 0x4ac   :  { %v1344_v43 = vpop.f32.mrf.mxu0 }
 0x4ad   :  { %v1345_v60 = vadd.f32 %v1344_v43, %v4385_v23  ;;  %v1366_v61 = vsel %vm845_vm3, %v1350_v51, -inf }
 0x4af   :  { %v1363_v62 = vsel %vm845_vm3, %v1345_v60, -inf }
 0x4b2   :  { %v3759_v44 = vpop.f32.mrf.mxu0 }
 0x4b3   :  { %v1360_v45 = vadd.f32 %v3759_v44, %v4365_v13 }
 0x4b4   :  { %v1354_v46 = vpop.f32.mrf.mxu0 }
 0x4b5   :  { %v1355_v47 = vadd.f32 %v1354_v46, %v4370_v15  ;;  %v1372_v48 = vsel %vm855_vm2, %v1360_v45, -inf }
 0x4b6   :  { %1373 = vmax.xlane.f32.xlu0 %v1372_v48 }
 0x4b7   :  { %v1369_v52 = vsel %vm845_vm3, %v1355_v47, -inf }
 0x4ba   :  { %1370 = vmax.xlane.f32.xlu0 %v1369_v52 }
 0x4be   :  { %1367 = vmax.xlane.f32.xlu0 %v1366_v61 }
 0x4c2   :  { %1364 = vmax.xlane.f32.xlu0 %v1363_v62 }
 0x4d8   :  { %181 = vperm.xlu0 %3891, %v114_v63  }
 0x4dc   :  { %348 = vperm.xlu0 %3891, %v127_v0  }
 0x53f   :  { %v1374_v1 = vpop.xlane.xlu0 %1373 }
 0x540   :  { %v1378_v4 = vsub.f32 %v1360_v45, %v1374_v1 }
 0x542   :  { %v1385_v12 = vmul.f32 1.442695, %v1378_v4 }
 0x543   :  { %v1371_v2 = vpop.xlane.xlu0 %1370 }
 0x544   :  { %v1377_v14 = vsub.f32 %v1355_v47, %v1371_v2 }
 0x546   :  { %v1383_v20 = vmul.f32 1.442695, %v1377_v14 }
 0x547   :  { %v1368_v3 = vpop.xlane.xlu0 %1367 }
 0x548   :  { %v1376_v11 = vsub.f32 %v1350_v51, %v1368_v3 }
 0x54a   :  { %v1381_v16 = vmul.f32 1.442695, %v1376_v11 }
 0x54b   :  { %v1365_v18 = vpop.xlane.xlu0 %1364 }
 0x54c   :  { %3909 = vpow2.f32 %v1381_v16  ;;  %v1375_v19 = vsub.f32 %v1345_v60, %v1365_v18 }
 0x54d   :  { %3911 = vpow2.f32 %v1385_v12 }
 0x54e   :  { %v1379_v22 = vmul.f32 1.442695, %v1375_v19 }
 0x550   :  { %3913 = vpow2.f32 %v1379_v22 }
 0x551   :  { %3915 = vpow2.f32 %v1383_v20 }
 0x553   :  { %v182_v24 = vpop.permute.xlu0 %181 }
 0x554   :  { %v323_v43 = vadd.f32 %v4329_v56, %v182_v24 }
 0x557   :  { %v349_v25 = vpop.permute.xlu0 %348 }
 0x558   :  { %v495_v54 = vadd.f32 %v4335_v59, %v349_v25  ;;  %v144_v59 = vld [vmem:[%s5088_s10 + $0x10] sm:$0xff] }
 0x559   :  { %v3910_v26 = vpop.eup %3909 }
 0x55a   :  { %3733 = vmatprep.subr.mxu1 %v495_v54  ;;  %v1390_v27 = vsel %vm845_vm3, %v3910_v26, 0.0  ;;  %v3912_v28 = vpop.eup %3911 }
 0x55b   :  { %1391 = vadd.xlane.f32.xlu0 %v1390_v27  ;;  %3734 = vmatpush3.msra.mxu1 %v495_v54  ;;  %v1396_v30 = vsel %vm855_vm2, %v3912_v28, 0.0 }
 0x55c   :  { %3741 = vmatprep.subr.mxu1 %v4046_v50 }
 0x55d   :  { %v3914_v29 = vpop.eup %3913 }
 0x55e   :  { %v1387_v31 = vsel %vm845_vm3, %v3914_v29, 0.0  ;;  %v3916_v32 = vpop.eup %3915 }
 0x55f   :  { %1397 = vadd.xlane.f32.xlu0 %v1396_v30  ;;  %1388 = vadd.xlane.f32.xlu1 %v1387_v31  ;;  %v1393_v6 = vsel %vm845_vm3, %v3916_v32, 0.0 }
 0x563   :  { %1394 = vadd.xlane.f32.xlu0 %v1393_v6 }
 0x570   :  { %540 = vperm.xlu1 %3892, %v144_v59  }
 0x579   :  { %363 = vperm.xlu0 %3891, %v130_v33  }
 0x597   :  { %976 = vxpose.xlu0.b32.start.end [1/1] (short) (narrow) %v308_v42, 32 }
 0x599   :  { %1750 = vxpose.xlu1.b32.start.end [1/1] (short) (narrow) %v323_v43, 32 }
 0x5e4   :  { %v1392_v44 = vpop.xlane.xlu0 %1391 }
 0x5e8   :  { %v1398_v45 = vpop.xlane.xlu0 %1397  ;;  %v1389_v47 = vpop.xlane.xlu1 %1388 }
 0x5e9   :  { %3917 = vrcp.f32 %v1398_v45 }
 0x5ec   :  { %v1395_v46 = vpop.xlane.xlu0 %1394  ;;  %v541_v63 = vpop.permute.xlu1 %540 }
 0x5ed   :  { %3919 = vrcp.f32 %v1395_v46  ;;  %v687_v2 = vadd.f32 %v4454_v35, %v541_v63 }
 0x5ee   :  { %3921 = vrcp.f32 %v1392_v44 }
 0x5ef   :  { %3923 = vrcp.f32 %v1389_v47 }
 0x5f4   :  { %v364_v62 = vpop.permute.xlu0 %363 }
 0x5f5   :  { %v510_v1 = vadd.f32 %v4356_v8, %v364_v62 }
 0x5f6   :  { %v3918_v48 = vpop.eup %3917 }
 0x5f7   :  { %v1406_v51 = vmul.f32 %v3918_v48, %v3912_v28 }
 0x5f9   :  { %3761 = vmatpush3.xpose.msk.msra.mxu0 %vm845_vm3, %v1406_v51 }
 0x5fa   :  { %v3920_v52 = vpop.eup %3919  ;;  %3762 = vmatprep.subr.mxu0 %v4046_v50 }
 0x5fb   :  { %v1405_v49 = vmul.f32 %v3920_v52, %v3916_v32  ;;  %v3922_v60 = vpop.eup %3921 }
 0x5fc   :  { %v1404_v56 = vmul.f32 %v3922_v60, %v3910_v26  ;;  %v3924_v61 = vpop.eup %3923 }
 0x5fd   :  { %3763 = vmatpush3.xpose.msk.msra.mxu0 %vm845_vm3, %v1405_v49  ;;  %v1403_v0 = vmul.f32 %v3924_v61, %v3914_v29 }
 0x5fe   :  { %3764 = vmatprep.subr.mxu0 %v4046_v50 }
 0x601   :  { %3765 = vmatpush3.xpose.msk.msra.mxu0 %vm845_vm3, %v1404_v56 }
 0x602   :  { %3766 = vmatprep.subr.mxu0 %v4046_v50 }
 0x605   :  { %3767 = vmatpush3.xpose.msk.msra.mxu0 %vm845_vm3, %v1403_v0 }
 0x606   :  { %3790 = vmatprep.subr.mxu0 %v510_v1 }
 0x608   :  { %3769 = vmatmul.mubr.msk.f32.vlgmr.msra.gmra.mxu0 %vm845_vm3, %v687_v2 }
 0x609   :  { %3791 = vmatpush3.msra.mxu0 %v510_v1 }
 0x60a   :  { %3798 = vmatprep.subr.mxu0 %v4046_v50 }
 0x613   :  { %v992_v4 = vpop.trf.xlu0 }
 0x614   :  { %3735 = vmatprep.mubr.msk.f32.mxu1 %vm747_vm1, %v992_v4 }
 0x615   :  { %v1766_v3 = vpop.trf.xlu1 }
 0x616   :  { %3792 = vmatprep.mubr.msk.f32.mxu0 %vm747_vm1, %v1766_v3 }
 0x617   :  { %v993_v11 = vpop.trf.xlu0 }
 0x618   :  { %3736 = vmatmul.mubr.msk.f32.vlgmr.msra.gmra.mxu1 %vm747_vm1, %v993_v11 }
 0x619   :  { %v1767_v8 = vpop.trf.xlu1 }
 0x61a   :  { %3793 = vmatmul.mubr.msk.f32.vlgmr.msra.gmra.mxu0 %vm747_vm1, %v1767_v8 }
 0x61b   :  { %v994_v12 = vpop.trf.xlu0 }
 0x61c   :  { %3738 = vmatprep.mubr.msk.f32.mxu1 %vm747_vm1, %v994_v12 }
 0x61d   :  { %v1768_v35 = vpop.trf.xlu1 }
 0x61e   :  { %3795 = vmatprep.mubr.msk.f32.mxu0 %vm747_vm1, %v1768_v35 }
 0x61f   :  { %v995_v14 = vpop.trf.xlu0 }
 0x620   :  { %3739 = vmatmul.mubr.msk.f32.gmra.mxu1 %vm747_vm1, %v995_v14 }
 0x621   :  { %v1769_v16 = vpop.trf.xlu1  ;;  %3749 = vmatprep.mubr.msk.f32.mxu1 %vm4047_vm4, %v4046_v50 }
 0x622   :  { %3796 = vmatmul.mubr.msk.f32.gmra.mxu0 %vm747_vm1, %v1769_v16 }
 0x623   :  { %3806 = vmatprep.mubr.msk.f32.mxu0 %vm4047_vm4, %v4046_v50 }
 0x6c8   :  { %v4517_v18 = vpop.f32.mrf.mxu0 }
 0x6ca   :  { %v3770_v19 = vpop.f32.mrf.mxu0 }
 0x6d8   :  { %v3737_v20 = vpop.f32.mrf.mxu1 }
 0x6d9   :  { %v1092_v29 = vadd.f32 %v3737_v20, %v4376_v17 }
 0x6da   :  { %v3794_v22 = vpop.f32.mrf.mxu0  ;;  %v1086_v24 = vpop.f32.mrf.mxu1 }
 0x6db   :  { %v1087_v33 = vadd.f32 %v1086_v24, %v4385_v23  ;;  %v1108_v41 = vsel %vm845_vm3, %v1092_v29, -inf  ;;  %v1866_v47 = vadd.f32 %v3794_v22, %v4376_v17  ;;  %v113_v22 = vld [vmem:[%s5118_s14 + $0x18] sm:$0xff] }
 0x6dc   :  { %v1860_v25 = vpop.f32.mrf.mxu0 }
 0x6dd   :  { %v1861_v32 = vadd.f32 %v1860_v25, %v4385_v23  ;;  %v1105_v45 = vsel %vm845_vm3, %v1087_v33, -inf  ;;  %v1882_v51 = vsel %vm845_vm3, %v1866_v47, -inf  ;;  %v143_v25 = vld [vmem:[%s5088_s10 + $0x8] sm:$0xff] }
 0x6df   :  { %v1879_v43 = vsel %vm845_vm3, %v1861_v32, -inf }
 0x6e0   :  { %v3740_v54 = vpop.f32.mrf.mxu1 }
 0x6e1   :  { %v1102_v26 = vadd.f32 %v3740_v54, %v4365_v13  ;;  %v116_v54 = vld [vmem:[%s5118_s14 + $0x30] sm:$0xff] }
 0x6e2   :  { %v1096_v27 = vpop.f32.mrf.mxu1  ;;  %v3797_v28 = vpop.f32.mrf.mxu0 }
 0x6e3   :  { %v1097_v30 = vadd.f32 %v1096_v27, %v4370_v15  ;;  %v1114_v31 = vsel %vm855_vm2, %v1102_v26, -inf  ;;  %v1876_v44 = vadd.f32 %v3797_v28, %v4365_v13 }
 0x6e4   :  { %1115 = vmax.xlane.f32.xlu0 %v1114_v31  ;;  %v1870_v6 = vpop.f32.mrf.mxu0 }
 0x6e5   :  { %v1111_v59 = vsel %vm845_vm3, %v1097_v30, -inf  ;;  %v1871_v42 = vadd.f32 %v1870_v6, %v4370_v15  ;;  %v1888_v48 = vsel %vm855_vm2, %v1876_v44, -inf }
 0x6e6   :  { %1112 = vmax.xlane.f32.xlu1 %v1111_v59 }
 0x6e7   :  { %v1885_v46 = vsel %vm845_vm3, %v1871_v42, -inf }
 0x6e8   :  { %1109 = vmax.xlane.f32.xlu0 %v1108_v41 }
 0x6ea   :  { %1880 = vmax.xlane.f32.xlu1 %v1879_v43 }
 0x6ec   :  { %1106 = vmax.xlane.f32.xlu0 %v1105_v45 }
 0x6ee   :  { %1886 = vmax.xlane.f32.xlu1 %v1885_v46 }
 0x6f0   :  { %1889 = vmax.xlane.f32.xlu0 %v1888_v48 }
 0x6f4   :  { %1883 = vmax.xlane.f32.xlu0 %v1882_v51 }
 0x76d   :  { %v1116_v52 = vpop.xlane.xlu0 %1115 }
 0x76e   :  { %v1120_v49 = vsub.f32 %v1102_v26, %v1116_v52  ;;  %v146_v52 = vld [vmem:[%s5088_s10 + $0x20] sm:$0xff] }
 0x76f   :  { %v1113_v60 = vpop.xlane.xlu1 %1112 }
 0x770   :  { %v1127_v56 = vmul.f32 1.442695, %v1120_v49  ;;  %v1119_v61 = vsub.f32 %v1097_v30, %v1113_v60  ;;  %v132_v49 = vld [vmem:[%s5084_s8 + $0x30] sm:$0xff]  ;;  %v129_v60 = vld [vmem:[%s5084_s8 + $0x18] sm:$0xff] }
 0x771   :  { %v1110_v62 = vpop.xlane.xlu0 %1109 }
 0x772   :  { %3925 = vpow2.f32 %v1127_v56  ;;  %v1125_v63 = vmul.f32 1.442695, %v1119_v61  ;;  %v1118_v0 = vsub.f32 %v1092_v29, %v1110_v62 }
 0x773   :  { %v1881_v28 = vpop.xlane.xlu1 %1880 }
 0x774   :  { %3927 = vpow2.f32 %v1125_v63  ;;  %v1123_v1 = vmul.f32 1.442695, %v1118_v0  ;;  %v1891_v30 = vsub.f32 %v1861_v32, %v1881_v28 }
 0x775   :  { %v1107_v2 = vpop.xlane.xlu0 %1106 }
 0x776   :  { %3929 = vpow2.f32 %v1123_v1  ;;  %v1117_v4 = vsub.f32 %v1087_v33, %v1107_v2  ;;  %v1895_v31 = vmul.f32 1.442695, %v1891_v30 }
 0x777   :  { %v1887_v59 = vpop.xlane.xlu1 %1886 }
 0x778   :  { %v1121_v3 = vmul.f32 1.442695, %v1117_v4  ;;  %v1893_v33 = vsub.f32 %v1871_v42, %v1887_v59 }
 0x779   :  { %v1890_v24 = vpop.xlane.xlu0 %1889 }
 0x77a   :  { %3931 = vpow2.f32 %v1121_v3  ;;  %v1894_v6 = vsub.f32 %v1876_v44, %v1890_v24  ;;  %v1899_v43 = vmul.f32 1.442695, %v1893_v33 }
 0x77c   :  { %v1901_v41 = vmul.f32 1.442695, %v1894_v6 }
 0x77d   :  { %v1884_v26 = vpop.xlane.xlu0 %1883 }
 0x77e   :  { %v1892_v27 = vsub.f32 %v1866_v47, %v1884_v26 }
 0x77f   :  { %v4535_v11 = vpop.eup %3925 }
 0x780   :  { %v1138_v8 = vsel %vm855_vm2, %v4535_v11, 0.0  ;;  %v1897_v29 = vmul.f32 1.442695, %v1892_v27 }
 0x781   :  { %v4539_v12 = vpop.eup %3927  ;;  %1139 = vadd.xlane.f32.xlu0 %v1138_v8 }
 0x782   :  { %v1135_v35 = vsel %vm845_vm3, %v4539_v12, 0.0  ;;  %3933 = vpow2.f32 %v1897_v29 }
 0x783   :  { %v4543_v14 = vpop.eup %3929  ;;  %1136 = vadd.xlane.f32.xlu1 %v1135_v35  ;;  %3935 = vpow2.f32 %v1895_v31 }
 0x784   :  { %v1132_v16 = vsel %vm845_vm3, %v4543_v14, 0.0  ;;  %3937 = vpow2.f32 %v1901_v41 }
 0x785   :  { %3939 = vpow2.f32 %v1899_v43 }
 0x787   :  { %v4547_v19 = vpop.eup %3931  ;;  %1133 = vadd.xlane.f32.xlu1 %v1132_v16 }
 0x788   :  { %v1129_v20 = vsel %vm845_vm3, %v4547_v19, 0.0 }
 0x78b   :  { %1130 = vadd.xlane.f32.xlu1 %v1129_v20 }
 0x78f   :  { %v4560_v45 = vpop.eup %3933 }
 0x790   :  { %v1906_v46 = vsel %vm845_vm3, %v4560_v45, 0.0  ;;  %v4564_v47 = vpop.eup %3935 }
 0x791   :  { %v1903_v32 = vsel %vm845_vm3, %v4564_v47, 0.0  ;;  %v3938_v48 = vpop.eup %3937 }
 0x792   :  { %v1912_v44 = vsel %vm855_vm2, %v3938_v48, 0.0  ;;  %v3940_v42 = vpop.eup %3939 }
 0x793   :  { %v1909_v51 = vsel %vm845_vm3, %v3940_v42, 0.0 }
 0x797   :  { %176 = vperm.xlu0 %3891, %v113_v22  }
 0x79b   :  { %535 = vperm.xlu0 %3891, %v143_v25  }
 0x79c   :  { %191 = vperm.xlu1 %3892, %v116_v54  }
 0x7ba   :  { %1907 = vadd.xlane.f32.xlu0 %v1906_v46 }
 0x7c0   :  { %1904 = vadd.xlane.f32.xlu1 %v1903_v32 }
 0x7c4   :  { %1913 = vadd.xlane.f32.xlu1 %v1912_v44 }
 0x7c8   :  { %1910 = vadd.xlane.f32.xlu1 %v1909_v51 }
 0x7d0   :  { %550 = vperm.xlu0 %3891, %v146_v52  }
 0x7d4   :  { %373 = vperm.xlu0 %3891, %v132_v49  }
 0x7d9   :  { %358 = vperm.xlu1 %3892, %v129_v60  }
 0x80a   :  { %v1140_v56 = vpop.xlane.xlu0 %1139 }
 0x80b   :  { %3941 = vrcp.f32 %v1140_v56 }
 0x80c   :  { %v1137_v61 = vpop.xlane.xlu1 %1136 }
 0x80d   :  { %3943 = vrcp.f32 %v1137_v61 }
 0x810   :  { %v1134_v62 = vpop.xlane.xlu1 %1133 }
 0x811   :  { %3945 = vrcp.f32 %v1134_v62 }
 0x812   :  { %v177_v63 = vpop.permute.xlu0 %176 }
 0x813   :  { %v318_v0 = vadd.f32 %v4323_v53, %v177_v63 }
 0x814   :  { %v1131_v1 = vpop.xlane.xlu1 %1130 }
 0x815   :  { %3947 = vrcp.f32 %v1131_v1  ;;  %1492 = vxpose.xlu0.b32.start.end [1/1] (short) (narrow) %v318_v0, 32 }
 0x818   :  { %v3942_v2 = vpop.eup %3941  ;;  %v192_v4 = vpop.permute.xlu1 %191 }
 0x819   :  { %v333_v3 = vadd.f32 %v4333_v58, %v192_v4  ;;  %v1148_v8 = vmul.f32 %v3942_v2, %v4535_v11  ;;  %v536_v58 = vpop.permute.xlu0 %535 }
 0x81a   :  { %v3944_v35 = vpop.eup %3943  ;;  %v682_v24 = vadd.f32 %v4433_v21, %v536_v58 }
 0x81b   :  { %3742 = vmatpush3.xpose.msk.msra.mxu1 %vm845_vm3, %v1148_v8  ;;  %2266 = vxpose.xlu1.b32.start.end [1/1] (short) (narrow) %v333_v3, 32  ;;  %v1147_v16 = vmul.f32 %v3944_v35, %v4539_v12 }
 0x81c   :  { %3743 = vmatprep.subr.mxu1 %v4046_v50 }
 0x81e   :  { %v3946_v20 = vpop.eup %3945 }
 0x81f   :  { %3744 = vmatpush3.xpose.msk.msra.mxu1 %vm845_vm3, %v1147_v16  ;;  %v1146_v53 = vmul.f32 %v3946_v20, %v4543_v14 }
 0x820   :  { %3745 = vmatprep.subr.mxu1 %v4046_v50 }
 0x822   :  { %v3948_v22 = vpop.eup %3947 }
 0x823   :  { %3746 = vmatpush3.xpose.msk.msra.mxu1 %vm845_vm3, %v1146_v53  ;;  %v1145_v11 = vmul.f32 %v3948_v22, %v4547_v19 }
 0x824   :  { %3747 = vmatprep.subr.mxu1 %v4046_v50 }
 0x827   :  { %3748 = vmatpush3.xpose.msk.msra.mxu1 %vm845_vm3, %v1145_v11 }
 0x82a   :  { %3750 = vmatmul.mubr.msk.f32.vlgmr.msra.gmra.mxu1 %vm845_vm3, %v682_v24 }
 0x843   :  { %v1908_v54 = vpop.xlane.xlu0 %1907 }
 0x849   :  { %v1905_v12 = vpop.xlane.xlu1 %1904 }
 0x84b   :  { %v551_v29 = vpop.permute.xlu0 %550 }
 0x84c   :  { %v697_v43 = vadd.f32 %v4458_v37, %v551_v29 }
 0x84d   :  { %v1914_v25 = vpop.xlane.xlu1 %1913 }
 0x84e   :  { %3949 = vrcp.f32 %v1914_v25 }
 0x84f   :  { %v374_v59 = vpop.permute.xlu0 %373 }
 0x850   :  { %v520_v41 = vadd.f32 %v4360_v10, %v374_v59 }
 0x851   :  { %v1911_v26 = vpop.xlane.xlu1 %1910 }
 0x852   :  { %3951 = vrcp.f32 %v1911_v26 }
 0x853   :  { %3953 = vrcp.f32 %v1908_v54 }
 0x854   :  { %3955 = vrcp.f32 %v1905_v12 }
 0x855   :  { %v359_v14 = vpop.permute.xlu1 %358 }
 0x856   :  { %v505_v27 = vadd.f32 %v4350_v5, %v359_v14 }
 0x858   :  { %3771 = vmatprep.subr.mxu1 %v505_v27 }
 0x859   :  { %3772 = vmatpush3.msra.mxu1 %v505_v27 }
 0x85a   :  { %3779 = vmatprep.subr.mxu1 %v4046_v50 }
 0x85b   :  { %v3950_v19 = vpop.eup %3949 }
 0x85c   :  { %v1922_v28 = vmul.f32 %v3950_v19, %v3938_v48 }
 0x85e   :  { %3799 = vmatpush3.xpose.msk.msra.mxu0 %vm845_vm3, %v1922_v28 }
 0x85f   :  { %v3952_v21 = vpop.eup %3951  ;;  %3800 = vmatprep.subr.mxu0 %v4046_v50 }
 0x860   :  { %v1921_v30 = vmul.f32 %v3952_v21, %v3940_v42  ;;  %v3954_v31 = vpop.eup %3953 }
 0x861   :  { %v1920_v5 = vmul.f32 %v3954_v31, %v4560_v45  ;;  %v3956_v6 = vpop.eup %3955 }
 0x862   :  { %3801 = vmatpush3.xpose.msk.msra.mxu0 %vm845_vm3, %v1921_v30  ;;  %v1919_v33 = vmul.f32 %v3956_v6, %v4564_v47 }
 0x863   :  { %3802 = vmatprep.subr.mxu0 %v4046_v50 }
 0x866   :  { %3803 = vmatpush3.xpose.msk.msra.mxu0 %vm845_vm3, %v1920_v5 }
 0x867   :  { %3804 = vmatprep.subr.mxu0 %v4046_v50 }
 0x86a   :  { %3805 = vmatpush3.xpose.msk.msra.mxu0 %vm845_vm3, %v1919_v33 }
 0x86b   :  { %3828 = vmatprep.subr.mxu0 %v520_v41 }
 0x86d   :  { %3807 = vmatmul.mubr.msk.f32.vlgmr.msra.gmra.mxu0 %vm845_vm3, %v697_v43 }
 0x86e   :  { %3829 = vmatpush3.msra.mxu0 %v520_v41 }
 0x86f   :  { %3836 = vmatprep.subr.mxu0 %v4046_v50 }
 0x891   :  { %v1508_v45 = vpop.trf.xlu0 }
 0x892   :  { %3773 = vmatprep.mubr.msk.f32.mxu1 %vm747_vm1, %v1508_v45 }
 0x895   :  { %v1509_v46 = vpop.trf.xlu0 }
 0x896   :  { %3774 = vmatmul.mubr.msk.f32.vlgmr.msra.gmra.mxu1 %vm747_vm1, %v1509_v46 }
 0x897   :  { %v2282_v32 = vpop.trf.xlu1 }
 0x898   :  { %3830 = vmatprep.mubr.msk.f32.mxu0 %vm747_vm1, %v2282_v32 }
 0x899   :  { %v1510_v10 = vpop.trf.xlu0 }
 0x89a   :  { %3776 = vmatprep.mubr.msk.f32.mxu1 %vm747_vm1, %v1510_v10  ;;  %v115_v10 = vld [vmem:[%s5118_s14 + $0x28] sm:$0xff] }
 0x89b   :  { %v2283_v47 = vpop.trf.xlu1 }
 0x89c   :  { %3831 = vmatmul.mubr.msk.f32.vlgmr.msra.gmra.mxu0 %vm747_vm1, %v2283_v47 }
 0x89d   :  { %v1511_v37 = vpop.trf.xlu0 }
 0x89e   :  { %3777 = vmatmul.mubr.msk.f32.gmra.mxu1 %vm747_vm1, %v1511_v37  ;;  %v145_v37 = vld [vmem:[%s5088_s10 + $0x18] sm:$0xff] }
 0x89f   :  { %v2284_v48 = vpop.trf.xlu1  ;;  %3787 = vmatprep.mubr.msk.f32.mxu1 %vm4047_vm4, %v4046_v50 }
 0x8a0   :  { %3833 = vmatprep.mubr.msk.f32.mxu0 %vm747_vm1, %v2284_v48  ;;  %v117_v48 = vld [vmem:[%s5118_s14 + $0x38] sm:$0xff] }
 0x8a3   :  { %v2285_v44 = vpop.trf.xlu1 }
 0x8a4   :  { %3834 = vmatmul.mubr.msk.f32.gmra.mxu0 %vm747_vm1, %v2285_v44 }
 0x8a5   :  { %3844 = vmatprep.mubr.msk.f32.mxu0 %vm4047_vm4, %v4046_v50 }
 0x8ea   :  { %v4621_v42 = vpop.f32.mrf.mxu1 }
 0x8ec   :  { %v3751_v51 = vpop.f32.mrf.mxu1 }
 0x92d   :  { %v4623_v52 = vpop.f32.mrf.mxu0 }
 0x92f   :  { %v3808_v49 = vpop.f32.mrf.mxu0 }
 0x956   :  { %v3775_v60 = vpop.f32.mrf.mxu1 }
 0x957   :  { %v1608_v2 = vadd.f32 %v3775_v60, %v4376_v17 }
 0x958   :  { %v1602_v56 = vpop.f32.mrf.mxu1 }
 0x959   :  { %v1603_v20 = vadd.f32 %v1602_v56, %v4385_v23  ;;  %v1624_v53 = vsel %vm845_vm3, %v1608_v2, -inf }
 0x95b   :  { %v1621_v12 = vsel %vm845_vm3, %v1603_v20, -inf }
 0x95c   :  { %v3832_v61 = vpop.f32.mrf.mxu0 }
 0x95d   :  { %v2382_v54 = vadd.f32 %v3832_v61, %v4376_v17 }
 0x95e   :  { %v3778_v62 = vpop.f32.mrf.mxu1  ;;  %v2376_v63 = vpop.f32.mrf.mxu0 }
 0x95f   :  { %v1618_v0 = vadd.f32 %v3778_v62, %v4365_v13  ;;  %v4630_v8 = vadd.f32 %v2376_v63, %v4385_v23  ;;  %v2398_v26 = vsel %vm845_vm3, %v2382_v54, -inf }
 0x960   :  { %v1612_v1 = vpop.f32.mrf.mxu1 }
 0x961   :  { %v1613_v4 = vadd.f32 %v1612_v1, %v4370_v15  ;;  %v1630_v3 = vsel %vm855_vm2, %v1618_v0, -inf  ;;  %v2395_v22 = vsel %vm845_vm3, %v4630_v8, -inf }
 0x962   :  { %1631 = vmax.xlane.f32.xlu0 %v1630_v3 }
 0x963   :  { %v1627_v35 = vsel %vm845_vm3, %v1613_v4, -inf }
 0x964   :  { %1628 = vmax.xlane.f32.xlu1 %v1627_v35  ;;  %v3835_v16 = vpop.f32.mrf.mxu0 }
 0x965   :  { %v2392_v11 = vadd.f32 %v3835_v16, %v4365_v13 }
 0x966   :  { %1625 = vmax.xlane.f32.xlu0 %v1624_v53  ;;  %v2386_v58 = vpop.f32.mrf.mxu0 }
 0x967   :  { %v2387_v24 = vadd.f32 %v2386_v58, %v4370_v15  ;;  %v2404_v23 = vsel %vm855_vm2, %v2392_v11, -inf  ;;  %v148_v58 = vld [vmem:[%s5088_s10 + $0x30] sm:$0xff] }
 0x968   :  { %2396 = vmax.xlane.f32.xlu1 %v2395_v22 }
 0x969   :  { %v2401_v25 = vsel %vm845_vm3, %v2387_v24, -inf }
 0x96a   :  { %1622 = vmax.xlane.f32.xlu0 %v1621_v12 }
 0x96c   :  { %2402 = vmax.xlane.f32.xlu1 %v2401_v25 }
 0x96e   :  { %2405 = vmax.xlane.f32.xlu0 %v2404_v23 }
 0x972   :  { %2399 = vmax.xlane.f32.xlu0 %v2398_v26 }
 0x9eb   :  { %v1632_v14 = vpop.xlane.xlu0 %1631 }
 0x9ec   :  { %v1636_v27 = vsub.f32 %v1618_v0, %v1632_v14 }
 0x9ed   :  { %v1629_v13 = vpop.xlane.xlu1 %1628 }
 0x9ee   :  { %v1643_v19 = vmul.f32 1.442695, %v1636_v27  ;;  %v1635_v15 = vsub.f32 %v1613_v4, %v1629_v13 }
 0x9ef   :  { %v1626_v28 = vpop.xlane.xlu0 %1625 }
 0x9f0   :  { %3957 = vpow2.f32 %v1643_v19  ;;  %v1641_v21 = vmul.f32 1.442695, %v1635_v15  ;;  %v1634_v29 = vsub.f32 %v1608_v2, %v1626_v28 }
 0x9f1   :  { %v2397_v49 = vpop.xlane.xlu1 %2396 }
 0x9f2   :  { %3959 = vpow2.f32 %v1641_v21  ;;  %v1639_v30 = vmul.f32 1.442695, %v1634_v29  ;;  %v2407_v56 = vsub.f32 %v4630_v8, %v2397_v49 }
 0x9f3   :  { %v1623_v31 = vpop.xlane.xlu0 %1622 }
 0x9f4   :  { %3961 = vpow2.f32 %v1639_v30  ;;  %v1633_v17 = vsub.f32 %v1603_v20, %v1623_v31  ;;  %v2411_v61 = vmul.f32 1.442695, %v2407_v56 }
 0x9f5   :  { %v2403_v63 = vpop.xlane.xlu1 %2402 }
 0x9f6   :  { %v1637_v5 = vmul.f32 1.442695, %v1633_v17  ;;  %v2409_v0 = vsub.f32 %v2387_v24, %v2403_v63  ;;  %v131_v24 = vld [vmem:[%s5084_s8 + $0x28] sm:$0xff] }
 0x9f7   :  { %v2406_v47 = vpop.xlane.xlu0 %2405 }
 0x9f8   :  { %3963 = vpow2.f32 %v1637_v5  ;;  %v2410_v62 = vsub.f32 %v2392_v11, %v2406_v47  ;;  %v2415_v2 = vmul.f32 1.442695, %v2409_v0  ;;  %v133_v11 = vld [vmem:[%s5084_s8 + $0x38] sm:$0xff] }
 0x9fa   :  { %v2417_v1 = vmul.f32 1.442695, %v2410_v62 }
 0x9fb   :  { %v2400_v44 = vpop.xlane.xlu0 %2399 }
 0x9fc   :  { %v2408_v51 = vsub.f32 %v2382_v54, %v2400_v44 }
 0x9fd   :  { %v4644_v6 = vpop.eup %3957 }
 0x9fe   :  { %v1654_v59 = vsel %vm855_vm2, %v4644_v6, 0.0  ;;  %v2413_v60 = vmul.f32 1.442695, %v2408_v51 }
 0x9ff   :  { %v4648_v33 = vpop.eup %3959  ;;  %1655 = vadd.xlane.f32.xlu0 %v1654_v59 }
 0xa00   :  { %v1651_v41 = vsel %vm845_vm3, %v4648_v33, 0.0  ;;  %3965 = vpow2.f32 %v2413_v60 }
 0xa01   :  { %v4652_v43 = vpop.eup %3961  ;;  %1652 = vadd.xlane.f32.xlu1 %v1651_v41  ;;  %3967 = vpow2.f32 %v2411_v61 }
 0xa02   :  { %v1648_v45 = vsel %vm845_vm3, %v4652_v43, 0.0  ;;  %3969 = vpow2.f32 %v2417_v1 }
 0xa03   :  { %3971 = vpow2.f32 %v2415_v2 }
 0xa05   :  { %v4656_v46 = vpop.eup %3963  ;;  %1649 = vadd.xlane.f32.xlu1 %v1648_v45 }
 0xa06   :  { %v1645_v32 = vsel %vm845_vm3, %v4656_v46, 0.0 }
 0xa09   :  { %1646 = vadd.xlane.f32.xlu1 %v1645_v32 }
 0xa0d   :  { %v4670_v4 = vpop.eup %3965 }
 0xa0e   :  { %v2422_v3 = vsel %vm845_vm3, %v4670_v4, 0.0  ;;  %v4674_v35 = vpop.eup %3967 }
 0xa0f   :  { %v2419_v8 = vsel %vm845_vm3, %v4674_v35, 0.0  ;;  %v3970_v16 = vpop.eup %3969 }
 0xa10   :  { %v2428_v20 = vsel %vm855_vm2, %v3970_v16, 0.0  ;;  %v3972_v53 = vpop.eup %3971 }
 0xa11   :  { %v2425_v22 = vsel %vm845_vm3, %v3972_v53, 0.0 }
 0xa15   :  { %186 = vperm.xlu0 %3891, %v115_v10  }
 0xa19   :  { %545 = vperm.xlu0 %3891, %v145_v37  }
 0xa1a   :  { %196 = vperm.xlu1 %3892, %v117_v48  }
 0xa38   :  { %2423 = vadd.xlane.f32.xlu0 %v2422_v3 }
 0xa3e   :  { %2420 = vadd.xlane.f32.xlu1 %v2419_v8 }
 0xa42   :  { %2429 = vadd.xlane.f32.xlu1 %v2428_v20 }
 0xa46   :  { %2426 = vadd.xlane.f32.xlu1 %v2425_v22 }
 0xa4e   :  { %560 = vperm.xlu0 %3891, %v148_v58  }
 0xa52   :  { %378 = vperm.xlu0 %3891, %v133_v11  }
 0xa57   :  { %368 = vperm.xlu1 %3892, %v131_v24   ;;  %v4038_v24 = vld [vmem:[%s5087_s4 + $0x8] sm:$0xff] }
 0xa88   :  { %v1656_v12 = vpop.xlane.xlu0 %1655 }
 0xa89   :  { %3973 = vrcp.f32 %v1656_v12 }
 0xa8a   :  { %v1653_v25 = vpop.xlane.xlu1 %1652 }
 0xa8b   :  { %3975 = vrcp.f32 %v1653_v25  ;;  %v4039_v25 = vld [vmem:[%s5087_s4 + $0x10] sm:$0xff] }
 0xa8e   :  { %v1650_v54 = vpop.xlane.xlu1 %1649 }
 0xa8f   :  { %3977 = vrcp.f32 %v1650_v54 }
 0xa90   :  { %v187_v23 = vpop.permute.xlu0 %186 }
 0xa91   :  { %v328_v26 = vadd.f32 %v4327_v55, %v187_v23 }
 0xa92   :  { %v1647_v14 = vpop.xlane.xlu1 %1646 }
 0xa93   :  { %3979 = vrcp.f32 %v1647_v14  ;;  %2008 = vxpose.xlu0.b32.start.end [1/1] (short) (narrow) %v328_v26, 32 }
 0xa96   :  { %v3974_v27 = vpop.eup %3973  ;;  %v197_v13 = vpop.permute.xlu1 %196 }
 0xa97   :  { %v338_v19 = vadd.f32 %v4331_v57, %v197_v13  ;;  %v1664_v15 = vmul.f32 %v3974_v27, %v4644_v6  ;;  %v546_v57 = vpop.permute.xlu0 %545  ;;  %v4040_v27 = vld [vmem:[%s5087_s4] sm:$0xff] }
 0xa98   :  { %v3976_v28 = vpop.eup %3975  ;;  %v692_v17 = vadd.f32 %v4452_v34, %v546_v57 }
 0xa99   :  { %3780 = vmatpush3.xpose.msk.msra.mxu1 %vm845_vm3, %v1664_v15  ;;  %2524 = vxpose.xlu1.b32.start.end [1/1] (short) (narrow) %v338_v19, 32  ;;  %v1663_v21 = vmul.f32 %v3976_v28, %v4648_v33 }
 0xa9a   :  { %3781 = vmatprep.subr.mxu1 %v4046_v50 }
 0xa9c   :  { %v3978_v29 = vpop.eup %3977 }
 0xa9d   :  { %3782 = vmatpush3.xpose.msk.msra.mxu1 %vm845_vm3, %v1663_v21  ;;  %v1662_v55 = vmul.f32 %v3978_v29, %v4652_v43 }
 0xa9e   :  { %3783 = vmatprep.subr.mxu1 %v4046_v50 }
 0xaa0   :  { %v3980_v30 = vpop.eup %3979 }
 0xaa1   :  { %3784 = vmatpush3.xpose.msk.msra.mxu1 %vm845_vm3, %v1662_v55  ;;  %v1661_v31 = vmul.f32 %v3980_v30, %v4656_v46 }
 0xaa2   :  { %3785 = vmatprep.subr.mxu1 %v4046_v50 }
 0xaa5   :  { %3786 = vmatpush3.xpose.msk.msra.mxu1 %vm845_vm3, %v1661_v31 }
 0xaa8   :  { %3788 = vmatmul.mubr.msk.f32.vlgmr.msra.gmra.mxu1 %vm845_vm3, %v692_v17 }
 0xac1   :  { %v2424_v59 = vpop.xlane.xlu0 %2423 }
 0xac7   :  { %v2421_v5 = vpop.xlane.xlu1 %2420 }
 0xac9   :  { %v561_v32 = vpop.permute.xlu0 %560 }
 0xaca   :  { %v707_v49 = vadd.f32 %v4462_v39, %v561_v32 }
 0xacb   :  { %v2430_v6 = vpop.xlane.xlu1 %2429 }
 0xacc   :  { %3981 = vrcp.f32 %v2430_v6 }
 0xacd   :  { %v379_v48 = vpop.permute.xlu0 %378 }
 0xace   :  { %v525_v51 = vadd.f32 %v4358_v9, %v379_v48 }
 0xacf   :  { %v2427_v33 = vpop.xlane.xlu1 %2426 }
 0xad0   :  { %3983 = vrcp.f32 %v2427_v33 }
 0xad1   :  { %3985 = vrcp.f32 %v2424_v59 }
 0xad2   :  { %3987 = vrcp.f32 %v2421_v5 }
 0xad3   :  { %v369_v41 = vpop.permute.xlu1 %368 }
 0xad4   :  { %v515_v43 = vadd.f32 %v4354_v7, %v369_v41 }
 0xad6   :  { %3809 = vmatprep.subr.mxu1 %v515_v43 }
 0xad7   :  { %3810 = vmatpush3.msra.mxu1 %v515_v43 }
 0xad8   :  { %3817 = vmatprep.subr.mxu1 %v4046_v50 }
 0xad9   :  { %v3982_v45 = vpop.eup %3981 }
 0xada   :  { %v2438_v46 = vmul.f32 %v3982_v45, %v3970_v16 }
 0xadc   :  { %3837 = vmatpush3.xpose.msk.msra.mxu0 %vm845_vm3, %v2438_v46 }
 0xadd   :  { %v3984_v34 = vpop.eup %3983  ;;  %3838 = vmatprep.subr.mxu0 %v4046_v50 }
 0xade   :  { %v2437_v10 = vmul.f32 %v3984_v34, %v3972_v53  ;;  %v3986_v47 = vpop.eup %3985  ;;  %v4037_v53 = vld [vmem:[%s5087_s4 + $0x18] sm:$0x3f] }
 0xadf   :  { %v2436_v7 = vmul.f32 %v3986_v47, %v4670_v4  ;;  %v3988_v37 = vpop.eup %3987 }
 0xae0   :  { %3839 = vmatpush3.xpose.msk.msra.mxu0 %vm845_vm3, %v2437_v10  ;;  %v2435_v44 = vmul.f32 %v3988_v37, %v4674_v35 }
 0xae1   :  { %3840 = vmatprep.subr.mxu0 %v4046_v50 }
 0xae4   :  { %3841 = vmatpush3.xpose.msk.msra.mxu0 %vm845_vm3, %v2436_v7 }
 0xae5   :  { %3842 = vmatprep.subr.mxu0 %v4046_v50 }
 0xae8   :  { %3843 = vmatpush3.xpose.msk.msra.mxu0 %vm845_vm3, %v2435_v44 }
 0xae9   :  { %3847 = vmatprep.subr.mxu0 %v525_v51 }
 0xaeb   :  { %3845 = vmatmul.mubr.msk.f32.vlgmr.msra.gmra.mxu0 %vm845_vm3, %v707_v49 }
 0xaec   :  { %3848 = vmatpush3.msra.mxu0 %v525_v51 }
 0xb0f   :  { %v2024_v60 = vpop.trf.xlu0 }
 0xb10   :  { %3811 = vmatprep.mubr.msk.f32.mxu1 %vm747_vm1, %v2024_v60 }
 0xb13   :  { %v2025_v56 = vpop.trf.xlu0 }
 0xb14   :  { %3812 = vmatmul.mubr.msk.f32.vlgmr.msra.gmra.mxu1 %vm747_vm1, %v2025_v56 }
 0xb15   :  { %v2540_v61 = vpop.trf.xlu1 }
 0xb16   :  { %3849 = vmatprep.mubr.msk.f32.mxu0 %vm747_vm1, %v2540_v61 }
 0xb17   :  { %v2026_v62 = vpop.trf.xlu0 }
 0xb18   :  { %3814 = vmatprep.mubr.msk.f32.mxu1 %vm747_vm1, %v2026_v62 }
 0xb19   :  { %v2541_v9 = vpop.trf.xlu1 }
 0xb1a   :  { %3850 = vmatmul.mubr.msk.f32.vlgmr.msra.gmra.mxu0 %vm747_vm1, %v2541_v9 }
 0xb1b   :  { %v2027_v39 = vpop.trf.xlu0 }
 0xb1c   :  { %3815 = vmatmul.mubr.msk.f32.gmra.mxu1 %vm747_vm1, %v2027_v39 }
 0xb1d   :  { %v2542_v63 = vpop.trf.xlu1  ;;  %3825 = vmatprep.mubr.msk.f32.mxu1 %vm4047_vm4, %v4046_v50 }
 0xb1e   :  { %3852 = vmatprep.mubr.msk.f32.mxu0 %vm747_vm1, %v2542_v63 }
 0xb21   :  { %v2543_v0 = vpop.trf.xlu1 }
 0xb22   :  { %3853 = vmatmul.mubr.msk.f32.gmra.mxu0 %vm747_vm1, %v2543_v0 }
 0xb68   :  { %v4728_v1 = vpop.f32.mrf.mxu1 }
 0xb6a   :  { %v3789_v2 = vpop.f32.mrf.mxu1 }
 0xbab   :  { %v4730_v4 = vpop.f32.mrf.mxu0 }
 0xbad   :  { %v3846_v3 = vpop.f32.mrf.mxu0 }
 0xbd4   :  { %v3813_v35 = vpop.f32.mrf.mxu1 }
 0xbd5   :  { %v2124_v12 = vadd.f32 %v4038_v24, %v3813_v35 }
 0xbd6   :  { %v2118_v8 = vpop.f32.mrf.mxu1 }
 0xbd7   :  { %v2119_v13 = vadd.f32 %v4040_v27, %v2118_v8  ;;  %v2140_v19 = vsel %vm845_vm3, %v2124_v12, -inf }
 0xbd9   :  { %v2137_v55 = vsel %vm845_vm3, %v2119_v13, -inf }
 0xbda   :  { %v3851_v16 = vpop.f32.mrf.mxu0 }
 0xbdb   :  { %v2640_v31 = vadd.f32 %v4038_v24, %v3851_v16 }
 0xbdc   :  { %v3816_v20 = vpop.f32.mrf.mxu1  ;;  %v2634_v11 = vpop.f32.mrf.mxu0 }
 0xbdd   :  { %v2134_v22 = vadd.f32 %v4037_v53, %v3816_v20  ;;  %v2635_v29 = vadd.f32 %v4040_v27, %v2634_v11  ;;  %v2656_v5 = vsel %vm845_vm3, %v2640_v31, -inf }
 0xbde   :  { %v2128_v58 = vpop.f32.mrf.mxu1 }
 0xbdf   :  { %v2129_v54 = vadd.f32 %v4039_v25, %v2128_v58  ;;  %v2146_v23 = vsel %vm855_vm2, %v2134_v22, -inf  ;;  %v2653_v17 = vsel %vm845_vm3, %v2635_v29, -inf }
 0xbe0   :  { %2147 = vmax.xlane.f32.xlu0 %v2146_v23 }
 0xbe1   :  { %v2143_v26 = vsel %vm845_vm3, %v2129_v54, -inf }
 0xbe2   :  { %2144 = vmax.xlane.f32.xlu1 %v2143_v26  ;;  %v3854_v14 = vpop.f32.mrf.mxu0  ;;  %v149_v26 = vld [vmem:[%s5088_s10 + $0x38] sm:$0xff] }
 0xbe3   :  { %v2650_v28 = vadd.f32 %v4037_v53, %v3854_v14  ;;  %v147_v14 = vld [vmem:[%s5088_s10 + $0x28] sm:$0xff] }
 0xbe4   :  { %2141 = vmax.xlane.f32.xlu0 %v2140_v19  ;;  %v2644_v15 = vpop.f32.mrf.mxu0 }
 0xbe5   :  { %v2645_v21 = vadd.f32 %v4039_v25, %v2644_v15  ;;  %v2662_v57 = vsel %vm855_vm2, %v2650_v28, -inf }
 0xbe7   :  { %v2659_v30 = vsel %vm845_vm3, %v2645_v21, -inf }
 0xbe8   :  { %2138 = vmax.xlane.f32.xlu0 %v2137_v55  ;;  %2660 = vmax.xlane.f32.xlu1 %v2659_v30 }
 0xbec   :  { %2663 = vmax.xlane.f32.xlu0 %v2662_v57  ;;  %2654 = vmax.xlane.f32.xlu1 %v2653_v17 }
 0xbf0   :  { %2657 = vmax.xlane.f32.xlu0 %v2656_v5 }
 0xc69   :  { %v2148_v6 = vpop.xlane.xlu0 %2147 }
 0xc6a   :  { %v2152_v59 = vsub.f32 %v2134_v22, %v2148_v6 }
 0xc6b   :  { %v2145_v33 = vpop.xlane.xlu1 %2144 }
 0xc6c   :  { %v2159_v41 = vmul.f32 1.442695, %v2152_v59  ;;  %v2151_v43 = vsub.f32 %v2129_v54, %v2145_v33 }
 0xc6d   :  { %v2142_v45 = vpop.xlane.xlu0 %2141 }
 0xc6e   :  { %3989 = vpow2.f32 %v2159_v41  ;;  %v2157_v46 = vmul.f32 1.442695, %v2151_v43  ;;  %v2150_v34 = vsub.f32 %v2124_v12, %v2142_v45 }
 0xc70   :  { %3991 = vpow2.f32 %v2157_v46  ;;  %v2155_v32 = vmul.f32 1.442695, %v2150_v34 }
 0xc71   :  { %v2139_v10 = vpop.xlane.xlu0 %2138  ;;  %v2661_v47 = vpop.xlane.xlu1 %2660 }
 0xc72   :  { %3993 = vpow2.f32 %v2155_v32  ;;  %v2149_v7 = vsub.f32 %v2119_v13, %v2139_v10  ;;  %v2667_v48 = vsub.f32 %v2645_v21, %v2661_v47  ;;  %v157_v10 = vld [vmem:[%s5089_s11 + $0x38] sm:$0xff]  ;;  %v156_v47 = vld [vmem:[%s5089_s11 + $0x30] sm:$0xff] }
 0xc73   :  { %3866 = vmatprep.subr.mxu0 %v157_v10 }
 0xc74   :  { %v2153_v37 = vmul.f32 1.442695, %v2149_v7  ;;  %v2673_v61 = vmul.f32 1.442695, %v2667_v48  ;;  %3867 = vmatpush3.msra.mxu0 %v157_v10  ;;  %v155_v7 = vld [vmem:[%s5089_s11 + $0x28] sm:$0xff]  ;;  %v152_v48 = vld [vmem:[%s5089_s11 + $0x10] sm:$0xff] }
 0xc75   :  { %v2664_v44 = vpop.xlane.xlu0 %2663  ;;  %v2655_v51 = vpop.xlane.xlu1 %2654  ;;  %3868 = vmatprep.subr.mxu0 %v156_v47  ;;  %v3006_v10 = vld [vmem:[%s5091_s15 + $0x48] sm:$0xff] }
 0xc76   :  { %3995 = vpow2.f32 %v2153_v37  ;;  %v2665_v49 = vsub.f32 %v2635_v29, %v2655_v51  ;;  %v2668_v60 = vsub.f32 %v2650_v28, %v2664_v44  ;;  %3869 = vmatpush3.msra.mxu0 %v156_v47  ;;  %v153_v37 = vld [vmem:[%s5089_s11 + $0x18] sm:$0xff]  ;;  %v151_v44 = vld [vmem:[%s5089_s11 + $0x8] sm:$0xff]  ;;  %v150_v51 = vld [vmem:[%s5089_s11] sm:$0xff] }
 0xc77   :  { %3870 = vmatprep.subr.mxu0 %v155_v7  ;;  %v3005_v47 = vld [vmem:[%s5091_s15 + $0x40] sm:$0xff] }
 0xc78   :  { %v2669_v56 = vmul.f32 1.442695, %v2665_v49  ;;  %v2675_v63 = vmul.f32 1.442695, %v2668_v60  ;;  %3871 = vmatpush3.msra.mxu0 %v155_v7  ;;  %v3004_v7 = vld [vmem:[%s5091_s15 + $0x38] sm:$0xff] }
 0xc79   :  { %v2658_v62 = vpop.xlane.xlu0 %2657 }
 0xc7a   :  { %v2666_v9 = vsub.f32 %v2640_v31, %v2658_v62  ;;  %3997 = vpow2.f32 %v2669_v56 }
 0xc7b   :  { %v3990_v39 = vpop.eup %3989  ;;  %3999 = vpow2.f32 %v2673_v61 }
 0xc7c   :  { %v2671_v0 = vmul.f32 1.442695, %v2666_v9  ;;  %v2170_v2 = vsel %vm855_vm2, %v3990_v39, 0.0 }
 0xc7d   :  { %v3992_v3 = vpop.eup %3991  ;;  %2171 = vadd.xlane.f32.xlu0 %v2170_v2 }
 0xc7e   :  { %4001 = vpow2.f32 %v2671_v0  ;;  %v2167_v35 = vsel %vm845_vm3, %v3992_v3, 0.0 }
 0xc7f   :  { %v3994_v8 = vpop.eup %3993  ;;  %2168 = vadd.xlane.f32.xlu1 %v2167_v35  ;;  %4003 = vpow2.f32 %v2675_v63 }
 0xc80   :  { %v2164_v16 = vsel %vm845_vm3, %v3994_v8, 0.0 }
 0xc81   :  { %2165 = vadd.xlane.f32.xlu0 %v2164_v16 }
 0xc83   :  { %v3996_v20 = vpop.eup %3995 }
 0xc84   :  { %v2161_v53 = vsel %vm845_vm3, %v3996_v20, 0.0 }
 0xc85   :  { %2162 = vadd.xlane.f32.xlu1 %v2161_v53 }
 0xc87   :  { %v4756_v22 = vpop.eup %3997 }
 0xc88   :  { %v2677_v58 = vsel %vm845_vm3, %v4756_v22, 0.0  ;;  %v4000_v11 = vpop.eup %3999 }
 0xc89   :  { %2678 = vadd.xlane.f32.xlu1 %v2677_v58  ;;  %v2683_v54 = vsel %vm845_vm3, %v4000_v11, 0.0 }
 0xc8b   :  { %v4002_v24 = vpop.eup %4001 }
 0xc8c   :  { %v2680_v12 = vsel %vm845_vm3, %v4002_v24, 0.0  ;;  %v4004_v25 = vpop.eup %4003 }
 0xc8d   :  { %2681 = vadd.xlane.f32.xlu0 %v2680_v12  ;;  %2684 = vadd.xlane.f32.xlu1 %v2683_v54  ;;  %v2686_v23 = vsel %vm855_vm2, %v4004_v25, 0.0  ;;  %v4043_v54 = vld [vmem:[%s5113_s26 + $0x10] sm:$0xff] }
 0xc91   :  { %2687 = vadd.xlane.f32.xlu0 %v2686_v23 }
 0xc9e   :  { %565 = vperm.xlu1 %3892, %v149_v26   ;;  %v4044_v26 = vld [vmem:[%s5113_s26 + $0x18] sm:$0x3f] }
 0xca7   :  { %555 = vperm.xlu0 %3891, %v147_v14  }
 0xcc7   :  { %2788 = vxpose.xlu1.b32.start [1/8] (short) (narrow) %v4464_v40, 32 }
 0xccb   :  { %2789 = vxpose.xlu1.b32.cont [2/8] (short) (narrow) %v4621_v42, 32 }
 0xccf   :  { %2790 = vxpose.xlu1.b32.cont [3/8] (short) (narrow) %v4517_v18, 32 }
 0xcd3   :  { %2791 = vxpose.xlu1.b32.cont [4/8] (short) (narrow) %v4728_v1, 32 }
 0xcd7   :  { %2792 = vxpose.xlu1.b32.cont [5/8] (short) (narrow) %v4623_v52, 32 }
 0xd06   :  { %v2172_v27 = vpop.xlane.xlu0 %2171 }
 0xd07   :  { %4005 = vrcp.f32 %v2172_v27 }
 0xd08   :  { %v2169_v13 = vpop.xlane.xlu1 %2168 }
 0xd09   :  { %4007 = vrcp.f32 %v2169_v13 }
 0xd0a   :  { %v2166_v19 = vpop.xlane.xlu0 %2165 }
 0xd0b   :  { %4009 = vrcp.f32 %v2166_v19 }
 0xd0e   :  { %v2163_v15 = vpop.xlane.xlu1 %2162 }
 0xd0f   :  { %4011 = vrcp.f32 %v2163_v15 }
 0xd12   :  { %v2679_v21 = vpop.xlane.xlu1 %2678 }
 0xd14   :  { %v4006_v28 = vpop.eup %4005 }
 0xd15   :  { %v2180_v29 = vmul.f32 %v4006_v28, %v3990_v39 }
 0xd16   :  { %v4008_v40 = vpop.eup %4007  ;;  %v2682_v55 = vpop.xlane.xlu0 %2681 }
 0xd17   :  { %3818 = vmatpush3.xpose.msk.msra.mxu1 %vm845_vm3, %v2180_v29  ;;  %v2179_v18 = vmul.f32 %v4008_v40, %v3992_v3  ;;  %v2685_v52 = vpop.xlane.xlu1 %2684 }
 0xd18   :  { %3819 = vmatprep.subr.mxu1 %v4046_v50  ;;  %v4010_v42 = vpop.eup %4009 }
 0xd19   :  { %v2178_v30 = vmul.f32 %v4010_v42, %v3994_v8  ;;  %v4041_v8 = vld [vmem:[%s5113_s26] sm:$0xff] }
 0xd1a   :  { %v2688_v1 = vpop.xlane.xlu0 %2687 }
 0xd1b   :  { %4013 = vrcp.f32 %v2688_v1  ;;  %3820 = vmatpush3.xpose.msk.msra.mxu1 %vm845_vm3, %v2179_v18  ;;  %v566_v46 = vpop.permute.xlu1 %565 }
 0xd1c   :  { %3821 = vmatprep.subr.mxu1 %v4046_v50  ;;  %4015 = vrcp.f32 %v2685_v52  ;;  %v4012_v57 = vpop.eup %4011  ;;  %v712_v32 = vadd.f32 %v4460_v38, %v566_v46  ;;  %v154_v38 = vld [vmem:[%s5089_s11 + $0x20] sm:$0xff]  ;;  %s5119_s11 = sld [smem:[#allocation8_spill]] }
 0xd1d   :  { %4017 = vrcp.f32 %v2682_v55  ;;  %v2177_v31 = vmul.f32 %v4012_v57, %v3996_v20  ;;  %3872 = vmatprep.subr.mxu0 %v154_v38  ;;  %v4042_v20 = vld [vmem:[%s5113_s26 + $0x8] sm:$0xff]  ;;  %v3009_v46 = vld [vmem:[%s5091_s15 + $0x60] sm:$0xff] }
 0xd1e   :  { %4019 = vrcp.f32 %v2679_v21  ;;  %3873 = vmatpush3.msra.mxu0 %v154_v38  ;;  %v3003_v38 = vld [vmem:[%s5091_s15 + $0x30] sm:$0xff] }
 0xd1f   :  { %3822 = vmatpush3.xpose.msk.msra.mxu1 %vm845_vm3, %v2178_v30  ;;  %3874 = vmatprep.subr.mxu0 %v153_v37 }
 0xd20   :  { %3823 = vmatprep.subr.mxu1 %v4046_v50  ;;  %3875 = vmatpush3.msra.mxu0 %v153_v37  ;;  %v3002_v37 = vld [vmem:[%s5091_s15 + $0x28] sm:$0xff] }
 0xd21   :  { %3876 = vmatprep.subr.mxu0 %v152_v48 }
 0xd22   :  { %v556_v17 = vpop.permute.xlu0 %555  ;;  %3877 = vmatpush3.msra.mxu0 %v152_v48  ;;  %v3001_v48 = vld [vmem:[%s5091_s15 + $0x20] sm:$0xff] }
 0xd23   :  { %v702_v5 = vadd.f32 %v4456_v36, %v556_v17  ;;  %3824 = vmatpush3.xpose.msk.msra.mxu1 %vm845_vm3, %v2177_v31  ;;  %3878 = vmatprep.subr.mxu0 %v151_v44 }
 0xd24   :  { %3855 = vmatprep.subr.mxu1 %v4046_v50  ;;  %3879 = vmatpush3.msra.mxu0 %v151_v44  ;;  %v3000_v44 = vld [vmem:[%s5091_s15 + $0x18] sm:$0xff] }
 0xd25   :  { %3880 = vmatprep.subr.mxu0 %v150_v51 }
 0xd26   :  { %3826 = vmatmul.mubr.msk.f32.vlgmr.msra.gmra.mxu1 %vm845_vm3, %v702_v5  ;;  %3881 = vmatpush3.msra.mxu0 %v150_v51  ;;  %v2999_v51 = vld [vmem:[%s5091_s15 + $0x10] sm:$0xff] }
 0xd27   :  { %3863 = vmatprep.mubr.msk.f32.mxu1 %vm4047_vm4, %v4046_v50 }
 0xd28   :  { %v4014_v6 = vpop.eup %4013 }
 0xd29   :  { %v2696_v59 = vmul.f32 %v4014_v6, %v4004_v25  ;;  %v4016_v33 = vpop.eup %4015 }
 0xd2a   :  { %v2695_v41 = vmul.f32 %v4016_v33, %v4000_v11  ;;  %v4018_v43 = vpop.eup %4017 }
 0xd2b   :  { %3856 = vmatpush3.xpose.msk.msra.mxu1 %vm845_vm3, %v2696_v59  ;;  %v2694_v36 = vmul.f32 %v4018_v43, %v4002_v24  ;;  %v4020_v45 = vpop.eup %4019  ;;  %v3012_v43 = vld [vmem:[%s5091_s15 + $0x78] sm:$0xff] }
 0xd2c   :  { %3857 = vmatprep.subr.mxu1 %v4046_v50  ;;  %v2693_v34 = vmul.f32 %v4020_v45, %v4756_v22  ;;  %v3010_v45 = vld [vmem:[%s5091_s15 + $0x68] sm:$0xff] }
 0xd2f   :  { %3858 = vmatpush3.xpose.msk.msra.mxu1 %vm845_vm3, %v2695_v41 }
 0xd30   :  { %3859 = vmatprep.subr.mxu1 %v4046_v50 }
 0xd33   :  { %3860 = vmatpush3.xpose.msk.msra.mxu1 %vm845_vm3, %v2694_v36  ;;  %v3011_v36 = vld [vmem:[%s5091_s15 + $0x70] sm:$0xff] }
 0xd34   :  { %3861 = vmatprep.subr.mxu1 %v4046_v50 }
 0xd37   :  { %3862 = vmatpush3.xpose.msk.msra.mxu1 %vm845_vm3, %v2693_v34  ;;  %v3008_v34 = vld [vmem:[%s5091_s15 + $0x58] sm:$0xff] }
 0xd38   :  { %3053 = vmatprep.subr.mxu1 %v3012_v43 }
 0xd3a   :  { %3864 = vmatmul.mubr.msk.f32.vlgmr.msra.gmra.mxu1 %vm845_vm3, %v712_v32  ;;  %v3007_v32 = vld [vmem:[%s5091_s15 + $0x50] sm:$0xff] }
 0xd3b   :  { %3101 = vmatprep.mubr.f32.mxu1 %v4046_v50  ;;  %3054 = vmatpush1.msra.mxu1 %v3011_v36 }
 0xd3c   :  { %3055 = vmatprep.subr.mxu1 %v3010_v45 }
 0xd3d   :  { %3056 = vmatpush1.msra.mxu1 %v3009_v46 }
 0xd3e   :  { %3057 = vmatprep.subr.mxu1 %v3008_v34 }
 0xd3f   :  { %3058 = vmatpush1.msra.mxu1 %v3007_v32 }
 0xd40   :  { %3059 = vmatprep.subr.mxu1 %v3006_v10 }
 0xd41   :  { %3060 = vmatpush1.msra.mxu1 %v3005_v47 }
 0xd42   :  { %3061 = vmatprep.subr.mxu1 %v3004_v7 }
 0xd43   :  { %3062 = vmatpush1.msra.mxu1 %v3003_v38  ;;  %v3152_v38 = vld [vmem:[%s5092_s17 + $0x90] sm:$0xff] }
 0xd44   :  { %3063 = vmatprep.subr.mxu1 %v3002_v37  ;;  %v3151_v37 = vld [vmem:[%s5092_s17 + $0x88] sm:$0xff] }
 0xd45   :  { %3064 = vmatpush1.msra.mxu1 %v3001_v48  ;;  %v3135_v48 = vld [vmem:[%s5092_s17 + $0x8] sm:$0xff] }
 0xd46   :  { %3065 = vmatprep.subr.mxu1 %v3000_v44  ;;  %v3150_v44 = vld [vmem:[%s5092_s17 + $0x80] sm:$0xff] }
 0xd47   :  { %3066 = vmatpush1.msra.mxu1 %v2999_v51  ;;  %v3134_v51 = vld [vmem:[%s5092_s17] sm:$0xff] }
 0xde6   :  { %v2262_v49 = vpop.f32.mrf.mxu1 }
 0xde7   :  { %2793 = vxpose.xlu1.b32.cont [6/8] (short) (narrow) %v2262_v49, 32  ;;  %v2998_v49 = vld [vmem:[%s5091_s15 + $0x8] sm:$0xff] }
 0xde8   :  { %v3827_v60 = vpop.f32.mrf.mxu1  ;;  %3067 = vmatprep.subr.mxu1 %v2998_v49  ;;  %v3015_v49 = vlaneseq }
 0xde9   :  { %v2997_v60 = vld [vmem:[%s5091_s15] sm:$0xff] }
 0xdea   :  { %3068 = vmatpush1.msra.mxu1 %v2997_v60  ;;  %v3016_v60 = vshrl.u32 %v3015_v49, 7 }
 0xdeb   :  { %2794 = vxpose.xlu1.b32.cont [7/8] (short) (narrow) %v4730_v4, 32  ;;  %v3456_v4 = vld [vmem:[%s5090_s12] ss:$0 sm:$0xff] }
 0xdfa   :  { %v2778_v56 = vpop.f32.mrf.mxu1 }
 0xdfb   :  { %2795 = vxpose.xlu1.b32.end [8/8] (short) (narrow) %v2778_v56, 32  ;;  %v3165_v56 = vld [vmem:[%s5092_s17 + $0xf8] sm:$0xff] }
 0xdfc   :  { %v3865_v61 = vpop.f32.mrf.mxu1  ;;  %3602 = vmatprep.subr.mxu0 %v3165_v56  ;;  %v3017_v56 = vsub.s32 0, %v3016_v60 }
 0xdfd   :  { %v3149_v61 = vld [vmem:[%s5092_s17 + $0x78] sm:$0xff] }
 0xe5b   :  { %v2804_v62 = vpop.trf.xlu1 }
 0xe5c   :  { %3882 = vmatprep.mubr.msk.f32.mxu0 %vm199_vm0, %v2804_v62  ;;  %v3164_v62 = vld [vmem:[%s5092_s17 + $0xf0] sm:$0xff] }
 0xe5f   :  { %v2805_v9 = vpop.trf.xlu1 }
 0xe60   :  { %3883 = vmatmul.mubr.msk.f32.vlgmr.msra.gmra.mxu0 %vm199_vm0, %v2805_v9  ;;  %v3148_v9 = vld [vmem:[%s5092_s17 + $0x70] sm:$0xff] }
 0xe61   :  { %3603 = vmatpush3.msra.mxu0 %v3149_v61  ;;  %v3013_v61 = vld [vmem:[%s5095_s16] sm:$0x3] }
 0xe62   :  { %3604 = vmatprep.subr.mxu0 %v3164_v62  ;;  %v3021_v62 = vsub.s32 1, %v3016_v60 }
 0xe63   :  { %v2806_v39 = vpop.trf.xlu1  ;;  %3605 = vmatpush3.msra.mxu0 %v3148_v9  ;;  %v3018_v9 = vrot.slane %v3013_v61, %v3017_v56 }
 0xe64   :  { %3885 = vmatprep.mubr.msk.f32.mxu0 %vm199_vm0, %v2806_v39  ;;  %v3163_v39 = vld [vmem:[%s5092_s17 + $0xe8] sm:$0xff] }
 0xe65   :  { %3606 = vmatprep.subr.mxu0 %v3163_v39  ;;  %v3022_v39 = vrot.slane %v3013_v61, %v3021_v62 }
 0xe67   :  { %v2807_v63 = vpop.trf.xlu1 }
 0xe68   :  { %3886 = vmatmul.mubr.msk.f32.gmra.mxu0 %vm199_vm0, %v2807_v63  ;;  %v3147_v63 = vld [vmem:[%s5092_s17 + $0x68] sm:$0xff] }
 0xe69   :  { %3607 = vmatpush3.msra.mxu0 %v3147_v63 }
 0xf20   :  { %v3884_v0 = vpop.f32.mrf.mxu0 }
 0xf21   :  { %v2904_v3 = vadd.f32 %v3884_v0, %v3456_v4  ;;  %v3162_v0 = vld [vmem:[%s5092_s17 + $0xe0] sm:$0xff] }
 0xf22   :  { %v2898_v2 = vpop.f32.mrf.mxu0  ;;  %3608 = vmatprep.subr.mxu0 %v3162_v0 }
 0xf23   :  { %v2899_v35 = vadd.f32 %v3456_v4, %v2898_v2  ;;  %v2918_v53 = vadd.f32 %v4042_v20, %v2904_v3  ;;  %v3161_v2 = vld [vmem:[%s5092_s17 + $0xd8] sm:$0xff]  ;;  %v3143_v20 = vld [vmem:[%s5092_s17 + $0x48] sm:$0xff] }
 0xf24   :  { %v3145_v3 = vld [vmem:[%s5092_s17 + $0x58] sm:$0xff] }
 0xf25   :  { %v2917_v16 = vadd.f32 %v4041_v8, %v2899_v35  ;;  %v2926_v25 = vsel %vm199_vm0, %v2918_v53, 0.0  ;;  %v3160_v35 = vld [vmem:[%s5092_s17 + $0xd0] sm:$0xff] }
 0xf26   :  { %v3144_v8 = vld [vmem:[%s5092_s17 + $0x50] sm:$0xff] }
 0xf27   :  { %v2923_v22 = vsel %vm199_vm0, %v2917_v16, 0.0 }
 0xf28   :  { %2924 = vadd.xlane.f32.xlu0 %v2923_v22  ;;  %v3887_v58 = vpop.f32.mrf.mxu0  ;;  %v3142_v22 = vld [vmem:[%s5092_s17 + $0x40] sm:$0xff] }
 0xf29   :  { %v2914_v24 = vadd.f32 %v3887_v58, %v3456_v4  ;;  %v3157_v58 = vld [vmem:[%s5092_s17 + $0xb8] sm:$0xff] }
 0xf2a   :  { %v2908_v11 = vpop.f32.mrf.mxu0 }
 0xf2b   :  { %v2909_v12 = vadd.f32 %v3456_v4, %v2908_v11  ;;  %v2920_v14 = vadd.f32 %v4044_v26, %v2914_v24  ;;  %v3146_v4 = vld [vmem:[%s5092_s17 + $0x60] sm:$0xff]  ;;  %v3141_v11 = vld [vmem:[%s5092_s17 + $0x38] sm:$0xff]  ;;  %v3156_v24 = vld [vmem:[%s5092_s17 + $0xb0] sm:$0xff] }
 0xf2c   :  { %2927 = vadd.xlane.f32.xlu0 %v2926_v25  ;;  %3609 = vmatpush3.msra.mxu0 %v3146_v4  ;;  %v3155_v25 = vld [vmem:[%s5092_s17 + $0xa8] sm:$0xff]  ;;  %v3138_v26 = vld [vmem:[%s5092_s17 + $0x20] sm:$0xff] }
 0xf2d   :  { %v2919_v23 = vadd.f32 %v4043_v54, %v2909_v12  ;;  %v2933_v13 = vsel %vm2932_vm5, %v2920_v14, 0.0  ;;  %3610 = vmatprep.subr.mxu0 %v3161_v2  ;;  %v3140_v12 = vld [vmem:[%s5092_s17 + $0x30] sm:$0xff]  ;;  %v3139_v54 = vld [vmem:[%s5092_s17 + $0x28] sm:$0xff] }
 0xf2e   :  { %3611 = vmatpush3.msra.mxu0 %v3145_v3 }
 0xf2f   :  { %v2929_v27 = vsel %vm199_vm0, %v2919_v23, 0.0  ;;  %3612 = vmatprep.subr.mxu0 %v3160_v35 }
 0xf30   :  { %2930 = vadd.xlane.f32.xlu0 %v2929_v27  ;;  %3613 = vmatpush3.msra.mxu0 %v3144_v8 }
 0xf34   :  { %2934 = vadd.xlane.f32.xlu0 %v2933_v13 }
 0xfb1   :  { %v2925_v19 = vpop.xlane.xlu0 %2924 }
 0xfb2   :  { %v2937_v15 = vmul.f32 0.015625, %v2925_v19 }
 0xfb4   :  { %v4845_v28 = vsub.f32 %v2917_v16, %v2937_v15  ;;  %v3159_v16 = vld [vmem:[%s5092_s17 + $0xc8] sm:$0xff] }
 0xfb5   :  { %v2928_v21 = vpop.xlane.xlu0 %2927  ;;  %3614 = vmatprep.subr.mxu0 %v3159_v16 }
 0xfb6   :  { %v2938_v29 = vmul.f32 0.015625, %v2928_v21  ;;  %v2945_v40 = vmul.f32 %v4845_v28, %v4845_v28  ;;  %3615 = vmatpush3.msra.mxu0 %v3143_v20 }
 0xfb8   :  { %v4849_v55 = vsub.f32 %v2918_v53, %v2938_v29  ;;  %v2949_v18 = vsel %vm199_vm0, %v2945_v40, 0.0  ;;  %v3158_v53 = vld [vmem:[%s5092_s17 + $0xc0] sm:$0xff] }
 0xfb9   :  { %2950 = vadd.xlane.f32.xlu0 %v2949_v18  ;;  %v2931_v42 = vpop.xlane.xlu0 %2930  ;;  %3616 = vmatprep.subr.mxu0 %v3158_v53 }
 0xfba   :  { %v2939_v52 = vmul.f32 0.015625, %v2931_v42  ;;  %v2946_v1 = vmul.f32 %v4849_v55, %v4849_v55  ;;  %3617 = vmatpush3.msra.mxu0 %v3142_v22 }
 0xfbb   :  { %3618 = vmatprep.subr.mxu0 %v3157_v58 }
 0xfbc   :  { %v4854_v30 = vsub.f32 %v2919_v23, %v2939_v52  ;;  %v2952_v57 = vsel %vm199_vm0, %v2946_v1, 0.0  ;;  %3619 = vmatpush3.msra.mxu0 %v3141_v11  ;;  %v3154_v23 = vld [vmem:[%s5092_s17 + $0xa0] sm:$0xff] }
 0xfbd   :  { %2953 = vadd.xlane.f32.xlu0 %v2952_v57  ;;  %v2935_v31 = vpop.xlane.xlu0 %2934  ;;  %3620 = vmatprep.subr.mxu0 %v3156_v24 }
 0xfbe   :  { %v2940_v17 = vmul.f32 0.015625, %v2935_v31  ;;  %v2947_v5 = vmul.f32 %v4854_v30, %v4854_v30  ;;  %3621 = vmatpush3.msra.mxu0 %v3140_v12  ;;  %v3461_v31 = vld [vmem:[%s5093_s13] ss:$0 sm:$0xff] }
 0xfbf   :  { %3622 = vmatprep.subr.mxu0 %v3155_v25 }
 0xfc0   :  { %v4859_v6 = vsub.f32 %v2920_v14, %v2940_v17  ;;  %v2955_v59 = vsel %vm199_vm0, %v2947_v5, 0.0  ;;  %3623 = vmatpush3.msra.mxu0 %v3139_v54  ;;  %v3462_v5 = vld [vmem:[%s5119_s11] ss:$0 sm:$0xff] }
 0xfc1   :  { %2956 = vadd.xlane.f32.xlu0 %v2955_v59  ;;  %3624 = vmatprep.subr.mxu0 %v3154_v23 }
 0xfc2   :  { %v2948_v33 = vmul.f32 %v4859_v6, %v4859_v6  ;;  %3625 = vmatpush3.msra.mxu0 %v3138_v26 }
 0xfc4   :  { %v2958_v41 = vsel %vm2932_vm5, %v2948_v33, 0.0 }
 0xfc5   :  { %2959 = vadd.xlane.f32.xlu0 %v2958_v41 }
0x1042   :  { %v2951_v14 = vpop.xlane.xlu0 %2950 }
0x1043   :  { %v2961_v27 = vmul.f32 0.015625, %v2951_v14 }
0x1045   :  { %v2965_v13 = vadd.f32 1e-05, %v2961_v27 }
0x1046   :  { %v2954_v19 = vpop.xlane.xlu0 %2953 }
0x1047   :  { %4021 = vrsqrt.f32 %v2965_v13  ;;  %v2962_v15 = vmul.f32 0.015625, %v2954_v19 }
0x1049   :  { %v2966_v21 = vadd.f32 1e-05, %v2962_v15 }
0x104a   :  { %v2957_v29 = vpop.xlane.xlu0 %2956 }
0x104b   :  { %4023 = vrsqrt.f32 %v2966_v21  ;;  %v2963_v40 = vmul.f32 0.015625, %v2957_v29  ;;  %v3467_v29 = vld [vmem:[%s5096_s18] ss:$0 sm:$0xff] }
0x104d   :  { %v2967_v18 = vadd.f32 1e-05, %v2963_v40 }
0x104e   :  { %v2960_v42 = vpop.xlane.xlu0 %2959 }
0x104f   :  { %4025 = vrsqrt.f32 %v2967_v18  ;;  %v2964_v52 = vmul.f32 0.015625, %v2960_v42 }
0x1051   :  { %v2968_v1 = vadd.f32 1e-05, %v2964_v52 }
0x1053   :  { %4027 = vrsqrt.f32 %v2968_v1 }
0x1054   :  { %v4022_v57 = vpop.eup %4021 }
0x1055   :  { %v2973_v17 = vmul.f32 %v4022_v57, %v4845_v28 }
0x1057   :  { %v2983_v59 = vmul.f32 %v3461_v31, %v2973_v17 }
0x1058   :  { %v4024_v33 = vpop.eup %4023 }
0x1059   :  { %v4992_v41 = vadd.f32 %v3462_v5, %v2983_v59  ;;  %v2974_v43 = vmul.f32 %v4024_v33, %v4849_v55 }
0x105b   :  { %3463 = vmatmul.mubr.msk.f32.vlgmr.msra.gmra.mxu1 %vm199_vm0, %v4992_v41  ;;  %v2984_v36 = vmul.f32 %v3461_v31, %v2974_v43 }
0x105c   :  { %v4026_v45 = vpop.eup %4025  ;;  %3107 = vmatprep.mubr.f32.mxu1 %v4046_v50 }
0x105d   :  { %v4998_v46 = vadd.f32 %v3462_v5, %v2984_v36  ;;  %v2975_v28 = vmul.f32 %v4026_v45, %v4854_v30  ;;  %v3153_v30 = vld [vmem:[%s5092_s17 + $0x98] sm:$0xff] }
0x105e   :  { %3626 = vmatprep.subr.mxu0 %v3153_v30 }
0x105f   :  { %3464 = vmatmul.mubr.msk.f32.gmra.mxu1 %vm199_vm0, %v4998_v46  ;;  %v2985_v34 = vmul.f32 %v3461_v31, %v2975_v28 }
0x1060   :  { %v4028_v32 = vpop.eup %4027  ;;  %3113 = vmatprep.mubr.f32.mxu1 %v4046_v50 }
0x1061   :  { %v5004_v10 = vadd.f32 %v3462_v5, %v2985_v34  ;;  %v2976_v55 = vmul.f32 %v4028_v32, %v4859_v6  ;;  %v3137_v6 = vld [vmem:[%s5092_s17 + $0x18] sm:$0xff] }
0x1062   :  { %3627 = vmatpush3.msra.mxu0 %v3137_v6 }
0x1063   :  { %3465 = vmatmul.mubr.msk.f32.gmra.mxu1 %vm199_vm0, %v5004_v10  ;;  %v2986_v47 = vmul.f32 %v3461_v31, %v2976_v55  ;;  %3628 = vmatprep.subr.mxu0 %v3152_v38 }
0x1064   :  { %3119 = vmatprep.mubr.f32.mxu1 %v4046_v50  ;;  %v3136_v50 = vld [vmem:[%s5092_s17 + $0x10] sm:$0xff] }
0x1065   :  { %v5010_v7 = vadd.f32 %v3462_v5, %v2986_v47  ;;  %3629 = vmatpush3.msra.mxu0 %v3136_v50 }
0x1066   :  { %3630 = vmatprep.subr.mxu0 %v3151_v37 }
0x1067   :  { %3466 = vmatmul.mubr.msk.f32.gmra.mxu1 %vm199_vm0, %v5010_v7  ;;  %3631 = vmatpush3.msra.mxu0 %v3135_v48 }
0x1068   :  { %3632 = vmatprep.subr.mxu0 %v3150_v44 }
0x1069   :  { %3633 = vmatpush3.msra.mxu0 %v3134_v51 }
0x111b   :  { %v3103_v63 = vpop.f32.mrf.mxu1 }
0x111c   :  { %v3104_v0 = vadd.f32 %v3103_v63, %v3018_v9 }
0x111d   :  { %v3105_v4 = vpop.f32.mrf.mxu1 }
0x111e   :  { %v3106_v2 = vadd.f32 %v3105_v4, %v3022_v39  ;;  %v3126_v8 = vmax.f32 %v3104_v0, 0.0 }
0x111f   :  { %v3109_v3 = vpop.f32.mrf.mxu1 }
0x1120   :  { %v3127_v35 = vmax.f32 %v3106_v2, 0.0  ;;  %v3110_v16 = vadd.f32 %v3109_v3, %v3018_v9 }
0x1121   :  { %v3111_v20 = vpop.f32.mrf.mxu1 }
0x1122   :  { %v3112_v53 = vadd.f32 %v3111_v20, %v3022_v39  ;;  %3237 = vmatprep.mubr.f32.mxu0 %v3127_v35  ;;  %v3128_v11 = vmax.f32 %v3110_v16, 0.0 }
0x1123   :  { %v3115_v22 = vpop.f32.mrf.mxu1  ;;  %3238 = vmatmul.mubr.f32.vlgmr.msra.gmra.mxu0 %v3126_v8 }
0x1124   :  { %v3129_v58 = vmax.f32 %v3112_v53, 0.0  ;;  %v3116_v24 = vadd.f32 %v3115_v22, %v3018_v9 }
0x1125   :  { %v3117_v12 = vpop.f32.mrf.mxu1 }
0x1126   :  { %v3118_v25 = vadd.f32 %v3117_v12, %v3022_v39  ;;  %3242 = vmatprep.mubr.f32.mxu0 %v3129_v58  ;;  %v3130_v26 = vmax.f32 %v3116_v24, 0.0 }
0x1127   :  { %v3121_v54 = vpop.f32.mrf.mxu1  ;;  %3243 = vmatmul.mubr.f32.gmra.mxu0 %v3128_v11 }
0x1128   :  { %v3131_v23 = vmax.f32 %v3118_v25, 0.0  ;;  %v3122_v14 = vadd.f32 %v3121_v54, %v3018_v9 }
0x1129   :  { %v3123_v27 = vpop.f32.mrf.mxu1 }
0x112a   :  { %v3124_v13 = vadd.f32 %v3123_v27, %v3022_v39  ;;  %3247 = vmatprep.mubr.f32.mxu0 %v3131_v23  ;;  %v3132_v15 = vmax.f32 %v3122_v14, 0.0  ;;  %v3469_v27 = vld [vmem:[%s5098_s20] ss:$0 sm:$0xff] }
0x112b   :  { %3248 = vmatmul.mubr.f32.gmra.mxu0 %v3130_v26  ;;  %v3468_v26 = vld [vmem:[%s5097_s19] ss:$0 sm:$0xff] }
0x112c   :  { %v3133_v19 = vmax.f32 %v3124_v13, 0.0 }
0x112e   :  { %3252 = vmatprep.mubr.f32.mxu0 %v3133_v19 }
0x112f   :  { %3253 = vmatmul.mubr.f32.gmra.mxu0 %v3132_v15 }
0x11e3   :  { %v3634_v21 = vpop.f32.mrf.mxu0 }
0x11e5   :  { %v3635_v40 = vpop.f32.mrf.mxu0 }
0x11e6   :  { %v3636_v18 = vadd.f32 %v3635_v40, %v3634_v21 }
0x11e7   :  { %v3637_v42 = vpop.f32.mrf.mxu0 }
0x11e8   :  { %v3240_v52 = vadd.f32 %v3636_v18, %v3467_v29 }
0x11e9   :  { %v3638_v1 = vpop.f32.mrf.mxu0 }
0x11ea   :  { %v3639_v57 = vadd.f32 %v3638_v1, %v3637_v42  ;;  %v3258_v31 = vadd.f32 %v3240_v52, %v4992_v41 }
0x11eb   :  { %v3640_v17 = vpop.f32.mrf.mxu0 }
0x11ec   :  { %v3245_v5 = vadd.f32 %v3639_v57, %v3467_v29  ;;  %v3264_v59 = vsel %vm199_vm0, %v3258_v31, 0.0 }
0x11ed   :  { %v3641_v33 = vpop.f32.mrf.mxu0  ;;  %3265 = vadd.xlane.f32.xlu0 %v3264_v59 }
0x11ee   :  { %v3642_v43 = vadd.f32 %v3641_v33, %v3640_v17  ;;  %v3259_v36 = vadd.f32 %v3245_v5, %v4998_v46 }
0x11ef   :  { %v3643_v45 = vpop.f32.mrf.mxu0 }
0x11f0   :  { %v3250_v28 = vadd.f32 %v3642_v43, %v3467_v29  ;;  %v3267_v34 = vsel %vm199_vm0, %v3259_v36, 0.0 }
0x11f1   :  { %v3644_v32 = vpop.f32.mrf.mxu0  ;;  %3268 = vadd.xlane.f32.xlu0 %v3267_v34 }
0x11f2   :  { %v3645_v55 = vadd.f32 %v3644_v32, %v3643_v45  ;;  %v3260_v47 = vadd.f32 %v3250_v28, %v5004_v10 }
0x11f4   :  { %v3255_v30 = vadd.f32 %v3645_v55, %v3467_v29  ;;  %v3270_v41 = vsel %vm199_vm0, %v3260_v47, 0.0 }
0x11f5   :  { %3271 = vadd.xlane.f32.xlu1 %v3270_v41 }
0x11f6   :  { %v3261_v6 = vadd.f32 %v3255_v30, %v5010_v7 }
0x11f8   :  { %v3273_v38 = vsel %vm2932_vm5, %v3261_v6, 0.0 }
0x11f9   :  { %3274 = vadd.xlane.f32.xlu0 %v3273_v38 }
0x1276   :  { %v3266_v50 = vpop.xlane.xlu0 %3265 }
0x1277   :  { %v3276_v46 = vmul.f32 0.015625, %v3266_v50 }
0x1279   :  { %v3280_v37 = vsub.f32 %v3258_v31, %v3276_v46 }
0x127a   :  { %v3269_v48 = vpop.xlane.xlu0 %3268 }
0x127b   :  { %v3277_v44 = vmul.f32 0.015625, %v3269_v48  ;;  %v3284_v51 = vmul.f32 %v3280_v37, %v3280_v37 }
0x127d   :  { %v3281_v49 = vsub.f32 %v3259_v36, %v3277_v44  ;;  %v3288_v60 = vsel %vm199_vm0, %v3284_v51, 0.0 }
0x127e   :  { %v3272_v56 = vpop.xlane.xlu1 %3271  ;;  %3289 = vadd.xlane.f32.xlu0 %v3288_v60 }
0x127f   :  { %v3278_v10 = vmul.f32 0.015625, %v3272_v56  ;;  %v3285_v61 = vmul.f32 %v3281_v49, %v3281_v49 }
0x1281   :  { %v3282_v62 = vsub.f32 %v3260_v47, %v3278_v10  ;;  %v3291_v9 = vsel %vm199_vm0, %v3285_v61, 0.0 }
0x1282   :  { %3292 = vadd.xlane.f32.xlu0 %v3291_v9  ;;  %v3275_v7 = vpop.xlane.xlu0 %3274 }
0x1283   :  { %v3279_v39 = vmul.f32 0.015625, %v3275_v7  ;;  %v3286_v63 = vmul.f32 %v3282_v62, %v3282_v62 }
0x1285   :  { %v3283_v0 = vsub.f32 %v3261_v6, %v3279_v39  ;;  %v3294_v4 = vsel %vm199_vm0, %v3286_v63, 0.0 }
0x1286   :  { %3295 = vadd.xlane.f32.xlu0 %v3294_v4 }
0x1287   :  { %v3287_v2 = vmul.f32 %v3283_v0, %v3283_v0 }
0x1289   :  { %v3297_v3 = vsel %vm2932_vm5, %v3287_v2, 0.0 }
0x128a   :  { %3298 = vadd.xlane.f32.xlu0 %v3297_v3 }
0x1307   :  { %v3290_v35 = vpop.xlane.xlu0 %3289 }
0x1308   :  { %v3300_v8 = vmul.f32 0.015625, %v3290_v35 }
0x130a   :  { %v3304_v16 = vadd.f32 1e-05, %v3300_v8 }
0x130b   :  { %v3293_v20 = vpop.xlane.xlu0 %3292 }
0x130c   :  { %4029 = vrsqrt.f32 %v3304_v16  ;;  %v3301_v53 = vmul.f32 0.015625, %v3293_v20 }
0x130e   :  { %v3305_v22 = vadd.f32 1e-05, %v3301_v53 }
0x130f   :  { %v3296_v58 = vpop.xlane.xlu0 %3295 }
0x1310   :  { %4031 = vrsqrt.f32 %v3305_v22  ;;  %v3302_v11 = vmul.f32 0.015625, %v3296_v58 }
0x1312   :  { %v3306_v24 = vadd.f32 1e-05, %v3302_v11 }
0x1313   :  { %v3299_v12 = vpop.xlane.xlu0 %3298 }
0x1314   :  { %4033 = vrsqrt.f32 %v3306_v24  ;;  %v3303_v25 = vmul.f32 0.015625, %v3299_v12 }
0x1316   :  { %v3307_v54 = vadd.f32 1e-05, %v3303_v25 }
0x1318   :  { %4035 = vrsqrt.f32 %v3307_v54 }
0x1319   :  { %v4030_v23 = vpop.eup %4029 }
0x131a   :  { %v3312_v14 = vmul.f32 %v4030_v23, %v3280_v37 }
0x131c   :  { %v3322_v13 = vmul.f32 %v3468_v26, %v3312_v14 }
0x131d   :  { %v4032_v19 = vpop.eup %4031 }
0x131e   :  { %v3332_v15 = vadd.f32 %v3469_v27, %v3322_v13  ;;  %v3313_v21 = vmul.f32 %v4032_v19, %v3281_v49 }
0x1320   :  { %3336 = vst.msk [vmem:[%s5099_s21] sm:$0xff] %vm199_vm0, %v3332_v15  ;;  %v3323_v29 = vmul.f32 %v3468_v26, %v3313_v21 }
0x1321   :  { %v4034_v40 = vpop.eup %4033 }
0x1322   :  { %v3333_v18 = vadd.f32 %v3469_v27, %v3323_v29  ;;  %v3314_v42 = vmul.f32 %v4034_v40, %v3282_v62 }
0x1324   :  { %3337 = vst.msk [vmem:[%s5099_s21 + $0x8] sm:$0xff] %vm199_vm0, %v3333_v18  ;;  %v3324_v52 = vmul.f32 %v3468_v26, %v3314_v42 }
0x1325   :  { %v4036_v1 = vpop.eup %4035 }
0x1326   :  { %v3334_v57 = vadd.f32 %v3469_v27, %v3324_v52  ;;  %v3315_v31 = vmul.f32 %v4036_v1, %v3283_v0 }
0x1328   :  { %3338 = vst.msk [vmem:[%s5099_s21 + $0x10] sm:$0xff] %vm199_vm0, %v3334_v57  ;;  %v3325_v17 = vmul.f32 %v3468_v26, %v3315_v31 }
0x132a   :  { %v3335_v5 = vadd.f32 %v3469_v27, %v3325_v17 }
0x132c   :  { %3339 = vst.msk [vmem:[%s5099_s21 + $0x18] sm:$0x3f] %vm2932_vm5, %v3335_v5 }

// kernel: forward.7
= control target key start
LH: loop header
LB: loop body
LE: loop exit
PB: predicated region body
PF: predicated region fallthrough
CT: control target
= control target key end

     0   :  { %vm201_vm0 = vcmask 523264   ;;  %v4708_v3 = vmov 0   ;;  %vm743_vm1 = vcmask 64512   ;;  %vm857_vm2 = vcmask 244736   ;;  %s6084_s0 = inlined_call_operand.vmem [shape: f32[48,64], index: 0, kind: input, shape index: {}]   ;;  %s6085_s1 = inlined_call_operand.vmem [shape: f32[48,64], index: 1, kind: input, shape index: {}]   ;;  %s6086_s2 = inlined_call_operand.vmem [shape: f32[30,64], index: 2, kind: input, shape index: {}]   ;;  %s6087_s3 = inlined_call_operand.vmem [shape: f32[30,64], index: 3, kind: input, shape index: {}]   ;;  %s6088_s7 = inlined_call_operand.vmem [shape: f32[64,64], index: 7, kind: input, shape index: {}]   ;;  %s6089_s5 = inlined_call_operand.vmem [shape: f32[64,64], index: 5, kind: input, shape index: {}]   ;;  %s6090_s6 = inlined_call_operand.vmem [shape: f32[64,1], index: 6, kind: input, shape index: {}]   ;;  %s6091_s8 = inlined_call_operand.vmem [shape: f32[64,1], index: 8, kind: input, shape index: {}]   ;;  %s6092_s4 = inlined_call_operand.vmem [shape: f32[48,30], index: 4, kind: input, shape index: {}]   ;;  %s6093_s9 = inlined_call_operand.vmem [shape: f32[64,64], index: 9, kind: input, shape index: {}]   ;;  %s6094_s10 = inlined_call_operand.vmem [shape: f32[64,1], index: 10, kind: input, shape index: {}]   ;;  %s6095_s11 = inlined_call_operand.vmem [shape: f32[64,64], index: 11, kind: input, shape index: {}]   ;;  %s6096_s12 = inlined_call_operand.vmem [shape: f32[1,64], index: 12, kind: input, shape index: {}]   ;;  %s6097_s15 = inlined_call_operand.vmem [shape: f32[64,256], index: 15, kind: input, shape index: {}]   ;;  %s6098_s17 = inlined_call_operand.vmem [shape: f32[256,64], index: 17, kind: input, shape index: {}]   ;;  %s6099_s13 = inlined_call_operand.vmem [shape: f32[1,64], index: 13, kind: input, shape index: {}]   ;;  %s6100_s14 = inlined_call_operand.vmem [shape: f32[1,64], index: 14, kind: input, shape index: {}]   ;;  %s6101_s16 = inlined_call_operand.vmem [shape: f32[1,256], index: 16, kind: input, shape index: {}]   ;;  %s6102_s18 = inlined_call_operand.vmem [shape: f32[1,64], index: 18, kind: input, shape index: {}]   ;;  %s6103_s19 = inlined_call_operand.vmem [shape: f32[1,64], index: 19, kind: input, shape index: {}]   ;;  %s6104_s20 = inlined_call_operand.vmem [shape: f32[1,64], index: 20, kind: input, shape index: {}]   ;;  %s6105_s21 = inlined_call_operand.vmem [shape: f32[48,64], index: 21, kind: output, shape index: {}]  }
   0x1   :  { %6112 = sst [smem:[#allocation2_spill]] %s6084_s0  ;;  %4478 = vset.pattern.permute.xlu0 %v4708_v3  ;;  %v112_v25 = vld [vmem:[%s6090_s6] sm:$0xff]  ;;  %vm4710_vm3 = vmmov 0  }
   0x2   :  { %6113 = sst [smem:[#allocation3_spill]] %s6085_s1  ;;  %163 = vperm.xlu0 %4478, %v112_v25   ;;  %v128_v30 = vld [vmem:[%s6091_s8] sm:$0xff] }
   0x3   :  { %6114 = sst [smem:[#allocation4_spill]] %s6086_s2 }
   0x4   :  { %6115 = sst [smem:[#allocation5_spill]] %s6087_s3 }
   0x5   :  { %6116 = sst [smem:[#allocation6_spill]] %s6088_s7 }
   0x6   :  { %6117 = sst [smem:[#allocation7_spill]] %s6089_s5  ;;  %351 = vperm.xlu0 %4478, %v128_v30   ;;  %v137_v30 = vld [vmem:[%s6093_s9 + $0x8] sm:$0xff] }
   0x7   :  { %6118 = sst [smem:[#allocation8_spill]] %s6100_s14 }
   0x8   :  { %s6119_s26 = sld [smem:[#allocation2_spill]] }
   0x9   :  { %s6120_s14 = sld [smem:[#allocation3_spill]] }
   0xa   :  { %s6121_s22 = sld [smem:[#allocation4_spill]] }
   0xb   :  { %s6122_s24 = sld [smem:[#allocation5_spill]] }
   0xc   :  { %s6123_s0 = sld [smem:[#allocation6_spill]] }
   0xd   :  { %s6124_s25 = sld [smem:[#allocation7_spill]] }
   0xe   :  { %v73_v0 = vld [vmem:[%s6119_s26 + $0x28] sm:$0xff]  ;;  %v72_v2 = vld [vmem:[%s6119_s26 + $0x20] sm:$0xff]  ;;  %v71_v10 = vld [vmem:[%s6119_s26 + $0x18] sm:$0xff] }
   0xf   :  { %v83_v1 = vld [vmem:[%s6120_s14 + $0x28] sm:$0xff]  ;;  %v82_v5 = vld [vmem:[%s6120_s14 + $0x20] sm:$0xff]  ;;  %v81_v11 = vld [vmem:[%s6120_s14 + $0x18] sm:$0xff] }
  0x10   :  { %v89_v4 = vadd.f32 %v83_v1, %v73_v0  ;;  %v77_v6 = vld [vmem:[%s6121_s22 + $0x18] sm:$0x3f]  ;;  %v88_v8 = vadd.f32 %v82_v5, %v72_v2  ;;  %v76_v12 = vld [vmem:[%s6121_s22 + $0x10] sm:$0xff]  ;;  %v75_v15 = vld [vmem:[%s6121_s22 + $0x8] sm:$0xff]  ;;  %v87_v17 = vadd.f32 %v81_v11, %v71_v10 }
  0x11   :  { %v93_v7 = vld [vmem:[%s6122_s24 + $0x18] sm:$0x3f]  ;;  %v92_v13 = vld [vmem:[%s6122_s24 + $0x10] sm:$0xff]  ;;  %v91_v16 = vld [vmem:[%s6122_s24 + $0x8] sm:$0xff] }
  0x12   :  { %v97_v9 = vadd.f32 %v93_v7, %v77_v6  ;;  %4178 = vmatprep.subr.msk.mxu0 %vm201_vm0, %v89_v4  ;;  %v96_v14 = vadd.f32 %v92_v13, %v76_v12  ;;  %v70_v18 = vld [vmem:[%s6119_s26 + $0x10] sm:$0xff]  ;;  %v95_v20 = vadd.f32 %v91_v16, %v75_v15  ;;  %v120_v21 = vld [vmem:[%s6123_s0] sm:$0xff]  ;;  %v69_v27 = vld [vmem:[%s6119_s26 + $0x8] sm:$0xff] }
  0x13   :  { %4179 = vmatpush3.xpose.msk.msra.mxu0 %vm201_vm0, %v89_v4  ;;  %v80_v19 = vld [vmem:[%s6120_s14 + $0x10] sm:$0xff]  ;;  %v74_v22 = vld [vmem:[%s6121_s22] sm:$0xff]  ;;  %4210 = vmatprep.mubr.msk.f32.mxu1 %vm201_vm0, %v120_v21  ;;  %v79_v28 = vld [vmem:[%s6120_s14 + $0x8] sm:$0xff] }
  0x14   :  { %4202 = vmatprep.subr.msk.mxu1 %vm201_vm0, %v97_v9  ;;  %4180 = vmatprep.subr.msk.mxu0 %vm201_vm0, %v88_v8  ;;  %v90_v23 = vld [vmem:[%s6122_s24] sm:$0xff]  ;;  %v86_v26 = vadd.f32 %v80_v19, %v70_v18  ;;  %v85_v31 = vadd.f32 %v79_v28, %v69_v27  ;;  %v121_v35 = vld [vmem:[%s6123_s0 + $0x8] sm:$0xff]  ;;  %v106_v37 = vld [vmem:[%s6124_s25 + $0x10] sm:$0xff] }
  0x15   :  { %4203 = vmatpush3.xpose.msk.msra.mxu1 %vm201_vm0, %v97_v9  ;;  %v104_v24 = vld [vmem:[%s6124_s25] sm:$0xff]  ;;  %v94_v29 = vadd.f32 %v90_v23, %v74_v22  ;;  %v105_v36 = vld [vmem:[%s6124_s25 + $0x8] sm:$0xff]  ;;  %v107_v38 = vld [vmem:[%s6124_s25 + $0x18] sm:$0xff] }
  0x16   :  { %4204 = vmatprep.subr.msk.mxu1 %vm201_vm0, %v96_v14  ;;  %4190 = vmatprep.mubr.msk.f32.mxu0 %vm201_vm0, %v104_v24  ;;  %v68_v32 = vld [vmem:[%s6119_s26] sm:$0xff]  ;;  %v109_v40 = vld [vmem:[%s6124_s25 + $0x28] sm:$0xff]  ;;  %v110_v41 = vld [vmem:[%s6124_s25 + $0x30] sm:$0xff] }
  0x17   :  { %4181 = vmatpush3.xpose.msk.msra.mxu0 %vm201_vm0, %v88_v8  ;;  %v78_v33 = vld [vmem:[%s6120_s14] sm:$0xff]  ;;  %v111_v42 = vld [vmem:[%s6124_s25 + $0x38] sm:$0xff]  ;;  %v122_v57 = vld [vmem:[%s6123_s0 + $0x10] sm:$0xff] }
  0x18   :  { %4182 = vmatprep.subr.msk.mxu0 %vm201_vm0, %v87_v17  ;;  %v84_v34 = vadd.f32 %v78_v33, %v68_v32  ;;  %v108_v39 = vld [vmem:[%s6124_s25 + $0x20] sm:$0xff]  ;;  %v123_v58 = vld [vmem:[%s6123_s0 + $0x18] sm:$0xff]  ;;  %v4990_v5 = vld [vmem:[%s6092_s4 + $0x28] sm:$0xff]  ;;  %s6125_s25 = sld [smem:[#allocation8_spill]] }
  0x19   :  { %4205 = vmatpush3.xpose.msk.msra.mxu1 %vm201_vm0, %v96_v14  ;;  %v4995_v7 = vld [vmem:[%s6092_s4 + $0x20] sm:$0xff]  ;;  %v5001_v9 = vld [vmem:[%s6092_s4 + $0x18] sm:$0xff]  ;;  %v5017_v18 = vld [vmem:[%s6092_s4 + $0x8] sm:$0xff] }
  0x1a   :  { %4206 = vmatprep.subr.msk.mxu1 %vm201_vm0, %v95_v20  ;;  %v5024_v21 = vld [vmem:[%s6092_s4] sm:$0xff]  ;;  %v125_v23 = vld [vmem:[%s6123_s0 + $0x28] sm:$0xff]  ;;  %v127_v27 = vld [vmem:[%s6123_s0 + $0x38] sm:$0xff] }
  0x1b   :  { %4183 = vmatpush3.xpose.msk.msra.mxu0 %vm201_vm0, %v87_v17 }
  0x1c   :  { %4184 = vmatprep.subr.msk.mxu0 %vm201_vm0, %v86_v26 }
  0x1d   :  { %4207 = vmatpush3.xpose.msk.msra.mxu1 %vm201_vm0, %v95_v20 }
  0x1e   :  { %4208 = vmatprep.subr.msk.mxu1 %vm201_vm0, %v94_v29 }
  0x1f   :  { %4185 = vmatpush3.xpose.msk.msra.mxu0 %vm201_vm0, %v86_v26  ;;  %v126_v26 = vld [vmem:[%s6123_s0 + $0x30] sm:$0xff] }
  0x20   :  { %4186 = vmatprep.subr.msk.mxu0 %vm201_vm0, %v85_v31 }
  0x21   :  { %4209 = vmatpush3.xpose.msk.msra.mxu1 %vm201_vm0, %v94_v29  ;;  %v136_v29 = vld [vmem:[%s6093_s9] sm:$0xff] }
  0x22   :  { %4222 = vmatprep.subr.msk.mxu1 %vm201_vm0, %v77_v6 }
  0x23   :  { %4187 = vmatpush3.xpose.msk.msra.mxu0 %vm201_vm0, %v85_v31 }
  0x24   :  { %4211 = vmatmul.mubr.msk.f32.vlgmr.msra.gmra.mxu1 %vm201_vm0, %v121_v35  ;;  %4188 = vmatprep.subr.msk.mxu0 %vm201_vm0, %v84_v34 }
  0x25   :  { %4223 = vmatpush3.xpose.msk.msra.mxu1 %vm201_vm0, %v77_v6  ;;  %4213 = vmatprep.mubr.msk.f32.mxu1 %vm201_vm0, %v122_v57 }
  0x26   :  { %4224 = vmatprep.subr.msk.mxu1 %vm201_vm0, %v76_v12 }
  0x27   :  { %4189 = vmatpush3.xpose.msk.msra.mxu0 %vm201_vm0, %v84_v34 }
  0x28   :  { %4214 = vmatmul.mubr.msk.f32.gmra.mxu1 %vm201_vm0, %v123_v58 }
  0x29   :  { %4225 = vmatpush3.xpose.msk.msra.mxu1 %vm201_vm0, %v76_v12 }
  0x2a   :  { %4226 = vmatprep.subr.msk.mxu1 %vm201_vm0, %v75_v15  ;;  %4191 = vmatmul.mubr.msk.f32.vlgmr.msra.gmra.mxu0 %vm201_vm0, %v105_v36 }
  0x2b   :  { %4193 = vmatprep.mubr.msk.f32.mxu0 %vm201_vm0, %v106_v37 }
  0x2d   :  { %4227 = vmatpush3.xpose.msk.msra.mxu1 %vm201_vm0, %v75_v15  ;;  %v5010_v15 = vld [vmem:[%s6092_s4 + $0x10] sm:$0xff] }
  0x2e   :  { %4228 = vmatprep.subr.msk.mxu1 %vm201_vm0, %v74_v22  ;;  %4194 = vmatmul.mubr.msk.f32.gmra.mxu0 %vm201_vm0, %v107_v38 }
  0x2f   :  { %4196 = vmatprep.mubr.msk.f32.mxu0 %vm201_vm0, %v108_v39 }
  0x31   :  { %4229 = vmatpush3.xpose.msk.msra.mxu1 %vm201_vm0, %v74_v22  ;;  %v124_v22 = vld [vmem:[%s6123_s0 + $0x20] sm:$0xff] }
  0x32   :  { %4197 = vmatmul.mubr.msk.f32.gmra.mxu0 %vm201_vm0, %v109_v40  ;;  %4216 = vmatprep.mubr.msk.f32.mxu1 %vm201_vm0, %v124_v22 }
  0x33   :  { %4199 = vmatprep.mubr.msk.f32.mxu0 %vm201_vm0, %v110_v41  ;;  %4217 = vmatmul.mubr.msk.f32.gmra.mxu1 %vm201_vm0, %v125_v23 }
  0x34   :  { %4219 = vmatprep.mubr.msk.f32.mxu1 %vm201_vm0, %v126_v26 }
  0x36   :  { %4200 = vmatmul.mubr.msk.f32.gmra.mxu0 %vm201_vm0, %v111_v42 }
  0x37   :  { %4220 = vmatmul.mubr.msk.f32.gmra.mxu1 %vm201_vm0, %v127_v27 }
  0x38   :  { %4230 = vmatprep.mubr.msk.f32.mxu1 %vm201_vm0, %v136_v29 }
  0x3b   :  { %4231 = vmatmul.mubr.msk.f32.vlgmr.msra.gmra.mxu1 %vm201_vm0, %v137_v30 }
  0x7d   :  { %v164_v43 = vpop.permute.xlu0 %163 }
  0x81   :  { %v352_v45 = vpop.permute.xlu0 %351 }
  0xe4   :  { %v4956_v44 = vpop.f32.mrf.mxu1 }
  0xe6   :  { %v491_v46 = vpop.f32.mrf.mxu1 }
  0xe7   :  { %v492_v47 = vadd.f32 %v491_v46, %v352_v45 }
  0xe9   :  { %4242 = vmatprep.subr.mxu0 %v492_v47 }
  0xea   :  { %4243 = vmatpush3.msra.mxu0 %v492_v47  ;;  %v4958_v48 = vpop.f32.mrf.mxu0 }
  0xec   :  { %v310_v49 = vpop.f32.mrf.mxu0 }
  0xed   :  { %v311_v50 = vadd.f32 %v310_v49, %v164_v43 }
  0xee   :  { %v4975_v59 = vpop.f32.mrf.mxu0 }
  0xef   :  { %711 = vxpose.xlu1.b32.start.end [1/1] (short) (narrow) %v311_v50, 48 }
  0xf0   :  { %v4977_v60 = vpop.f32.mrf.mxu0 }
  0xf2   :  { %v4979_v61 = vpop.f32.mrf.mxu0 }
  0xf4   :  { %v4981_v62 = vpop.f32.mrf.mxu0 }
  0xf6   :  { %v4983_v63 = vpop.f32.mrf.mxu0 }
  0xf8   :  { %v4985_v0 = vpop.f32.mrf.mxu0 }
 0x10d   :  { %4479 = vset.pattern.permute.xlu1 %v4708_v3 }
 0x16b   :  { %v727_v51 = vpop.trf.xlu1 }
 0x16c   :  { %4244 = vmatprep.mubr.msk.f32.mxu0 %vm743_vm1, %v727_v51 }
 0x16f   :  { %v728_v52 = vpop.trf.xlu1 }
 0x170   :  { %4245 = vmatmul.mubr.msk.f32.vlgmr.msra.gmra.mxu0 %vm743_vm1, %v728_v52 }
 0x173   :  { %v729_v53 = vpop.trf.xlu1 }
 0x174   :  { %4247 = vmatprep.mubr.msk.f32.mxu0 %vm743_vm1, %v729_v53 }
 0x177   :  { %v730_v54 = vpop.trf.xlu1 }
 0x178   :  { %4248 = vmatmul.mubr.msk.f32.gmra.mxu0 %vm743_vm1, %v730_v54 }
 0x17b   :  { %v731_v55 = vpop.trf.xlu1 }
 0x17c   :  { %4250 = vmatprep.mubr.msk.f32.mxu0 %vm743_vm1, %v731_v55 }
 0x17f   :  { %v732_v56 = vpop.trf.xlu1 }
 0x180   :  { %4251 = vmatmul.mubr.msk.f32.gmra.mxu0 %vm743_vm1, %v732_v56 }
 0x230   :  { %v4246_v1 = vpop.f32.mrf.mxu0 }
 0x231   :  { %v834_v19 = vadd.f32 %v4246_v1, %v5017_v18 }
 0x232   :  { %v828_v2 = vpop.f32.mrf.mxu0 }
 0x233   :  { %v829_v24 = vadd.f32 %v828_v2, %v5024_v21  ;;  %v861_v25 = vsel %vm857_vm2, %v834_v19, -inf }
 0x235   :  { %v858_v28 = vsel %vm857_vm2, %v829_v24, -inf }
 0x238   :  { %v4249_v3 = vpop.f32.mrf.mxu0 }
 0x239   :  { %v844_v13 = vadd.f32 %v4249_v3, %v5001_v9 }
 0x23a   :  { %v838_v4 = vpop.f32.mrf.mxu0 }
 0x23b   :  { %v839_v16 = vadd.f32 %v838_v4, %v5010_v15  ;;  %v867_v17 = vsel %vm857_vm2, %v844_v13, -inf }
 0x23d   :  { %v864_v20 = vsel %vm857_vm2, %v839_v16, -inf }
 0x240   :  { %v4252_v6 = vpop.f32.mrf.mxu0 }
 0x241   :  { %v854_v8 = vadd.f32 %v4252_v6, %v4990_v5  ;;  %v144_v6 = vld [vmem:[%s6094_s10] sm:$0xff] }
 0x242   :  { %v848_v10 = vpop.f32.mrf.mxu0 }
 0x243   :  { %v849_v11 = vadd.f32 %v848_v10, %v4995_v7  ;;  %v873_v12 = vsel %vm857_vm2, %v854_v8, -inf  ;;  %v4709_v10 = vmov 0.0  }
 0x244   :  { %874 = vmax.xlane.f32.xlu1 %v873_v12  ;;  %4253 = vmatprep.subr.mxu1 %v4709_v10  ;;  %v138_v12 = vld [vmem:[%s6093_s9 + $0x10] sm:$0xff] }
 0x245   :  { %v870_v14 = vsel %vm857_vm2, %v849_v11, -inf  ;;  %4279 = vmatprep.subr.mxu0 %v4709_v10  ;;  %4233 = vmatprep.mubr.msk.f32.mxu1 %vm201_vm0, %v138_v12 }
 0x246   :  { %871 = vmax.xlane.f32.xlu0 %v870_v14  ;;  %v140_v14 = vld [vmem:[%s6093_s9 + $0x20] sm:$0xff]  ;;  %4291 = vmatprep.mubr.msk.f32.mxu0 %vm4710_vm3, %v4709_v10 }
 0x24a   :  { %868 = vmax.xlane.f32.xlu0 %v867_v17  ;;  %v142_v17 = vld [vmem:[%s6093_s9 + $0x30] sm:$0xff] }
 0x24e   :  { %865 = vmax.xlane.f32.xlu0 %v864_v20 }
 0x252   :  { %862 = vmax.xlane.f32.xlu0 %v861_v25  ;;  %v5110_v25 = vpop.f32.mrf.mxu1 }
 0x254   :  { %v5112_v26 = vpop.f32.mrf.mxu1 }
 0x256   :  { %859 = vmax.xlane.f32.xlu0 %v858_v28  ;;  %v5115_v30 = vpop.f32.mrf.mxu1 }
 0x2cd   :  { %v875_v31 = vpop.xlane.xlu1 %874 }
 0x2ce   :  { %v881_v33 = vsub.f32 %v854_v8, %v875_v31  ;;  %v113_v8 = vld [vmem:[%s6090_s6 + $0x8] sm:$0xff] }
 0x2cf   :  { %v872_v32 = vpop.xlane.xlu0 %871 }
 0x2d0   :  { %v892_v36 = vmul.f32 1.442695, %v881_v33  ;;  %v880_v37 = vsub.f32 %v849_v11, %v872_v32  ;;  %v129_v11 = vld [vmem:[%s6091_s8 + $0x8] sm:$0xff] }
 0x2d2   :  { %v890_v41 = vmul.f32 1.442695, %v880_v37 }
 0x2d3   :  { %v869_v34 = vpop.xlane.xlu0 %868 }
 0x2d4   :  { %v879_v35 = vsub.f32 %v844_v13, %v869_v34  ;;  %v139_v13 = vld [vmem:[%s6093_s9 + $0x18] sm:$0xff]  ;;  %v5117_v34 = vpop.f32.mrf.mxu1 }
 0x2d5   :  { %4234 = vmatmul.mubr.msk.f32.gmra.mxu1 %vm201_vm0, %v139_v13 }
 0x2d6   :  { %v888_v38 = vmul.f32 1.442695, %v879_v35  ;;  %4236 = vmatprep.mubr.msk.f32.mxu1 %vm201_vm0, %v140_v14 }
 0x2d7   :  { %v866_v39 = vpop.xlane.xlu0 %865 }
 0x2d8   :  { %4480 = vpow2.f32 %v888_v38  ;;  %v878_v40 = vsub.f32 %v839_v16, %v866_v39  ;;  %v141_v16 = vld [vmem:[%s6093_s9 + $0x28] sm:$0xff]  ;;  %v5121_v38 = vpop.f32.mrf.mxu1 }
 0x2d9   :  { %4482 = vpow2.f32 %v892_v36  ;;  %4237 = vmatmul.mubr.msk.f32.gmra.mxu1 %vm201_vm0, %v141_v16 }
 0x2da   :  { %v886_v42 = vmul.f32 1.442695, %v878_v40  ;;  %4239 = vmatprep.mubr.msk.f32.mxu1 %vm201_vm0, %v142_v17  ;;  %v5126_v40 = vpop.f32.mrf.mxu1 }
 0x2db   :  { %v863_v43 = vpop.xlane.xlu0 %862 }
 0x2dc   :  { %4484 = vpow2.f32 %v886_v42  ;;  %v877_v45 = vsub.f32 %v834_v19, %v863_v43  ;;  %v143_v19 = vld [vmem:[%s6093_s9 + $0x38] sm:$0xff]  ;;  %v5131_v43 = vpop.f32.mrf.mxu1 }
 0x2dd   :  { %4486 = vpow2.f32 %v890_v41  ;;  %4240 = vmatmul.mubr.msk.f32.gmra.mxu1 %vm201_vm0, %v143_v19 }
 0x2de   :  { %v884_v46 = vmul.f32 1.442695, %v877_v45  ;;  %4265 = vmatprep.mubr.msk.f32.mxu1 %vm4710_vm3, %v4709_v10 }
 0x2df   :  { %v860_v47 = vpop.xlane.xlu0 %859 }
 0x2e0   :  { %4488 = vpow2.f32 %v884_v46  ;;  %v876_v49 = vsub.f32 %v829_v24, %v860_v47  ;;  %v672_v47 = vpop.f32.mrf.mxu1 }
 0x2e2   :  { %v882_v50 = vmul.f32 1.442695, %v876_v49 }
 0x2e4   :  { %4490 = vpow2.f32 %v882_v50 }
 0x2e5   :  { %v5053_v51 = vpop.eup %4480 }
 0x2e6   :  { %v903_v52 = vsel %vm857_vm2, %v5053_v51, 0.0  ;;  %v4483_v53 = vpop.eup %4482 }
 0x2e7   :  { %904 = vadd.xlane.f32.xlu0 %v903_v52  ;;  %v909_v55 = vsel %vm857_vm2, %v4483_v53, 0.0 }
 0x2e9   :  { %v5057_v54 = vpop.eup %4484 }
 0x2ea   :  { %v900_v56 = vsel %vm857_vm2, %v5057_v54, 0.0  ;;  %v4487_v57 = vpop.eup %4486 }
 0x2eb   :  { %910 = vadd.xlane.f32.xlu0 %v909_v55  ;;  %901 = vadd.xlane.f32.xlu1 %v900_v56  ;;  %v906_v1 = vsel %vm857_vm2, %v4487_v57, 0.0 }
 0x2ed   :  { %v5062_v58 = vpop.eup %4488 }
 0x2ee   :  { %v897_v2 = vsel %vm857_vm2, %v5062_v58, 0.0 }
 0x2ef   :  { %907 = vadd.xlane.f32.xlu0 %v906_v1  ;;  %898 = vadd.xlane.f32.xlu1 %v897_v2 }
 0x2f1   :  { %v5067_v3 = vpop.eup %4490 }
 0x2f2   :  { %v894_v4 = vsel %vm857_vm2, %v5067_v3, 0.0 }
 0x2f3   :  { %895 = vadd.xlane.f32.xlu1 %v894_v4 }
 0x304   :  { %532 = vperm.xlu1 %4479, %v144_v6  }
 0x305   :  { %168 = vperm.xlu0 %4478, %v113_v8  }
 0x309   :  { %356 = vperm.xlu0 %4478, %v129_v11  }
 0x370   :  { %v905_v20 = vpop.xlane.xlu0 %904 }
 0x374   :  { %v911_v22 = vpop.xlane.xlu0 %910  ;;  %v902_v24 = vpop.xlane.xlu1 %901 }
 0x375   :  { %4492 = vrcp.f32 %v911_v22 }
 0x378   :  { %v908_v23 = vpop.xlane.xlu0 %907  ;;  %v899_v27 = vpop.xlane.xlu1 %898 }
 0x379   :  { %4494 = vrcp.f32 %v908_v23 }
 0x37a   :  { %4496 = vrcp.f32 %v905_v20 }
 0x37b   :  { %4498 = vrcp.f32 %v902_v24 }
 0x37c   :  { %4500 = vrcp.f32 %v899_v27  ;;  %v896_v33 = vpop.xlane.xlu1 %895  ;;  %v115_v27 = vld [vmem:[%s6090_s6 + $0x18] sm:$0xff] }
 0x37d   :  { %4502 = vrcp.f32 %v896_v33 }
 0x380   :  { %v169_v28 = vpop.permute.xlu0 %168  ;;  %v533_v50 = vpop.permute.xlu1 %532 }
 0x381   :  { %v316_v29 = vadd.f32 %v4958_v48, %v169_v28 }
 0x382   :  { %v4493_v31 = vpop.eup %4492 }
 0x383   :  { %1015 = vxpose.xlu1.b32.start.end [1/1] (short) (narrow) %v316_v29, 48  ;;  %v923_v32 = vmul.f32 %v4493_v31, %v4483_v53  ;;  %v673_v53 = vadd.f32 %v672_v47, %v533_v50  ;;  %v130_v31 = vld [vmem:[%s6091_s8 + $0x10] sm:$0xff] }
 0x384   :  { %v357_v49 = vpop.permute.xlu0 %356 }
 0x385   :  { %4254 = vmatpush3.xpose.msk.msra.mxu1 %vm857_vm2, %v923_v32  ;;  %v497_v52 = vadd.f32 %v4956_v44, %v357_v49 }
 0x386   :  { %v4495_v35 = vpop.eup %4494  ;;  %4255 = vmatprep.subr.mxu1 %v4709_v10 }
 0x387   :  { %v922_v36 = vmul.f32 %v4495_v35, %v4487_v57  ;;  %v4497_v37 = vpop.eup %4496  ;;  %v131_v35 = vld [vmem:[%s6091_s8 + $0x18] sm:$0xff] }
 0x388   :  { %v921_v48 = vmul.f32 %v4497_v37, %v5053_v51  ;;  %v4499_v39 = vpop.eup %4498 }
 0x389   :  { %4256 = vmatpush3.xpose.msk.msra.mxu1 %vm857_vm2, %v922_v36  ;;  %v920_v41 = vmul.f32 %v4499_v39, %v5057_v54  ;;  %v4501_v42 = vpop.eup %4500 }
 0x38a   :  { %4257 = vmatprep.subr.mxu1 %v4709_v10  ;;  %v919_v45 = vmul.f32 %v4501_v42, %v5062_v58  ;;  %v4503_v46 = vpop.eup %4502  ;;  %v114_v42 = vld [vmem:[%s6090_s6 + $0x10] sm:$0xff] }
 0x38b   :  { %v918_v51 = vmul.f32 %v4503_v46, %v5067_v3 }
 0x38d   :  { %4258 = vmatpush3.xpose.msk.msra.mxu1 %vm857_vm2, %v921_v48 }
 0x38e   :  { %4259 = vmatprep.subr.mxu1 %v4709_v10 }
 0x391   :  { %4260 = vmatpush3.xpose.msk.msra.mxu1 %vm857_vm2, %v920_v41 }
 0x392   :  { %4261 = vmatprep.subr.mxu1 %v4709_v10 }
 0x395   :  { %4262 = vmatpush3.xpose.msk.msra.mxu1 %vm857_vm2, %v919_v45  ;;  %v5148_v1 = vpop.f32.mrf.mxu1 }
 0x396   :  { %4263 = vmatprep.subr.mxu1 %v4709_v10 }
 0x397   :  { %v5150_v2 = vpop.f32.mrf.mxu1 }
 0x399   :  { %4264 = vmatpush3.xpose.msk.msra.mxu1 %vm857_vm2, %v918_v51  ;;  %v5152_v3 = vpop.f32.mrf.mxu1 }
 0x39a   :  { %4268 = vmatprep.subr.mxu1 %v497_v52 }
 0x39b   :  { %v5154_v4 = vpop.f32.mrf.mxu1 }
 0x39c   :  { %4266 = vmatmul.mubr.msk.f32.vlgmr.msra.gmra.mxu1 %vm857_vm2, %v673_v53 }
 0x39d   :  { %4269 = vmatpush3.msra.mxu1 %v497_v52  ;;  %v5156_v6 = vpop.f32.mrf.mxu1 }
 0x39f   :  { %v5158_v8 = vpop.f32.mrf.mxu1 }
 0x3ff   :  { %v1031_v54 = vpop.trf.xlu1 }
 0x400   :  { %4270 = vmatprep.mubr.msk.f32.mxu1 %vm743_vm1, %v1031_v54 }
 0x403   :  { %v1032_v55 = vpop.trf.xlu1 }
 0x404   :  { %4271 = vmatmul.mubr.msk.f32.vlgmr.msra.gmra.mxu1 %vm743_vm1, %v1032_v55 }
 0x407   :  { %v1033_v56 = vpop.trf.xlu1 }
 0x408   :  { %4273 = vmatprep.mubr.msk.f32.mxu1 %vm743_vm1, %v1033_v56 }
 0x40b   :  { %v1034_v57 = vpop.trf.xlu1 }
 0x40c   :  { %4274 = vmatmul.mubr.msk.f32.gmra.mxu1 %vm743_vm1, %v1034_v57 }
 0x40f   :  { %v1035_v44 = vpop.trf.xlu1 }
 0x410   :  { %4276 = vmatprep.mubr.msk.f32.mxu1 %vm743_vm1, %v1035_v44 }
 0x413   :  { %v1036_v58 = vpop.trf.xlu1 }
 0x414   :  { %4277 = vmatmul.mubr.msk.f32.gmra.mxu1 %vm743_vm1, %v1036_v58 }
 0x45c   :  { %v5160_v11 = vpop.f32.mrf.mxu1 }
 0x45e   :  { %v4267_v12 = vpop.f32.mrf.mxu1 }
 0x4c4   :  { %v4272_v13 = vpop.f32.mrf.mxu1 }
 0x4c5   :  { %v1137_v14 = vadd.f32 %v4272_v13, %v5017_v18 }
 0x4c6   :  { %v1131_v17 = vpop.f32.mrf.mxu1 }
 0x4c7   :  { %v1163_v16 = vsel %vm857_vm2, %v1137_v14, -inf  ;;  %v1132_v48 = vadd.f32 %v1131_v17, %v5024_v21 }
 0x4c8   :  { %1164 = vmax.xlane.f32.xlu1 %v1163_v16 }
 0x4c9   :  { %v1160_v41 = vsel %vm857_vm2, %v1132_v48, -inf }
 0x4cc   :  { %v4275_v19 = vpop.f32.mrf.mxu1 }
 0x4cd   :  { %v1147_v32 = vadd.f32 %v4275_v19, %v5001_v9 }
 0x4ce   :  { %v1141_v20 = vpop.f32.mrf.mxu1 }
 0x4cf   :  { %v1142_v36 = vadd.f32 %v1141_v20, %v5010_v15  ;;  %v1169_v37 = vsel %vm857_vm2, %v1147_v32, -inf }
 0x4d1   :  { %v1166_v39 = vsel %vm857_vm2, %v1142_v36, -inf }
 0x4d4   :  { %v4278_v22 = vpop.f32.mrf.mxu1 }
 0x4d5   :  { %v1157_v23 = vadd.f32 %v4278_v22, %v4990_v5 }
 0x4d6   :  { %v1151_v24 = vpop.f32.mrf.mxu1 }
 0x4d7   :  { %v1152_v28 = vadd.f32 %v1151_v24, %v4995_v7  ;;  %v1175_v29 = vsel %vm857_vm2, %v1157_v23, -inf }
 0x4d8   :  { %1176 = vmax.xlane.f32.xlu0 %v1175_v29 }
 0x4d9   :  { %178 = vperm.xlu1 %4479, %v115_v27   ;;  %v1172_v33 = vsel %vm857_vm2, %v1152_v28, -inf }
 0x4dc   :  { %1173 = vmax.xlane.f32.xlu0 %v1172_v33 }
 0x4dd   :  { %361 = vperm.xlu1 %4479, %v130_v31  }
 0x4e0   :  { %1170 = vmax.xlane.f32.xlu0 %v1169_v37 }
 0x4e1   :  { %366 = vperm.xlu1 %4479, %v131_v35  }
 0x4e4   :  { %1167 = vmax.xlane.f32.xlu0 %v1166_v39 }
 0x4e8   :  { %1161 = vmax.xlane.f32.xlu0 %v1160_v41 }
 0x4fe   :  { %173 = vperm.xlu0 %4478, %v114_v42  }
 0x551   :  { %v1165_v45 = vpop.xlane.xlu1 %1164 }
 0x552   :  { %v1179_v13 = vsub.f32 %v1137_v14, %v1165_v45 }
 0x554   :  { %v1186_v17 = vmul.f32 1.442695, %v1179_v13 }
 0x555   :  { %v179_v46 = vpop.permute.xlu1 %178 }
 0x556   :  { %v326_v39 = vadd.f32 %v4975_v59, %v179_v46 }
 0x559   :  { %v362_v47 = vpop.permute.xlu1 %361 }
 0x55a   :  { %v502_v49 = vadd.f32 %v5112_v26, %v362_v47 }
 0x55c   :  { %4294 = vmatprep.subr.mxu1 %v502_v49 }
 0x55d   :  { %4295 = vmatpush3.msra.mxu1 %v502_v49  ;;  %v367_v41 = vpop.permute.xlu1 %366 }
 0x55e   :  { %4305 = vmatprep.subr.mxu1 %v4709_v10 }
 0x561   :  { %v1177_v50 = vpop.xlane.xlu0 %1176 }
 0x562   :  { %v1183_v52 = vsub.f32 %v1157_v23, %v1177_v50 }
 0x564   :  { %v1194_v55 = vmul.f32 1.442695, %v1183_v52 }
 0x565   :  { %v1174_v51 = vpop.xlane.xlu0 %1173 }
 0x566   :  { %v1182_v56 = vsub.f32 %v1152_v28, %v1174_v51 }
 0x568   :  { %v1192_v58 = vmul.f32 1.442695, %v1182_v56 }
 0x569   :  { %v1171_v53 = vpop.xlane.xlu0 %1170 }
 0x56a   :  { %v1181_v54 = vsub.f32 %v1147_v32, %v1171_v53 }
 0x56c   :  { %v1190_v57 = vmul.f32 1.442695, %v1181_v54 }
 0x56d   :  { %v1168_v44 = vpop.xlane.xlu0 %1167 }
 0x56e   :  { %4504 = vpow2.f32 %v1190_v57  ;;  %v1180_v12 = vsub.f32 %v1142_v36, %v1168_v44 }
 0x56f   :  { %4506 = vpow2.f32 %v1194_v55 }
 0x570   :  { %4508 = vpow2.f32 %v1192_v58  ;;  %v1188_v26 = vmul.f32 1.442695, %v1180_v12 }
 0x571   :  { %v1162_v16 = vpop.xlane.xlu0 %1161 }
 0x572   :  { %4510 = vpow2.f32 %v1188_v26  ;;  %v1178_v19 = vsub.f32 %v1132_v48, %v1162_v16  ;;  %v145_v48 = vld [vmem:[%s6094_s10 + $0x8] sm:$0xff] }
 0x573   :  { %4512 = vpow2.f32 %v1186_v17 }
 0x574   :  { %v1184_v24 = vmul.f32 1.442695, %v1178_v19 }
 0x576   :  { %4514 = vpow2.f32 %v1184_v24 }
 0x579   :  { %v174_v20 = vpop.permute.xlu0 %173 }
 0x57a   :  { %v321_v22 = vadd.f32 %v4977_v60, %v174_v20 }
 0x57b   :  { %v4505_v23 = vpop.eup %4504 }
 0x57c   :  { %1317 = vxpose.xlu1.b32.start.end [1/1] (short) (narrow) %v321_v22, 48  ;;  %v1205_v27 = vsel %vm857_vm2, %v4505_v23, 0.0  ;;  %v4507_v28 = vpop.eup %4506 }
 0x57d   :  { %1206 = vadd.xlane.f32.xlu0 %v1205_v27  ;;  %v1211_v14 = vsel %vm857_vm2, %v4507_v28, 0.0  ;;  %v4509_v29 = vpop.eup %4508 }
 0x57e   :  { %v1208_v31 = vsel %vm857_vm2, %v4509_v29, 0.0 }
 0x57f   :  { %v4511_v32 = vpop.eup %4510 }
 0x580   :  { %v1202_v33 = vsel %vm857_vm2, %v4511_v32, 0.0  ;;  %v4513_v60 = vpop.eup %4512 }
 0x581   :  { %1212 = vadd.xlane.f32.xlu0 %v1211_v14  ;;  %v1199_v35 = vsel %vm857_vm2, %v4513_v60, 0.0 }
 0x583   :  { %v4515_v36 = vpop.eup %4514 }
 0x584   :  { %v1196_v37 = vsel %vm857_vm2, %v4515_v36, 0.0 }
 0x585   :  { %1209 = vadd.xlane.f32.xlu0 %v1208_v31 }
 0x589   :  { %1203 = vadd.xlane.f32.xlu0 %v1202_v33 }
 0x58d   :  { %1200 = vadd.xlane.f32.xlu0 %v1199_v35 }
 0x591   :  { %1197 = vadd.xlane.f32.xlu0 %v1196_v37 }
 0x5a7   :  { %537 = vperm.xlu0 %4478, %v145_v48  }
 0x5c5   :  { %1619 = vxpose.xlu0.b32.start.end [1/1] (short) (narrow) %v326_v39, 48 }
 0x5f8   :  { %v1333_v42 = vpop.trf.xlu1 }
 0x5f9   :  { %4296 = vmatprep.mubr.msk.f32.mxu1 %vm743_vm1, %v1333_v42 }
 0x5fc   :  { %v1334_v45 = vpop.trf.xlu1 }
 0x5fd   :  { %4297 = vmatmul.mubr.msk.f32.vlgmr.msra.gmra.mxu1 %vm743_vm1, %v1334_v45 }
 0x600   :  { %v1335_v47 = vpop.trf.xlu1 }
 0x601   :  { %4299 = vmatprep.mubr.msk.f32.mxu1 %vm743_vm1, %v1335_v47 }
 0x604   :  { %v1336_v49 = vpop.trf.xlu1 }
 0x605   :  { %4300 = vmatmul.mubr.msk.f32.gmra.mxu1 %vm743_vm1, %v1336_v49 }
 0x606   :  { %v1207_v50 = vpop.xlane.xlu0 %1206 }
 0x608   :  { %v1337_v51 = vpop.trf.xlu1 }
 0x609   :  { %4302 = vmatprep.mubr.msk.f32.mxu1 %vm743_vm1, %v1337_v51 }
 0x60a   :  { %v1213_v52 = vpop.xlane.xlu0 %1212 }
 0x60b   :  { %4516 = vrcp.f32 %v1213_v52 }
 0x60c   :  { %v1338_v59 = vpop.trf.xlu1 }
 0x60d   :  { %4303 = vmatmul.mubr.msk.f32.gmra.mxu1 %vm743_vm1, %v1338_v59 }
 0x60e   :  { %v1210_v46 = vpop.xlane.xlu0 %1209  ;;  %4317 = vmatprep.mubr.msk.f32.mxu1 %vm4710_vm3, %v4709_v10 }
 0x60f   :  { %4518 = vrcp.f32 %v1210_v46 }
 0x610   :  { %4520 = vrcp.f32 %v1207_v50 }
 0x612   :  { %v1204_v53 = vpop.xlane.xlu0 %1203 }
 0x613   :  { %4522 = vrcp.f32 %v1204_v53 }
 0x616   :  { %v1201_v54 = vpop.xlane.xlu0 %1200 }
 0x617   :  { %4524 = vrcp.f32 %v1201_v54 }
 0x618   :  { %v4517_v55 = vpop.eup %4516 }
 0x619   :  { %v1225_v56 = vmul.f32 %v4517_v55, %v4507_v28 }
 0x61a   :  { %v1198_v57 = vpop.xlane.xlu0 %1197 }
 0x61b   :  { %4280 = vmatpush3.xpose.msk.msra.mxu0 %vm857_vm2, %v1225_v56  ;;  %4526 = vrcp.f32 %v1198_v57 }
 0x61c   :  { %v4519_v44 = vpop.eup %4518  ;;  %4281 = vmatprep.subr.mxu0 %v4709_v10 }
 0x61d   :  { %v1224_v58 = vmul.f32 %v4519_v44, %v4509_v29  ;;  %v4521_v12 = vpop.eup %4520 }
 0x61e   :  { %v1223_v13 = vmul.f32 %v4521_v12, %v4505_v23  ;;  %v507_v23 = vadd.f32 %v5110_v25, %v367_v41 }
 0x61f   :  { %4282 = vmatpush3.xpose.msk.msra.mxu0 %vm857_vm2, %v1224_v58 }
 0x620   :  { %4283 = vmatprep.subr.mxu0 %v4709_v10  ;;  %v4523_v26 = vpop.eup %4522 }
 0x621   :  { %v1222_v16 = vmul.f32 %v4523_v26, %v4511_v32 }
 0x622   :  { %v538_v22 = vpop.permute.xlu0 %537 }
 0x623   :  { %4284 = vmatpush3.xpose.msk.msra.mxu0 %vm857_vm2, %v1223_v13  ;;  %v678_v27 = vadd.f32 %v5131_v43, %v538_v22 }
 0x624   :  { %4285 = vmatprep.subr.mxu0 %v4709_v10  ;;  %v4525_v17 = vpop.eup %4524 }
 0x625   :  { %v1221_v19 = vmul.f32 %v4525_v17, %v4513_v60 }
 0x627   :  { %4286 = vmatpush3.xpose.msk.msra.mxu0 %vm857_vm2, %v1222_v16 }
 0x628   :  { %4287 = vmatprep.subr.mxu0 %v4709_v10  ;;  %v4527_v20 = vpop.eup %4526 }
 0x629   :  { %v1220_v24 = vmul.f32 %v4527_v20, %v4515_v36 }
 0x62b   :  { %4288 = vmatpush3.xpose.msk.msra.mxu0 %vm857_vm2, %v1221_v19 }
 0x62c   :  { %4289 = vmatprep.subr.mxu0 %v4709_v10 }
 0x62f   :  { %4290 = vmatpush3.xpose.msk.msra.mxu0 %vm857_vm2, %v1220_v24 }
 0x630   :  { %4320 = vmatprep.subr.mxu0 %v507_v23 }
 0x632   :  { %4292 = vmatmul.mubr.msk.f32.vlgmr.msra.gmra.mxu0 %vm857_vm2, %v678_v27 }
 0x633   :  { %4321 = vmatpush3.msra.mxu0 %v507_v23 }
 0x634   :  { %4331 = vmatprep.subr.mxu0 %v4709_v10 }
 0x641   :  { %v1635_v28 = vpop.trf.xlu0 }
 0x642   :  { %4322 = vmatprep.mubr.msk.f32.mxu0 %vm743_vm1, %v1635_v28 }
 0x645   :  { %v1636_v14 = vpop.trf.xlu0 }
 0x646   :  { %4323 = vmatmul.mubr.msk.f32.vlgmr.msra.gmra.mxu0 %vm743_vm1, %v1636_v14 }
 0x649   :  { %v1637_v29 = vpop.trf.xlu0 }
 0x64a   :  { %4325 = vmatprep.mubr.msk.f32.mxu0 %vm743_vm1, %v1637_v29 }
 0x64d   :  { %v1638_v25 = vpop.trf.xlu0 }
 0x64e   :  { %4326 = vmatmul.mubr.msk.f32.gmra.mxu0 %vm743_vm1, %v1638_v25 }
 0x651   :  { %v1639_v31 = vpop.trf.xlu0 }
 0x652   :  { %4328 = vmatprep.mubr.msk.f32.mxu0 %vm743_vm1, %v1639_v31 }
 0x655   :  { %v1640_v43 = vpop.trf.xlu0 }
 0x656   :  { %4329 = vmatmul.mubr.msk.f32.gmra.mxu0 %vm743_vm1, %v1640_v43 }
 0x657   :  { %4343 = vmatprep.mubr.msk.f32.mxu0 %vm4710_vm3, %v4709_v10 }
 0x6bd   :  { %v4298_v32 = vpop.f32.mrf.mxu1 }
 0x6be   :  { %v1439_v17 = vadd.f32 %v4298_v32, %v5017_v18 }
 0x6bf   :  { %v1433_v33 = vpop.f32.mrf.mxu1 }
 0x6c0   :  { %v1434_v20 = vadd.f32 %v1433_v33, %v5024_v21  ;;  %v1465_v22 = vsel %vm857_vm2, %v1439_v17, -inf }
 0x6c5   :  { %v4301_v60 = vpop.f32.mrf.mxu1 }
 0x6c6   :  { %v1449_v42 = vadd.f32 %v4301_v60, %v5001_v9 }
 0x6c7   :  { %v1443_v35 = vpop.f32.mrf.mxu1 }
 0x6c8   :  { %v1471_v47 = vsel %vm857_vm2, %v1449_v42, -inf }
 0x6cd   :  { %v4304_v36 = vpop.f32.mrf.mxu1 }
 0x6ce   :  { %v1459_v37 = vadd.f32 %v4304_v36, %v4990_v5 }
 0x6cf   :  { %v1453_v48 = vpop.f32.mrf.mxu1 }
 0x6d0   :  { %v1477_v39 = vsel %vm857_vm2, %v1459_v37, -inf  ;;  %v1454_v41 = vadd.f32 %v1453_v48, %v4995_v7 }
 0x6d1   :  { %1478 = vmax.xlane.f32.xlu1 %v1477_v39 }
 0x6d2   :  { %v1474_v45 = vsel %vm857_vm2, %v1454_v41, -inf }
 0x6d5   :  { %1475 = vmax.xlane.f32.xlu1 %v1474_v45 }
 0x6d9   :  { %1472 = vmax.xlane.f32.xlu1 %v1471_v47 }
 0x6f2   :  { %v5236_v49 = vpop.f32.mrf.mxu0 }
 0x6f4   :  { %v4293_v50 = vpop.f32.mrf.mxu0 }
 0x706   :  { %v4324_v51 = vpop.f32.mrf.mxu0 }
 0x707   :  { %v5247_v56 = vadd.f32 %v4324_v51, %v5017_v18  ;;  %v1462_v18 = vsel %vm857_vm2, %v1434_v20, -inf }
 0x708   :  { %v1735_v52 = vpop.f32.mrf.mxu0 }
 0x709   :  { %v1736_v12 = vadd.f32 %v1735_v52, %v5024_v21  ;;  %v1767_v13 = vsel %vm857_vm2, %v5247_v56, -inf }
 0x70e   :  { %v4327_v59 = vpop.f32.mrf.mxu0 }
 0x70f   :  { %v5239_v46 = vadd.f32 %v4327_v59, %v5001_v9  ;;  %v1444_v9 = vadd.f32 %v1443_v35, %v5010_v15 }
 0x710   :  { %v1745_v53 = vpop.f32.mrf.mxu0 }
 0x711   :  { %v5242_v54 = vadd.f32 %v1745_v53, %v5010_v15  ;;  %v1773_v55 = vsel %vm857_vm2, %v5239_v46, -inf  ;;  %v1468_v15 = vsel %vm857_vm2, %v1444_v9, -inf }
 0x712   :  { %1774 = vmax.xlane.f32.xlu1 %v1773_v55 }
 0x713   :  { %v1770_v57 = vsel %vm857_vm2, %v5242_v54, -inf }
 0x716   :  { %1771 = vmax.xlane.f32.xlu1 %v1770_v57  ;;  %v4330_v44 = vpop.f32.mrf.mxu0 }
 0x717   :  { %v5252_v58 = vadd.f32 %v4330_v44, %v4990_v5  ;;  %v1764_v5 = vsel %vm857_vm2, %v1736_v12, -inf }
 0x718   :  { %v1755_v16 = vpop.f32.mrf.mxu0 }
 0x719   :  { %v1779_v26 = vsel %vm857_vm2, %v5252_v58, -inf  ;;  %v5262_v19 = vadd.f32 %v1755_v16, %v4995_v7  ;;  %v116_v7 = vld [vmem:[%s6090_s6 + $0x20] sm:$0xff] }
 0x71a   :  { %1768 = vmax.xlane.f32.xlu1 %v1767_v13  ;;  %1780 = vmax.xlane.f32.xlu0 %v1779_v26 }
 0x71b   :  { %v1776_v24 = vsel %vm857_vm2, %v5262_v19, -inf }
 0x71e   :  { %1765 = vmax.xlane.f32.xlu1 %v1764_v5  ;;  %1469 = vmax.xlane.f32.xlu0 %v1468_v15 }
 0x722   :  { %1466 = vmax.xlane.f32.xlu0 %v1465_v22  ;;  %1777 = vmax.xlane.f32.xlu1 %v1776_v24 }
 0x726   :  { %1463 = vmax.xlane.f32.xlu0 %v1462_v18 }
 0x733   :  { %183 = vperm.xlu1 %4479, %v116_v7  }
 0x75a   :  { %v1479_v23 = vpop.xlane.xlu1 %1478 }
 0x75b   :  { %v1485_v27 = vsub.f32 %v1459_v37, %v1479_v23  ;;  %v117_v23 = vld [vmem:[%s6090_s6 + $0x28] sm:$0xff] }
 0x75d   :  { %v1496_v28 = vmul.f32 1.442695, %v1485_v27 }
 0x75e   :  { %v1476_v14 = vpop.xlane.xlu1 %1475 }
 0x75f   :  { %4528 = vpow2.f32 %v1496_v28  ;;  %v1484_v21 = vsub.f32 %v1454_v41, %v1476_v14  ;;  %v132_v28 = vld [vmem:[%s6091_s8 + $0x20] sm:$0xff] }
 0x761   :  { %v1494_v29 = vmul.f32 1.442695, %v1484_v21 }
 0x762   :  { %v1473_v25 = vpop.xlane.xlu1 %1472 }
 0x763   :  { %4530 = vpow2.f32 %v1494_v29  ;;  %v1483_v31 = vsub.f32 %v1449_v42, %v1473_v25 }
 0x765   :  { %v1492_v43 = vmul.f32 1.442695, %v1483_v31 }
 0x767   :  { %4532 = vpow2.f32 %v1492_v43 }
 0x76c   :  { %v5274_v32 = vpop.eup %4528 }
 0x76d   :  { %v1513_v33 = vsel %vm857_vm2, %v5274_v32, 0.0 }
 0x76e   :  { %1514 = vadd.xlane.f32.xlu0 %v1513_v33 }
 0x770   :  { %v5278_v60 = vpop.eup %4530 }
 0x771   :  { %v1510_v35 = vsel %vm857_vm2, %v5278_v60, 0.0 }
 0x772   :  { %1511 = vadd.xlane.f32.xlu0 %v1510_v35 }
 0x774   :  { %v5282_v36 = vpop.eup %4532 }
 0x775   :  { %v1507_v37 = vsel %vm857_vm2, %v5282_v36, 0.0 }
 0x776   :  { %1508 = vadd.xlane.f32.xlu0 %v1507_v37 }
 0x79b   :  { %v1775_v48 = vpop.xlane.xlu1 %1774 }
 0x79c   :  { %v1785_v13 = vsub.f32 %v5239_v46, %v1775_v48 }
 0x79e   :  { %v1794_v5 = vmul.f32 1.442695, %v1785_v13 }
 0x79f   :  { %v1772_v39 = vpop.xlane.xlu1 %1771 }
 0x7a0   :  { %v1784_v14 = vsub.f32 %v5242_v54, %v1772_v39 }
 0x7a2   :  { %v1792_v29 = vmul.f32 1.442695, %v1784_v14 }
 0x7a3   :  { %v1781_v41 = vpop.xlane.xlu0 %1780  ;;  %v1769_v42 = vpop.xlane.xlu1 %1768 }
 0x7a4   :  { %v1783_v27 = vsub.f32 %v5247_v56, %v1769_v42  ;;  %v1787_v25 = vsub.f32 %v5252_v58, %v1781_v41 }
 0x7a6   :  { %v1790_v21 = vmul.f32 1.442695, %v1783_v27  ;;  %v1798_v43 = vmul.f32 1.442695, %v1787_v25 }
 0x7a7   :  { %v1470_v45 = vpop.xlane.xlu0 %1469  ;;  %v1766_v51 = vpop.xlane.xlu1 %1765 }
 0x7a8   :  { %v1482_v47 = vsub.f32 %v1444_v9, %v1470_v45  ;;  %v1782_v53 = vsub.f32 %v1736_v12, %v1766_v51 }
 0x7aa   :  { %v1490_v50 = vmul.f32 1.442695, %v1482_v47  ;;  %v1788_v26 = vmul.f32 1.442695, %v1782_v53 }
 0x7ab   :  { %v1467_v52 = vpop.xlane.xlu0 %1466  ;;  %v1778_v31 = vpop.xlane.xlu1 %1777 }
 0x7ac   :  { %v1481_v59 = vsub.f32 %v1439_v17, %v1467_v52  ;;  %4534 = vpow2.f32 %v1490_v50  ;;  %v1786_v33 = vsub.f32 %v5262_v19, %v1778_v31  ;;  %v146_v52 = vld [vmem:[%s6094_s10 + $0x10] sm:$0xff] }
 0x7ae   :  { %v1488_v55 = vmul.f32 1.442695, %v1481_v59  ;;  %v1796_v56 = vmul.f32 1.442695, %v1786_v33 }
 0x7af   :  { %v1464_v57 = vpop.xlane.xlu0 %1463 }
 0x7b0   :  { %4536 = vpow2.f32 %v1488_v55  ;;  %v1480_v44 = vsub.f32 %v1434_v20, %v1464_v57  ;;  %v133_v55 = vld [vmem:[%s6091_s8 + $0x28] sm:$0xff] }
 0x7b2   :  { %v1486_v16 = vmul.f32 1.442695, %v1480_v44  ;;  %v184_v44 = vpop.permute.xlu1 %183 }
 0x7b3   :  { %v331_v13 = vadd.f32 %v4981_v62, %v184_v44 }
 0x7b4   :  { %4538 = vpow2.f32 %v1486_v16 }
 0x7b5   :  { %4540 = vpow2.f32 %v1788_v26 }
 0x7b6   :  { %4542 = vpow2.f32 %v1794_v5 }
 0x7b7   :  { %4544 = vpow2.f32 %v1790_v21 }
 0x7b8   :  { %4546 = vpow2.f32 %v1792_v29 }
 0x7b9   :  { %v5287_v15 = vpop.eup %4534  ;;  %4548 = vpow2.f32 %v1798_v43 }
 0x7ba   :  { %v1504_v9 = vsel %vm857_vm2, %v5287_v15, 0.0  ;;  %4550 = vpow2.f32 %v1796_v56 }
 0x7bb   :  { %1505 = vadd.xlane.f32.xlu0 %v1504_v9 }
 0x7bd   :  { %v5291_v17 = vpop.eup %4536 }
 0x7be   :  { %v1501_v12 = vsel %vm857_vm2, %v5291_v17, 0.0 }
 0x7bf   :  { %1502 = vadd.xlane.f32.xlu1 %v1501_v12 }
 0x7c1   :  { %v5295_v20 = vpop.eup %4538 }
 0x7c2   :  { %v1498_v46 = vsel %vm857_vm2, %v5295_v20, 0.0  ;;  %v5299_v22 = vpop.eup %4540 }
 0x7c3   :  { %1499 = vadd.xlane.f32.xlu1 %v1498_v46  ;;  %v1800_v24 = vsel %vm857_vm2, %v5299_v22, 0.0  ;;  %v5303_v18 = vpop.eup %4542 }
 0x7c4   :  { %v1809_v7 = vsel %vm857_vm2, %v5303_v18, 0.0  ;;  %v5317_v35 = vpop.eup %4544 }
 0x7c5   :  { %v1803_v37 = vsel %vm857_vm2, %v5317_v35, 0.0  ;;  %v5321_v48 = vpop.eup %4546 }
 0x7c6   :  { %v1806_v54 = vsel %vm857_vm2, %v5321_v48, 0.0  ;;  %v5325_v41 = vpop.eup %4548 }
 0x7c7   :  { %1801 = vadd.xlane.f32.xlu1 %v1800_v24  ;;  %v1815_v42 = vsel %vm857_vm2, %v5325_v41, 0.0  ;;  %v5329_v45 = vpop.eup %4550 }
 0x7c8   :  { %v1812_v47 = vsel %vm857_vm2, %v5329_v45, 0.0 }
 0x7cb   :  { %1810 = vadd.xlane.f32.xlu1 %v1809_v7 }
 0x7d1   :  { %188 = vperm.xlu0 %4478, %v117_v23  }
 0x7dc   :  { %371 = vperm.xlu1 %4479, %v132_v28  }
 0x7f0   :  { %1804 = vadd.xlane.f32.xlu0 %v1803_v37 }
 0x7f4   :  { %1807 = vadd.xlane.f32.xlu0 %v1806_v54 }
 0x7f7   :  { %v1515_v58 = vpop.xlane.xlu0 %1514 }
 0x7f8   :  { %4552 = vrcp.f32 %v1515_v58 }
 0x7fb   :  { %v1512_v39 = vpop.xlane.xlu0 %1511 }
 0x7fc   :  { %4554 = vrcp.f32 %v1512_v39 }
 0x7ff   :  { %v1509_v19 = vpop.xlane.xlu0 %1508 }
 0x800   :  { %4556 = vrcp.f32 %v1509_v19  ;;  %1816 = vadd.xlane.f32.xlu1 %v1815_v42 }
 0x804   :  { %1813 = vadd.xlane.f32.xlu1 %v1812_v47 }
 0x805   :  { %v4553_v50 = vpop.eup %4552 }
 0x806   :  { %v1527_v51 = vmul.f32 %v4553_v50, %v5274_v32 }
 0x808   :  { %4306 = vmatpush3.xpose.msk.msra.mxu1 %vm857_vm2, %v1527_v51 }
 0x809   :  { %v4555_v59 = vpop.eup %4554  ;;  %4307 = vmatprep.subr.mxu1 %v4709_v10 }
 0x80a   :  { %v1526_v53 = vmul.f32 %v4555_v59, %v5278_v60  ;;  %542 = vperm.xlu0 %4478, %v146_v52   ;;  %v147_v60 = vld [vmem:[%s6094_s10 + $0x18] sm:$0xff] }
 0x80c   :  { %4308 = vmatpush3.xpose.msk.msra.mxu1 %vm857_vm2, %v1526_v53 }
 0x80d   :  { %v4557_v57 = vpop.eup %4556  ;;  %4309 = vmatprep.subr.mxu1 %v4709_v10 }
 0x80e   :  { %v1525_v32 = vmul.f32 %v4557_v57, %v5282_v36  ;;  %376 = vperm.xlu0 %4478, %v133_v55  }
 0x810   :  { %4310 = vmatpush3.xpose.msk.msra.mxu1 %vm857_vm2, %v1525_v32 }
 0x811   :  { %4311 = vmatprep.subr.mxu1 %v4709_v10 }
 0x815   :  { %547 = vperm.xlu1 %4479, %v147_v60  }
 0x83e   :  { %1921 = vxpose.xlu1.b32.start.end [1/1] (short) (narrow) %v331_v13, 48 }
 0x844   :  { %v1506_v26 = vpop.xlane.xlu0 %1505 }
 0x845   :  { %4558 = vrcp.f32 %v1506_v26 }
 0x848   :  { %v1503_v16 = vpop.xlane.xlu1 %1502 }
 0x849   :  { %4560 = vrcp.f32 %v1503_v16 }
 0x84c   :  { %v1500_v5 = vpop.xlane.xlu1 %1499  ;;  %v189_v36 = vpop.permute.xlu0 %188 }
 0x84d   :  { %4562 = vrcp.f32 %v1500_v5  ;;  %v336_v9 = vadd.f32 %v4979_v61, %v189_v36 }
 0x84f   :  { %2223 = vxpose.xlu0.b32.start.end [1/1] (short) (narrow) %v336_v9, 48 }
 0x850   :  { %v1802_v12 = vpop.xlane.xlu1 %1801 }
 0x852   :  { %v4559_v46 = vpop.eup %4558 }
 0x853   :  { %v1524_v7 = vmul.f32 %v4559_v46, %v5287_v15 }
 0x854   :  { %v1811_v24 = vpop.xlane.xlu1 %1810 }
 0x855   :  { %4312 = vmatpush3.xpose.msk.msra.mxu1 %vm857_vm2, %v1524_v7 }
 0x856   :  { %v4561_v23 = vpop.eup %4560  ;;  %4313 = vmatprep.subr.mxu1 %v4709_v10 }
 0x857   :  { %v1523_v62 = vmul.f32 %v4561_v23, %v5291_v17  ;;  %v5415_v23 = vld [vmem:[%s6092_s4 + $0x8] sm:$0xff] }
 0x858   :  { %v372_v28 = vpop.permute.xlu1 %371 }
 0x859   :  { %4314 = vmatpush3.xpose.msk.msra.mxu1 %vm857_vm2, %v1523_v62  ;;  %v512_v14 = vadd.f32 %v5117_v34, %v372_v28 }
 0x85a   :  { %v4563_v27 = vpop.eup %4562  ;;  %4315 = vmatprep.subr.mxu1 %v4709_v10 }
 0x85b   :  { %v1522_v61 = vmul.f32 %v4563_v27, %v5295_v20  ;;  %v5423_v27 = vld [vmem:[%s6092_s4 + $0x20] sm:$0xff] }
 0x85d   :  { %4316 = vmatpush3.xpose.msk.msra.mxu1 %vm857_vm2, %v1522_v61 }
 0x85e   :  { %4346 = vmatprep.subr.mxu1 %v512_v14 }
 0x879   :  { %v1805_v15 = vpop.xlane.xlu0 %1804 }
 0x87d   :  { %v1808_v21 = vpop.xlane.xlu0 %1807 }
 0x885   :  { %v543_v29 = vpop.permute.xlu0 %542 }
 0x886   :  { %v683_v25 = vadd.f32 %v5150_v2, %v543_v29 }
 0x888   :  { %4318 = vmatmul.mubr.msk.f32.vlgmr.msra.gmra.mxu1 %vm857_vm2, %v683_v25  ;;  %v5440_v25 = vld [vmem:[%s6092_s4 + $0x18] sm:$0xff] }
 0x889   :  { %v1817_v17 = vpop.xlane.xlu1 %1816  ;;  %4347 = vmatpush3.msra.mxu1 %v512_v14  ;;  %v377_v19 = vpop.permute.xlu0 %376 }
 0x88a   :  { %4564 = vrcp.f32 %v1817_v17  ;;  %4357 = vmatprep.subr.mxu1 %v4709_v10 }
 0x88d   :  { %v1814_v31 = vpop.xlane.xlu1 %1813 }
 0x88e   :  { %4566 = vrcp.f32 %v1814_v31 }
 0x88f   :  { %4568 = vrcp.f32 %v1811_v24 }
 0x890   :  { %4570 = vrcp.f32 %v1808_v21  ;;  %v5432_v21 = vld [vmem:[%s6092_s4] sm:$0xff] }
 0x891   :  { %4572 = vrcp.f32 %v1805_v15 }
 0x892   :  { %4574 = vrcp.f32 %v1802_v12  ;;  %v5409_v12 = vld [vmem:[%s6092_s4 + $0x28] sm:$0xff] }
 0x897   :  { %v4565_v34 = vpop.eup %4564 }
 0x898   :  { %v1829_v20 = vmul.f32 %v4565_v34, %v5325_v41 }
 0x89a   :  { %4332 = vmatpush3.xpose.msk.msra.mxu0 %vm857_vm2, %v1829_v20 }
 0x89b   :  { %v4567_v43 = vpop.eup %4566  ;;  %4333 = vmatprep.subr.mxu0 %v4709_v10 }
 0x89c   :  { %v1828_v2 = vmul.f32 %v4567_v43, %v5329_v45  ;;  %v4569_v33 = vpop.eup %4568  ;;  %v517_v45 = vadd.f32 %v5115_v30, %v377_v19  ;;  %v5449_v43 = vld [vmem:[%s6092_s4 + $0x10] sm:$0xff] }
 0x89d   :  { %v1827_v56 = vmul.f32 %v4569_v33, %v5303_v18  ;;  %v4571_v37 = vpop.eup %4570  ;;  %v548_v18 = vpop.permute.xlu1 %547 }
 0x89e   :  { %4334 = vmatpush3.xpose.msk.msra.mxu0 %vm857_vm2, %v1828_v2  ;;  %v1826_v54 = vmul.f32 %v4571_v37, %v5321_v48  ;;  %v4573_v58 = vpop.eup %4572  ;;  %v688_v48 = vadd.f32 %v5148_v1, %v548_v18 }
 0x89f   :  { %4335 = vmatprep.subr.mxu0 %v4709_v10  ;;  %v1825_v39 = vmul.f32 %v4573_v58, %v5317_v35  ;;  %v4575_v41 = vpop.eup %4574 }
 0x8a0   :  { %v1824_v42 = vmul.f32 %v4575_v41, %v5299_v22 }
 0x8a2   :  { %4336 = vmatpush3.xpose.msk.msra.mxu0 %vm857_vm2, %v1827_v56 }
 0x8a3   :  { %4337 = vmatprep.subr.mxu0 %v4709_v10 }
 0x8a6   :  { %4338 = vmatpush3.xpose.msk.msra.mxu0 %vm857_vm2, %v1826_v54 }
 0x8a7   :  { %4339 = vmatprep.subr.mxu0 %v4709_v10 }
 0x8aa   :  { %4340 = vmatpush3.xpose.msk.msra.mxu0 %vm857_vm2, %v1825_v39 }
 0x8ab   :  { %4341 = vmatprep.subr.mxu0 %v4709_v10 }
 0x8ae   :  { %4342 = vmatpush3.xpose.msk.msra.mxu0 %vm857_vm2, %v1824_v42 }
 0x8af   :  { %4372 = vmatprep.subr.mxu0 %v517_v45 }
 0x8b1   :  { %4344 = vmatmul.mubr.msk.f32.vlgmr.msra.gmra.mxu0 %vm857_vm2, %v688_v48 }
 0x8b2   :  { %4373 = vmatpush3.msra.mxu0 %v517_v45 }
 0x8b3   :  { %4383 = vmatprep.subr.mxu0 %v4709_v10 }
 0x8ba   :  { %v1937_v35 = vpop.trf.xlu1 }
 0x8bb   :  { %4348 = vmatprep.mubr.msk.f32.mxu1 %vm743_vm1, %v1937_v35 }
 0x8be   :  { %v1938_v47 = vpop.trf.xlu1 }
 0x8bf   :  { %4349 = vmatmul.mubr.msk.f32.vlgmr.msra.gmra.mxu1 %vm743_vm1, %v1938_v47 }
 0x8c2   :  { %v1939_v50 = vpop.trf.xlu1 }
 0x8c3   :  { %4351 = vmatprep.mubr.msk.f32.mxu1 %vm743_vm1, %v1939_v50 }
 0x8c6   :  { %v1940_v30 = vpop.trf.xlu1 }
 0x8c7   :  { %4352 = vmatmul.mubr.msk.f32.gmra.mxu1 %vm743_vm1, %v1940_v30 }
 0x8ca   :  { %v1941_v22 = vpop.trf.xlu1 }
 0x8cb   :  { %4354 = vmatprep.mubr.msk.f32.mxu1 %vm743_vm1, %v1941_v22  ;;  %v2239_v1 = vpop.trf.xlu0 }
 0x8cc   :  { %4374 = vmatprep.mubr.msk.f32.mxu0 %vm743_vm1, %v2239_v1  ;;  %v118_v1 = vld [vmem:[%s6090_s6 + $0x30] sm:$0xff] }
 0x8ce   :  { %v1942_v51 = vpop.trf.xlu1 }
 0x8cf   :  { %4355 = vmatmul.mubr.msk.f32.gmra.mxu1 %vm743_vm1, %v1942_v51  ;;  %v2240_v52 = vpop.trf.xlu0 }
 0x8d0   :  { %4369 = vmatprep.mubr.msk.f32.mxu1 %vm4710_vm3, %v4709_v10  ;;  %4375 = vmatmul.mubr.msk.f32.vlgmr.msra.gmra.mxu0 %vm743_vm1, %v2240_v52 }
 0x8d3   :  { %v2241_v59 = vpop.trf.xlu0 }
 0x8d4   :  { %4377 = vmatprep.mubr.msk.f32.mxu0 %vm743_vm1, %v2241_v59 }
 0x8d7   :  { %v2242_v53 = vpop.trf.xlu0 }
 0x8d8   :  { %4378 = vmatmul.mubr.msk.f32.gmra.mxu0 %vm743_vm1, %v2242_v53 }
 0x8db   :  { %v2243_v55 = vpop.trf.xlu0 }
 0x8dc   :  { %4380 = vmatprep.mubr.msk.f32.mxu0 %vm743_vm1, %v2243_v55 }
 0x8df   :  { %v2244_v57 = vpop.trf.xlu0 }
 0x8e0   :  { %4381 = vmatmul.mubr.msk.f32.gmra.mxu0 %vm743_vm1, %v2244_v57 }
 0x8e1   :  { %4395 = vmatprep.mubr.msk.f32.mxu0 %vm4710_vm3, %v4709_v10 }
 0x948   :  { %v5402_v32 = vpop.f32.mrf.mxu1 }
 0x94a   :  { %v4319_v60 = vpop.f32.mrf.mxu1 }
 0x971   :  { %v5404_v44 = vpop.f32.mrf.mxu0 }
 0x973   :  { %v4345_v13 = vpop.f32.mrf.mxu0 }
 0x97f   :  { %v4350_v26 = vpop.f32.mrf.mxu1 }
 0x980   :  { %v2043_v39 = vadd.f32 %v5415_v23, %v4350_v26 }
 0x981   :  { %v2037_v16 = vpop.f32.mrf.mxu1 }
 0x982   :  { %v2038_v42 = vadd.f32 %v5432_v21, %v2037_v16  ;;  %v2069_v48 = vsel %vm857_vm2, %v2043_v39, -inf }
 0x984   :  { %v2066_v30 = vsel %vm857_vm2, %v2038_v42, -inf }
 0x987   :  { %v4353_v5 = vpop.f32.mrf.mxu1 }
 0x988   :  { %v2053_v17 = vadd.f32 %v5440_v25, %v4353_v5 }
 0x989   :  { %v2047_v36 = vpop.f32.mrf.mxu1 }
 0x98a   :  { %v2048_v2 = vadd.f32 %v5449_v43, %v2047_v36  ;;  %v2075_v56 = vsel %vm857_vm2, %v2053_v17, -inf }
 0x98c   :  { %v2072_v41 = vsel %vm857_vm2, %v2048_v2, -inf }
 0x98f   :  { %v4356_v9 = vpop.f32.mrf.mxu1 }
 0x990   :  { %v2063_v46 = vadd.f32 %v5409_v12, %v4356_v9  ;;  %v4376_v24 = vpop.f32.mrf.mxu0 }
 0x991   :  { %v2057_v7 = vpop.f32.mrf.mxu1  ;;  %v5418_v62 = vadd.f32 %v5415_v23, %v4376_v24 }
 0x992   :  { %v2058_v28 = vadd.f32 %v5423_v27, %v2057_v7  ;;  %v2081_v61 = vsel %vm857_vm2, %v2063_v46, -inf  ;;  %v2339_v14 = vpop.f32.mrf.mxu0 }
 0x993   :  { %2082 = vmax.xlane.f32.xlu0 %v2081_v61  ;;  %v2371_v15 = vsel %vm857_vm2, %v5418_v62, -inf  ;;  %v5435_v29 = vadd.f32 %v5432_v21, %v2339_v14 }
 0x994   :  { %2372 = vmax.xlane.f32.xlu1 %v2371_v15  ;;  %v2078_v31 = vsel %vm857_vm2, %v2058_v28, -inf }
 0x995   :  { %v2368_v34 = vsel %vm857_vm2, %v5435_v29, -inf }
 0x997   :  { %2079 = vmax.xlane.f32.xlu0 %v2078_v31 }
 0x998   :  { %v4379_v20 = vpop.f32.mrf.mxu0  ;;  %2369 = vmax.xlane.f32.xlu1 %v2368_v34 }
 0x999   :  { %v2355_v33 = vadd.f32 %v5440_v25, %v4379_v20 }
 0x99a   :  { %v2349_v37 = vpop.f32.mrf.mxu0 }
 0x99b   :  { %2076 = vmax.xlane.f32.xlu0 %v2075_v56  ;;  %v5455_v54 = vadd.f32 %v5449_v43, %v2349_v37  ;;  %v2377_v58 = vsel %vm857_vm2, %v2355_v33, -inf }
 0x99c   :  { %2378 = vmax.xlane.f32.xlu1 %v2377_v58 }
 0x99d   :  { %v2374_v19 = vsel %vm857_vm2, %v5455_v54, -inf }
 0x99f   :  { %2073 = vmax.xlane.f32.xlu0 %v2072_v41 }
 0x9a0   :  { %v4382_v18 = vpop.f32.mrf.mxu0  ;;  %2375 = vmax.xlane.f32.xlu1 %v2374_v19 }
 0x9a1   :  { %v5464_v45 = vadd.f32 %v5409_v12, %v4382_v18 }
 0x9a2   :  { %v2359_v35 = vpop.f32.mrf.mxu0 }
 0x9a3   :  { %2070 = vmax.xlane.f32.xlu0 %v2069_v48  ;;  %v5468_v47 = vadd.f32 %v5423_v27, %v2359_v35  ;;  %v2383_v50 = vsel %vm857_vm2, %v5464_v45, -inf }
 0x9a4   :  { %2384 = vmax.xlane.f32.xlu1 %v2383_v50 }
 0x9a5   :  { %v2380_v22 = vsel %vm857_vm2, %v5468_v47, -inf }
 0x9a7   :  { %2067 = vmax.xlane.f32.xlu0 %v2066_v30 }
 0x9a8   :  { %2381 = vmax.xlane.f32.xlu1 %v2380_v22 }
 0x9b9   :  { %193 = vperm.xlu1 %4479, %v118_v1  }
 0xa1c   :  { %v2083_v51 = vpop.xlane.xlu0 %2082 }
 0xa1d   :  { %v2373_v59 = vpop.xlane.xlu1 %2372  ;;  %v2089_v57 = vsub.f32 %v2063_v46, %v2083_v51  ;;  %v119_v51 = vld [vmem:[%s6090_s6 + $0x38] sm:$0xff] }
 0xa1f   :  { %v2100_v5 = vmul.f32 1.442695, %v2089_v57 }
 0xa20   :  { %v2080_v52 = vpop.xlane.xlu0 %2079 }
 0xa21   :  { %v2370_v16 = vpop.xlane.xlu1 %2369  ;;  %v2088_v36 = vsub.f32 %v2058_v28, %v2080_v52  ;;  %v134_v52 = vld [vmem:[%s6091_s8 + $0x30] sm:$0xff] }
 0xa22   :  { %v2386_v14 = vsub.f32 %v5435_v29, %v2370_v16 }
 0xa23   :  { %v2098_v61 = vmul.f32 1.442695, %v2088_v36 }
 0xa24   :  { %v2077_v53 = vpop.xlane.xlu0 %2076 }
 0xa25   :  { %v2087_v55 = vsub.f32 %v2053_v17, %v2077_v53  ;;  %v2379_v31 = vpop.xlane.xlu1 %2378  ;;  %v2392_v17 = vmul.f32 1.442695, %v2386_v14 }
 0xa26   :  { %v2389_v20 = vsub.f32 %v2355_v33, %v2379_v31  ;;  %v149_v31 = vld [vmem:[%s6094_s10 + $0x28] sm:$0xff] }
 0xa27   :  { %v2096_v60 = vmul.f32 1.442695, %v2087_v55  ;;  %v2387_v55 = vsub.f32 %v5418_v62, %v2373_v59 }
 0xa28   :  { %v2074_v13 = vpop.xlane.xlu0 %2073  ;;  %v2398_v28 = vmul.f32 1.442695, %v2389_v20 }
 0xa29   :  { %4576 = vpow2.f32 %v2096_v60  ;;  %v2086_v26 = vsub.f32 %v2048_v2, %v2074_v13  ;;  %v2376_v53 = vpop.xlane.xlu1 %2375  ;;  %v2394_v60 = vmul.f32 1.442695, %v2387_v55 }
 0xa2a   :  { %v2388_v13 = vsub.f32 %v5455_v54, %v2376_v53 }
 0xa2b   :  { %v2094_v9 = vmul.f32 1.442695, %v2086_v26 }
 0xa2c   :  { %v2071_v24 = vpop.xlane.xlu0 %2070  ;;  %v2396_v26 = vmul.f32 1.442695, %v2388_v13 }
 0xa2d   :  { %4578 = vpow2.f32 %v2094_v9  ;;  %v2085_v7 = vsub.f32 %v2043_v39, %v2071_v24  ;;  %v2385_v57 = vpop.xlane.xlu1 %2384 }
 0xa2e   :  { %4580 = vpow2.f32 %v2100_v5  ;;  %v2391_v16 = vsub.f32 %v5464_v45, %v2385_v57 }
 0xa2f   :  { %v2092_v15 = vmul.f32 1.442695, %v2085_v7 }
 0xa30   :  { %v2068_v34 = vpop.xlane.xlu0 %2067  ;;  %v2402_v36 = vmul.f32 1.442695, %v2391_v16 }
 0xa31   :  { %4582 = vpow2.f32 %v2092_v15  ;;  %v2084_v46 = vsub.f32 %v2038_v42, %v2068_v34  ;;  %v2382_v5 = vpop.xlane.xlu1 %2381  ;;  %v148_v15 = vld [vmem:[%s6094_s10 + $0x20] sm:$0xff]  ;;  %v135_v34 = vld [vmem:[%s6091_s8 + $0x38] sm:$0xff] }
 0xa32   :  { %4584 = vpow2.f32 %v2098_v61  ;;  %v2390_v9 = vsub.f32 %v5468_v47, %v2382_v5 }
 0xa33   :  { %v2090_v2 = vmul.f32 1.442695, %v2084_v46 }
 0xa34   :  { %v2400_v24 = vmul.f32 1.442695, %v2390_v9 }
 0xa35   :  { %4586 = vpow2.f32 %v2090_v2  ;;  %v194_v46 = vpop.permute.xlu1 %193 }
 0xa36   :  { %v5479_v56 = vpop.eup %4576  ;;  %4588 = vpow2.f32 %v2392_v17  ;;  %v341_v17 = vadd.f32 %v4985_v0, %v194_v46 }
 0xa37   :  { %v2111_v37 = vsel %vm857_vm2, %v5479_v56, 0.0  ;;  %4590 = vpow2.f32 %v2398_v28 }
 0xa38   :  { %2112 = vadd.xlane.f32.xlu0 %v2111_v37  ;;  %4592 = vpow2.f32 %v2394_v60 }
 0xa39   :  { %4594 = vpow2.f32 %v2396_v26 }
 0xa3a   :  { %v5483_v58 = vpop.eup %4578  ;;  %4596 = vpow2.f32 %v2402_v36 }
 0xa3b   :  { %v2108_v29 = vsel %vm857_vm2, %v5483_v58, 0.0  ;;  %v5487_v39 = vpop.eup %4580  ;;  %4598 = vpow2.f32 %v2400_v24 }
 0xa3c   :  { %2109 = vadd.xlane.f32.xlu0 %v2108_v29  ;;  %v2117_v41 = vsel %vm857_vm2, %v5487_v39, 0.0 }
 0xa3e   :  { %v5489_v33 = vpop.eup %4582 }
 0xa3f   :  { %v2105_v19 = vsel %vm857_vm2, %v5489_v33, 0.0  ;;  %v5495_v18 = vpop.eup %4584 }
 0xa40   :  { %2118 = vadd.xlane.f32.xlu0 %v2117_v41  ;;  %2106 = vadd.xlane.f32.xlu1 %v2105_v19  ;;  %v2114_v48 = vsel %vm857_vm2, %v5495_v18, 0.0 }
 0xa42   :  { %v5497_v42 = vpop.eup %4586 }
 0xa43   :  { %v2102_v35 = vsel %vm857_vm2, %v5497_v42, 0.0  ;;  %v5503_v50 = vpop.eup %4588 }
 0xa44   :  { %2115 = vadd.xlane.f32.xlu0 %v2114_v48  ;;  %2103 = vadd.xlane.f32.xlu1 %v2102_v35  ;;  %v2404_v30 = vsel %vm857_vm2, %v5503_v50, 0.0  ;;  %v5507_v22 = vpop.eup %4590 }
 0xa45   :  { %v2413_v1 = vsel %vm857_vm2, %v5507_v22, 0.0  ;;  %v5521_v7 = vpop.eup %4592 }
 0xa46   :  { %v2407_v62 = vsel %vm857_vm2, %v5521_v7, 0.0  ;;  %v5525_v59 = vpop.eup %4594 }
 0xa47   :  { %v2410_v54 = vsel %vm857_vm2, %v5525_v59, 0.0  ;;  %v5529_v45 = vpop.eup %4596 }
 0xa48   :  { %2405 = vadd.xlane.f32.xlu1 %v2404_v30  ;;  %v2419_v47 = vsel %vm857_vm2, %v5529_v45, 0.0  ;;  %v5533_v61 = vpop.eup %4598 }
 0xa49   :  { %v2416_v14 = vsel %vm857_vm2, %v5533_v61, 0.0 }
 0xa4c   :  { %2414 = vadd.xlane.f32.xlu1 %v2413_v1 }
 0xa5a   :  { %198 = vperm.xlu0 %4478, %v119_v51  }
 0xa5d   :  { %381 = vperm.xlu1 %4479, %v134_v52  }
 0xa79   :  { %2408 = vadd.xlane.f32.xlu0 %v2407_v62 }
 0xa7d   :  { %2411 = vadd.xlane.f32.xlu0 %v2410_v54 }
 0xa81   :  { %2420 = vadd.xlane.f32.xlu1 %v2419_v47 }
 0xa85   :  { %2417 = vadd.xlane.f32.xlu1 %v2416_v14 }
 0xa93   :  { %552 = vperm.xlu0 %4478, %v148_v15  }
 0xa96   :  { %557 = vperm.xlu1 %4479, %v149_v31  }
 0xa97   :  { %386 = vperm.xlu0 %4478, %v135_v34  }
 0xabf   :  { %2525 = vxpose.xlu1.b32.start.end [1/1] (short) (narrow) %v341_v17, 48 }
 0xac1   :  { %v2113_v20 = vpop.xlane.xlu0 %2112 }
 0xac5   :  { %v2110_v2 = vpop.xlane.xlu0 %2109 }
 0xac9   :  { %v2119_v28 = vpop.xlane.xlu0 %2118  ;;  %v2107_v29 = vpop.xlane.xlu1 %2106 }
 0xaca   :  { %4600 = vrcp.f32 %v2119_v28 }
 0xacd   :  { %v2116_v37 = vpop.xlane.xlu0 %2115  ;;  %v2104_v35 = vpop.xlane.xlu1 %2103 }
 0xace   :  { %4602 = vrcp.f32 %v2116_v37 }
 0xacf   :  { %4604 = vrcp.f32 %v2113_v20 }
 0xad0   :  { %4606 = vrcp.f32 %v2110_v2 }
 0xad1   :  { %4608 = vrcp.f32 %v2107_v29  ;;  %v2406_v52 = vpop.xlane.xlu1 %2405 }
 0xad2   :  { %4610 = vrcp.f32 %v2104_v35 }
 0xad5   :  { %v199_v41 = vpop.permute.xlu0 %198 }
 0xad6   :  { %v346_v19 = vadd.f32 %v4983_v63, %v199_v41 }
 0xad7   :  { %v4601_v48 = vpop.eup %4600 }
 0xad8   :  { %2827 = vxpose.xlu0.b32.start.end [1/1] (short) (narrow) %v346_v19, 48  ;;  %v2131_v30 = vmul.f32 %v4601_v48, %v5487_v39  ;;  %v2415_v39 = vpop.xlane.xlu1 %2414 }
 0xada   :  { %4358 = vmatpush3.xpose.msk.msra.mxu1 %vm857_vm2, %v2131_v30 }
 0xadb   :  { %v4603_v0 = vpop.eup %4602  ;;  %4359 = vmatprep.subr.mxu1 %v4709_v10 }
 0xadc   :  { %v2130_v1 = vmul.f32 %v4603_v0, %v5495_v18  ;;  %v4605_v51 = vpop.eup %4604  ;;  %v382_v13 = vpop.permute.xlu1 %381 }
 0xadd   :  { %v2129_v63 = vmul.f32 %v4605_v51, %v5479_v56  ;;  %v4607_v53 = vpop.eup %4606  ;;  %v522_v26 = vadd.f32 %v5126_v40, %v382_v13 }
 0xade   :  { %4360 = vmatpush3.xpose.msk.msra.mxu1 %vm857_vm2, %v2130_v1  ;;  %v2128_v55 = vmul.f32 %v4607_v53, %v5483_v58  ;;  %v4609_v57 = vpop.eup %4608 }
 0xadf   :  { %4361 = vmatprep.subr.mxu1 %v4709_v10  ;;  %v2127_v18 = vmul.f32 %v4609_v57, %v5489_v33  ;;  %v4611_v60 = vpop.eup %4610 }
 0xae0   :  { %v2126_v56 = vmul.f32 %v4611_v60, %v5497_v42 }
 0xae2   :  { %4362 = vmatpush3.xpose.msk.msra.mxu1 %vm857_vm2, %v2129_v63 }
 0xae3   :  { %4363 = vmatprep.subr.mxu1 %v4709_v10 }
 0xae6   :  { %4364 = vmatpush3.xpose.msk.msra.mxu1 %vm857_vm2, %v2128_v55 }
 0xae7   :  { %4365 = vmatprep.subr.mxu1 %v4709_v10 }
 0xaea   :  { %4366 = vmatpush3.xpose.msk.msra.mxu1 %vm857_vm2, %v2127_v18 }
 0xaeb   :  { %4367 = vmatprep.subr.mxu1 %v4709_v10 }
 0xaee   :  { %4368 = vmatpush3.xpose.msk.msra.mxu1 %vm857_vm2, %v2126_v56 }
 0xaef   :  { %4398 = vmatprep.subr.mxu1 %v522_v26 }
 0xb02   :  { %v2409_v58 = vpop.xlane.xlu0 %2408 }
 0xb06   :  { %v2412_v16 = vpop.xlane.xlu0 %2411 }
 0xb0a   :  { %v2421_v5 = vpop.xlane.xlu1 %2420 }
 0xb0b   :  { %4612 = vrcp.f32 %v2421_v5 }
 0xb0e   :  { %v553_v36 = vpop.permute.xlu0 %552  ;;  %v2418_v9 = vpop.xlane.xlu1 %2417 }
 0xb0f   :  { %v693_v33 = vadd.f32 %v5154_v4, %v553_v36  ;;  %4614 = vrcp.f32 %v2418_v9 }
 0xb10   :  { %4616 = vrcp.f32 %v2415_v39 }
 0xb11   :  { %4370 = vmatmul.mubr.msk.f32.vlgmr.msra.gmra.mxu1 %vm857_vm2, %v693_v33  ;;  %4618 = vrcp.f32 %v2412_v16 }
 0xb12   :  { %4399 = vmatpush3.msra.mxu1 %v522_v26  ;;  %4620 = vrcp.f32 %v2409_v58  ;;  %v387_v31 = vpop.permute.xlu0 %386 }
 0xb13   :  { %4409 = vmatprep.subr.mxu1 %v4709_v10  ;;  %4622 = vrcp.f32 %v2406_v52  ;;  %v527_v46 = vadd.f32 %v5121_v38, %v387_v31 }
 0xb18   :  { %v4613_v40 = vpop.eup %4612 }
 0xb19   :  { %v2433_v42 = vmul.f32 %v4613_v40, %v5529_v45 }
 0xb1b   :  { %4384 = vmatpush3.xpose.msk.msra.mxu0 %vm857_vm2, %v2433_v42 }
 0xb1c   :  { %v4615_v24 = vpop.eup %4614  ;;  %4385 = vmatprep.subr.mxu0 %v4709_v10 }
 0xb1d   :  { %v2432_v4 = vmul.f32 %v4615_v24, %v5533_v61  ;;  %v4617_v62 = vpop.eup %4616 }
 0xb1e   :  { %v2431_v54 = vmul.f32 %v4617_v62, %v5507_v22  ;;  %v4619_v47 = vpop.eup %4618  ;;  %v558_v22 = vpop.permute.xlu1 %557 }
 0xb1f   :  { %4386 = vmatpush3.xpose.msk.msra.mxu0 %vm857_vm2, %v2432_v4  ;;  %v2430_v45 = vmul.f32 %v4619_v47, %v5525_v59  ;;  %v4621_v14 = vpop.eup %4620  ;;  %v698_v59 = vadd.f32 %v5152_v3, %v558_v22 }
 0xb20   :  { %4387 = vmatprep.subr.mxu0 %v4709_v10  ;;  %v2429_v61 = vmul.f32 %v4621_v14, %v5521_v7  ;;  %v4623_v15 = vpop.eup %4622 }
 0xb21   :  { %v2428_v34 = vmul.f32 %v4623_v15, %v5503_v50 }
 0xb23   :  { %4388 = vmatpush3.xpose.msk.msra.mxu0 %vm857_vm2, %v2431_v54 }
 0xb24   :  { %4389 = vmatprep.subr.mxu0 %v4709_v10 }
 0xb27   :  { %4390 = vmatpush3.xpose.msk.msra.mxu0 %vm857_vm2, %v2430_v45 }
 0xb28   :  { %4391 = vmatprep.subr.mxu0 %v4709_v10 }
 0xb2b   :  { %4392 = vmatpush3.xpose.msk.msra.mxu0 %vm857_vm2, %v2429_v61 }
 0xb2c   :  { %4393 = vmatprep.subr.mxu0 %v4709_v10 }
 0xb2f   :  { %4394 = vmatpush3.xpose.msk.msra.mxu0 %vm857_vm2, %v2428_v34 }
 0xb30   :  { %4424 = vmatprep.subr.mxu0 %v527_v46 }
 0xb32   :  { %4396 = vmatmul.mubr.msk.f32.vlgmr.msra.gmra.mxu0 %vm857_vm2, %v698_v59 }
 0xb33   :  { %4425 = vmatpush3.msra.mxu0 %v527_v46 }
 0xb34   :  { %4435 = vmatprep.subr.mxu0 %v4709_v10 }
 0xb3b   :  { %v2541_v7 = vpop.trf.xlu1 }
 0xb3c   :  { %4400 = vmatprep.mubr.msk.f32.mxu1 %vm743_vm1, %v2541_v7 }
 0xb3f   :  { %v2542_v17 = vpop.trf.xlu1 }
 0xb40   :  { %4401 = vmatmul.mubr.msk.f32.vlgmr.msra.gmra.mxu1 %vm743_vm1, %v2542_v17 }
 0xb43   :  { %v2543_v20 = vpop.trf.xlu1 }
 0xb44   :  { %4403 = vmatprep.mubr.msk.f32.mxu1 %vm743_vm1, %v2543_v20 }
 0xb47   :  { %v2544_v38 = vpop.trf.xlu1 }
 0xb48   :  { %4404 = vmatmul.mubr.msk.f32.gmra.mxu1 %vm743_vm1, %v2544_v38 }
 0xb4b   :  { %v2545_v50 = vpop.trf.xlu1 }
 0xb4c   :  { %4406 = vmatprep.mubr.msk.f32.mxu1 %vm743_vm1, %v2545_v50 }
 0xb4f   :  { %v2546_v3 = vpop.trf.xlu1 }
 0xb50   :  { %4407 = vmatmul.mubr.msk.f32.gmra.mxu1 %vm743_vm1, %v2546_v3 }
 0xb51   :  { %4421 = vmatprep.mubr.msk.f32.mxu1 %vm4710_vm3, %v4709_v10 }
 0xb54   :  { %v2843_v2 = vpop.trf.xlu0 }
 0xb55   :  { %4426 = vmatprep.mubr.msk.f32.mxu0 %vm743_vm1, %v2843_v2 }
 0xb58   :  { %v2844_v28 = vpop.trf.xlu0 }
 0xb59   :  { %4427 = vmatmul.mubr.msk.f32.vlgmr.msra.gmra.mxu0 %vm743_vm1, %v2844_v28 }
 0xb5c   :  { %v2845_v37 = vpop.trf.xlu0 }
 0xb5d   :  { %4429 = vmatprep.mubr.msk.f32.mxu0 %vm743_vm1, %v2845_v37 }
 0xb60   :  { %v2846_v29 = vpop.trf.xlu0 }
 0xb61   :  { %4430 = vmatmul.mubr.msk.f32.gmra.mxu0 %vm743_vm1, %v2846_v29 }
 0xb64   :  { %v2847_v41 = vpop.trf.xlu0 }
 0xb65   :  { %4432 = vmatprep.mubr.msk.f32.mxu0 %vm743_vm1, %v2847_v41 }
 0xb68   :  { %v2848_v19 = vpop.trf.xlu0 }
 0xb69   :  { %4433 = vmatmul.mubr.msk.f32.gmra.mxu0 %vm743_vm1, %v2848_v19 }
 0xb6a   :  { %4447 = vmatprep.mubr.msk.f32.mxu0 %vm4710_vm3, %v4709_v10 }
 0xbd1   :  { %v5606_v48 = vpop.f32.mrf.mxu1 }
 0xbd3   :  { %v4371_v35 = vpop.f32.mrf.mxu1 }
 0xbf2   :  { %v5608_v30 = vpop.f32.mrf.mxu0 }
 0xbf4   :  { %v4397_v0 = vpop.f32.mrf.mxu0 }
 0xc00   :  { %v4402_v1 = vpop.f32.mrf.mxu1 }
 0xc01   :  { %v2647_v58 = vadd.f32 %v5415_v23, %v4402_v1 }
 0xc02   :  { %v2641_v51 = vpop.f32.mrf.mxu1 }
 0xc03   :  { %v2642_v36 = vadd.f32 %v5432_v21, %v2641_v51  ;;  %v2673_v33 = vsel %vm857_vm2, %v2647_v58, -inf }
 0xc05   :  { %v2670_v42 = vsel %vm857_vm2, %v2642_v36, -inf }
 0xc08   :  { %v4405_v52 = vpop.f32.mrf.mxu1 }
 0xc09   :  { %v2657_v60 = vadd.f32 %v5440_v25, %v4405_v52 }
 0xc0a   :  { %v2651_v63 = vpop.f32.mrf.mxu1 }
 0xc0b   :  { %v2652_v56 = vadd.f32 %v5449_v43, %v2651_v63  ;;  %v2679_v26 = vsel %vm857_vm2, %v2657_v60, -inf }
 0xc0d   :  { %v2676_v5 = vsel %vm857_vm2, %v2652_v56, -inf }
 0xc10   :  { %v4408_v53 = vpop.f32.mrf.mxu1 }
 0xc11   :  { %v2667_v39 = vadd.f32 %v5409_v12, %v4408_v53 }
 0xc12   :  { %v2661_v55 = vpop.f32.mrf.mxu1 }
 0xc13   :  { %v2685_v57 = vsel %vm857_vm2, %v2667_v39, -inf  ;;  %v2662_v18 = vadd.f32 %v5423_v27, %v2661_v55 }
 0xc14   :  { %2686 = vmax.xlane.f32.xlu0 %v2685_v57 }
 0xc15   :  { %v2682_v13 = vsel %vm857_vm2, %v2662_v18, -inf }
 0xc18   :  { %2683 = vmax.xlane.f32.xlu0 %v2682_v13 }
 0xc19   :  { %v4428_v16 = vpop.f32.mrf.mxu0 }
 0xc1b   :  { %v2943_v9 = vpop.f32.mrf.mxu0 }
 0xc1c   :  { %2680 = vmax.xlane.f32.xlu0 %v2679_v26 }
 0xc20   :  { %2677 = vmax.xlane.f32.xlu0 %v2676_v5 }
 0xc21   :  { %v4431_v40 = vpop.f32.mrf.mxu0 }
 0xc22   :  { %v5631_v14 = vadd.f32 %v5440_v25, %v4431_v40  ;;  %v5644_v25 = vadd.f32 %v5432_v21, %v2943_v9 }
 0xc23   :  { %v2953_v24 = vpop.f32.mrf.mxu0 }
 0xc24   :  { %2674 = vmax.xlane.f32.xlu0 %v2673_v33  ;;  %v5636_v15 = vadd.f32 %v5449_v43, %v2953_v24  ;;  %v2972_v43 = vsel %vm857_vm2, %v5644_v25, -inf }
 0xc26   :  { %v2978_v31 = vsel %vm857_vm2, %v5636_v15, -inf }
 0xc28   :  { %2671 = vmax.xlane.f32.xlu0 %v2670_v42 }
 0xc29   :  { %v4434_v4 = vpop.f32.mrf.mxu0 }
 0xc2a   :  { %v5623_v62 = vadd.f32 %v5409_v12, %v4434_v4  ;;  %v2981_v12 = vsel %vm857_vm2, %v5631_v14, -inf }
 0xc2b   :  { %v2963_v54 = vpop.f32.mrf.mxu0 }
 0xc2c   :  { %v5626_v47 = vadd.f32 %v5423_v27, %v2963_v54  ;;  %v2987_v45 = vsel %vm857_vm2, %v5623_v62, -inf  ;;  %v2949_v27 = vadd.f32 %v5415_v23, %v4428_v16 }
 0xc2d   :  { %2988 = vmax.xlane.f32.xlu1 %v2987_v45 }
 0xc2e   :  { %v2984_v61 = vsel %vm857_vm2, %v5626_v47, -inf  ;;  %v2975_v22 = vsel %vm857_vm2, %v2949_v27, -inf }
 0xc31   :  { %2985 = vmax.xlane.f32.xlu1 %v2984_v61 }
 0xc35   :  { %2982 = vmax.xlane.f32.xlu1 %v2981_v12 }
 0xc39   :  { %2979 = vmax.xlane.f32.xlu1 %v2978_v31 }
 0xc3d   :  { %2976 = vmax.xlane.f32.xlu1 %v2975_v22 }
 0xc41   :  { %2973 = vmax.xlane.f32.xlu1 %v2972_v43 }
 0xc9d   :  { %v2687_v34 = vpop.xlane.xlu0 %2686 }
 0xc9e   :  { %v2693_v46 = vsub.f32 %v2667_v39, %v2687_v34 }
 0xca0   :  { %v2704_v59 = vmul.f32 1.442695, %v2693_v46 }
 0xca1   :  { %v2684_v7 = vpop.xlane.xlu0 %2683 }
 0xca2   :  { %4624 = vpow2.f32 %v2704_v59  ;;  %v2692_v23 = vsub.f32 %v2662_v18, %v2684_v7 }
 0xca4   :  { %v2702_v17 = vmul.f32 1.442695, %v2692_v23 }
 0xca5   :  { %v2681_v20 = vpop.xlane.xlu0 %2680 }
 0xca6   :  { %4626 = vpow2.f32 %v2702_v17  ;;  %v2691_v38 = vsub.f32 %v2657_v60, %v2681_v20  ;;  %v151_v20 = vld [vmem:[%s6094_s10 + $0x38] sm:$0xff] }
 0xca8   :  { %v2700_v50 = vmul.f32 1.442695, %v2691_v38 }
 0xca9   :  { %v2678_v21 = vpop.xlane.xlu0 %2677 }
 0xcaa   :  { %4628 = vpow2.f32 %v2700_v50  ;;  %v2690_v3 = vsub.f32 %v2652_v56, %v2678_v21 }
 0xcac   :  { %v2698_v2 = vmul.f32 1.442695, %v2690_v3 }
 0xcad   :  { %v2675_v28 = vpop.xlane.xlu0 %2674 }
 0xcae   :  { %4630 = vpow2.f32 %v2698_v2  ;;  %v2689_v37 = vsub.f32 %v2647_v58, %v2675_v28 }
 0xcaf   :  { %v5649_v29 = vpop.eup %4624 }
 0xcb0   :  { %v2696_v41 = vmul.f32 1.442695, %v2689_v37  ;;  %v2721_v19 = vsel %vm857_vm2, %v5649_v29, 0.0 }
 0xcb1   :  { %2722 = vadd.xlane.f32.xlu0 %v2721_v19  ;;  %v2672_v35 = vpop.xlane.xlu0 %2671 }
 0xcb2   :  { %4632 = vpow2.f32 %v2696_v41  ;;  %v2688_v0 = vsub.f32 %v2642_v36, %v2672_v35 }
 0xcb3   :  { %v5653_v1 = vpop.eup %4626 }
 0xcb4   :  { %v2694_v51 = vmul.f32 1.442695, %v2688_v0  ;;  %v2718_v52 = vsel %vm857_vm2, %v5653_v1, 0.0 }
 0xcb5   :  { %2719 = vadd.xlane.f32.xlu0 %v2718_v52 }
 0xcb6   :  { %4634 = vpow2.f32 %v2694_v51  ;;  %v2989_v63 = vpop.xlane.xlu1 %2988 }
 0xcb7   :  { %v5657_v53 = vpop.eup %4628  ;;  %v2995_v24 = vsub.f32 %v5623_v62, %v2989_v63 }
 0xcb8   :  { %v2715_v39 = vsel %vm857_vm2, %v5657_v53, 0.0 }
 0xcb9   :  { %2716 = vadd.xlane.f32.xlu0 %v2715_v39  ;;  %v3006_v54 = vmul.f32 1.442695, %v2995_v24  ;;  %v159_v24 = vld [vmem:[%s6095_s11 + $0x38] sm:$0xff] }
 0xcba   :  { %v2986_v55 = vpop.xlane.xlu1 %2985 }
 0xcbb   :  { %v5661_v57 = vpop.eup %4630  ;;  %v2994_v45 = vsub.f32 %v5626_v47, %v2986_v55 }
 0xcbc   :  { %v2712_v18 = vsel %vm857_vm2, %v5661_v57, 0.0 }
 0xcbd   :  { %2713 = vadd.xlane.f32.xlu0 %v2712_v18  ;;  %v3004_v12 = vmul.f32 1.442695, %v2994_v45  ;;  %v155_v45 = vld [vmem:[%s6095_s11 + $0x18] sm:$0xff] }
 0xcbe   :  { %v2983_v60 = vpop.xlane.xlu1 %2982 }
 0xcbf   :  { %v5665_v13 = vpop.eup %4632  ;;  %v2993_v5 = vsub.f32 %v5631_v14, %v2983_v60 }
 0xcc0   :  { %v2709_v56 = vsel %vm857_vm2, %v5665_v13, 0.0 }
 0xcc1   :  { %2710 = vadd.xlane.f32.xlu0 %v2709_v56  ;;  %v3002_v33 = vmul.f32 1.442695, %v2993_v5 }
 0xcc2   :  { %v2980_v26 = vpop.xlane.xlu1 %2979 }
 0xcc3   :  { %v5669_v58 = vpop.eup %4634  ;;  %v2992_v40 = vsub.f32 %v5636_v15, %v2980_v26  ;;  %v150_v15 = vld [vmem:[%s6094_s10 + $0x30] sm:$0xff] }
 0xcc4   :  { %v2706_v16 = vsel %vm857_vm2, %v5669_v58, 0.0 }
 0xcc5   :  { %2707 = vadd.xlane.f32.xlu0 %v2706_v16  ;;  %v3000_v4 = vmul.f32 1.442695, %v2992_v40 }
 0xcc6   :  { %v2977_v36 = vpop.xlane.xlu1 %2976 }
 0xcc7   :  { %v2991_v9 = vsub.f32 %v2949_v27, %v2977_v36 }
 0xcc9   :  { %v2998_v42 = vmul.f32 1.442695, %v2991_v9 }
 0xcca   :  { %v2974_v61 = vpop.xlane.xlu1 %2973 }
 0xccb   :  { %4636 = vpow2.f32 %v2998_v42  ;;  %v2990_v14 = vsub.f32 %v5644_v25, %v2974_v61  ;;  %v154_v61 = vld [vmem:[%s6095_s11 + $0x10] sm:$0xff] }
 0xccc   :  { %4638 = vpow2.f32 %v3002_v33 }
 0xccd   :  { %4640 = vpow2.f32 %v3000_v4  ;;  %v2996_v27 = vmul.f32 1.442695, %v2990_v14  ;;  %v158_v4 = vld [vmem:[%s6095_s11 + $0x30] sm:$0xff] }
 0xcce   :  { %4642 = vpow2.f32 %v3006_v54  ;;  %v157_v54 = vld [vmem:[%s6095_s11 + $0x28] sm:$0xff] }
 0xccf   :  { %4644 = vpow2.f32 %v3004_v12 }
 0xcd0   :  { %4646 = vpow2.f32 %v2996_v27 }
 0xcd8   :  { %v5678_v31 = vpop.eup %4636 }
 0xcd9   :  { %v3011_v62 = vsel %vm857_vm2, %v5678_v31, 0.0  ;;  %v5685_v22 = vpop.eup %4638 }
 0xcda   :  { %3012 = vadd.xlane.f32.xlu1 %v3011_v62  ;;  %v3017_v47 = vsel %vm857_vm2, %v5685_v22, 0.0  ;;  %v5689_v25 = vpop.eup %4640 }
 0xcdb   :  { %562 = vperm.xlu0 %4478, %v150_v15   ;;  %v3014_v43 = vsel %vm857_vm2, %v5689_v25, 0.0  ;;  %v5693_v34 = vpop.eup %4642  ;;  %v152_v15 = vld [vmem:[%s6095_s11] sm:$0xff] }
 0xcdc   :  { %v3023_v46 = vsel %vm857_vm2, %v5693_v34, 0.0  ;;  %v5697_v59 = vpop.eup %4644 }
 0xcdd   :  { %v3020_v7 = vsel %vm857_vm2, %v5697_v59, 0.0  ;;  %v5701_v23 = vpop.eup %4646 }
 0xcde   :  { %3018 = vadd.xlane.f32.xlu1 %v3017_v47  ;;  %v3008_v17 = vsel %vm857_vm2, %v5701_v23, 0.0 }
 0xce2   :  { %3015 = vadd.xlane.f32.xlu1 %v3014_v43 }
 0xce6   :  { %3024 = vadd.xlane.f32.xlu1 %v3023_v46 }
 0xcea   :  { %3021 = vadd.xlane.f32.xlu1 %v3020_v7  ;;  %v3946_v7 = vld [vmem:[%s6096_s12] ss:$0 sm:$0xff] }
 0xcee   :  { %3009 = vadd.xlane.f32.xlu1 %v3008_v17 }
 0xcff   :  { %567 = vperm.xlu1 %4479, %v151_v20  }
 0xd28   :  { %3135 = vxpose.xlu1.b32.start [1/8] (short) (narrow) %v5160_v11, 48 }
 0xd2c   :  { %3136 = vxpose.xlu1.b32.cont [2/8] (short) (narrow) %v5236_v49, 48 }
 0xd30   :  { %3137 = vxpose.xlu1.b32.cont [3/8] (short) (narrow) %v5402_v32, 48 }
 0xd34   :  { %3138 = vxpose.xlu1.b32.cont [4/8] (short) (narrow) %v5404_v44, 48 }
 0xd38   :  { %3139 = vxpose.xlu1.b32.cont [5/8] (short) (narrow) %v5606_v48, 48 }
 0xd3a   :  { %v2723_v38 = vpop.xlane.xlu0 %2722 }
 0xd3b   :  { %4648 = vrcp.f32 %v2723_v38  ;;  %v4702_v38 = vld [vmem:[%s6119_s26] sm:$0xff] }
 0xd3c   :  { %3140 = vxpose.xlu1.b32.cont [6/8] (short) (narrow) %v5608_v30, 48 }
 0xd3e   :  { %v2720_v50 = vpop.xlane.xlu0 %2719 }
 0xd3f   :  { %4650 = vrcp.f32 %v2720_v50 }
 0xd42   :  { %v2717_v21 = vpop.xlane.xlu0 %2716 }
 0xd43   :  { %4652 = vrcp.f32 %v2717_v21  ;;  %v4703_v21 = vld [vmem:[%s6119_s26 + $0x8] sm:$0xff] }
 0xd46   :  { %v2714_v3 = vpop.xlane.xlu0 %2713 }
 0xd47   :  { %4654 = vrcp.f32 %v2714_v3 }
 0xd48   :  { %v4649_v2 = vpop.eup %4648 }
 0xd49   :  { %v2735_v11 = vmul.f32 %v4649_v2, %v5649_v29 }
 0xd4a   :  { %v2711_v49 = vpop.xlane.xlu0 %2710 }
 0xd4b   :  { %4656 = vrcp.f32 %v2711_v49  ;;  %4410 = vmatpush3.xpose.msk.msra.mxu1 %vm857_vm2, %v2735_v11 }
 0xd4c   :  { %v4651_v32 = vpop.eup %4650  ;;  %4411 = vmatprep.subr.mxu1 %v4709_v10 }
 0xd4d   :  { %v2734_v44 = vmul.f32 %v4651_v32, %v5653_v1 }
 0xd4e   :  { %v2708_v48 = vpop.xlane.xlu0 %2707 }
 0xd4f   :  { %4658 = vrcp.f32 %v2708_v48  ;;  %4412 = vmatpush3.xpose.msk.msra.mxu1 %vm857_vm2, %v2734_v44 }
 0xd50   :  { %v4653_v30 = vpop.eup %4652  ;;  %4413 = vmatprep.subr.mxu1 %v4709_v10 }
 0xd51   :  { %v2733_v28 = vmul.f32 %v4653_v30, %v5657_v53  ;;  %v4704_v30 = vld [vmem:[%s6119_s26 + $0x10] sm:$0xff] }
 0xd53   :  { %4414 = vmatpush3.xpose.msk.msra.mxu1 %vm857_vm2, %v2733_v28 }
 0xd54   :  { %v4655_v37 = vpop.eup %4654  ;;  %4415 = vmatprep.subr.mxu1 %v4709_v10 }
 0xd55   :  { %v2732_v29 = vmul.f32 %v4655_v37, %v5661_v57  ;;  %v4705_v37 = vld [vmem:[%s6119_s26 + $0x18] sm:$0xff] }
 0xd56   :  { %v563_v0 = vpop.permute.xlu0 %562 }
 0xd57   :  { %4416 = vmatpush3.xpose.msk.msra.mxu1 %vm857_vm2, %v2732_v29  ;;  %v703_v51 = vadd.f32 %v5158_v8, %v563_v0 }
 0xd58   :  { %v4657_v41 = vpop.eup %4656  ;;  %4417 = vmatprep.subr.mxu1 %v4709_v10 }
 0xd59   :  { %v2731_v19 = vmul.f32 %v4657_v41, %v5665_v13 }
 0xd5b   :  { %4418 = vmatpush3.xpose.msk.msra.mxu1 %vm857_vm2, %v2731_v19 }
 0xd5c   :  { %v4659_v35 = vpop.eup %4658  ;;  %4419 = vmatprep.subr.mxu1 %v4709_v10 }
 0xd5d   :  { %v2730_v1 = vmul.f32 %v4659_v35, %v5669_v58 }
 0xd5f   :  { %4420 = vmatpush3.xpose.msk.msra.mxu1 %vm857_vm2, %v2730_v1 }
 0xd60   :  { %4450 = vmatprep.subr.mxu1 %v159_v24 }
 0xd62   :  { %4422 = vmatmul.mubr.msk.f32.vlgmr.msra.gmra.mxu1 %vm857_vm2, %v703_v51 }
 0xd63   :  { %v3013_v52 = vpop.xlane.xlu1 %3012  ;;  %4451 = vmatpush3.msra.mxu1 %v159_v24 }
 0xd64   :  { %4452 = vmatprep.subr.mxu1 %v158_v4 }
 0xd65   :  { %4453 = vmatpush3.msra.mxu1 %v158_v4 }
 0xd66   :  { %4454 = vmatprep.subr.mxu1 %v157_v54 }
 0xd67   :  { %v3019_v63 = vpop.xlane.xlu1 %3018  ;;  %4455 = vmatpush3.msra.mxu1 %v157_v54 }
 0xd6b   :  { %v3016_v53 = vpop.xlane.xlu1 %3015 }
 0xd6f   :  { %v3025_v39 = vpop.xlane.xlu1 %3024 }
 0xd70   :  { %4660 = vrcp.f32 %v3025_v39 }
 0xd73   :  { %v3022_v55 = vpop.xlane.xlu1 %3021 }
 0xd74   :  { %4662 = vrcp.f32 %v3022_v55 }
 0xd75   :  { %4664 = vrcp.f32 %v3019_v63 }
 0xd76   :  { %4666 = vrcp.f32 %v3016_v53  ;;  %v4707_v53 = vld [vmem:[%s6119_s26 + $0x28] sm:$0xff] }
 0xd77   :  { %4668 = vrcp.f32 %v3013_v52  ;;  %v3010_v60 = vpop.xlane.xlu1 %3009  ;;  %v4706_v52 = vld [vmem:[%s6119_s26 + $0x20] sm:$0xff] }
 0xd78   :  { %4670 = vrcp.f32 %v3010_v60 }
 0xd7b   :  { %v568_v33 = vpop.permute.xlu1 %567 }
 0xd7c   :  { %v708_v42 = vadd.f32 %v5156_v6, %v568_v33  ;;  %v156_v6 = vld [vmem:[%s6095_s11 + $0x20] sm:$0xff] }
 0xd7d   :  { %v4661_v57 = vpop.eup %4660  ;;  %4456 = vmatprep.subr.mxu1 %v156_v6 }
 0xd7e   :  { %v3037_v18 = vmul.f32 %v4661_v57, %v5693_v34  ;;  %4457 = vmatpush3.msra.mxu1 %v156_v6 }
 0xd7f   :  { %4458 = vmatprep.subr.mxu1 %v155_v45 }
 0xd80   :  { %4436 = vmatpush3.xpose.msk.msra.mxu0 %vm857_vm2, %v3037_v18  ;;  %4459 = vmatpush3.msra.mxu1 %v155_v45 }
 0xd81   :  { %v4663_v13 = vpop.eup %4662  ;;  %4437 = vmatprep.subr.mxu0 %v4709_v10  ;;  %4460 = vmatprep.subr.mxu1 %v154_v61 }
 0xd82   :  { %v3036_v8 = vmul.f32 %v4663_v13, %v5697_v59  ;;  %v4665_v56 = vpop.eup %4664  ;;  %4461 = vmatpush3.msra.mxu1 %v154_v61 }
 0xd83   :  { %v3035_v26 = vmul.f32 %v4665_v56, %v5685_v22  ;;  %v4667_v58 = vpop.eup %4666 }
 0xd84   :  { %4438 = vmatpush3.xpose.msk.msra.mxu0 %vm857_vm2, %v3036_v8  ;;  %v3034_v16 = vmul.f32 %v4667_v58, %v5689_v25  ;;  %v4669_v5 = vpop.eup %4668 }
 0xd85   :  { %4439 = vmatprep.subr.mxu0 %v4709_v10  ;;  %v3033_v36 = vmul.f32 %v4669_v5, %v5678_v31  ;;  %v4671_v9 = vpop.eup %4670  ;;  %v153_v31 = vld [vmem:[%s6095_s11 + $0x8] sm:$0xff] }
 0xd86   :  { %v3032_v40 = vmul.f32 %v4671_v9, %v5701_v23  ;;  %4462 = vmatprep.subr.mxu1 %v153_v31 }
 0xd87   :  { %4463 = vmatpush3.msra.mxu1 %v153_v31 }
 0xd88   :  { %4440 = vmatpush3.xpose.msk.msra.mxu0 %vm857_vm2, %v3035_v26  ;;  %4464 = vmatprep.subr.mxu1 %v152_v15 }
 0xd89   :  { %4441 = vmatprep.subr.mxu0 %v4709_v10  ;;  %4465 = vmatpush3.msra.mxu1 %v152_v15 }
 0xd8c   :  { %4442 = vmatpush3.xpose.msk.msra.mxu0 %vm857_vm2, %v3034_v16 }
 0xd8d   :  { %4443 = vmatprep.subr.mxu0 %v4709_v10 }
 0xd90   :  { %4444 = vmatpush3.xpose.msk.msra.mxu0 %vm857_vm2, %v3033_v36 }
 0xd91   :  { %4445 = vmatprep.subr.mxu0 %v4709_v10 }
 0xd94   :  { %4446 = vmatpush3.xpose.msk.msra.mxu0 %vm857_vm2, %v3032_v40 }
 0xd97   :  { %4448 = vmatmul.mubr.msk.f32.vlgmr.msra.gmra.mxu0 %vm857_vm2, %v708_v42 }
 0xe22   :  { %v2823_v12 = vpop.f32.mrf.mxu1 }
 0xe23   :  { %3141 = vxpose.xlu1.b32.cont [7/8] (short) (narrow) %v2823_v12, 48 }
 0xe24   :  { %v4423_v14 = vpop.f32.mrf.mxu1 }
 0xe57   :  { %v3125_v27 = vpop.f32.mrf.mxu0 }
 0xe58   :  { %3142 = vxpose.xlu1.b32.end [8/8] (short) (narrow) %v3125_v27, 48 }
 0xe59   :  { %v4449_v62 = vpop.f32.mrf.mxu0 }
 0xeb8   :  { %v3151_v22 = vpop.trf.xlu1 }
 0xeb9   :  { %4466 = vmatprep.mubr.msk.f32.mxu1 %vm201_vm0, %v3151_v22 }
 0xebc   :  { %v3152_v47 = vpop.trf.xlu1 }
 0xebd   :  { %4467 = vmatmul.mubr.msk.f32.vlgmr.msra.gmra.mxu1 %vm201_vm0, %v3152_v47 }
 0xec0   :  { %v3153_v25 = vpop.trf.xlu1 }
 0xec1   :  { %4469 = vmatprep.mubr.msk.f32.mxu1 %vm201_vm0, %v3153_v25 }
 0xec4   :  { %v3154_v43 = vpop.trf.xlu1 }
 0xec5   :  { %4470 = vmatmul.mubr.msk.f32.gmra.mxu1 %vm201_vm0, %v3154_v43 }
 0xec8   :  { %v3155_v34 = vpop.trf.xlu1 }
 0xec9   :  { %4472 = vmatprep.mubr.msk.f32.mxu1 %vm201_vm0, %v3155_v34  ;;  %v3406_v34 = vld [vmem:[%s6097_s15 + $0x78] sm:$0xff] }
 0xeca   :  { %3453 = vmatprep.subr.mxu1 %v3406_v34 }
 0xecc   :  { %v3156_v46 = vpop.trf.xlu1 }
 0xecd   :  { %4473 = vmatmul.mubr.msk.f32.gmra.mxu1 %vm201_vm0, %v3156_v46  ;;  %v3405_v46 = vld [vmem:[%s6097_s15 + $0x70] sm:$0xff] }
 0xece   :  { %3501 = vmatprep.mubr.f32.mxu1 %v4709_v10  ;;  %3454 = vmatpush1.msra.mxu1 %v3405_v46 }
 0xf7d   :  { %v4468_v59 = vpop.f32.mrf.mxu1 }
 0xf7e   :  { %v3257_v17 = vadd.f32 %v4468_v59, %v3946_v7  ;;  %v3404_v59 = vld [vmem:[%s6097_s15 + $0x68] sm:$0xff] }
 0xf7f   :  { %v3251_v23 = vpop.f32.mrf.mxu1  ;;  %3455 = vmatprep.subr.mxu1 %v3404_v59  ;;  %v3954_v59 = vld [vmem:[%s6125_s25] ss:$0 sm:$0xff] }
 0xf80   :  { %v3252_v20 = vadd.f32 %v3946_v7, %v3251_v23  ;;  %v3281_v3 = vadd.f32 %v4703_v21, %v3257_v17  ;;  %v3402_v23 = vld [vmem:[%s6097_s15 + $0x58] sm:$0xff]  ;;  %v3401_v17 = vld [vmem:[%s6097_s15 + $0x50] sm:$0xff] }
 0xf81   :  { %v3397_v21 = vld [vmem:[%s6097_s15 + $0x30] sm:$0xff] }
 0xf82   :  { %v3280_v50 = vadd.f32 %v4702_v38, %v3252_v20  ;;  %v3291_v48 = vsel %vm201_vm0, %v3281_v3, 0.0  ;;  %v3400_v20 = vld [vmem:[%s6097_s15 + $0x48] sm:$0xff]  ;;  %v3399_v38 = vld [vmem:[%s6097_s15 + $0x40] sm:$0xff] }
 0xf84   :  { %v3288_v2 = vsel %vm201_vm0, %v3280_v50, 0.0 }
 0xf85   :  { %3289 = vadd.xlane.f32.xlu0 %v3288_v2  ;;  %v4471_v11 = vpop.f32.mrf.mxu1  ;;  %v3395_v2 = vld [vmem:[%s6097_s15 + $0x20] sm:$0xff] }
 0xf86   :  { %v3267_v32 = vadd.f32 %v4471_v11, %v3946_v7  ;;  %v3394_v11 = vld [vmem:[%s6097_s15 + $0x18] sm:$0xff] }
 0xf87   :  { %v3261_v49 = vpop.f32.mrf.mxu1 }
 0xf88   :  { %v3262_v44 = vadd.f32 %v3946_v7, %v3261_v49  ;;  %v3283_v29 = vadd.f32 %v4705_v37, %v3267_v32  ;;  %v3393_v49 = vld [vmem:[%s6097_s15 + $0x10] sm:$0xff]  ;;  %v3392_v32 = vld [vmem:[%s6097_s15 + $0x8] sm:$0xff] }
 0xf89   :  { %3292 = vadd.xlane.f32.xlu0 %v3291_v48  ;;  %v3581_v48 = vld [vmem:[%s6098_s17 + $0xf8] sm:$0xff]  ;;  %v3564_v37 = vld [vmem:[%s6098_s17 + $0x70] sm:$0xff] }
 0xf8a   :  { %v3282_v28 = vadd.f32 %v4704_v30, %v3262_v44  ;;  %v3297_v51 = vsel %vm201_vm0, %v3283_v29, 0.0  ;;  %v3391_v44 = vld [vmem:[%s6097_s15] sm:$0xff]  ;;  %v3565_v30 = vld [vmem:[%s6098_s17 + $0x78] sm:$0xff]  ;;  %4128 = vmatprep.subr.mxu0 %v3581_v48 }
 0xf8b   :  { %4129 = vmatpush3.msra.mxu0 %v3565_v30 }
 0xf8c   :  { %v3294_v41 = vsel %vm201_vm0, %v3282_v28, 0.0 }
 0xf8d   :  { %3295 = vadd.xlane.f32.xlu0 %v3294_v41  ;;  %v4474_v19 = vpop.f32.mrf.mxu1  ;;  %v3563_v41 = vld [vmem:[%s6098_s17 + $0x68] sm:$0xff] }
 0xf8e   :  { %v3277_v0 = vadd.f32 %v4474_v19, %v3946_v7  ;;  %v3578_v19 = vld [vmem:[%s6098_s17 + $0xe0] sm:$0xff] }
 0xf8f   :  { %v3271_v35 = vpop.f32.mrf.mxu1 }
 0xf90   :  { %v3272_v1 = vadd.f32 %v3946_v7, %v3271_v35  ;;  %v3285_v39 = vadd.f32 %v4707_v53, %v3277_v0  ;;  %v3403_v7 = vld [vmem:[%s6097_s15 + $0x60] sm:$0xff]  ;;  %v3577_v0 = vld [vmem:[%s6098_s17 + $0xd8] sm:$0xff]  ;;  %v3559_v53 = vld [vmem:[%s6098_s17 + $0x48] sm:$0xff] }
 0xf91   :  { %3298 = vadd.xlane.f32.xlu0 %v3297_v51  ;;  %3456 = vmatpush1.msra.mxu1 %v3403_v7  ;;  %v3562_v35 = vld [vmem:[%s6098_s17 + $0x60] sm:$0xff]  ;;  %v3576_v51 = vld [vmem:[%s6098_s17 + $0xd0] sm:$0xff] }
 0xf92   :  { %v3284_v63 = vadd.f32 %v4706_v52, %v3272_v1  ;;  %v3303_v57 = vsel %vm201_vm0, %v3285_v39, 0.0  ;;  %3457 = vmatprep.subr.mxu1 %v3402_v23  ;;  %v3561_v1 = vld [vmem:[%s6098_s17 + $0x58] sm:$0xff]  ;;  %v3560_v52 = vld [vmem:[%s6098_s17 + $0x50] sm:$0xff] }
 0xf93   :  { %3458 = vmatpush1.msra.mxu1 %v3401_v17 }
 0xf94   :  { %v3300_v55 = vsel %vm201_vm0, %v3284_v63, 0.0  ;;  %3459 = vmatprep.subr.mxu1 %v3400_v20 }
 0xf95   :  { %3301 = vadd.xlane.f32.xlu0 %v3300_v55  ;;  %3460 = vmatpush1.msra.mxu1 %v3399_v38  ;;  %v3558_v55 = vld [vmem:[%s6098_s17 + $0x40] sm:$0xff] }
 0xf99   :  { %3304 = vadd.xlane.f32.xlu0 %v3303_v57  ;;  %v3573_v57 = vld [vmem:[%s6098_s17 + $0xb8] sm:$0xff] }
0x100e   :  { %v3290_v18 = vpop.xlane.xlu0 %3289 }
0x100f   :  { %v3307_v60 = vmul.f32 0.015625, %v3290_v18  ;;  %v3557_v18 = vld [vmem:[%s6098_s17 + $0x38] sm:$0xff] }
0x1011   :  { %v5810_v13 = vsub.f32 %v3280_v50, %v3307_v60  ;;  %v3398_v50 = vld [vmem:[%s6097_s15 + $0x38] sm:$0xff]  ;;  %v3572_v60 = vld [vmem:[%s6098_s17 + $0xb0] sm:$0xff] }
0x1012   :  { %v3293_v8 = vpop.xlane.xlu0 %3292  ;;  %3461 = vmatprep.subr.mxu1 %v3398_v50 }
0x1013   :  { %v3308_v56 = vmul.f32 0.015625, %v3293_v8  ;;  %v3319_v26 = vmul.f32 %v5810_v13, %v5810_v13  ;;  %3462 = vmatpush1.msra.mxu1 %v3397_v21  ;;  %v3556_v8 = vld [vmem:[%s6098_s17 + $0x30] sm:$0xff] }
0x1015   :  { %v5814_v58 = vsub.f32 %v3281_v3, %v3308_v56  ;;  %v3325_v16 = vsel %vm201_vm0, %v3319_v26, 0.0  ;;  %v3396_v3 = vld [vmem:[%s6097_s15 + $0x28] sm:$0xff] }
0x1016   :  { %v3296_v5 = vpop.xlane.xlu0 %3295  ;;  %3326 = vadd.xlane.f32.xlu0 %v3325_v16  ;;  %3463 = vmatprep.subr.mxu1 %v3396_v3  ;;  %v3571_v56 = vld [vmem:[%s6098_s17 + $0xa8] sm:$0xff]  ;;  %v3570_v16 = vld [vmem:[%s6098_s17 + $0xa0] sm:$0xff] }
0x1017   :  { %v3309_v36 = vmul.f32 0.015625, %v3296_v5  ;;  %v3320_v9 = vmul.f32 %v5814_v58, %v5814_v58  ;;  %3464 = vmatpush1.msra.mxu1 %v3395_v2  ;;  %v3555_v26 = vld [vmem:[%s6098_s17 + $0x28] sm:$0xff]  ;;  %v3554_v5 = vld [vmem:[%s6098_s17 + $0x20] sm:$0xff] }
0x1018   :  { %3465 = vmatprep.subr.mxu1 %v3394_v11 }
0x1019   :  { %v5819_v33 = vsub.f32 %v3282_v28, %v3309_v36  ;;  %v3328_v40 = vsel %vm201_vm0, %v3320_v9, 0.0  ;;  %3466 = vmatpush1.msra.mxu1 %v3393_v49  ;;  %v3580_v28 = vld [vmem:[%s6098_s17 + $0xf0] sm:$0xff] }
0x101a   :  { %v3299_v42 = vpop.xlane.xlu0 %3298  ;;  %3329 = vadd.xlane.f32.xlu0 %v3328_v40  ;;  %3467 = vmatprep.subr.mxu1 %v3392_v32 }
0x101b   :  { %v3310_v24 = vmul.f32 0.015625, %v3299_v42  ;;  %v3321_v4 = vmul.f32 %v5819_v33, %v5819_v33  ;;  %3468 = vmatpush1.msra.mxu1 %v3391_v44  ;;  %4130 = vmatprep.subr.mxu0 %v3580_v28 }
0x101c   :  { %4131 = vmatpush3.msra.mxu0 %v3564_v37 }
0x101d   :  { %v5824_v54 = vsub.f32 %v3283_v29, %v3310_v24  ;;  %v3331_v6 = vsel %vm201_vm0, %v3321_v4, 0.0  ;;  %v3579_v29 = vld [vmem:[%s6098_s17 + $0xe8] sm:$0xff] }
0x101e   :  { %3332 = vadd.xlane.f32.xlu0 %v3331_v6  ;;  %v3302_v45 = vpop.xlane.xlu0 %3301  ;;  %4132 = vmatprep.subr.mxu0 %v3579_v29 }
0x101f   :  { %v3311_v61 = vmul.f32 0.015625, %v3302_v45  ;;  %v3322_v12 = vmul.f32 %v5824_v54, %v5824_v54  ;;  %4133 = vmatpush3.msra.mxu0 %v3563_v41 }
0x1020   :  { %4134 = vmatprep.subr.mxu0 %v3578_v19 }
0x1021   :  { %v5829_v14 = vsub.f32 %v3284_v63, %v3311_v61  ;;  %v3334_v31 = vsel %vm201_vm0, %v3322_v12, 0.0  ;;  %4135 = vmatpush3.msra.mxu0 %v3562_v35  ;;  %v3575_v63 = vld [vmem:[%s6098_s17 + $0xc8] sm:$0xff]  ;;  %v3568_v35 = vld [vmem:[%s6098_s17 + $0x90] sm:$0xff] }
0x1022   :  { %3335 = vadd.xlane.f32.xlu0 %v3334_v31  ;;  %v3305_v15 = vpop.xlane.xlu0 %3304  ;;  %4136 = vmatprep.subr.mxu0 %v3577_v0  ;;  %v3567_v0 = vld [vmem:[%s6098_s17 + $0x88] sm:$0xff] }
0x1023   :  { %v3312_v27 = vmul.f32 0.015625, %v3305_v15  ;;  %v3323_v62 = vmul.f32 %v5829_v14, %v5829_v14  ;;  %4137 = vmatpush3.msra.mxu0 %v3561_v1  ;;  %v3551_v1 = vld [vmem:[%s6098_s17 + $0x8] sm:$0xff] }
0x1024   :  { %4138 = vmatprep.subr.mxu0 %v3576_v51  ;;  %v3566_v51 = vld [vmem:[%s6098_s17 + $0x80] sm:$0xff] }
0x1025   :  { %v5834_v22 = vsub.f32 %v3285_v39, %v3312_v27  ;;  %v3337_v47 = vsel %vm201_vm0, %v3323_v62, 0.0  ;;  %4139 = vmatpush3.msra.mxu0 %v3560_v52  ;;  %v3574_v39 = vld [vmem:[%s6098_s17 + $0xc0] sm:$0xff] }
0x1026   :  { %3338 = vadd.xlane.f32.xlu0 %v3337_v47  ;;  %4140 = vmatprep.subr.mxu0 %v3575_v63  ;;  %v3550_v52 = vld [vmem:[%s6098_s17] sm:$0xff]  ;;  %v3409_v63 = vlaneseq }
0x1027   :  { %v3324_v25 = vmul.f32 %v5834_v22, %v5834_v22  ;;  %4141 = vmatpush3.msra.mxu0 %v3559_v53 }
0x1028   :  { %4142 = vmatprep.subr.mxu0 %v3574_v39  ;;  %v3410_v53 = vshrl.u32 %v3409_v63, 7 }
0x1029   :  { %v3340_v43 = vsel %vm201_vm0, %v3324_v25, 0.0  ;;  %4143 = vmatpush3.msra.mxu0 %v3558_v55  ;;  %v3953_v25 = vld [vmem:[%s6099_s13] ss:$0 sm:$0xff] }
0x102a   :  { %3341 = vadd.xlane.f32.xlu1 %v3340_v43  ;;  %4144 = vmatprep.subr.mxu0 %v3573_v57  ;;  %v3411_v39 = vsub.s32 0, %v3410_v53  ;;  %v3407_v55 = vld [vmem:[%s6101_s16] sm:$0x3]  ;;  %v3415_v57 = vsub.s32 1, %v3410_v53 }
0x102b   :  { %4145 = vmatpush3.msra.mxu0 %v3557_v18 }
0x102c   :  { %4146 = vmatprep.subr.mxu0 %v3572_v60  ;;  %v3412_v18 = vrot.slane %v3407_v55, %v3411_v39  ;;  %v3416_v60 = vrot.slane %v3407_v55, %v3415_v57 }
0x102d   :  { %4147 = vmatpush3.msra.mxu0 %v3556_v8 }
0x102e   :  { %4148 = vmatprep.subr.mxu0 %v3571_v56 }
0x102f   :  { %4149 = vmatpush3.msra.mxu0 %v3555_v26 }
0x1030   :  { %4150 = vmatprep.subr.mxu0 %v3570_v16 }
0x1031   :  { %4151 = vmatpush3.msra.mxu0 %v3554_v5 }
0x109f   :  { %v3327_v36 = vpop.xlane.xlu0 %3326 }
0x10a0   :  { %v3343_v9 = vmul.f32 0.015625, %v3327_v36 }
0x10a2   :  { %v3349_v40 = vadd.f32 1e-05, %v3343_v9 }
0x10a3   :  { %v3330_v42 = vpop.xlane.xlu0 %3329 }
0x10a4   :  { %4672 = vrsqrt.f32 %v3349_v40  ;;  %v3344_v24 = vmul.f32 0.015625, %v3330_v42 }
0x10a6   :  { %v3350_v4 = vadd.f32 1e-05, %v3344_v24 }
0x10a7   :  { %v3333_v6 = vpop.xlane.xlu0 %3332 }
0x10a8   :  { %4674 = vrsqrt.f32 %v3350_v4  ;;  %v3345_v45 = vmul.f32 0.015625, %v3333_v6 }
0x10aa   :  { %v3351_v61 = vadd.f32 1e-05, %v3345_v45 }
0x10ab   :  { %v3336_v12 = vpop.xlane.xlu0 %3335 }
0x10ac   :  { %4676 = vrsqrt.f32 %v3351_v61  ;;  %v3346_v31 = vmul.f32 0.015625, %v3336_v12 }
0x10ae   :  { %v3352_v15 = vadd.f32 1e-05, %v3346_v31 }
0x10af   :  { %v3339_v27 = vpop.xlane.xlu0 %3338 }
0x10b0   :  { %4678 = vrsqrt.f32 %v3352_v15  ;;  %v3347_v62 = vmul.f32 0.015625, %v3339_v27 }
0x10b1   :  { %v4673_v47 = vpop.eup %4672 }
0x10b2   :  { %v3361_v43 = vmul.f32 %v4673_v47, %v5810_v13  ;;  %v3353_v34 = vadd.f32 1e-05, %v3347_v62 }
0x10b3   :  { %v3342_v46 = vpop.xlane.xlu1 %3341 }
0x10b4   :  { %v3373_v7 = vmul.f32 %v3953_v25, %v3361_v43  ;;  %4680 = vrsqrt.f32 %v3353_v34  ;;  %v3348_v23 = vmul.f32 0.015625, %v3342_v46 }
0x10b5   :  { %v4675_v17 = vpop.eup %4674 }
0x10b6   :  { %v3354_v20 = vadd.f32 1e-05, %v3348_v23  ;;  %v5967_v38 = vadd.f32 %v3954_v59, %v3373_v7  ;;  %v3362_v50 = vmul.f32 %v4675_v17, %v5814_v58 }
0x10b8   :  { %4682 = vrsqrt.f32 %v3354_v20  ;;  %3955 = vmatmul.mubr.msk.f32.vlgmr.msra.gmra.mxu1 %vm201_vm0, %v5967_v38  ;;  %v3374_v13 = vmul.f32 %v3953_v25, %v3362_v50 }
0x10b9   :  { %v4677_v21 = vpop.eup %4676  ;;  %3507 = vmatprep.mubr.f32.mxu1 %v4709_v10 }
0x10ba   :  { %v5973_v3 = vadd.f32 %v3954_v59, %v3374_v13  ;;  %v3363_v2 = vmul.f32 %v4677_v21, %v5819_v33 }
0x10bc   :  { %3956 = vmatmul.mubr.msk.f32.gmra.mxu1 %vm201_vm0, %v5973_v3  ;;  %v3375_v11 = vmul.f32 %v3953_v25, %v3363_v2 }
0x10bd   :  { %v4679_v49 = vpop.eup %4678  ;;  %3513 = vmatprep.mubr.f32.mxu1 %v4709_v10 }
0x10be   :  { %v5979_v58 = vadd.f32 %v3954_v59, %v3375_v11  ;;  %v3364_v32 = vmul.f32 %v4679_v49, %v5824_v54 }
0x10c0   :  { %3957 = vmatmul.mubr.msk.f32.gmra.mxu1 %vm201_vm0, %v5979_v58  ;;  %v3376_v44 = vmul.f32 %v3953_v25, %v3364_v32 }
0x10c1   :  { %v4681_v48 = vpop.eup %4680  ;;  %3519 = vmatprep.mubr.f32.mxu1 %v4709_v10 }
0x10c2   :  { %v5985_v30 = vadd.f32 %v3954_v59, %v3376_v44  ;;  %v3365_v33 = vmul.f32 %v4681_v48, %v5829_v14  ;;  %v3569_v14 = vld [vmem:[%s6098_s17 + $0x98] sm:$0xff]  ;;  %v3961_v48 = vld [vmem:[%s6102_s18] ss:$0 sm:$0xff] }
0x10c3   :  { %4152 = vmatprep.subr.mxu0 %v3569_v14 }
0x10c4   :  { %3958 = vmatmul.mubr.msk.f32.gmra.mxu1 %vm201_vm0, %v5985_v30  ;;  %v3377_v28 = vmul.f32 %v3953_v25, %v3365_v33 }
0x10c5   :  { %v4683_v37 = vpop.eup %4682  ;;  %3525 = vmatprep.mubr.f32.mxu1 %v4709_v10 }
0x10c6   :  { %v5991_v29 = vadd.f32 %v3954_v59, %v3377_v28  ;;  %v3366_v54 = vmul.f32 %v4683_v37, %v5834_v22  ;;  %v3553_v22 = vld [vmem:[%s6098_s17 + $0x18] sm:$0xff] }
0x10c7   :  { %4153 = vmatpush3.msra.mxu0 %v3553_v22 }
0x10c8   :  { %3959 = vmatmul.mubr.msk.f32.gmra.mxu1 %vm201_vm0, %v5991_v29  ;;  %v3378_v41 = vmul.f32 %v3953_v25, %v3366_v54  ;;  %4154 = vmatprep.subr.mxu0 %v3568_v35 }
0x10c9   :  { %3531 = vmatprep.mubr.f32.mxu1 %v4709_v10  ;;  %v3552_v10 = vld [vmem:[%s6098_s17 + $0x10] sm:$0xff] }
0x10ca   :  { %v5997_v19 = vadd.f32 %v3954_v59, %v3378_v41  ;;  %4155 = vmatpush3.msra.mxu0 %v3552_v10 }
0x10cb   :  { %4156 = vmatprep.subr.mxu0 %v3567_v0 }
0x10cc   :  { %3960 = vmatmul.mubr.msk.f32.gmra.mxu1 %vm201_vm0, %v5997_v19  ;;  %4157 = vmatpush3.msra.mxu0 %v3551_v1 }
0x10cd   :  { %4158 = vmatprep.subr.mxu0 %v3566_v51 }
0x10ce   :  { %4159 = vmatpush3.msra.mxu0 %v3550_v52 }
0x1178   :  { %v3503_v8 = vpop.f32.mrf.mxu1 }
0x1179   :  { %v3504_v56 = vadd.f32 %v3503_v8, %v3412_v18 }
0x117a   :  { %v3505_v26 = vpop.f32.mrf.mxu1 }
0x117b   :  { %v3506_v16 = vadd.f32 %v3505_v26, %v3416_v60  ;;  %v3538_v9 = vmax.f32 %v3504_v56, 0.0 }
0x117c   :  { %v3509_v5 = vpop.f32.mrf.mxu1 }
0x117d   :  { %v3539_v36 = vmax.f32 %v3506_v16, 0.0  ;;  %v3510_v40 = vadd.f32 %v3509_v5, %v3412_v18 }
0x117e   :  { %v3511_v42 = vpop.f32.mrf.mxu1 }
0x117f   :  { %v3512_v24 = vadd.f32 %v3511_v42, %v3416_v60  ;;  %3653 = vmatprep.mubr.f32.mxu0 %v3539_v36  ;;  %v3540_v45 = vmax.f32 %v3510_v40, 0.0 }
0x1180   :  { %v3515_v4 = vpop.f32.mrf.mxu1  ;;  %3654 = vmatmul.mubr.f32.vlgmr.msra.gmra.mxu0 %v3538_v9 }
0x1181   :  { %v3541_v6 = vmax.f32 %v3512_v24, 0.0  ;;  %v3516_v61 = vadd.f32 %v3515_v4, %v3412_v18 }
0x1182   :  { %v3517_v12 = vpop.f32.mrf.mxu1 }
0x1183   :  { %v3518_v31 = vadd.f32 %v3517_v12, %v3416_v60  ;;  %3658 = vmatprep.mubr.f32.mxu0 %v3541_v6  ;;  %v3542_v62 = vmax.f32 %v3516_v61, 0.0 }
0x1184   :  { %v3521_v15 = vpop.f32.mrf.mxu1  ;;  %3659 = vmatmul.mubr.f32.gmra.mxu0 %v3540_v45 }
0x1185   :  { %v3543_v27 = vmax.f32 %v3518_v31, 0.0  ;;  %v3522_v47 = vadd.f32 %v3521_v15, %v3412_v18 }
0x1186   :  { %v3523_v25 = vpop.f32.mrf.mxu1 }
0x1187   :  { %v3524_v43 = vadd.f32 %v3523_v25, %v3416_v60  ;;  %3663 = vmatprep.mubr.f32.mxu0 %v3543_v27  ;;  %v3544_v59 = vmax.f32 %v3522_v47, 0.0 }
0x1188   :  { %v3527_v34 = vpop.f32.mrf.mxu1  ;;  %3664 = vmatmul.mubr.f32.gmra.mxu0 %v3542_v62 }
0x1189   :  { %v3545_v46 = vmax.f32 %v3524_v43, 0.0  ;;  %v3528_v7 = vadd.f32 %v3527_v34, %v3412_v18 }
0x118a   :  { %v3529_v23 = vpop.f32.mrf.mxu1 }
0x118b   :  { %v3530_v17 = vadd.f32 %v3529_v23, %v3416_v60  ;;  %3668 = vmatprep.mubr.f32.mxu0 %v3545_v46  ;;  %v3546_v13 = vmax.f32 %v3528_v7, 0.0 }
0x118c   :  { %v3533_v20 = vpop.f32.mrf.mxu1  ;;  %3669 = vmatmul.mubr.f32.gmra.mxu0 %v3544_v59 }
0x118d   :  { %v3547_v50 = vmax.f32 %v3530_v17, 0.0  ;;  %v3534_v21 = vadd.f32 %v3533_v20, %v3412_v18 }
0x118e   :  { %v3535_v2 = vpop.f32.mrf.mxu1 }
0x118f   :  { %v3536_v11 = vadd.f32 %v3535_v2, %v3416_v60  ;;  %3673 = vmatprep.mubr.f32.mxu0 %v3547_v50  ;;  %v3548_v32 = vmax.f32 %v3534_v21, 0.0 }
0x1190   :  { %3674 = vmatmul.mubr.f32.gmra.mxu0 %v3546_v13 }
0x1191   :  { %v3549_v49 = vmax.f32 %v3536_v11, 0.0 }
0x1193   :  { %3678 = vmatprep.mubr.f32.mxu0 %v3549_v49 }
0x1194   :  { %3679 = vmatmul.mubr.f32.gmra.mxu0 %v3548_v32 }
0x1240   :  { %v4160_v44 = vpop.f32.mrf.mxu0 }
0x1242   :  { %v4161_v33 = vpop.f32.mrf.mxu0 }
0x1243   :  { %v4162_v28 = vadd.f32 %v4161_v33, %v4160_v44 }
0x1244   :  { %v4163_v37 = vpop.f32.mrf.mxu0 }
0x1245   :  { %v3656_v54 = vadd.f32 %v4162_v28, %v3961_v48 }
0x1246   :  { %v4164_v41 = vpop.f32.mrf.mxu0 }
0x1247   :  { %v4165_v14 = vadd.f32 %v4164_v41, %v4163_v37  ;;  %v3684_v22 = vadd.f32 %v3656_v54, %v5967_v38 }
0x1248   :  { %v4166_v35 = vpop.f32.mrf.mxu0 }
0x1249   :  { %v3661_v10 = vadd.f32 %v4165_v14, %v3961_v48  ;;  %v3692_v0 = vsel %vm201_vm0, %v3684_v22, 0.0 }
0x124a   :  { %v4167_v1 = vpop.f32.mrf.mxu0  ;;  %3693 = vadd.xlane.f32.xlu0 %v3692_v0 }
0x124b   :  { %v4168_v51 = vadd.f32 %v4167_v1, %v4166_v35  ;;  %v3685_v52 = vadd.f32 %v3661_v10, %v5973_v3 }
0x124c   :  { %v4169_v63 = vpop.f32.mrf.mxu0 }
0x124d   :  { %v3666_v53 = vadd.f32 %v4168_v51, %v3961_v48  ;;  %v3695_v39 = vsel %vm201_vm0, %v3685_v52, 0.0 }
0x124e   :  { %v4170_v55 = vpop.f32.mrf.mxu0  ;;  %3696 = vadd.xlane.f32.xlu0 %v3695_v39 }
0x124f   :  { %v4171_v57 = vadd.f32 %v4170_v55, %v4169_v63  ;;  %v3686_v18 = vadd.f32 %v3666_v53, %v5979_v58  ;;  %v3962_v55 = vld [vmem:[%s6103_s19] ss:$0 sm:$0xff] }
0x1250   :  { %v4172_v60 = vpop.f32.mrf.mxu0 }
0x1251   :  { %v3671_v38 = vadd.f32 %v4171_v57, %v3961_v48  ;;  %v3698_v8 = vsel %vm201_vm0, %v3686_v18, 0.0 }
0x1252   :  { %v4173_v56 = vpop.f32.mrf.mxu0  ;;  %3699 = vadd.xlane.f32.xlu0 %v3698_v8 }
0x1253   :  { %v4174_v26 = vadd.f32 %v4173_v56, %v4172_v60  ;;  %v3687_v16 = vadd.f32 %v3671_v38, %v5985_v30  ;;  %v3963_v60 = vld [vmem:[%s6104_s20] ss:$0 sm:$0xff] }
0x1254   :  { %v4175_v5 = vpop.f32.mrf.mxu0 }
0x1255   :  { %v3676_v3 = vadd.f32 %v4174_v26, %v3961_v48  ;;  %v3701_v36 = vsel %vm201_vm0, %v3687_v16, 0.0 }
0x1256   :  { %v4176_v9 = vpop.f32.mrf.mxu0  ;;  %3702 = vadd.xlane.f32.xlu0 %v3701_v36 }
0x1257   :  { %v4177_v40 = vadd.f32 %v4176_v9, %v4175_v5  ;;  %v3688_v42 = vadd.f32 %v3676_v3, %v5991_v29 }
0x1259   :  { %v3681_v24 = vadd.f32 %v4177_v40, %v3961_v48  ;;  %v3704_v58 = vsel %vm201_vm0, %v3688_v42, 0.0 }
0x125a   :  { %3705 = vadd.xlane.f32.xlu0 %v3704_v58 }
0x125b   :  { %v3689_v4 = vadd.f32 %v3681_v24, %v5997_v19 }
0x125d   :  { %v3707_v6 = vsel %vm201_vm0, %v3689_v4, 0.0 }
0x125e   :  { %3708 = vadd.xlane.f32.xlu0 %v3707_v6 }
0x12d3   :  { %v3694_v45 = vpop.xlane.xlu0 %3693 }
0x12d4   :  { %v3710_v30 = vmul.f32 0.015625, %v3694_v45 }
0x12d6   :  { %v3716_v61 = vsub.f32 %v3684_v22, %v3710_v30 }
0x12d7   :  { %v3697_v12 = vpop.xlane.xlu0 %3696 }
0x12d8   :  { %v3711_v31 = vmul.f32 0.015625, %v3697_v12  ;;  %v3722_v15 = vmul.f32 %v3716_v61, %v3716_v61 }
0x12da   :  { %v3717_v27 = vsub.f32 %v3685_v52, %v3711_v31  ;;  %v3728_v62 = vsel %vm201_vm0, %v3722_v15, 0.0 }
0x12db   :  { %3729 = vadd.xlane.f32.xlu0 %v3728_v62  ;;  %v3700_v29 = vpop.xlane.xlu0 %3699 }
0x12dc   :  { %v3712_v47 = vmul.f32 0.015625, %v3700_v29  ;;  %v3723_v25 = vmul.f32 %v3717_v27, %v3717_v27 }
0x12de   :  { %v6044_v43 = vsub.f32 %v3686_v18, %v3712_v47  ;;  %v3731_v19 = vsel %vm201_vm0, %v3723_v25, 0.0 }
0x12df   :  { %3732 = vadd.xlane.f32.xlu0 %v3731_v19  ;;  %v3703_v34 = vpop.xlane.xlu0 %3702 }
0x12e0   :  { %v3713_v46 = vmul.f32 0.015625, %v3703_v34  ;;  %v3724_v59 = vmul.f32 %v6044_v43, %v6044_v43 }
0x12e2   :  { %v3719_v7 = vsub.f32 %v3687_v16, %v3713_v46  ;;  %v3734_v23 = vsel %vm201_vm0, %v3724_v59, 0.0 }
0x12e3   :  { %3735 = vadd.xlane.f32.xlu0 %v3734_v23  ;;  %v3706_v17 = vpop.xlane.xlu0 %3705 }
0x12e4   :  { %v3714_v20 = vmul.f32 0.015625, %v3706_v17  ;;  %v3725_v50 = vmul.f32 %v3719_v7, %v3719_v7 }
0x12e6   :  { %v3720_v13 = vsub.f32 %v3688_v42, %v3714_v20  ;;  %v3737_v21 = vsel %vm201_vm0, %v3725_v50, 0.0 }
0x12e7   :  { %3738 = vadd.xlane.f32.xlu1 %v3737_v21  ;;  %v3709_v2 = vpop.xlane.xlu0 %3708 }
0x12e8   :  { %v3715_v11 = vmul.f32 0.015625, %v3709_v2  ;;  %v3726_v49 = vmul.f32 %v3720_v13, %v3720_v13 }
0x12ea   :  { %v3721_v32 = vsub.f32 %v3689_v4, %v3715_v11  ;;  %v3740_v44 = vsel %vm201_vm0, %v3726_v49, 0.0 }
0x12eb   :  { %3741 = vadd.xlane.f32.xlu0 %v3740_v44 }
0x12ec   :  { %v3727_v48 = vmul.f32 %v3721_v32, %v3721_v32 }
0x12ee   :  { %v3743_v33 = vsel %vm201_vm0, %v3727_v48, 0.0 }
0x12ef   :  { %3744 = vadd.xlane.f32.xlu1 %v3743_v33 }
0x1364   :  { %v3730_v28 = vpop.xlane.xlu0 %3729 }
0x1365   :  { %v3746_v37 = vmul.f32 0.015625, %v3730_v28 }
0x1367   :  { %v3752_v54 = vadd.f32 1e-05, %v3746_v37 }
0x1368   :  { %v3733_v41 = vpop.xlane.xlu0 %3732 }
0x1369   :  { %4684 = vrsqrt.f32 %v3752_v54  ;;  %v3747_v14 = vmul.f32 0.015625, %v3733_v41 }
0x136b   :  { %v3753_v22 = vadd.f32 1e-05, %v3747_v14 }
0x136c   :  { %v3736_v35 = vpop.xlane.xlu0 %3735 }
0x136d   :  { %4686 = vrsqrt.f32 %v3753_v22  ;;  %v3748_v10 = vmul.f32 0.015625, %v3736_v35 }
0x136f   :  { %v3754_v0 = vadd.f32 1e-05, %v3748_v10 }
0x1370   :  { %v3739_v1 = vpop.xlane.xlu1 %3738 }
0x1371   :  { %4688 = vrsqrt.f32 %v3754_v0  ;;  %v3749_v51 = vmul.f32 0.015625, %v3739_v1 }
0x1373   :  { %v3755_v52 = vadd.f32 1e-05, %v3749_v51 }
0x1374   :  { %v3742_v63 = vpop.xlane.xlu0 %3741 }
0x1375   :  { %4690 = vrsqrt.f32 %v3755_v52  ;;  %v3750_v53 = vmul.f32 0.015625, %v3742_v63 }
0x1376   :  { %v4685_v39 = vpop.eup %4684 }
0x1377   :  { %v3764_v57 = vmul.f32 %v4685_v39, %v3716_v61  ;;  %v3756_v18 = vadd.f32 1e-05, %v3750_v53 }
0x1378   :  { %v3745_v38 = vpop.xlane.xlu1 %3744 }
0x1379   :  { %v3776_v8 = vmul.f32 %v3962_v55, %v3764_v57  ;;  %4692 = vrsqrt.f32 %v3756_v18  ;;  %v3751_v56 = vmul.f32 0.015625, %v3745_v38 }
0x137a   :  { %v4687_v26 = vpop.eup %4686 }
0x137b   :  { %v3788_v16 = vadd.f32 %v3963_v60, %v3776_v8  ;;  %v3765_v5 = vmul.f32 %v4687_v26, %v3717_v27  ;;  %v3757_v3 = vadd.f32 1e-05, %v3751_v56 }
0x137d   :  { %3794 = vst.msk [vmem:[%s6105_s21] sm:$0xff] %vm201_vm0, %v3788_v16  ;;  %v3777_v36 = vmul.f32 %v3962_v55, %v3765_v5  ;;  %4694 = vrsqrt.f32 %v3757_v3 }
0x137e   :  { %v4689_v9 = vpop.eup %4688 }
0x137f   :  { %v3789_v40 = vadd.f32 %v3963_v60, %v3777_v36  ;;  %v3766_v42 = vmul.f32 %v4689_v9, %v6044_v43 }
0x1381   :  { %3795 = vst.msk [vmem:[%s6105_s21 + $0x8] sm:$0xff] %vm201_vm0, %v3789_v40  ;;  %v3778_v24 = vmul.f32 %v3962_v55, %v3766_v42 }
0x1382   :  { %v4691_v58 = vpop.eup %4690 }
0x1383   :  { %v3790_v4 = vadd.f32 %v3963_v60, %v3778_v24  ;;  %v3767_v6 = vmul.f32 %v4691_v58, %v3719_v7 }
0x1385   :  { %3796 = vst.msk [vmem:[%s6105_s21 + $0x10] sm:$0xff] %vm201_vm0, %v3790_v4  ;;  %v3779_v45 = vmul.f32 %v3962_v55, %v3767_v6 }
0x1386   :  { %v4693_v30 = vpop.eup %4692 }
0x1387   :  { %v3791_v61 = vadd.f32 %v3963_v60, %v3779_v45  ;;  %v3768_v12 = vmul.f32 %v4693_v30, %v3720_v13 }
0x1389   :  { %3797 = vst.msk [vmem:[%s6105_s21 + $0x18] sm:$0xff] %vm201_vm0, %v3791_v61  ;;  %v3780_v31 = vmul.f32 %v3962_v55, %v3768_v12 }
0x138a   :  { %v4695_v15 = vpop.eup %4694 }
0x138b   :  { %v3792_v27 = vadd.f32 %v3963_v60, %v3780_v31  ;;  %v3769_v62 = vmul.f32 %v4695_v15, %v3721_v32 }
0x138d   :  { %3798 = vst.msk [vmem:[%s6105_s21 + $0x20] sm:$0xff] %vm201_vm0, %v3792_v27  ;;  %v3781_v29 = vmul.f32 %v3962_v55, %v3769_v62 }
0x138f   :  { %v3793_v47 = vadd.f32 %v3963_v60, %v3781_v29 }
0x1391   :  { %3799 = vst.msk [vmem:[%s6105_s21 + $0x28] sm:$0xff] %vm201_vm0, %v3793_v47 }

</bundles_post_ra>
